<compile_context>
chip_gen: v7x
topology: tpu7x:2x2x1
jax: 0.10.0
libtpu: 0.0.40
codegen_flags: <defaults>
</compile_context>

<pallas_src>
import functools

import numpy as np
import jax
import jax.numpy as jnp
from jax import lax
from jax.experimental import pallas as pl
from jax.experimental.pallas import tpu as pltpu

MXU_DTYPE = jnp.bfloat16     # conv MXU operand dtype (accumulation is f32)
WN_PER_CHANNEL = False       # ca_code Conv2dWNUB uses a global weight norm
_SMALL_HW = 128              # levels with HW < 128 use tiny selection matmuls


def _round_up8(n):
    return max(8, ((n + 7) // 8) * 8)


# -----------------------------------------------------------------------------
# Host-side precomputed linear operators
# -----------------------------------------------------------------------------
def _bilinear_matrix(s_in, s_out, align_corners):
    i = np.arange(s_out, dtype=np.float64)
    if align_corners:
        src = i * (s_in - 1) / (s_out - 1) if s_out > 1 else np.zeros_like(i)
    else:
        src = np.maximum((i + 0.5) * (s_in / s_out) - 0.5, 0.0)
    i0 = np.clip(np.floor(src).astype(np.int64), 0, s_in - 1)
    i1 = np.minimum(i0 + 1, s_in - 1)
    w1 = (src - i0).astype(np.float32)
    w0 = 1.0 - w1
    M = np.zeros((s_out, s_in), np.float32)
    M[np.arange(s_out), i0] += w0
    M[np.arange(s_out), i1] += w1
    return M


def _bilinear_resize_matrix_T(s_in, s_out, align_corners):
    """(C, HW_in) @ R_T -> (C, HW_out); R_T: (HW_in, HW_out), f32."""
    M = _bilinear_matrix(s_in, s_out, align_corners)
    return np.ascontiguousarray(np.kron(M, M).T)


def _nearest_indices(s_in, s_out):
    # PyTorch F.interpolate(mode='nearest'): src = floor(i * s_in / s_out)
    return np.floor(np.arange(s_out) * (s_in / s_out)).astype(np.int64)


def _shift_sel_matrices_T(size):
    """A[t] (HW, HW) s.t. (x @ A[t])[:, h*W+w] = x[:, (h+dy-1)*W + (w+dx-1)]
    (0 outside the image).  Only built for tiny levels (HW < 128)."""
    H = W = size
    HW = H * W
    A = np.zeros((9, HW, HW), np.float32)
    for dy in range(3):
        for dx in range(3):
            t = dy * 3 + dx
            for h in range(H):
                hh = h + dy - 1
                if not (0 <= hh < H):
                    continue
                for w in range(W):
                    ww = w + dx - 1
                    if 0 <= ww < W:
                        A[t, hh * W + ww, h * W + w] = 1.0
    return A


# -----------------------------------------------------------------------------
# Parameter construction (deterministic, synthetic) — Conv2dWNUB semantics
# -----------------------------------------------------------------------------
def _make_wnub_conv(key, cin, cout, size, slope, cin_pad=None):
    """Returns W_flat (cout, 9*cin_pad) and bias (cout, HW), channels-first."""
    kv, kb = jax.random.split(key)
    gain = np.sqrt(2.0 / (1.0 + slope ** 2))
    std = gain / np.sqrt(cin * 9)
    v = jax.random.normal(kv, (cout, cin, 3, 3), jnp.float32) * std
    g = jnp.ones((cout,), jnp.float32)
    b = jax.random.normal(kb, (cout, size, size), jnp.float32) * 0.01
    if WN_PER_CHANNEL:
        norm = jnp.sqrt(jnp.sum(v ** 2, axis=(1, 2, 3), keepdims=True))
    else:
        norm = jnp.sqrt(jnp.sum(v ** 2))
    w_eff = v * g[:, None, None, None] / norm                      # (co,ci,3,3)
    w = jnp.transpose(w_eff, (0, 2, 3, 1)).reshape(cout, 9, cin)   # (co,tap,ci)
    if cin_pad is not None and cin_pad > cin:
        w = jnp.pad(w, ((0, 0), (0, 0), (0, cin_pad - cin)))
    w_flat = w.reshape(cout, -1)                                   # (co, 9*ciP)
    b_flat = b.reshape(cout, size * size)                          # (co, HW)
    return w_flat, b_flat


def init_shadow_unet_pose_cond(key, *, uv_size, shadow_size, n_dims,
                               n_pose_dims, n_pose_enc_dims, lrelu_slope,
                               ao_mean):
    assert shadow_size & (shadow_size - 1) == 0, "shadow_size must be 2**k"
    sizes = [shadow_size // 2 ** i for i in range(4)]
    keys = jax.random.split(key, 16)
    cdt = MXU_DTYPE
    p = {}

    # internal bilinear resize operators (transposed for (C, HW) layout), f32
    p['DOWN_T'] = [jnp.asarray(_bilinear_resize_matrix_T(sizes[i], sizes[i + 1], True))
                   for i in range(3)]
    p['UP_T'] = [jnp.asarray(_bilinear_resize_matrix_T(sizes[3 - i], sizes[2 - i], True))
                 for i in range(3)]

    # final separable bilinear upsample (align_corners=False) + flat->2D ops
    H0 = W0 = sizes[0]
    Mh = _bilinear_matrix(shadow_size, uv_size, False)             # (uv, H0)
    p['MH'] = jnp.asarray(Mh)
    p['MWT'] = jnp.asarray(np.ascontiguousarray(Mh.T))             # (W0, uv)
    p['R'] = jnp.asarray(np.kron(np.eye(H0, dtype=np.float32),
                                 np.ones((1, W0), np.float32)))    # (H0, HW0)
    p['Q'] = jnp.asarray(np.tile(np.eye(W0, dtype=np.float32), (H0, 1)))  # (HW0, W0)

    # ao_mean nearest-resized to shadow_size, channels-first (8, HW0), row 0 real
    idx = _nearest_indices(uv_size, shadow_size)
    mean2d = jnp.asarray(ao_mean, jnp.float32).reshape(uv_size, uv_size)
    mean_flat = mean2d[idx][:, idx].reshape(1, shadow_size * shadow_size)
    p['MEAN'] = jnp.pad(mean_flat, ((0, 7), (0, 0)))               # (8, HW0)

    # encoder convs (enc0 input channel padded to 8 for aligned sublane concat)
    n_enc = [(1, n_dims), (n_dims, n_dims), (n_dims, n_dims), (n_dims, n_dims)]
    enc_w, enc_b = [], []
    for i, s in enumerate(sizes):
        cin, cout = n_enc[i]
        w, b = _make_wnub_conv(keys[i], cin, cout, s, lrelu_slope,
                               cin_pad=8 if cin < 8 else None)
        enc_w.append(w.astype(cdt))
        enc_b.append(b)
    p['ENC_W'], p['ENC_B'] = enc_w, enc_b

    # pose conv block (Conv2dWNUB n_pose_dims -> n_pose_enc_dims @ sizes[3])
    pose_pad = _round_up8(n_pose_dims)
    wp, bp = _make_wnub_conv(keys[4], n_pose_dims, n_pose_enc_dims, sizes[3],
                             lrelu_slope, cin_pad=pose_pad)
    p['POSE_W'], p['POSE_B'] = wp.astype(cdt), bp

    # decoder convs; the channel concat [x, skip] uses ONE fused weight per conv
    n_dec = [(n_dims + n_pose_enc_dims, n_dims), (n_dims * 2, n_dims),
             (n_dims * 2, n_dims), (n_dims * 2, n_dims)]
    dec_w, dec_b = [], []
    for i in range(4):
        s = sizes[3 - i]
        cin, cout = n_dec[i]
        w, b = _make_wnub_conv(keys[5 + i], cin, cout, s, lrelu_slope)
        dec_w.append(w.astype(cdt))
        dec_b.append(b)
    p['DEC_W'], p['DEC_B'] = dec_w, dec_b

    # shadow_pred (n_dims -> 1), weights_initializer(1.0)
    wq, bq = _make_wnub_conv(keys[9], n_dims, 1, sizes[0], 1.0)
    p['PRED_W'], p['PRED_B'] = wq.astype(cdt), bq

    # tiny shift/mask selection matrices only for levels with HW < 128
    p['S_SMALL'] = {i: jnp.asarray(_shift_sel_matrices_T(sizes[i]))
                    for i in range(4) if sizes[i] * sizes[i] < _SMALL_HW}
    return p


# -----------------------------------------------------------------------------
# Fused Pallas kernel
# -----------------------------------------------------------------------------
def _leaky_relu(x, slope):
    return jnp.where(x >= 0.0, x, slope * x)


def _tap_masks(H, W, HW):
    """Per-tap validity masks (1, HW) bool for a 3x3 same conv (None = all ok)."""
    idx = lax.broadcasted_iota(jnp.int32, (1, HW), 1)
    col = idx & (W - 1)                       # W is a power of two
    row_ok = {0: idx >= W, 1: None, 2: idx < (H - 1) * W}
    col_ok = {0: col >= 1, 1: None, 2: col <= W - 2}
    masks = []
    for dy in range(3):
        for dx in range(3):
            r, c = row_ok[dy], col_ok[dx]
            if r is None and c is None:
                masks.append(None)
            elif r is None:
                masks.append(c)
            elif c is None:
                masks.append(r)
            else:
                masks.append(jnp.logical_and(r, c))
    return masks


def _conv3x3(x, w_ref, b_ref, W, HW, masks, s_ref):
    """x: (Cin, HW) f32; w_ref: (Cout, 9*Cin) bf16; b_ref: (Cout, HW) f32.

    3x3 'same' conv with untied spatial bias.  Each tap is either a lane roll
    (XLU) + boundary mask (HW >= 128), or a tiny (HW, HW) selection matmul
    (HW < 128).  The 9 taps are stacked along sublanes (aligned im2col) and
    contracted with ONE MXU matmul; returns f32 (Cout, HW)."""
    taps = []
    for dy in range(3):
        for dx in range(3):
            s = (dy - 1) * W + (dx - 1)
            if s == 0:
                t = x
            elif s_ref is None:
                t = pltpu.roll(x, (-s) % HW, axis=1)
                m = masks[dy * 3 + dx]
                if m is not None:
                    t = jnp.where(m, t, 0.0)
            else:
                t = jnp.dot(x, s_ref[dy * 3 + dx],
                            preferred_element_type=jnp.float32)
            taps.append(t)
    im2col = jnp.concatenate(taps, axis=0).astype(MXU_DTYPE)      # (9*Cin, HW)
    out = jnp.dot(w_ref[...], im2col, preferred_element_type=jnp.float32)
    return out + b_ref[...]


def _fused_forward_kernel(*refs, sizes, small_levels, lrelu_slope, beta):
    (x_ref, pose_ref, MEAN,
     D0, D1, D2, U0, U1, U2,
     R, Q, MH, MWT,
     We0, Be0, We1, Be1, We2, Be2, We3, Be3,
     Wp, Bp,
     Wd0, Bd0, Wd1, Bd1, Wd2, Bd2, Wd3, Bd3,
     Wq, Bq) = refs[:33]
    o_ref = refs[-1]
    s_refs = dict(zip(small_levels, refs[33:-1]))

    ENC = ((We0, Be0), (We1, Be1), (We2, Be2), (We3, Be3))
    DEC = ((Wd0, Bd0), (Wd1, Bd1), (Wd2, Bd2), (Wd3, Bd3))
    DOWN = (D0, D1, D2)
    UP = (U0, U1, U2)

    hw = [s * s for s in sizes]
    # per-level tap context (hoisted: iota/masks built once per level)
    ctx = []
    for i in range(4):
        if i in s_refs:
            ctx.append((sizes[i], hw[i], None, s_refs[i]))
        else:
            ctx.append((sizes[i], hw[i], _tap_masks(sizes[i], sizes[i], hw[i]),
                        None))

    def conv(x, w_ref, b_ref, lvl):
        W, HW, masks, s_ref = ctx[lvl]
        return _conv3x3(x, w_ref, b_ref, W, HW, masks, s_ref)

    # x = nearest(ao_map) - nearest(ao_mean), channels-first (8, HW0)
    x = x_ref[...] - MEAN[...]

    # ---- encoder ----
    enc_acts = []
    for i in range(4):
        w, b = ENC[i]
        a = _leaky_relu(conv(x, w, b, i), lrelu_slope)
        enc_acts.append(a)
        if i < 3:
            # bilinear downsample (align_corners=True) as (C,HW)@(HW,HW/4), f32
            x = jnp.dot(a, DOWN[i][...], preferred_element_type=jnp.float32)

    # ---- pose branch: tile2d(pose_vec) -> Conv2dWNUB (no activation) ----
    pose_plane = jnp.broadcast_to(pose_ref[...],
                                  (pose_ref.shape[0], hw[3]))      # (P, HW3)
    pose_enc = conv(pose_plane, Wp, Bp, 3)

    # ---- decoder (channel concat along sublanes, one fused weight) ----
    y = _leaky_relu(
        conv(jnp.concatenate([enc_acts[3], pose_enc], axis=0), *DEC[0], 3),
        lrelu_slope)
    for i in range(1, 4):
        y_up = jnp.dot(y, UP[i - 1][...], preferred_element_type=jnp.float32)
        y = _leaky_relu(
            conv(jnp.concatenate([y_up, enc_acts[3 - i]], axis=0),
                 *DEC[i], 3 - i),
            lrelu_slope)

    # ---- shadow_pred + sigmoid(. + beta): lane-dense (1, HW0) row ----
    low = jax.nn.sigmoid(conv(y, Wq, Bq, 0) + beta)

    # ---- final bilinear upsample to (uv, uv), separable & lane-dense ----
    # L2d[h, w] = low[0, h*W0 + w] realized as (R * low) @ Q (no value reshape)
    l2d = jnp.dot(R[...] * low, Q[...], preferred_element_type=jnp.float32)
    t = jnp.dot(MH[...], l2d, preferred_element_type=jnp.float32)
    o_ref[...] = jnp.dot(t, MWT[...], preferred_element_type=jnp.float32)


# -----------------------------------------------------------------------------
# Forward wrapper (matches ShadowUNet_PoseCond.forward)
# -----------------------------------------------------------------------------
def shadow_unet_pose_cond_forward(params, ao_map, pose_vec, *, uv_size,
                                  shadow_size, lrelu_slope=0.2, beta=1.0):
    assert shadow_size & (shadow_size - 1) == 0, "shadow_size must be 2**k"
    N = ao_map.shape[0]
    sizes = [shadow_size // 2 ** i for i in range(4)]
    hw0 = shadow_size * shadow_size
    n_pose = pose_vec.shape[-1]
    pose_pad = _round_up8(n_pose)
    small_levels = tuple(i for i in range(4) if sizes[i] * sizes[i] < _SMALL_HW)

    # nearest-resize of the 1-channel ao input (pure selection; the ao_mean
    # subtraction commutes with it and happens inside the kernel); channels
    # first (8, HW0) with 7 zero pad rows so sublane concats stay 8-aligned.
    idx = _nearest_indices(uv_size, shadow_size)
    ao_s = ao_map[:, 0, idx][:, :, idx].reshape(N, 1, hw0).astype(jnp.float32)
    x8 = jnp.pad(ao_s, ((0, 0), (0, 7), (0, 0)))                   # (N, 8, HW0)

    # pose_vec as a tiny (N, pose_pad, 1) column; tiling happens in-kernel
    pose8 = jnp.pad(pose_vec.astype(jnp.float32),
                    ((0, 0), (0, pose_pad - n_pose)))[:, :, None]  # (N, P, 1)

    p = params
    const_inputs = (
        [p['MEAN']]
        + list(p['DOWN_T']) + list(p['UP_T'])
        + [p['R'], p['Q'], p['MH'], p['MWT']]
        + [a for pair in zip(p['ENC_W'], p['ENC_B']) for a in pair]
        + [p['POSE_W'], p['POSE_B']]
        + [a for pair in zip(p['DEC_W'], p['DEC_B']) for a in pair]
        + [p['PRED_W'], p['PRED_B']]
        + [p['S_SMALL'][i] for i in small_levels]
    )

    def _const_spec(arr):
        nd = arr.ndim
        return pl.BlockSpec(arr.shape, lambda n, _nd=nd: (0,) * _nd)

    in_specs = [
        pl.BlockSpec((None, 8, hw0), lambda n: (n, 0, 0)),
        pl.BlockSpec((None, pose_pad, 1), lambda n: (n, 0, 0)),
    ] + [_const_spec(a) for a in const_inputs]

    kernel = functools.partial(_fused_forward_kernel, sizes=tuple(sizes),
                               small_levels=small_levels,
                               lrelu_slope=lrelu_slope, beta=beta)

    shadow2d = pl.pallas_call(
        kernel,
        out_shape=jax.ShapeDtypeStruct((N, uv_size, uv_size), jnp.float32),
        grid=(N,),
        in_specs=in_specs,
        out_specs=pl.BlockSpec((None, uv_size, uv_size), lambda n: (n, 0, 0)),
        compiler_params=pltpu.CompilerParams(
            dimension_semantics=("parallel",),
            vmem_limit_bytes=32 * 1024 * 1024),
    )(x8, pose8, *const_inputs)

    shadow_map = shadow2d[:, None, :, :]
    return {'shadow_map': shadow_map, 'ao_map': ao_map}


if __name__ == "__main__":
    uv_size, shadow_size = 32, 16
    n_dims, n_pose_dims, n_pose_enc_dims = 32, 6, 32
    N = 2
    lrelu_slope, beta = 0.2, 1.0

    key = jax.random.PRNGKey(0)
    k_param, k_mean, k_ao, k_pose = jax.random.split(key, 4)

    ao_mean = jax.random.uniform(k_mean, (1, uv_size, uv_size), jnp.float32)
    params = init_shadow_unet_pose_cond(
        k_param, uv_size=uv_size, shadow_size=shadow_size, n_dims=n_dims,
        n_pose_dims=n_pose_dims, n_pose_enc_dims=n_pose_enc_dims,
        lrelu_slope=lrelu_slope, ao_mean=ao_mean)

    ao_map = jax.random.uniform(k_ao, (N, 1, uv_size, uv_size), jnp.float32)
    pose_vec = jax.random.normal(k_pose, (N, n_pose_dims), jnp.float32)

    fwd = jax.jit(functools.partial(
        shadow_unet_pose_cond_forward, uv_size=uv_size,
        shadow_size=shadow_size, lrelu_slope=lrelu_slope, beta=beta))
    out = fwd(params, ao_map, pose_vec)

    jax.block_until_ready(out['shadow_map'])
    jax.block_until_ready(out['ao_map'])

    assert out['shadow_map'].shape == (N, 1, uv_size, uv_size)
    assert out['ao_map'].shape == (N, 1, uv_size, uv_size)
    assert bool(jnp.all(jnp.isfinite(out['shadow_map'])))
    assert bool(jnp.all((out['shadow_map'] >= 0.0) & (out['shadow_map'] <= 1.0)))
    print("KERNEL_OK")
</pallas_src>

<mosaic_0001>
module attributes {stable_mosaic.version = 11 : i64} {
  func.func @_fused_forward_kernel(%arg0: i32, %arg1: memref<1x8x256xf32, #tpu.memory_space<vmem>>, %arg2: memref<1x8x1xf32, #tpu.memory_space<vmem>>, %arg3: memref<8x256xf32, #tpu.memory_space<vmem>>, %arg4: memref<256x64xf32, #tpu.memory_space<vmem>>, %arg5: memref<64x16xf32, #tpu.memory_space<vmem>>, %arg6: memref<16x4xf32, #tpu.memory_space<vmem>>, %arg7: memref<4x16xf32, #tpu.memory_space<vmem>>, %arg8: memref<16x64xf32, #tpu.memory_space<vmem>>, %arg9: memref<64x256xf32, #tpu.memory_space<vmem>>, %arg10: memref<16x256xf32, #tpu.memory_space<vmem>>, %arg11: memref<256x16xf32, #tpu.memory_space<vmem>>, %arg12: memref<32x16xf32, #tpu.memory_space<vmem>>, %arg13: memref<16x32xf32, #tpu.memory_space<vmem>>, %arg14: memref<32x72xbf16, #tpu.memory_space<vmem>>, %arg15: memref<32x256xf32, #tpu.memory_space<vmem>>, %arg16: memref<32x288xbf16, #tpu.memory_space<vmem>>, %arg17: memref<32x64xf32, #tpu.memory_space<vmem>>, %arg18: memref<32x288xbf16, #tpu.memory_space<vmem>>, %arg19: memref<32x16xf32, #tpu.memory_space<vmem>>, %arg20: memref<32x288xbf16, #tpu.memory_space<vmem>>, %arg21: memref<32x4xf32, #tpu.memory_space<vmem>>, %arg22: memref<32x72xbf16, #tpu.memory_space<vmem>>, %arg23: memref<32x4xf32, #tpu.memory_space<vmem>>, %arg24: memref<32x576xbf16, #tpu.memory_space<vmem>>, %arg25: memref<32x4xf32, #tpu.memory_space<vmem>>, %arg26: memref<32x576xbf16, #tpu.memory_space<vmem>>, %arg27: memref<32x16xf32, #tpu.memory_space<vmem>>, %arg28: memref<32x576xbf16, #tpu.memory_space<vmem>>, %arg29: memref<32x64xf32, #tpu.memory_space<vmem>>, %arg30: memref<32x576xbf16, #tpu.memory_space<vmem>>, %arg31: memref<32x256xf32, #tpu.memory_space<vmem>>, %arg32: memref<1x288xbf16, #tpu.memory_space<vmem>>, %arg33: memref<1x256xf32, #tpu.memory_space<vmem>>, %arg34: memref<9x64x64xf32, #tpu.memory_space<vmem>>, %arg35: memref<9x16x16xf32, #tpu.memory_space<vmem>>, %arg36: memref<9x4x4xf32, #tpu.memory_space<vmem>>, %arg37: memref<1x32x32xf32, #tpu.memory_space<vmem>>) attributes {dimension_semantics = [#tpu.dimension_semantics<parallel>], iteration_bounds = array<i64: 2>, scalar_prefetch = 0 : i64, scratch_operands = 0 : i64, tpu.core_type = #tpu.core_type<tc>, window_params = [{transform_indices = @transform_0, window_bounds = array<i64: 1, 8, 256>}, {transform_indices = @transform_1, window_bounds = array<i64: 1, 8, 1>}, {pipeline_mode = #tpu.pipeline_mode<synchronous>, transform_indices = @transform_2, window_bounds = array<i64: 8, 256>}, {pipeline_mode = #tpu.pipeline_mode<synchronous>, transform_indices = @transform_3, window_bounds = array<i64: 256, 64>}, {pipeline_mode = #tpu.pipeline_mode<synchronous>, transform_indices = @transform_4, window_bounds = array<i64: 64, 16>}, {pipeline_mode = #tpu.pipeline_mode<synchronous>, transform_indices = @transform_5, window_bounds = array<i64: 16, 4>}, {pipeline_mode = #tpu.pipeline_mode<synchronous>, transform_indices = @transform_6, window_bounds = array<i64: 4, 16>}, {pipeline_mode = #tpu.pipeline_mode<synchronous>, transform_indices = @transform_7, window_bounds = array<i64: 16, 64>}, {pipeline_mode = #tpu.pipeline_mode<synchronous>, transform_indices = @transform_8, window_bounds = array<i64: 64, 256>}, {pipeline_mode = #tpu.pipeline_mode<synchronous>, transform_indices = @transform_9, window_bounds = array<i64: 16, 256>}, {pipeline_mode = #tpu.pipeline_mode<synchronous>, transform_indices = @transform_10, window_bounds = array<i64: 256, 16>}, {pipeline_mode = #tpu.pipeline_mode<synchronous>, transform_indices = @transform_11, window_bounds = array<i64: 32, 16>}, {pipeline_mode = #tpu.pipeline_mode<synchronous>, transform_indices = @transform_12, window_bounds = array<i64: 16, 32>}, {pipeline_mode = #tpu.pipeline_mode<synchronous>, transform_indices = @transform_13, window_bounds = array<i64: 32, 72>}, {pipeline_mode = #tpu.pipeline_mode<synchronous>, transform_indices = @transform_14, window_bounds = array<i64: 32, 256>}, {pipeline_mode = #tpu.pipeline_mode<synchronous>, transform_indices = @transform_15, window_bounds = array<i64: 32, 288>}, {pipeline_mode = #tpu.pipeline_mode<synchronous>, transform_indices = @transform_16, window_bounds = array<i64: 32, 64>}, {pipeline_mode = #tpu.pipeline_mode<synchronous>, transform_indices = @transform_17, window_bounds = array<i64: 32, 288>}, {pipeline_mode = #tpu.pipeline_mode<synchronous>, transform_indices = @transform_18, window_bounds = array<i64: 32, 16>}, {pipeline_mode = #tpu.pipeline_mode<synchronous>, transform_indices = @transform_19, window_bounds = array<i64: 32, 288>}, {pipeline_mode = #tpu.pipeline_mode<synchronous>, transform_indices = @transform_20, window_bounds = array<i64: 32, 4>}, {pipeline_mode = #tpu.pipeline_mode<synchronous>, transform_indices = @transform_21, window_bounds = array<i64: 32, 72>}, {pipeline_mode = #tpu.pipeline_mode<synchronous>, transform_indices = @transform_22, window_bounds = array<i64: 32, 4>}, {pipeline_mode = #tpu.pipeline_mode<synchronous>, transform_indices = @transform_23, window_bounds = array<i64: 32, 576>}, {pipeline_mode = #tpu.pipeline_mode<synchronous>, transform_indices = @transform_24, window_bounds = array<i64: 32, 4>}, {pipeline_mode = #tpu.pipeline_mode<synchronous>, transform_indices = @transform_25, window_bounds = array<i64: 32, 576>}, {pipeline_mode = #tpu.pipeline_mode<synchronous>, transform_indices = @transform_26, window_bounds = array<i64: 32, 16>}, {pipeline_mode = #tpu.pipeline_mode<synchronous>, transform_indices = @transform_27, window_bounds = array<i64: 32, 576>}, {pipeline_mode = #tpu.pipeline_mode<synchronous>, transform_indices = @transform_28, window_bounds = array<i64: 32, 64>}, {pipeline_mode = #tpu.pipeline_mode<synchronous>, transform_indices = @transform_29, window_bounds = array<i64: 32, 576>}, {pipeline_mode = #tpu.pipeline_mode<synchronous>, transform_indices = @transform_30, window_bounds = array<i64: 32, 256>}, {pipeline_mode = #tpu.pipeline_mode<synchronous>, transform_indices = @transform_31, window_bounds = array<i64: 1, 288>}, {pipeline_mode = #tpu.pipeline_mode<synchronous>, transform_indices = @transform_32, window_bounds = array<i64: 1, 256>}, {pipeline_mode = #tpu.pipeline_mode<synchronous>, transform_indices = @transform_33, window_bounds = array<i64: 9, 64, 64>}, {pipeline_mode = #tpu.pipeline_mode<synchronous>, transform_indices = @transform_34, window_bounds = array<i64: 9, 16, 16>}, {pipeline_mode = #tpu.pipeline_mode<synchronous>, transform_indices = @transform_35, window_bounds = array<i64: 9, 4, 4>}, {transform_indices = @transform_36, window_bounds = array<i64: 1, 32, 32>}]} {
    %0 = tpu.iota {dimensions = array<i32: 1>} : vector<1x256xi32>
    %c15_i32 = arith.constant 15 : i32
    %1 = vector.broadcast %c15_i32 : i32 to vector<1x256xi32>
    %2 = arith.andi %0, %1 : vector<1x256xi32>
    %c16_i32 = arith.constant 16 : i32
    %3 = vector.broadcast %c16_i32 : i32 to vector<1x256xi32>
    %4 = arith.cmpi sge, %0, %3 : vector<1x256xi32>
    %c240_i32 = arith.constant 240 : i32
    %5 = vector.broadcast %c240_i32 : i32 to vector<1x256xi32>
    %6 = arith.cmpi slt, %0, %5 : vector<1x256xi32>
    %c1_i32 = arith.constant 1 : i32
    %7 = vector.broadcast %c1_i32 : i32 to vector<1x256xi32>
    %8 = arith.cmpi sge, %2, %7 : vector<1x256xi32>
    %c14_i32 = arith.constant 14 : i32
    %9 = vector.broadcast %c14_i32 : i32 to vector<1x256xi32>
    %10 = arith.cmpi sle, %2, %9 : vector<1x256xi32>
    %11 = arith.andi %4, %8 : vector<1x256xi1>
    %12 = arith.andi %4, %10 : vector<1x256xi1>
    %13 = arith.andi %6, %8 : vector<1x256xi1>
    %14 = arith.andi %6, %10 : vector<1x256xi1>
    %c0 = arith.constant 0 : index
    %c0_0 = arith.constant 0 : index
    %c0_1 = arith.constant 0 : index
    %15 = vector.load %arg1[%c0, %c0_0, %c0_1] : memref<1x8x256xf32, #tpu.memory_space<vmem>>, vector<1x8x256xf32>
    %16 = vector.shape_cast %15 : vector<1x8x256xf32> to vector<8x256xf32>
    %c0_2 = arith.constant 0 : index
    %c0_3 = arith.constant 0 : index
    %17 = vector.load %arg3[%c0_2, %c0_3] : memref<8x256xf32, #tpu.memory_space<vmem>>, vector<8x256xf32>
    %18 = arith.subf %16, %17 : vector<8x256xf32>
    %c17_i32 = arith.constant 17 : i32
    %19 = tpu.dynamic_rotate %18 by %c17_i32 dim 1 : vector<8x256xf32>, i32 -> vector<8x256xf32>
    %cst = arith.constant 0.000000e+00 : f32
    %20 = vector.shape_cast %11 : vector<1x256xi1> to vector<1x256xi1>
    %21 = vector.broadcast %20 : vector<1x256xi1> to vector<8x256xi1>
    %22 = vector.broadcast %cst : f32 to vector<8x256xf32>
    %23 = arith.select %21, %19, %22 : vector<8x256xi1>, vector<8x256xf32>
    %c16_i32_4 = arith.constant 16 : i32
    %24 = tpu.dynamic_rotate %18 by %c16_i32_4 dim 1 : vector<8x256xf32>, i32 -> vector<8x256xf32>
    %cst_5 = arith.constant 0.000000e+00 : f32
    %25 = vector.shape_cast %4 : vector<1x256xi1> to vector<1x256xi1>
    %26 = vector.broadcast %25 : vector<1x256xi1> to vector<8x256xi1>
    %27 = vector.broadcast %cst_5 : f32 to vector<8x256xf32>
    %28 = arith.select %26, %24, %27 : vector<8x256xi1>, vector<8x256xf32>
    %c15_i32_6 = arith.constant 15 : i32
    %29 = tpu.dynamic_rotate %18 by %c15_i32_6 dim 1 : vector<8x256xf32>, i32 -> vector<8x256xf32>
    %cst_7 = arith.constant 0.000000e+00 : f32
    %30 = vector.shape_cast %12 : vector<1x256xi1> to vector<1x256xi1>
    %31 = vector.broadcast %30 : vector<1x256xi1> to vector<8x256xi1>
    %32 = vector.broadcast %cst_7 : f32 to vector<8x256xf32>
    %33 = arith.select %31, %29, %32 : vector<8x256xi1>, vector<8x256xf32>
    %c1_i32_8 = arith.constant 1 : i32
    %34 = tpu.dynamic_rotate %18 by %c1_i32_8 dim 1 : vector<8x256xf32>, i32 -> vector<8x256xf32>
    %cst_9 = arith.constant 0.000000e+00 : f32
    %35 = vector.shape_cast %8 : vector<1x256xi1> to vector<1x256xi1>
    %36 = vector.broadcast %35 : vector<1x256xi1> to vector<8x256xi1>
    %37 = vector.broadcast %cst_9 : f32 to vector<8x256xf32>
    %38 = arith.select %36, %34, %37 : vector<8x256xi1>, vector<8x256xf32>
    %c255_i32 = arith.constant 255 : i32
    %39 = tpu.dynamic_rotate %18 by %c255_i32 dim 1 : vector<8x256xf32>, i32 -> vector<8x256xf32>
    %cst_10 = arith.constant 0.000000e+00 : f32
    %40 = vector.shape_cast %10 : vector<1x256xi1> to vector<1x256xi1>
    %41 = vector.broadcast %40 : vector<1x256xi1> to vector<8x256xi1>
    %42 = vector.broadcast %cst_10 : f32 to vector<8x256xf32>
    %43 = arith.select %41, %39, %42 : vector<8x256xi1>, vector<8x256xf32>
    %c241_i32 = arith.constant 241 : i32
    %44 = tpu.dynamic_rotate %18 by %c241_i32 dim 1 : vector<8x256xf32>, i32 -> vector<8x256xf32>
    %cst_11 = arith.constant 0.000000e+00 : f32
    %45 = vector.shape_cast %13 : vector<1x256xi1> to vector<1x256xi1>
    %46 = vector.broadcast %45 : vector<1x256xi1> to vector<8x256xi1>
    %47 = vector.broadcast %cst_11 : f32 to vector<8x256xf32>
    %48 = arith.select %46, %44, %47 : vector<8x256xi1>, vector<8x256xf32>
    %c240_i32_12 = arith.constant 240 : i32
    %49 = tpu.dynamic_rotate %18 by %c240_i32_12 dim 1 : vector<8x256xf32>, i32 -> vector<8x256xf32>
    %cst_13 = arith.constant 0.000000e+00 : f32
    %50 = vector.shape_cast %6 : vector<1x256xi1> to vector<1x256xi1>
    %51 = vector.broadcast %50 : vector<1x256xi1> to vector<8x256xi1>
    %52 = vector.broadcast %cst_13 : f32 to vector<8x256xf32>
    %53 = arith.select %51, %49, %52 : vector<8x256xi1>, vector<8x256xf32>
    %c239_i32 = arith.constant 239 : i32
    %54 = tpu.dynamic_rotate %18 by %c239_i32 dim 1 : vector<8x256xf32>, i32 -> vector<8x256xf32>
    %cst_14 = arith.constant 0.000000e+00 : f32
    %55 = vector.shape_cast %14 : vector<1x256xi1> to vector<1x256xi1>
    %56 = vector.broadcast %55 : vector<1x256xi1> to vector<8x256xi1>
    %57 = vector.broadcast %cst_14 : f32 to vector<8x256xf32>
    %58 = arith.select %56, %54, %57 : vector<8x256xi1>, vector<8x256xf32>
    %59 = tpu.concatenate %23, %28, %33, %38, %18, %43, %48, %53, %58 in 0 : vector<8x256xf32>, vector<8x256xf32>, vector<8x256xf32>, vector<8x256xf32>, vector<8x256xf32>, vector<8x256xf32>, vector<8x256xf32>, vector<8x256xf32>, vector<8x256xf32> -> vector<72x256xf32>
    %60 = arith.truncf %59 : vector<72x256xf32> to vector<72x256xbf16>
    %c0_15 = arith.constant 0 : index
    %c0_16 = arith.constant 0 : index
    %61 = vector.load %arg14[%c0_15, %c0_16] : memref<32x72xbf16, #tpu.memory_space<vmem>>, vector<32x72xbf16>
    %cst_17 = arith.constant dense<0.000000e+00> : vector<32x256xf32>
    %62 = tpu.matmul %61, %60, %cst_17 {dimension_numbers = #tpu.dot_dimension_numbers<[1], [0], [0], [1], [0, 0, 1, 1], [], []>} : vector<32x72xbf16>, vector<72x256xbf16>, vector<32x256xf32> -> vector<32x256xf32>
    %c0_18 = arith.constant 0 : index
    %c0_19 = arith.constant 0 : index
    %63 = vector.load %arg15[%c0_18, %c0_19] : memref<32x256xf32, #tpu.memory_space<vmem>>, vector<32x256xf32>
    %64 = arith.addf %62, %63 : vector<32x256xf32>
    %cst_20 = arith.constant 0.000000e+00 : f32
    %65 = vector.broadcast %cst_20 : f32 to vector<32x256xf32>
    %66 = arith.cmpf oge, %64, %65 : vector<32x256xf32>
    %cst_21 = arith.constant 2.000000e-01 : f32
    %67 = vector.broadcast %cst_21 : f32 to vector<32x256xf32>
    %68 = arith.mulf %67, %64 : vector<32x256xf32>
    %69 = arith.select %66, %64, %68 : vector<32x256xi1>, vector<32x256xf32>
    %c0_22 = arith.constant 0 : index
    %c0_23 = arith.constant 0 : index
    %70 = vector.load %arg4[%c0_22, %c0_23] : memref<256x64xf32, #tpu.memory_space<vmem>>, vector<256x64xf32>
    %cst_24 = arith.constant dense<0.000000e+00> : vector<32x64xf32>
    %71 = tpu.matmul %69, %70, %cst_24 {dimension_numbers = #tpu.dot_dimension_numbers<[1], [0], [0], [1], [0, 0, 1, 1], [], []>} : vector<32x256xf32>, vector<256x64xf32>, vector<32x64xf32> -> vector<32x64xf32>
    %c0_25 = arith.constant 0 : index
    %c0_26 = arith.constant 0 : index
    %c0_27 = arith.constant 0 : index
    %72 = vector.load %arg34[%c0_25, %c0_26, %c0_27] : memref<9x64x64xf32, #tpu.memory_space<vmem>>, vector<1x64x64xf32>
    %73 = vector.shape_cast %72 : vector<1x64x64xf32> to vector<64x64xf32>
    %cst_28 = arith.constant dense<0.000000e+00> : vector<32x64xf32>
    %74 = tpu.matmul %71, %73, %cst_28 {dimension_numbers = #tpu.dot_dimension_numbers<[1], [0], [0], [1], [0, 0, 1, 1], [], []>} : vector<32x64xf32>, vector<64x64xf32>, vector<32x64xf32> -> vector<32x64xf32>
    %c1 = arith.constant 1 : index
    %c0_29 = arith.constant 0 : index
    %c0_30 = arith.constant 0 : index
    %75 = vector.load %arg34[%c1, %c0_29, %c0_30] : memref<9x64x64xf32, #tpu.memory_space<vmem>>, vector<1x64x64xf32>
    %76 = vector.shape_cast %75 : vector<1x64x64xf32> to vector<64x64xf32>
    %cst_31 = arith.constant dense<0.000000e+00> : vector<32x64xf32>
    %77 = tpu.matmul %71, %76, %cst_31 {dimension_numbers = #tpu.dot_dimension_numbers<[1], [0], [0], [1], [0, 0, 1, 1], [], []>} : vector<32x64xf32>, vector<64x64xf32>, vector<32x64xf32> -> vector<32x64xf32>
    %c2 = arith.constant 2 : index
    %c0_32 = arith.constant 0 : index
    %c0_33 = arith.constant 0 : index
    %78 = vector.load %arg34[%c2, %c0_32, %c0_33] : memref<9x64x64xf32, #tpu.memory_space<vmem>>, vector<1x64x64xf32>
    %79 = vector.shape_cast %78 : vector<1x64x64xf32> to vector<64x64xf32>
    %cst_34 = arith.constant dense<0.000000e+00> : vector<32x64xf32>
    %80 = tpu.matmul %71, %79, %cst_34 {dimension_numbers = #tpu.dot_dimension_numbers<[1], [0], [0], [1], [0, 0, 1, 1], [], []>} : vector<32x64xf32>, vector<64x64xf32>, vector<32x64xf32> -> vector<32x64xf32>
    %c3 = arith.constant 3 : index
    %c0_35 = arith.constant 0 : index
    %c0_36 = arith.constant 0 : index
    %81 = vector.load %arg34[%c3, %c0_35, %c0_36] : memref<9x64x64xf32, #tpu.memory_space<vmem>>, vector<1x64x64xf32>
    %82 = vector.shape_cast %81 : vector<1x64x64xf32> to vector<64x64xf32>
    %cst_37 = arith.constant dense<0.000000e+00> : vector<32x64xf32>
    %83 = tpu.matmul %71, %82, %cst_37 {dimension_numbers = #tpu.dot_dimension_numbers<[1], [0], [0], [1], [0, 0, 1, 1], [], []>} : vector<32x64xf32>, vector<64x64xf32>, vector<32x64xf32> -> vector<32x64xf32>
    %c5 = arith.constant 5 : index
    %c0_38 = arith.constant 0 : index
    %c0_39 = arith.constant 0 : index
    %84 = vector.load %arg34[%c5, %c0_38, %c0_39] : memref<9x64x64xf32, #tpu.memory_space<vmem>>, vector<1x64x64xf32>
    %85 = vector.shape_cast %84 : vector<1x64x64xf32> to vector<64x64xf32>
    %cst_40 = arith.constant dense<0.000000e+00> : vector<32x64xf32>
    %86 = tpu.matmul %71, %85, %cst_40 {dimension_numbers = #tpu.dot_dimension_numbers<[1], [0], [0], [1], [0, 0, 1, 1], [], []>} : vector<32x64xf32>, vector<64x64xf32>, vector<32x64xf32> -> vector<32x64xf32>
    %c6 = arith.constant 6 : index
    %c0_41 = arith.constant 0 : index
    %c0_42 = arith.constant 0 : index
    %87 = vector.load %arg34[%c6, %c0_41, %c0_42] : memref<9x64x64xf32, #tpu.memory_space<vmem>>, vector<1x64x64xf32>
    %88 = vector.shape_cast %87 : vector<1x64x64xf32> to vector<64x64xf32>
    %cst_43 = arith.constant dense<0.000000e+00> : vector<32x64xf32>
    %89 = tpu.matmul %71, %88, %cst_43 {dimension_numbers = #tpu.dot_dimension_numbers<[1], [0], [0], [1], [0, 0, 1, 1], [], []>} : vector<32x64xf32>, vector<64x64xf32>, vector<32x64xf32> -> vector<32x64xf32>
    %c7 = arith.constant 7 : index
    %c0_44 = arith.constant 0 : index
    %c0_45 = arith.constant 0 : index
    %90 = vector.load %arg34[%c7, %c0_44, %c0_45] : memref<9x64x64xf32, #tpu.memory_space<vmem>>, vector<1x64x64xf32>
    %91 = vector.shape_cast %90 : vector<1x64x64xf32> to vector<64x64xf32>
    %cst_46 = arith.constant dense<0.000000e+00> : vector<32x64xf32>
    %92 = tpu.matmul %71, %91, %cst_46 {dimension_numbers = #tpu.dot_dimension_numbers<[1], [0], [0], [1], [0, 0, 1, 1], [], []>} : vector<32x64xf32>, vector<64x64xf32>, vector<32x64xf32> -> vector<32x64xf32>
    %c8 = arith.constant 8 : index
    %c0_47 = arith.constant 0 : index
    %c0_48 = arith.constant 0 : index
    %93 = vector.load %arg34[%c8, %c0_47, %c0_48] : memref<9x64x64xf32, #tpu.memory_space<vmem>>, vector<1x64x64xf32>
    %94 = vector.shape_cast %93 : vector<1x64x64xf32> to vector<64x64xf32>
    %cst_49 = arith.constant dense<0.000000e+00> : vector<32x64xf32>
    %95 = tpu.matmul %71, %94, %cst_49 {dimension_numbers = #tpu.dot_dimension_numbers<[1], [0], [0], [1], [0, 0, 1, 1], [], []>} : vector<32x64xf32>, vector<64x64xf32>, vector<32x64xf32> -> vector<32x64xf32>
    %96 = tpu.concatenate %74, %77, %80, %83, %71, %86, %89, %92, %95 in 0 : vector<32x64xf32>, vector<32x64xf32>, vector<32x64xf32>, vector<32x64xf32>, vector<32x64xf32>, vector<32x64xf32>, vector<32x64xf32>, vector<32x64xf32>, vector<32x64xf32> -> vector<288x64xf32>
    %97 = arith.truncf %96 : vector<288x64xf32> to vector<288x64xbf16>
    %c0_50 = arith.constant 0 : index
    %c0_51 = arith.constant 0 : index
    %98 = vector.load %arg16[%c0_50, %c0_51] : memref<32x288xbf16, #tpu.memory_space<vmem>>, vector<32x288xbf16>
    %cst_52 = arith.constant dense<0.000000e+00> : vector<32x64xf32>
    %99 = tpu.matmul %98, %97, %cst_52 {dimension_numbers = #tpu.dot_dimension_numbers<[1], [0], [0], [1], [0, 0, 1, 1], [], []>} : vector<32x288xbf16>, vector<288x64xbf16>, vector<32x64xf32> -> vector<32x64xf32>
    %c0_53 = arith.constant 0 : index
    %c0_54 = arith.constant 0 : index
    %100 = vector.load %arg17[%c0_53, %c0_54] : memref<32x64xf32, #tpu.memory_space<vmem>>, vector<32x64xf32>
    %101 = arith.addf %99, %100 : vector<32x64xf32>
    %cst_55 = arith.constant 0.000000e+00 : f32
    %102 = vector.broadcast %cst_55 : f32 to vector<32x64xf32>
    %103 = arith.cmpf oge, %101, %102 : vector<32x64xf32>
    %cst_56 = arith.constant 2.000000e-01 : f32
    %104 = vector.broadcast %cst_56 : f32 to vector<32x64xf32>
    %105 = arith.mulf %104, %101 : vector<32x64xf32>
    %106 = arith.select %103, %101, %105 : vector<32x64xi1>, vector<32x64xf32>
    %c0_57 = arith.constant 0 : index
    %c0_58 = arith.constant 0 : index
    %107 = vector.load %arg5[%c0_57, %c0_58] : memref<64x16xf32, #tpu.memory_space<vmem>>, vector<64x16xf32>
    %cst_59 = arith.constant dense<0.000000e+00> : vector<32x16xf32>
    %108 = tpu.matmul %106, %107, %cst_59 {dimension_numbers = #tpu.dot_dimension_numbers<[1], [0], [0], [1], [0, 0, 1, 1], [], []>} : vector<32x64xf32>, vector<64x16xf32>, vector<32x16xf32> -> vector<32x16xf32>
    %c0_60 = arith.constant 0 : index
    %c0_61 = arith.constant 0 : index
    %c0_62 = arith.constant 0 : index
    %109 = vector.load %arg35[%c0_60, %c0_61, %c0_62] : memref<9x16x16xf32, #tpu.memory_space<vmem>>, vector<1x16x16xf32>
    %110 = vector.shape_cast %109 : vector<1x16x16xf32> to vector<16x16xf32>
    %cst_63 = arith.constant dense<0.000000e+00> : vector<32x16xf32>
    %111 = tpu.matmul %108, %110, %cst_63 {dimension_numbers = #tpu.dot_dimension_numbers<[1], [0], [0], [1], [0, 0, 1, 1], [], []>} : vector<32x16xf32>, vector<16x16xf32>, vector<32x16xf32> -> vector<32x16xf32>
    %c1_64 = arith.constant 1 : index
    %c0_65 = arith.constant 0 : index
    %c0_66 = arith.constant 0 : index
    %112 = vector.load %arg35[%c1_64, %c0_65, %c0_66] : memref<9x16x16xf32, #tpu.memory_space<vmem>>, vector<1x16x16xf32>
    %113 = vector.shape_cast %112 : vector<1x16x16xf32> to vector<16x16xf32>
    %cst_67 = arith.constant dense<0.000000e+00> : vector<32x16xf32>
    %114 = tpu.matmul %108, %113, %cst_67 {dimension_numbers = #tpu.dot_dimension_numbers<[1], [0], [0], [1], [0, 0, 1, 1], [], []>} : vector<32x16xf32>, vector<16x16xf32>, vector<32x16xf32> -> vector<32x16xf32>
    %c2_68 = arith.constant 2 : index
    %c0_69 = arith.constant 0 : index
    %c0_70 = arith.constant 0 : index
    %115 = vector.load %arg35[%c2_68, %c0_69, %c0_70] : memref<9x16x16xf32, #tpu.memory_space<vmem>>, vector<1x16x16xf32>
    %116 = vector.shape_cast %115 : vector<1x16x16xf32> to vector<16x16xf32>
    %cst_71 = arith.constant dense<0.000000e+00> : vector<32x16xf32>
    %117 = tpu.matmul %108, %116, %cst_71 {dimension_numbers = #tpu.dot_dimension_numbers<[1], [0], [0], [1], [0, 0, 1, 1], [], []>} : vector<32x16xf32>, vector<16x16xf32>, vector<32x16xf32> -> vector<32x16xf32>
    %c3_72 = arith.constant 3 : index
    %c0_73 = arith.constant 0 : index
    %c0_74 = arith.constant 0 : index
    %118 = vector.load %arg35[%c3_72, %c0_73, %c0_74] : memref<9x16x16xf32, #tpu.memory_space<vmem>>, vector<1x16x16xf32>
    %119 = vector.shape_cast %118 : vector<1x16x16xf32> to vector<16x16xf32>
    %cst_75 = arith.constant dense<0.000000e+00> : vector<32x16xf32>
    %120 = tpu.matmul %108, %119, %cst_75 {dimension_numbers = #tpu.dot_dimension_numbers<[1], [0], [0], [1], [0, 0, 1, 1], [], []>} : vector<32x16xf32>, vector<16x16xf32>, vector<32x16xf32> -> vector<32x16xf32>
    %c5_76 = arith.constant 5 : index
    %c0_77 = arith.constant 0 : index
    %c0_78 = arith.constant 0 : index
    %121 = vector.load %arg35[%c5_76, %c0_77, %c0_78] : memref<9x16x16xf32, #tpu.memory_space<vmem>>, vector<1x16x16xf32>
    %122 = vector.shape_cast %121 : vector<1x16x16xf32> to vector<16x16xf32>
    %cst_79 = arith.constant dense<0.000000e+00> : vector<32x16xf32>
    %123 = tpu.matmul %108, %122, %cst_79 {dimension_numbers = #tpu.dot_dimension_numbers<[1], [0], [0], [1], [0, 0, 1, 1], [], []>} : vector<32x16xf32>, vector<16x16xf32>, vector<32x16xf32> -> vector<32x16xf32>
    %c6_80 = arith.constant 6 : index
    %c0_81 = arith.constant 0 : index
    %c0_82 = arith.constant 0 : index
    %124 = vector.load %arg35[%c6_80, %c0_81, %c0_82] : memref<9x16x16xf32, #tpu.memory_space<vmem>>, vector<1x16x16xf32>
    %125 = vector.shape_cast %124 : vector<1x16x16xf32> to vector<16x16xf32>
    %cst_83 = arith.constant dense<0.000000e+00> : vector<32x16xf32>
    %126 = tpu.matmul %108, %125, %cst_83 {dimension_numbers = #tpu.dot_dimension_numbers<[1], [0], [0], [1], [0, 0, 1, 1], [], []>} : vector<32x16xf32>, vector<16x16xf32>, vector<32x16xf32> -> vector<32x16xf32>
    %c7_84 = arith.constant 7 : index
    %c0_85 = arith.constant 0 : index
    %c0_86 = arith.constant 0 : index
    %127 = vector.load %arg35[%c7_84, %c0_85, %c0_86] : memref<9x16x16xf32, #tpu.memory_space<vmem>>, vector<1x16x16xf32>
    %128 = vector.shape_cast %127 : vector<1x16x16xf32> to vector<16x16xf32>
    %cst_87 = arith.constant dense<0.000000e+00> : vector<32x16xf32>
    %129 = tpu.matmul %108, %128, %cst_87 {dimension_numbers = #tpu.dot_dimension_numbers<[1], [0], [0], [1], [0, 0, 1, 1], [], []>} : vector<32x16xf32>, vector<16x16xf32>, vector<32x16xf32> -> vector<32x16xf32>
    %c8_88 = arith.constant 8 : index
    %c0_89 = arith.constant 0 : index
    %c0_90 = arith.constant 0 : index
    %130 = vector.load %arg35[%c8_88, %c0_89, %c0_90] : memref<9x16x16xf32, #tpu.memory_space<vmem>>, vector<1x16x16xf32>
    %131 = vector.shape_cast %130 : vector<1x16x16xf32> to vector<16x16xf32>
    %cst_91 = arith.constant dense<0.000000e+00> : vector<32x16xf32>
    %132 = tpu.matmul %108, %131, %cst_91 {dimension_numbers = #tpu.dot_dimension_numbers<[1], [0], [0], [1], [0, 0, 1, 1], [], []>} : vector<32x16xf32>, vector<16x16xf32>, vector<32x16xf32> -> vector<32x16xf32>
    %133 = tpu.concatenate %111, %114, %117, %120, %108, %123, %126, %129, %132 in 0 : vector<32x16xf32>, vector<32x16xf32>, vector<32x16xf32>, vector<32x16xf32>, vector<32x16xf32>, vector<32x16xf32>, vector<32x16xf32>, vector<32x16xf32>, vector<32x16xf32> -> vector<288x16xf32>
    %134 = arith.truncf %133 : vector<288x16xf32> to vector<288x16xbf16>
    %c0_92 = arith.constant 0 : index
    %c0_93 = arith.constant 0 : index
    %135 = vector.load %arg18[%c0_92, %c0_93] : memref<32x288xbf16, #tpu.memory_space<vmem>>, vector<32x288xbf16>
    %cst_94 = arith.constant dense<0.000000e+00> : vector<32x16xf32>
    %136 = tpu.matmul %135, %134, %cst_94 {dimension_numbers = #tpu.dot_dimension_numbers<[1], [0], [0], [1], [0, 0, 1, 1], [], []>} : vector<32x288xbf16>, vector<288x16xbf16>, vector<32x16xf32> -> vector<32x16xf32>
    %c0_95 = arith.constant 0 : index
    %c0_96 = arith.constant 0 : index
    %137 = vector.load %arg19[%c0_95, %c0_96] : memref<32x16xf32, #tpu.memory_space<vmem>>, vector<32x16xf32>
    %138 = arith.addf %136, %137 : vector<32x16xf32>
    %cst_97 = arith.constant 0.000000e+00 : f32
    %139 = vector.broadcast %cst_97 : f32 to vector<32x16xf32>
    %140 = arith.cmpf oge, %138, %139 : vector<32x16xf32>
    %cst_98 = arith.constant 2.000000e-01 : f32
    %141 = vector.broadcast %cst_98 : f32 to vector<32x16xf32>
    %142 = arith.mulf %141, %138 : vector<32x16xf32>
    %143 = arith.select %140, %138, %142 : vector<32x16xi1>, vector<32x16xf32>
    %c0_99 = arith.constant 0 : index
    %c0_100 = arith.constant 0 : index
    %144 = vector.load %arg6[%c0_99, %c0_100] : memref<16x4xf32, #tpu.memory_space<vmem>>, vector<16x4xf32>
    %cst_101 = arith.constant dense<0.000000e+00> : vector<32x4xf32>
    %145 = tpu.matmul %143, %144, %cst_101 {dimension_numbers = #tpu.dot_dimension_numbers<[1], [0], [0], [1], [0, 0, 1, 1], [], []>} : vector<32x16xf32>, vector<16x4xf32>, vector<32x4xf32> -> vector<32x4xf32>
    %c0_102 = arith.constant 0 : index
    %c0_103 = arith.constant 0 : index
    %c0_104 = arith.constant 0 : index
    %146 = vector.load %arg36[%c0_102, %c0_103, %c0_104] : memref<9x4x4xf32, #tpu.memory_space<vmem>>, vector<1x4x4xf32>
    %147 = vector.shape_cast %146 : vector<1x4x4xf32> to vector<4x4xf32>
    %cst_105 = arith.constant dense<0.000000e+00> : vector<32x4xf32>
    %148 = tpu.matmul %145, %147, %cst_105 {dimension_numbers = #tpu.dot_dimension_numbers<[1], [0], [0], [1], [0, 0, 1, 1], [], []>} : vector<32x4xf32>, vector<4x4xf32>, vector<32x4xf32> -> vector<32x4xf32>
    %c1_106 = arith.constant 1 : index
    %c0_107 = arith.constant 0 : index
    %c0_108 = arith.constant 0 : index
    %149 = vector.load %arg36[%c1_106, %c0_107, %c0_108] : memref<9x4x4xf32, #tpu.memory_space<vmem>>, vector<1x4x4xf32>
    %150 = vector.shape_cast %149 : vector<1x4x4xf32> to vector<4x4xf32>
    %cst_109 = arith.constant dense<0.000000e+00> : vector<32x4xf32>
    %151 = tpu.matmul %145, %150, %cst_109 {dimension_numbers = #tpu.dot_dimension_numbers<[1], [0], [0], [1], [0, 0, 1, 1], [], []>} : vector<32x4xf32>, vector<4x4xf32>, vector<32x4xf32> -> vector<32x4xf32>
    %c2_110 = arith.constant 2 : index
    %c0_111 = arith.constant 0 : index
    %c0_112 = arith.constant 0 : index
    %152 = vector.load %arg36[%c2_110, %c0_111, %c0_112] : memref<9x4x4xf32, #tpu.memory_space<vmem>>, vector<1x4x4xf32>
    %153 = vector.shape_cast %152 : vector<1x4x4xf32> to vector<4x4xf32>
    %cst_113 = arith.constant dense<0.000000e+00> : vector<32x4xf32>
    %154 = tpu.matmul %145, %153, %cst_113 {dimension_numbers = #tpu.dot_dimension_numbers<[1], [0], [0], [1], [0, 0, 1, 1], [], []>} : vector<32x4xf32>, vector<4x4xf32>, vector<32x4xf32> -> vector<32x4xf32>
    %c3_114 = arith.constant 3 : index
    %c0_115 = arith.constant 0 : index
    %c0_116 = arith.constant 0 : index
    %155 = vector.load %arg36[%c3_114, %c0_115, %c0_116] : memref<9x4x4xf32, #tpu.memory_space<vmem>>, vector<1x4x4xf32>
    %156 = vector.shape_cast %155 : vector<1x4x4xf32> to vector<4x4xf32>
    %cst_117 = arith.constant dense<0.000000e+00> : vector<32x4xf32>
    %157 = tpu.matmul %145, %156, %cst_117 {dimension_numbers = #tpu.dot_dimension_numbers<[1], [0], [0], [1], [0, 0, 1, 1], [], []>} : vector<32x4xf32>, vector<4x4xf32>, vector<32x4xf32> -> vector<32x4xf32>
    %c5_118 = arith.constant 5 : index
    %c0_119 = arith.constant 0 : index
    %c0_120 = arith.constant 0 : index
    %158 = vector.load %arg36[%c5_118, %c0_119, %c0_120] : memref<9x4x4xf32, #tpu.memory_space<vmem>>, vector<1x4x4xf32>
    %159 = vector.shape_cast %158 : vector<1x4x4xf32> to vector<4x4xf32>
    %cst_121 = arith.constant dense<0.000000e+00> : vector<32x4xf32>
    %160 = tpu.matmul %145, %159, %cst_121 {dimension_numbers = #tpu.dot_dimension_numbers<[1], [0], [0], [1], [0, 0, 1, 1], [], []>} : vector<32x4xf32>, vector<4x4xf32>, vector<32x4xf32> -> vector<32x4xf32>
    %c6_122 = arith.constant 6 : index
    %c0_123 = arith.constant 0 : index
    %c0_124 = arith.constant 0 : index
    %161 = vector.load %arg36[%c6_122, %c0_123, %c0_124] : memref<9x4x4xf32, #tpu.memory_space<vmem>>, vector<1x4x4xf32>
    %162 = vector.shape_cast %161 : vector<1x4x4xf32> to vector<4x4xf32>
    %cst_125 = arith.constant dense<0.000000e+00> : vector<32x4xf32>
    %163 = tpu.matmul %145, %162, %cst_125 {dimension_numbers = #tpu.dot_dimension_numbers<[1], [0], [0], [1], [0, 0, 1, 1], [], []>} : vector<32x4xf32>, vector<4x4xf32>, vector<32x4xf32> -> vector<32x4xf32>
    %c7_126 = arith.constant 7 : index
    %c0_127 = arith.constant 0 : index
    %c0_128 = arith.constant 0 : index
    %164 = vector.load %arg36[%c7_126, %c0_127, %c0_128] : memref<9x4x4xf32, #tpu.memory_space<vmem>>, vector<1x4x4xf32>
    %165 = vector.shape_cast %164 : vector<1x4x4xf32> to vector<4x4xf32>
    %cst_129 = arith.constant dense<0.000000e+00> : vector<32x4xf32>
    %166 = tpu.matmul %145, %165, %cst_129 {dimension_numbers = #tpu.dot_dimension_numbers<[1], [0], [0], [1], [0, 0, 1, 1], [], []>} : vector<32x4xf32>, vector<4x4xf32>, vector<32x4xf32> -> vector<32x4xf32>
    %c8_130 = arith.constant 8 : index
    %c0_131 = arith.constant 0 : index
    %c0_132 = arith.constant 0 : index
    %167 = vector.load %arg36[%c8_130, %c0_131, %c0_132] : memref<9x4x4xf32, #tpu.memory_space<vmem>>, vector<1x4x4xf32>
    %168 = vector.shape_cast %167 : vector<1x4x4xf32> to vector<4x4xf32>
    %cst_133 = arith.constant dense<0.000000e+00> : vector<32x4xf32>
    %169 = tpu.matmul %145, %168, %cst_133 {dimension_numbers = #tpu.dot_dimension_numbers<[1], [0], [0], [1], [0, 0, 1, 1], [], []>} : vector<32x4xf32>, vector<4x4xf32>, vector<32x4xf32> -> vector<32x4xf32>
    %170 = tpu.concatenate %148, %151, %154, %157, %145, %160, %163, %166, %169 in 0 : vector<32x4xf32>, vector<32x4xf32>, vector<32x4xf32>, vector<32x4xf32>, vector<32x4xf32>, vector<32x4xf32>, vector<32x4xf32>, vector<32x4xf32>, vector<32x4xf32> -> vector<288x4xf32>
    %171 = arith.truncf %170 : vector<288x4xf32> to vector<288x4xbf16>
    %c0_134 = arith.constant 0 : index
    %c0_135 = arith.constant 0 : index
    %172 = vector.load %arg20[%c0_134, %c0_135] : memref<32x288xbf16, #tpu.memory_space<vmem>>, vector<32x288xbf16>
    %cst_136 = arith.constant dense<0.000000e+00> : vector<32x4xf32>
    %173 = tpu.matmul %172, %171, %cst_136 {dimension_numbers = #tpu.dot_dimension_numbers<[1], [0], [0], [1], [0, 0, 1, 1], [], []>} : vector<32x288xbf16>, vector<288x4xbf16>, vector<32x4xf32> -> vector<32x4xf32>
    %c0_137 = arith.constant 0 : index
    %c0_138 = arith.constant 0 : index
    %174 = vector.load %arg21[%c0_137, %c0_138] : memref<32x4xf32, #tpu.memory_space<vmem>>, vector<32x4xf32>
    %175 = arith.addf %173, %174 : vector<32x4xf32>
    %cst_139 = arith.constant 0.000000e+00 : f32
    %176 = vector.broadcast %cst_139 : f32 to vector<32x4xf32>
    %177 = arith.cmpf oge, %175, %176 : vector<32x4xf32>
    %cst_140 = arith.constant 2.000000e-01 : f32
    %178 = vector.broadcast %cst_140 : f32 to vector<32x4xf32>
    %179 = arith.mulf %178, %175 : vector<32x4xf32>
    %180 = arith.select %177, %175, %179 : vector<32x4xi1>, vector<32x4xf32>
    %c0_141 = arith.constant 0 : index
    %c0_142 = arith.constant 0 : index
    %c0_143 = arith.constant 0 : index
    %181 = vector.load %arg2[%c0_141, %c0_142, %c0_143] : memref<1x8x1xf32, #tpu.memory_space<vmem>>, vector<1x8x1xf32>
    %182 = vector.shape_cast %181 : vector<1x8x1xf32> to vector<8x1xf32>
    %183 = vector.shape_cast %182 : vector<8x1xf32> to vector<8x1xf32>
    %184 = vector.broadcast %183 : vector<8x1xf32> to vector<8x4xf32>
    %c0_144 = arith.constant 0 : index
    %c0_145 = arith.constant 0 : index
    %c0_146 = arith.constant 0 : index
    %185 = vector.load %arg36[%c0_144, %c0_145, %c0_146] : memref<9x4x4xf32, #tpu.memory_space<vmem>>, vector<1x4x4xf32>
    %186 = vector.shape_cast %185 : vector<1x4x4xf32> to vector<4x4xf32>
    %cst_147 = arith.constant dense<0.000000e+00> : vector<8x4xf32>
    %187 = tpu.matmul %184, %186, %cst_147 {dimension_numbers = #tpu.dot_dimension_numbers<[1], [0], [0], [1], [0, 0, 1, 1], [], []>} : vector<8x4xf32>, vector<4x4xf32>, vector<8x4xf32> -> vector<8x4xf32>
    %c1_148 = arith.constant 1 : index
    %c0_149 = arith.constant 0 : index
    %c0_150 = arith.constant 0 : index
    %188 = vector.load %arg36[%c1_148, %c0_149, %c0_150] : memref<9x4x4xf32, #tpu.memory_space<vmem>>, vector<1x4x4xf32>
    %189 = vector.shape_cast %188 : vector<1x4x4xf32> to vector<4x4xf32>
    %cst_151 = arith.constant dense<0.000000e+00> : vector<8x4xf32>
    %190 = tpu.matmul %184, %189, %cst_151 {dimension_numbers = #tpu.dot_dimension_numbers<[1], [0], [0], [1], [0, 0, 1, 1], [], []>} : vector<8x4xf32>, vector<4x4xf32>, vector<8x4xf32> -> vector<8x4xf32>
    %c2_152 = arith.constant 2 : index
    %c0_153 = arith.constant 0 : index
    %c0_154 = arith.constant 0 : index
    %191 = vector.load %arg36[%c2_152, %c0_153, %c0_154] : memref<9x4x4xf32, #tpu.memory_space<vmem>>, vector<1x4x4xf32>
    %192 = vector.shape_cast %191 : vector<1x4x4xf32> to vector<4x4xf32>
    %cst_155 = arith.constant dense<0.000000e+00> : vector<8x4xf32>
    %193 = tpu.matmul %184, %192, %cst_155 {dimension_numbers = #tpu.dot_dimension_numbers<[1], [0], [0], [1], [0, 0, 1, 1], [], []>} : vector<8x4xf32>, vector<4x4xf32>, vector<8x4xf32> -> vector<8x4xf32>
    %c3_156 = arith.constant 3 : index
    %c0_157 = arith.constant 0 : index
    %c0_158 = arith.constant 0 : index
    %194 = vector.load %arg36[%c3_156, %c0_157, %c0_158] : memref<9x4x4xf32, #tpu.memory_space<vmem>>, vector<1x4x4xf32>
    %195 = vector.shape_cast %194 : vector<1x4x4xf32> to vector<4x4xf32>
    %cst_159 = arith.constant dense<0.000000e+00> : vector<8x4xf32>
    %196 = tpu.matmul %184, %195, %cst_159 {dimension_numbers = #tpu.dot_dimension_numbers<[1], [0], [0], [1], [0, 0, 1, 1], [], []>} : vector<8x4xf32>, vector<4x4xf32>, vector<8x4xf32> -> vector<8x4xf32>
    %c5_160 = arith.constant 5 : index
    %c0_161 = arith.constant 0 : index
    %c0_162 = arith.constant 0 : index
    %197 = vector.load %arg36[%c5_160, %c0_161, %c0_162] : memref<9x4x4xf32, #tpu.memory_space<vmem>>, vector<1x4x4xf32>
    %198 = vector.shape_cast %197 : vector<1x4x4xf32> to vector<4x4xf32>
    %cst_163 = arith.constant dense<0.000000e+00> : vector<8x4xf32>
    %199 = tpu.matmul %184, %198, %cst_163 {dimension_numbers = #tpu.dot_dimension_numbers<[1], [0], [0], [1], [0, 0, 1, 1], [], []>} : vector<8x4xf32>, vector<4x4xf32>, vector<8x4xf32> -> vector<8x4xf32>
    %c6_164 = arith.constant 6 : index
    %c0_165 = arith.constant 0 : index
    %c0_166 = arith.constant 0 : index
    %200 = vector.load %arg36[%c6_164, %c0_165, %c0_166] : memref<9x4x4xf32, #tpu.memory_space<vmem>>, vector<1x4x4xf32>
    %201 = vector.shape_cast %200 : vector<1x4x4xf32> to vector<4x4xf32>
    %cst_167 = arith.constant dense<0.000000e+00> : vector<8x4xf32>
    %202 = tpu.matmul %184, %201, %cst_167 {dimension_numbers = #tpu.dot_dimension_numbers<[1], [0], [0], [1], [0, 0, 1, 1], [], []>} : vector<8x4xf32>, vector<4x4xf32>, vector<8x4xf32> -> vector<8x4xf32>
    %c7_168 = arith.constant 7 : index
    %c0_169 = arith.constant 0 : index
    %c0_170 = arith.constant 0 : index
    %203 = vector.load %arg36[%c7_168, %c0_169, %c0_170] : memref<9x4x4xf32, #tpu.memory_space<vmem>>, vector<1x4x4xf32>
    %204 = vector.shape_cast %203 : vector<1x4x4xf32> to vector<4x4xf32>
    %cst_171 = arith.constant dense<0.000000e+00> : vector<8x4xf32>
    %205 = tpu.matmul %184, %204, %cst_171 {dimension_numbers = #tpu.dot_dimension_numbers<[1], [0], [0], [1], [0, 0, 1, 1], [], []>} : vector<8x4xf32>, vector<4x4xf32>, vector<8x4xf32> -> vector<8x4xf32>
    %c8_172 = arith.constant 8 : index
    %c0_173 = arith.constant 0 : index
    %c0_174 = arith.constant 0 : index
    %206 = vector.load %arg36[%c8_172, %c0_173, %c0_174] : memref<9x4x4xf32, #tpu.memory_space<vmem>>, vector<1x4x4xf32>
    %207 = vector.shape_cast %206 : vector<1x4x4xf32> to vector<4x4xf32>
    %cst_175 = arith.constant dense<0.000000e+00> : vector<8x4xf32>
    %208 = tpu.matmul %184, %207, %cst_175 {dimension_numbers = #tpu.dot_dimension_numbers<[1], [0], [0], [1], [0, 0, 1, 1], [], []>} : vector<8x4xf32>, vector<4x4xf32>, vector<8x4xf32> -> vector<8x4xf32>
    %209 = tpu.concatenate %187, %190, %193, %196, %184, %199, %202, %205, %208 in 0 : vector<8x4xf32>, vector<8x4xf32>, vector<8x4xf32>, vector<8x4xf32>, vector<8x4xf32>, vector<8x4xf32>, vector<8x4xf32>, vector<8x4xf32>, vector<8x4xf32> -> vector<72x4xf32>
    %210 = arith.truncf %209 : vector<72x4xf32> to vector<72x4xbf16>
    %c0_176 = arith.constant 0 : index
    %c0_177 = arith.constant 0 : index
    %211 = vector.load %arg22[%c0_176, %c0_177] : memref<32x72xbf16, #tpu.memory_space<vmem>>, vector<32x72xbf16>
    %cst_178 = arith.constant dense<0.000000e+00> : vector<32x4xf32>
    %212 = tpu.matmul %211, %210, %cst_178 {dimension_numbers = #tpu.dot_dimension_numbers<[1], [0], [0], [1], [0, 0, 1, 1], [], []>} : vector<32x72xbf16>, vector<72x4xbf16>, vector<32x4xf32> -> vector<32x4xf32>
    %c0_179 = arith.constant 0 : index
    %c0_180 = arith.constant 0 : index
    %213 = vector.load %arg23[%c0_179, %c0_180] : memref<32x4xf32, #tpu.memory_space<vmem>>, vector<32x4xf32>
    %214 = arith.addf %212, %213 : vector<32x4xf32>
    %215 = tpu.concatenate %180, %214 in 0 : vector<32x4xf32>, vector<32x4xf32> -> vector<64x4xf32>
    %c0_181 = arith.constant 0 : index
    %c0_182 = arith.constant 0 : index
    %c0_183 = arith.constant 0 : index
    %216 = vector.load %arg36[%c0_181, %c0_182, %c0_183] : memref<9x4x4xf32, #tpu.memory_space<vmem>>, vector<1x4x4xf32>
    %217 = vector.shape_cast %216 : vector<1x4x4xf32> to vector<4x4xf32>
    %cst_184 = arith.constant dense<0.000000e+00> : vector<64x4xf32>
    %218 = tpu.matmul %215, %217, %cst_184 {dimension_numbers = #tpu.dot_dimension_numbers<[1], [0], [0], [1], [0, 0, 1, 1], [], []>} : vector<64x4xf32>, vector<4x4xf32>, vector<64x4xf32> -> vector<64x4xf32>
    %c1_185 = arith.constant 1 : index
    %c0_186 = arith.constant 0 : index
    %c0_187 = arith.constant 0 : index
    %219 = vector.load %arg36[%c1_185, %c0_186, %c0_187] : memref<9x4x4xf32, #tpu.memory_space<vmem>>, vector<1x4x4xf32>
    %220 = vector.shape_cast %219 : vector<1x4x4xf32> to vector<4x4xf32>
    %cst_188 = arith.constant dense<0.000000e+00> : vector<64x4xf32>
    %221 = tpu.matmul %215, %220, %cst_188 {dimension_numbers = #tpu.dot_dimension_numbers<[1], [0], [0], [1], [0, 0, 1, 1], [], []>} : vector<64x4xf32>, vector<4x4xf32>, vector<64x4xf32> -> vector<64x4xf32>
    %c2_189 = arith.constant 2 : index
    %c0_190 = arith.constant 0 : index
    %c0_191 = arith.constant 0 : index
    %222 = vector.load %arg36[%c2_189, %c0_190, %c0_191] : memref<9x4x4xf32, #tpu.memory_space<vmem>>, vector<1x4x4xf32>
    %223 = vector.shape_cast %222 : vector<1x4x4xf32> to vector<4x4xf32>
    %cst_192 = arith.constant dense<0.000000e+00> : vector<64x4xf32>
    %224 = tpu.matmul %215, %223, %cst_192 {dimension_numbers = #tpu.dot_dimension_numbers<[1], [0], [0], [1], [0, 0, 1, 1], [], []>} : vector<64x4xf32>, vector<4x4xf32>, vector<64x4xf32> -> vector<64x4xf32>
    %c3_193 = arith.constant 3 : index
    %c0_194 = arith.constant 0 : index
    %c0_195 = arith.constant 0 : index
    %225 = vector.load %arg36[%c3_193, %c0_194, %c0_195] : memref<9x4x4xf32, #tpu.memory_space<vmem>>, vector<1x4x4xf32>
    %226 = vector.shape_cast %225 : vector<1x4x4xf32> to vector<4x4xf32>
    %cst_196 = arith.constant dense<0.000000e+00> : vector<64x4xf32>
    %227 = tpu.matmul %215, %226, %cst_196 {dimension_numbers = #tpu.dot_dimension_numbers<[1], [0], [0], [1], [0, 0, 1, 1], [], []>} : vector<64x4xf32>, vector<4x4xf32>, vector<64x4xf32> -> vector<64x4xf32>
    %c5_197 = arith.constant 5 : index
    %c0_198 = arith.constant 0 : index
    %c0_199 = arith.constant 0 : index
    %228 = vector.load %arg36[%c5_197, %c0_198, %c0_199] : memref<9x4x4xf32, #tpu.memory_space<vmem>>, vector<1x4x4xf32>
    %229 = vector.shape_cast %228 : vector<1x4x4xf32> to vector<4x4xf32>
    %cst_200 = arith.constant dense<0.000000e+00> : vector<64x4xf32>
    %230 = tpu.matmul %215, %229, %cst_200 {dimension_numbers = #tpu.dot_dimension_numbers<[1], [0], [0], [1], [0, 0, 1, 1], [], []>} : vector<64x4xf32>, vector<4x4xf32>, vector<64x4xf32> -> vector<64x4xf32>
    %c6_201 = arith.constant 6 : index
    %c0_202 = arith.constant 0 : index
    %c0_203 = arith.constant 0 : index
    %231 = vector.load %arg36[%c6_201, %c0_202, %c0_203] : memref<9x4x4xf32, #tpu.memory_space<vmem>>, vector<1x4x4xf32>
    %232 = vector.shape_cast %231 : vector<1x4x4xf32> to vector<4x4xf32>
    %cst_204 = arith.constant dense<0.000000e+00> : vector<64x4xf32>
    %233 = tpu.matmul %215, %232, %cst_204 {dimension_numbers = #tpu.dot_dimension_numbers<[1], [0], [0], [1], [0, 0, 1, 1], [], []>} : vector<64x4xf32>, vector<4x4xf32>, vector<64x4xf32> -> vector<64x4xf32>
    %c7_205 = arith.constant 7 : index
    %c0_206 = arith.constant 0 : index
    %c0_207 = arith.constant 0 : index
    %234 = vector.load %arg36[%c7_205, %c0_206, %c0_207] : memref<9x4x4xf32, #tpu.memory_space<vmem>>, vector<1x4x4xf32>
    %235 = vector.shape_cast %234 : vector<1x4x4xf32> to vector<4x4xf32>
    %cst_208 = arith.constant dense<0.000000e+00> : vector<64x4xf32>
    %236 = tpu.matmul %215, %235, %cst_208 {dimension_numbers = #tpu.dot_dimension_numbers<[1], [0], [0], [1], [0, 0, 1, 1], [], []>} : vector<64x4xf32>, vector<4x4xf32>, vector<64x4xf32> -> vector<64x4xf32>
    %c8_209 = arith.constant 8 : index
    %c0_210 = arith.constant 0 : index
    %c0_211 = arith.constant 0 : index
    %237 = vector.load %arg36[%c8_209, %c0_210, %c0_211] : memref<9x4x4xf32, #tpu.memory_space<vmem>>, vector<1x4x4xf32>
    %238 = vector.shape_cast %237 : vector<1x4x4xf32> to vector<4x4xf32>
    %cst_212 = arith.constant dense<0.000000e+00> : vector<64x4xf32>
    %239 = tpu.matmul %215, %238, %cst_212 {dimension_numbers = #tpu.dot_dimension_numbers<[1], [0], [0], [1], [0, 0, 1, 1], [], []>} : vector<64x4xf32>, vector<4x4xf32>, vector<64x4xf32> -> vector<64x4xf32>
    %240 = tpu.concatenate %218, %221, %224, %227, %215, %230, %233, %236, %239 in 0 : vector<64x4xf32>, vector<64x4xf32>, vector<64x4xf32>, vector<64x4xf32>, vector<64x4xf32>, vector<64x4xf32>, vector<64x4xf32>, vector<64x4xf32>, vector<64x4xf32> -> vector<576x4xf32>
    %241 = arith.truncf %240 : vector<576x4xf32> to vector<576x4xbf16>
    %c0_213 = arith.constant 0 : index
    %c0_214 = arith.constant 0 : index
    %242 = vector.load %arg24[%c0_213, %c0_214] : memref<32x576xbf16, #tpu.memory_space<vmem>>, vector<32x576xbf16>
    %cst_215 = arith.constant dense<0.000000e+00> : vector<32x4xf32>
    %243 = tpu.matmul %242, %241, %cst_215 {dimension_numbers = #tpu.dot_dimension_numbers<[1], [0], [0], [1], [0, 0, 1, 1], [], []>} : vector<32x576xbf16>, vector<576x4xbf16>, vector<32x4xf32> -> vector<32x4xf32>
    %c0_216 = arith.constant 0 : index
    %c0_217 = arith.constant 0 : index
    %244 = vector.load %arg25[%c0_216, %c0_217] : memref<32x4xf32, #tpu.memory_space<vmem>>, vector<32x4xf32>
    %245 = arith.addf %243, %244 : vector<32x4xf32>
    %cst_218 = arith.constant 0.000000e+00 : f32
    %246 = vector.broadcast %cst_218 : f32 to vector<32x4xf32>
    %247 = arith.cmpf oge, %245, %246 : vector<32x4xf32>
    %cst_219 = arith.constant 2.000000e-01 : f32
    %248 = vector.broadcast %cst_219 : f32 to vector<32x4xf32>
    %249 = arith.mulf %248, %245 : vector<32x4xf32>
    %250 = arith.select %247, %245, %249 : vector<32x4xi1>, vector<32x4xf32>
    %c0_220 = arith.constant 0 : index
    %c0_221 = arith.constant 0 : index
    %251 = vector.load %arg7[%c0_220, %c0_221] : memref<4x16xf32, #tpu.memory_space<vmem>>, vector<4x16xf32>
    %cst_222 = arith.constant dense<0.000000e+00> : vector<32x16xf32>
    %252 = tpu.matmul %250, %251, %cst_222 {dimension_numbers = #tpu.dot_dimension_numbers<[1], [0], [0], [1], [0, 0, 1, 1], [], []>} : vector<32x4xf32>, vector<4x16xf32>, vector<32x16xf32> -> vector<32x16xf32>
    %253 = tpu.concatenate %252, %143 in 0 : vector<32x16xf32>, vector<32x16xf32> -> vector<64x16xf32>
    %c0_223 = arith.constant 0 : index
    %c0_224 = arith.constant 0 : index
    %c0_225 = arith.constant 0 : index
    %254 = vector.load %arg35[%c0_223, %c0_224, %c0_225] : memref<9x16x16xf32, #tpu.memory_space<vmem>>, vector<1x16x16xf32>
    %255 = vector.shape_cast %254 : vector<1x16x16xf32> to vector<16x16xf32>
    %cst_226 = arith.constant dense<0.000000e+00> : vector<64x16xf32>
    %256 = tpu.matmul %253, %255, %cst_226 {dimension_numbers = #tpu.dot_dimension_numbers<[1], [0], [0], [1], [0, 0, 1, 1], [], []>} : vector<64x16xf32>, vector<16x16xf32>, vector<64x16xf32> -> vector<64x16xf32>
    %c1_227 = arith.constant 1 : index
    %c0_228 = arith.constant 0 : index
    %c0_229 = arith.constant 0 : index
    %257 = vector.load %arg35[%c1_227, %c0_228, %c0_229] : memref<9x16x16xf32, #tpu.memory_space<vmem>>, vector<1x16x16xf32>
    %258 = vector.shape_cast %257 : vector<1x16x16xf32> to vector<16x16xf32>
    %cst_230 = arith.constant dense<0.000000e+00> : vector<64x16xf32>
    %259 = tpu.matmul %253, %258, %cst_230 {dimension_numbers = #tpu.dot_dimension_numbers<[1], [0], [0], [1], [0, 0, 1, 1], [], []>} : vector<64x16xf32>, vector<16x16xf32>, vector<64x16xf32> -> vector<64x16xf32>
    %c2_231 = arith.constant 2 : index
    %c0_232 = arith.constant 0 : index
    %c0_233 = arith.constant 0 : index
    %260 = vector.load %arg35[%c2_231, %c0_232, %c0_233] : memref<9x16x16xf32, #tpu.memory_space<vmem>>, vector<1x16x16xf32>
    %261 = vector.shape_cast %260 : vector<1x16x16xf32> to vector<16x16xf32>
    %cst_234 = arith.constant dense<0.000000e+00> : vector<64x16xf32>
    %262 = tpu.matmul %253, %261, %cst_234 {dimension_numbers = #tpu.dot_dimension_numbers<[1], [0], [0], [1], [0, 0, 1, 1], [], []>} : vector<64x16xf32>, vector<16x16xf32>, vector<64x16xf32> -> vector<64x16xf32>
    %c3_235 = arith.constant 3 : index
    %c0_236 = arith.constant 0 : index
    %c0_237 = arith.constant 0 : index
    %263 = vector.load %arg35[%c3_235, %c0_236, %c0_237] : memref<9x16x16xf32, #tpu.memory_space<vmem>>, vector<1x16x16xf32>
    %264 = vector.shape_cast %263 : vector<1x16x16xf32> to vector<16x16xf32>
    %cst_238 = arith.constant dense<0.000000e+00> : vector<64x16xf32>
    %265 = tpu.matmul %253, %264, %cst_238 {dimension_numbers = #tpu.dot_dimension_numbers<[1], [0], [0], [1], [0, 0, 1, 1], [], []>} : vector<64x16xf32>, vector<16x16xf32>, vector<64x16xf32> -> vector<64x16xf32>
    %c5_239 = arith.constant 5 : index
    %c0_240 = arith.constant 0 : index
    %c0_241 = arith.constant 0 : index
    %266 = vector.load %arg35[%c5_239, %c0_240, %c0_241] : memref<9x16x16xf32, #tpu.memory_space<vmem>>, vector<1x16x16xf32>
    %267 = vector.shape_cast %266 : vector<1x16x16xf32> to vector<16x16xf32>
    %cst_242 = arith.constant dense<0.000000e+00> : vector<64x16xf32>
    %268 = tpu.matmul %253, %267, %cst_242 {dimension_numbers = #tpu.dot_dimension_numbers<[1], [0], [0], [1], [0, 0, 1, 1], [], []>} : vector<64x16xf32>, vector<16x16xf32>, vector<64x16xf32> -> vector<64x16xf32>
    %c6_243 = arith.constant 6 : index
    %c0_244 = arith.constant 0 : index
    %c0_245 = arith.constant 0 : index
    %269 = vector.load %arg35[%c6_243, %c0_244, %c0_245] : memref<9x16x16xf32, #tpu.memory_space<vmem>>, vector<1x16x16xf32>
    %270 = vector.shape_cast %269 : vector<1x16x16xf32> to vector<16x16xf32>
    %cst_246 = arith.constant dense<0.000000e+00> : vector<64x16xf32>
    %271 = tpu.matmul %253, %270, %cst_246 {dimension_numbers = #tpu.dot_dimension_numbers<[1], [0], [0], [1], [0, 0, 1, 1], [], []>} : vector<64x16xf32>, vector<16x16xf32>, vector<64x16xf32> -> vector<64x16xf32>
    %c7_247 = arith.constant 7 : index
    %c0_248 = arith.constant 0 : index
    %c0_249 = arith.constant 0 : index
    %272 = vector.load %arg35[%c7_247, %c0_248, %c0_249] : memref<9x16x16xf32, #tpu.memory_space<vmem>>, vector<1x16x16xf32>
    %273 = vector.shape_cast %272 : vector<1x16x16xf32> to vector<16x16xf32>
    %cst_250 = arith.constant dense<0.000000e+00> : vector<64x16xf32>
    %274 = tpu.matmul %253, %273, %cst_250 {dimension_numbers = #tpu.dot_dimension_numbers<[1], [0], [0], [1], [0, 0, 1, 1], [], []>} : vector<64x16xf32>, vector<16x16xf32>, vector<64x16xf32> -> vector<64x16xf32>
    %c8_251 = arith.constant 8 : index
    %c0_252 = arith.constant 0 : index
    %c0_253 = arith.constant 0 : index
    %275 = vector.load %arg35[%c8_251, %c0_252, %c0_253] : memref<9x16x16xf32, #tpu.memory_space<vmem>>, vector<1x16x16xf32>
    %276 = vector.shape_cast %275 : vector<1x16x16xf32> to vector<16x16xf32>
    %cst_254 = arith.constant dense<0.000000e+00> : vector<64x16xf32>
    %277 = tpu.matmul %253, %276, %cst_254 {dimension_numbers = #tpu.dot_dimension_numbers<[1], [0], [0], [1], [0, 0, 1, 1], [], []>} : vector<64x16xf32>, vector<16x16xf32>, vector<64x16xf32> -> vector<64x16xf32>
    %278 = tpu.concatenate %256, %259, %262, %265, %253, %268, %271, %274, %277 in 0 : vector<64x16xf32>, vector<64x16xf32>, vector<64x16xf32>, vector<64x16xf32>, vector<64x16xf32>, vector<64x16xf32>, vector<64x16xf32>, vector<64x16xf32>, vector<64x16xf32> -> vector<576x16xf32>
    %279 = arith.truncf %278 : vector<576x16xf32> to vector<576x16xbf16>
    %c0_255 = arith.constant 0 : index
    %c0_256 = arith.constant 0 : index
    %280 = vector.load %arg26[%c0_255, %c0_256] : memref<32x576xbf16, #tpu.memory_space<vmem>>, vector<32x576xbf16>
    %cst_257 = arith.constant dense<0.000000e+00> : vector<32x16xf32>
    %281 = tpu.matmul %280, %279, %cst_257 {dimension_numbers = #tpu.dot_dimension_numbers<[1], [0], [0], [1], [0, 0, 1, 1], [], []>} : vector<32x576xbf16>, vector<576x16xbf16>, vector<32x16xf32> -> vector<32x16xf32>
    %c0_258 = arith.constant 0 : index
    %c0_259 = arith.constant 0 : index
    %282 = vector.load %arg27[%c0_258, %c0_259] : memref<32x16xf32, #tpu.memory_space<vmem>>, vector<32x16xf32>
    %283 = arith.addf %281, %282 : vector<32x16xf32>
    %cst_260 = arith.constant 0.000000e+00 : f32
    %284 = vector.broadcast %cst_260 : f32 to vector<32x16xf32>
    %285 = arith.cmpf oge, %283, %284 : vector<32x16xf32>
    %cst_261 = arith.constant 2.000000e-01 : f32
    %286 = vector.broadcast %cst_261 : f32 to vector<32x16xf32>
    %287 = arith.mulf %286, %283 : vector<32x16xf32>
    %288 = arith.select %285, %283, %287 : vector<32x16xi1>, vector<32x16xf32>
    %c0_262 = arith.constant 0 : index
    %c0_263 = arith.constant 0 : index
    %289 = vector.load %arg8[%c0_262, %c0_263] : memref<16x64xf32, #tpu.memory_space<vmem>>, vector<16x64xf32>
    %cst_264 = arith.constant dense<0.000000e+00> : vector<32x64xf32>
    %290 = tpu.matmul %288, %289, %cst_264 {dimension_numbers = #tpu.dot_dimension_numbers<[1], [0], [0], [1], [0, 0, 1, 1], [], []>} : vector<32x16xf32>, vector<16x64xf32>, vector<32x64xf32> -> vector<32x64xf32>
    %291 = tpu.concatenate %290, %106 in 0 : vector<32x64xf32>, vector<32x64xf32> -> vector<64x64xf32>
    %c0_265 = arith.constant 0 : index
    %c0_266 = arith.constant 0 : index
    %c0_267 = arith.constant 0 : index
    %292 = vector.load %arg34[%c0_265, %c0_266, %c0_267] : memref<9x64x64xf32, #tpu.memory_space<vmem>>, vector<1x64x64xf32>
    %293 = vector.shape_cast %292 : vector<1x64x64xf32> to vector<64x64xf32>
    %cst_268 = arith.constant dense<0.000000e+00> : vector<64x64xf32>
    %294 = tpu.matmul %291, %293, %cst_268 {dimension_numbers = #tpu.dot_dimension_numbers<[1], [0], [0], [1], [0, 0, 1, 1], [], []>} : vector<64x64xf32>, vector<64x64xf32>, vector<64x64xf32> -> vector<64x64xf32>
    %c1_269 = arith.constant 1 : index
    %c0_270 = arith.constant 0 : index
    %c0_271 = arith.constant 0 : index
    %295 = vector.load %arg34[%c1_269, %c0_270, %c0_271] : memref<9x64x64xf32, #tpu.memory_space<vmem>>, vector<1x64x64xf32>
    %296 = vector.shape_cast %295 : vector<1x64x64xf32> to vector<64x64xf32>
    %cst_272 = arith.constant dense<0.000000e+00> : vector<64x64xf32>
    %297 = tpu.matmul %291, %296, %cst_272 {dimension_numbers = #tpu.dot_dimension_numbers<[1], [0], [0], [1], [0, 0, 1, 1], [], []>} : vector<64x64xf32>, vector<64x64xf32>, vector<64x64xf32> -> vector<64x64xf32>
    %c2_273 = arith.constant 2 : index
    %c0_274 = arith.constant 0 : index
    %c0_275 = arith.constant 0 : index
    %298 = vector.load %arg34[%c2_273, %c0_274, %c0_275] : memref<9x64x64xf32, #tpu.memory_space<vmem>>, vector<1x64x64xf32>
    %299 = vector.shape_cast %298 : vector<1x64x64xf32> to vector<64x64xf32>
    %cst_276 = arith.constant dense<0.000000e+00> : vector<64x64xf32>
    %300 = tpu.matmul %291, %299, %cst_276 {dimension_numbers = #tpu.dot_dimension_numbers<[1], [0], [0], [1], [0, 0, 1, 1], [], []>} : vector<64x64xf32>, vector<64x64xf32>, vector<64x64xf32> -> vector<64x64xf32>
    %c3_277 = arith.constant 3 : index
    %c0_278 = arith.constant 0 : index
    %c0_279 = arith.constant 0 : index
    %301 = vector.load %arg34[%c3_277, %c0_278, %c0_279] : memref<9x64x64xf32, #tpu.memory_space<vmem>>, vector<1x64x64xf32>
    %302 = vector.shape_cast %301 : vector<1x64x64xf32> to vector<64x64xf32>
    %cst_280 = arith.constant dense<0.000000e+00> : vector<64x64xf32>
    %303 = tpu.matmul %291, %302, %cst_280 {dimension_numbers = #tpu.dot_dimension_numbers<[1], [0], [0], [1], [0, 0, 1, 1], [], []>} : vector<64x64xf32>, vector<64x64xf32>, vector<64x64xf32> -> vector<64x64xf32>
    %c5_281 = arith.constant 5 : index
    %c0_282 = arith.constant 0 : index
    %c0_283 = arith.constant 0 : index
    %304 = vector.load %arg34[%c5_281, %c0_282, %c0_283] : memref<9x64x64xf32, #tpu.memory_space<vmem>>, vector<1x64x64xf32>
    %305 = vector.shape_cast %304 : vector<1x64x64xf32> to vector<64x64xf32>
    %cst_284 = arith.constant dense<0.000000e+00> : vector<64x64xf32>
    %306 = tpu.matmul %291, %305, %cst_284 {dimension_numbers = #tpu.dot_dimension_numbers<[1], [0], [0], [1], [0, 0, 1, 1], [], []>} : vector<64x64xf32>, vector<64x64xf32>, vector<64x64xf32> -> vector<64x64xf32>
    %c6_285 = arith.constant 6 : index
    %c0_286 = arith.constant 0 : index
    %c0_287 = arith.constant 0 : index
    %307 = vector.load %arg34[%c6_285, %c0_286, %c0_287] : memref<9x64x64xf32, #tpu.memory_space<vmem>>, vector<1x64x64xf32>
    %308 = vector.shape_cast %307 : vector<1x64x64xf32> to vector<64x64xf32>
    %cst_288 = arith.constant dense<0.000000e+00> : vector<64x64xf32>
    %309 = tpu.matmul %291, %308, %cst_288 {dimension_numbers = #tpu.dot_dimension_numbers<[1], [0], [0], [1], [0, 0, 1, 1], [], []>} : vector<64x64xf32>, vector<64x64xf32>, vector<64x64xf32> -> vector<64x64xf32>
    %c7_289 = arith.constant 7 : index
    %c0_290 = arith.constant 0 : index
    %c0_291 = arith.constant 0 : index
    %310 = vector.load %arg34[%c7_289, %c0_290, %c0_291] : memref<9x64x64xf32, #tpu.memory_space<vmem>>, vector<1x64x64xf32>
    %311 = vector.shape_cast %310 : vector<1x64x64xf32> to vector<64x64xf32>
    %cst_292 = arith.constant dense<0.000000e+00> : vector<64x64xf32>
    %312 = tpu.matmul %291, %311, %cst_292 {dimension_numbers = #tpu.dot_dimension_numbers<[1], [0], [0], [1], [0, 0, 1, 1], [], []>} : vector<64x64xf32>, vector<64x64xf32>, vector<64x64xf32> -> vector<64x64xf32>
    %c8_293 = arith.constant 8 : index
    %c0_294 = arith.constant 0 : index
    %c0_295 = arith.constant 0 : index
    %313 = vector.load %arg34[%c8_293, %c0_294, %c0_295] : memref<9x64x64xf32, #tpu.memory_space<vmem>>, vector<1x64x64xf32>
    %314 = vector.shape_cast %313 : vector<1x64x64xf32> to vector<64x64xf32>
    %cst_296 = arith.constant dense<0.000000e+00> : vector<64x64xf32>
    %315 = tpu.matmul %291, %314, %cst_296 {dimension_numbers = #tpu.dot_dimension_numbers<[1], [0], [0], [1], [0, 0, 1, 1], [], []>} : vector<64x64xf32>, vector<64x64xf32>, vector<64x64xf32> -> vector<64x64xf32>
    %316 = tpu.concatenate %294, %297, %300, %303, %291, %306, %309, %312, %315 in 0 : vector<64x64xf32>, vector<64x64xf32>, vector<64x64xf32>, vector<64x64xf32>, vector<64x64xf32>, vector<64x64xf32>, vector<64x64xf32>, vector<64x64xf32>, vector<64x64xf32> -> vector<576x64xf32>
    %317 = arith.truncf %316 : vector<576x64xf32> to vector<576x64xbf16>
    %c0_297 = arith.constant 0 : index
    %c0_298 = arith.constant 0 : index
    %318 = vector.load %arg28[%c0_297, %c0_298] : memref<32x576xbf16, #tpu.memory_space<vmem>>, vector<32x576xbf16>
    %cst_299 = arith.constant dense<0.000000e+00> : vector<32x64xf32>
    %319 = tpu.matmul %318, %317, %cst_299 {dimension_numbers = #tpu.dot_dimension_numbers<[1], [0], [0], [1], [0, 0, 1, 1], [], []>} : vector<32x576xbf16>, vector<576x64xbf16>, vector<32x64xf32> -> vector<32x64xf32>
    %c0_300 = arith.constant 0 : index
    %c0_301 = arith.constant 0 : index
    %320 = vector.load %arg29[%c0_300, %c0_301] : memref<32x64xf32, #tpu.memory_space<vmem>>, vector<32x64xf32>
    %321 = arith.addf %319, %320 : vector<32x64xf32>
    %cst_302 = arith.constant 0.000000e+00 : f32
    %322 = vector.broadcast %cst_302 : f32 to vector<32x64xf32>
    %323 = arith.cmpf oge, %321, %322 : vector<32x64xf32>
    %cst_303 = arith.constant 2.000000e-01 : f32
    %324 = vector.broadcast %cst_303 : f32 to vector<32x64xf32>
    %325 = arith.mulf %324, %321 : vector<32x64xf32>
    %326 = arith.select %323, %321, %325 : vector<32x64xi1>, vector<32x64xf32>
    %c0_304 = arith.constant 0 : index
    %c0_305 = arith.constant 0 : index
    %327 = vector.load %arg9[%c0_304, %c0_305] : memref<64x256xf32, #tpu.memory_space<vmem>>, vector<64x256xf32>
    %cst_306 = arith.constant dense<0.000000e+00> : vector<32x256xf32>
    %328 = tpu.matmul %326, %327, %cst_306 {dimension_numbers = #tpu.dot_dimension_numbers<[1], [0], [0], [1], [0, 0, 1, 1], [], []>} : vector<32x64xf32>, vector<64x256xf32>, vector<32x256xf32> -> vector<32x256xf32>
    %329 = tpu.concatenate %328, %69 in 0 : vector<32x256xf32>, vector<32x256xf32> -> vector<64x256xf32>
    %c17_i32_307 = arith.constant 17 : i32
    %330 = tpu.dynamic_rotate %329 by %c17_i32_307 dim 1 : vector<64x256xf32>, i32 -> vector<64x256xf32>
    %cst_308 = arith.constant 0.000000e+00 : f32
    %331 = vector.shape_cast %11 : vector<1x256xi1> to vector<1x256xi1>
    %332 = vector.broadcast %331 : vector<1x256xi1> to vector<64x256xi1>
    %333 = vector.broadcast %cst_308 : f32 to vector<64x256xf32>
    %334 = arith.select %332, %330, %333 : vector<64x256xi1>, vector<64x256xf32>
    %c16_i32_309 = arith.constant 16 : i32
    %335 = tpu.dynamic_rotate %329 by %c16_i32_309 dim 1 : vector<64x256xf32>, i32 -> vector<64x256xf32>
    %cst_310 = arith.constant 0.000000e+00 : f32
    %336 = vector.shape_cast %4 : vector<1x256xi1> to vector<1x256xi1>
    %337 = vector.broadcast %336 : vector<1x256xi1> to vector<64x256xi1>
    %338 = vector.broadcast %cst_310 : f32 to vector<64x256xf32>
    %339 = arith.select %337, %335, %338 : vector<64x256xi1>, vector<64x256xf32>
    %c15_i32_311 = arith.constant 15 : i32
    %340 = tpu.dynamic_rotate %329 by %c15_i32_311 dim 1 : vector<64x256xf32>, i32 -> vector<64x256xf32>
    %cst_312 = arith.constant 0.000000e+00 : f32
    %341 = vector.shape_cast %12 : vector<1x256xi1> to vector<1x256xi1>
    %342 = vector.broadcast %341 : vector<1x256xi1> to vector<64x256xi1>
    %343 = vector.broadcast %cst_312 : f32 to vector<64x256xf32>
    %344 = arith.select %342, %340, %343 : vector<64x256xi1>, vector<64x256xf32>
    %c1_i32_313 = arith.constant 1 : i32
    %345 = tpu.dynamic_rotate %329 by %c1_i32_313 dim 1 : vector<64x256xf32>, i32 -> vector<64x256xf32>
    %cst_314 = arith.constant 0.000000e+00 : f32
    %346 = vector.shape_cast %8 : vector<1x256xi1> to vector<1x256xi1>
    %347 = vector.broadcast %346 : vector<1x256xi1> to vector<64x256xi1>
    %348 = vector.broadcast %cst_314 : f32 to vector<64x256xf32>
    %349 = arith.select %347, %345, %348 : vector<64x256xi1>, vector<64x256xf32>
    %c255_i32_315 = arith.constant 255 : i32
    %350 = tpu.dynamic_rotate %329 by %c255_i32_315 dim 1 : vector<64x256xf32>, i32 -> vector<64x256xf32>
    %cst_316 = arith.constant 0.000000e+00 : f32
    %351 = vector.shape_cast %10 : vector<1x256xi1> to vector<1x256xi1>
    %352 = vector.broadcast %351 : vector<1x256xi1> to vector<64x256xi1>
    %353 = vector.broadcast %cst_316 : f32 to vector<64x256xf32>
    %354 = arith.select %352, %350, %353 : vector<64x256xi1>, vector<64x256xf32>
    %c241_i32_317 = arith.constant 241 : i32
    %355 = tpu.dynamic_rotate %329 by %c241_i32_317 dim 1 : vector<64x256xf32>, i32 -> vector<64x256xf32>
    %cst_318 = arith.constant 0.000000e+00 : f32
    %356 = vector.shape_cast %13 : vector<1x256xi1> to vector<1x256xi1>
    %357 = vector.broadcast %356 : vector<1x256xi1> to vector<64x256xi1>
    %358 = vector.broadcast %cst_318 : f32 to vector<64x256xf32>
    %359 = arith.select %357, %355, %358 : vector<64x256xi1>, vector<64x256xf32>
    %c240_i32_319 = arith.constant 240 : i32
    %360 = tpu.dynamic_rotate %329 by %c240_i32_319 dim 1 : vector<64x256xf32>, i32 -> vector<64x256xf32>
    %cst_320 = arith.constant 0.000000e+00 : f32
    %361 = vector.shape_cast %6 : vector<1x256xi1> to vector<1x256xi1>
    %362 = vector.broadcast %361 : vector<1x256xi1> to vector<64x256xi1>
    %363 = vector.broadcast %cst_320 : f32 to vector<64x256xf32>
    %364 = arith.select %362, %360, %363 : vector<64x256xi1>, vector<64x256xf32>
    %c239_i32_321 = arith.constant 239 : i32
    %365 = tpu.dynamic_rotate %329 by %c239_i32_321 dim 1 : vector<64x256xf32>, i32 -> vector<64x256xf32>
    %cst_322 = arith.constant 0.000000e+00 : f32
    %366 = vector.shape_cast %14 : vector<1x256xi1> to vector<1x256xi1>
    %367 = vector.broadcast %366 : vector<1x256xi1> to vector<64x256xi1>
    %368 = vector.broadcast %cst_322 : f32 to vector<64x256xf32>
    %369 = arith.select %367, %365, %368 : vector<64x256xi1>, vector<64x256xf32>
    %370 = tpu.concatenate %334, %339, %344, %349, %329, %354, %359, %364, %369 in 0 : vector<64x256xf32>, vector<64x256xf32>, vector<64x256xf32>, vector<64x256xf32>, vector<64x256xf32>, vector<64x256xf32>, vector<64x256xf32>, vector<64x256xf32>, vector<64x256xf32> -> vector<576x256xf32>
    %371 = arith.truncf %370 : vector<576x256xf32> to vector<576x256xbf16>
    %c0_323 = arith.constant 0 : index
    %c0_324 = arith.constant 0 : index
    %372 = vector.load %arg30[%c0_323, %c0_324] : memref<32x576xbf16, #tpu.memory_space<vmem>>, vector<32x576xbf16>
    %cst_325 = arith.constant dense<0.000000e+00> : vector<32x256xf32>
    %373 = tpu.matmul %372, %371, %cst_325 {dimension_numbers = #tpu.dot_dimension_numbers<[1], [0], [0], [1], [0, 0, 1, 1], [], []>} : vector<32x576xbf16>, vector<576x256xbf16>, vector<32x256xf32> -> vector<32x256xf32>
    %c0_326 = arith.constant 0 : index
    %c0_327 = arith.constant 0 : index
    %374 = vector.load %arg31[%c0_326, %c0_327] : memref<32x256xf32, #tpu.memory_space<vmem>>, vector<32x256xf32>
    %375 = arith.addf %373, %374 : vector<32x256xf32>
    %cst_328 = arith.constant 0.000000e+00 : f32
    %376 = vector.broadcast %cst_328 : f32 to vector<32x256xf32>
    %377 = arith.cmpf oge, %375, %376 : vector<32x256xf32>
    %cst_329 = arith.constant 2.000000e-01 : f32
    %378 = vector.broadcast %cst_329 : f32 to vector<32x256xf32>
    %379 = arith.mulf %378, %375 : vector<32x256xf32>
    %380 = arith.select %377, %375, %379 : vector<32x256xi1>, vector<32x256xf32>
    %c17_i32_330 = arith.constant 17 : i32
    %381 = tpu.dynamic_rotate %380 by %c17_i32_330 dim 1 : vector<32x256xf32>, i32 -> vector<32x256xf32>
    %cst_331 = arith.constant 0.000000e+00 : f32
    %382 = vector.shape_cast %11 : vector<1x256xi1> to vector<1x256xi1>
    %383 = vector.broadcast %382 : vector<1x256xi1> to vector<32x256xi1>
    %384 = vector.broadcast %cst_331 : f32 to vector<32x256xf32>
    %385 = arith.select %383, %381, %384 : vector<32x256xi1>, vector<32x256xf32>
    %c16_i32_332 = arith.constant 16 : i32
    %386 = tpu.dynamic_rotate %380 by %c16_i32_332 dim 1 : vector<32x256xf32>, i32 -> vector<32x256xf32>
    %cst_333 = arith.constant 0.000000e+00 : f32
    %387 = vector.shape_cast %4 : vector<1x256xi1> to vector<1x256xi1>
    %388 = vector.broadcast %387 : vector<1x256xi1> to vector<32x256xi1>
    %389 = vector.broadcast %cst_333 : f32 to vector<32x256xf32>
    %390 = arith.select %388, %386, %389 : vector<32x256xi1>, vector<32x256xf32>
    %c15_i32_334 = arith.constant 15 : i32
    %391 = tpu.dynamic_rotate %380 by %c15_i32_334 dim 1 : vector<32x256xf32>, i32 -> vector<32x256xf32>
    %cst_335 = arith.constant 0.000000e+00 : f32
    %392 = vector.shape_cast %12 : vector<1x256xi1> to vector<1x256xi1>
    %393 = vector.broadcast %392 : vector<1x256xi1> to vector<32x256xi1>
    %394 = vector.broadcast %cst_335 : f32 to vector<32x256xf32>
    %395 = arith.select %393, %391, %394 : vector<32x256xi1>, vector<32x256xf32>
    %c1_i32_336 = arith.constant 1 : i32
    %396 = tpu.dynamic_rotate %380 by %c1_i32_336 dim 1 : vector<32x256xf32>, i32 -> vector<32x256xf32>
    %cst_337 = arith.constant 0.000000e+00 : f32
    %397 = vector.shape_cast %8 : vector<1x256xi1> to vector<1x256xi1>
    %398 = vector.broadcast %397 : vector<1x256xi1> to vector<32x256xi1>
    %399 = vector.broadcast %cst_337 : f32 to vector<32x256xf32>
    %400 = arith.select %398, %396, %399 : vector<32x256xi1>, vector<32x256xf32>
    %c255_i32_338 = arith.constant 255 : i32
    %401 = tpu.dynamic_rotate %380 by %c255_i32_338 dim 1 : vector<32x256xf32>, i32 -> vector<32x256xf32>
    %cst_339 = arith.constant 0.000000e+00 : f32
    %402 = vector.shape_cast %10 : vector<1x256xi1> to vector<1x256xi1>
    %403 = vector.broadcast %402 : vector<1x256xi1> to vector<32x256xi1>
    %404 = vector.broadcast %cst_339 : f32 to vector<32x256xf32>
    %405 = arith.select %403, %401, %404 : vector<32x256xi1>, vector<32x256xf32>
    %c241_i32_340 = arith.constant 241 : i32
    %406 = tpu.dynamic_rotate %380 by %c241_i32_340 dim 1 : vector<32x256xf32>, i32 -> vector<32x256xf32>
    %cst_341 = arith.constant 0.000000e+00 : f32
    %407 = vector.shape_cast %13 : vector<1x256xi1> to vector<1x256xi1>
    %408 = vector.broadcast %407 : vector<1x256xi1> to vector<32x256xi1>
    %409 = vector.broadcast %cst_341 : f32 to vector<32x256xf32>
    %410 = arith.select %408, %406, %409 : vector<32x256xi1>, vector<32x256xf32>
    %c240_i32_342 = arith.constant 240 : i32
    %411 = tpu.dynamic_rotate %380 by %c240_i32_342 dim 1 : vector<32x256xf32>, i32 -> vector<32x256xf32>
    %cst_343 = arith.constant 0.000000e+00 : f32
    %412 = vector.shape_cast %6 : vector<1x256xi1> to vector<1x256xi1>
    %413 = vector.broadcast %412 : vector<1x256xi1> to vector<32x256xi1>
    %414 = vector.broadcast %cst_343 : f32 to vector<32x256xf32>
    %415 = arith.select %413, %411, %414 : vector<32x256xi1>, vector<32x256xf32>
    %c239_i32_344 = arith.constant 239 : i32
    %416 = tpu.dynamic_rotate %380 by %c239_i32_344 dim 1 : vector<32x256xf32>, i32 -> vector<32x256xf32>
    %cst_345 = arith.constant 0.000000e+00 : f32
    %417 = vector.shape_cast %14 : vector<1x256xi1> to vector<1x256xi1>
    %418 = vector.broadcast %417 : vector<1x256xi1> to vector<32x256xi1>
    %419 = vector.broadcast %cst_345 : f32 to vector<32x256xf32>
    %420 = arith.select %418, %416, %419 : vector<32x256xi1>, vector<32x256xf32>
    %421 = tpu.concatenate %385, %390, %395, %400, %380, %405, %410, %415, %420 in 0 : vector<32x256xf32>, vector<32x256xf32>, vector<32x256xf32>, vector<32x256xf32>, vector<32x256xf32>, vector<32x256xf32>, vector<32x256xf32>, vector<32x256xf32>, vector<32x256xf32> -> vector<288x256xf32>
    %422 = arith.truncf %421 : vector<288x256xf32> to vector<288x256xbf16>
    %c0_346 = arith.constant 0 : index
    %c0_347 = arith.constant 0 : index
    %423 = vector.load %arg32[%c0_346, %c0_347] : memref<1x288xbf16, #tpu.memory_space<vmem>>, vector<1x288xbf16>
    %cst_348 = arith.constant dense<0.000000e+00> : vector<1x256xf32>
    %424 = tpu.matmul %423, %422, %cst_348 {dimension_numbers = #tpu.dot_dimension_numbers<[1], [0], [0], [1], [0, 0, 1, 1], [], []>} : vector<1x288xbf16>, vector<288x256xbf16>, vector<1x256xf32> -> vector<1x256xf32>
    %c0_349 = arith.constant 0 : index
    %c0_350 = arith.constant 0 : index
    %425 = vector.load %arg33[%c0_349, %c0_350] : memref<1x256xf32, #tpu.memory_space<vmem>>, vector<1x256xf32>
    %426 = arith.addf %424, %425 : vector<1x256xf32>
    %cst_351 = arith.constant 1.000000e+00 : f32
    %427 = vector.broadcast %cst_351 : f32 to vector<1x256xf32>
    %428 = arith.addf %426, %427 : vector<1x256xf32>
    %429 = arith.negf %428 : vector<1x256xf32>
    %430 = math.exp %429 : vector<1x256xf32>
    %cst_352 = arith.constant 1.000000e+00 : f32
    %431 = vector.broadcast %cst_352 : f32 to vector<1x256xf32>
    %432 = arith.addf %431, %430 : vector<1x256xf32>
    %433 = arith.divf %431, %432 : vector<1x256xf32>
    %c0_353 = arith.constant 0 : index
    %c0_354 = arith.constant 0 : index
    %434 = vector.load %arg10[%c0_353, %c0_354] : memref<16x256xf32, #tpu.memory_space<vmem>>, vector<16x256xf32>
    %435 = vector.broadcast %433 : vector<1x256xf32> to vector<16x256xf32>
    %436 = arith.mulf %434, %435 : vector<16x256xf32>
    %c0_355 = arith.constant 0 : index
    %c0_356 = arith.constant 0 : index
    %437 = vector.load %arg11[%c0_355, %c0_356] : memref<256x16xf32, #tpu.memory_space<vmem>>, vector<256x16xf32>
    %cst_357 = arith.constant dense<0.000000e+00> : vector<16x16xf32>
    %438 = tpu.matmul %436, %437, %cst_357 {dimension_numbers = #tpu.dot_dimension_numbers<[1], [0], [0], [1], [0, 0, 1, 1], [], []>} : vector<16x256xf32>, vector<256x16xf32>, vector<16x16xf32> -> vector<16x16xf32>
    %c0_358 = arith.constant 0 : index
    %c0_359 = arith.constant 0 : index
    %439 = vector.load %arg12[%c0_358, %c0_359] : memref<32x16xf32, #tpu.memory_space<vmem>>, vector<32x16xf32>
    %cst_360 = arith.constant dense<0.000000e+00> : vector<32x16xf32>
    %440 = tpu.matmul %439, %438, %cst_360 {dimension_numbers = #tpu.dot_dimension_numbers<[1], [0], [0], [1], [0, 0, 1, 1], [], []>} : vector<32x16xf32>, vector<16x16xf32>, vector<32x16xf32> -> vector<32x16xf32>
    %c0_361 = arith.constant 0 : index
    %c0_362 = arith.constant 0 : index
    %441 = vector.load %arg13[%c0_361, %c0_362] : memref<16x32xf32, #tpu.memory_space<vmem>>, vector<16x32xf32>
    %cst_363 = arith.constant dense<0.000000e+00> : vector<32x32xf32>
    %442 = tpu.matmul %440, %441, %cst_363 {dimension_numbers = #tpu.dot_dimension_numbers<[1], [0], [0], [1], [0, 0, 1, 1], [], []>} : vector<32x16xf32>, vector<16x32xf32>, vector<32x32xf32> -> vector<32x32xf32>
    %c0_364 = arith.constant 0 : index
    %c0_365 = arith.constant 0 : index
    %c0_366 = arith.constant 0 : index
    %443 = vector.load %arg37[%c0_364, %c0_365, %c0_366] : memref<1x32x32xf32, #tpu.memory_space<vmem>>, vector<1x32x32xf32>
    %444 = vector.shape_cast %443 : vector<1x32x32xf32> to vector<32x32xf32>
    %445 = vector.shape_cast %442 : vector<32x32xf32> to vector<1x32x32xf32>
    tpu.vector_store %arg37[%c0_364, %c0_365, %c0_366], %445 {strides = array<i32>} : memref<1x32x32xf32, #tpu.memory_space<vmem>>, vector<1x32x32xf32>,
    return
  }
  func.func @transform_0(%arg0: i32) -> (i32, i32, i32) {
    %c0_i32 = arith.constant 0 : i32
    %c0_i32_0 = arith.constant 0 : i32
    %c0_i32_1 = arith.constant 0 : i32
    return %arg0, %c0_i32, %c0_i32_0 : i32, i32, i32
  }
  func.func @transform_1(%arg0: i32) -> (i32, i32, i32) {
    %c0_i32 = arith.constant 0 : i32
    %c0_i32_0 = arith.constant 0 : i32
    %c0_i32_1 = arith.constant 0 : i32
    return %arg0, %c0_i32, %c0_i32_0 : i32, i32, i32
  }
  func.func @transform_2(%arg0: i32) -> (i32, i32) {
    %c0_i32 = arith.constant 0 : i32
    %c0_i32_0 = arith.constant 0 : i32
    %c0_i32_1 = arith.constant 0 : i32
    return %c0_i32, %c0_i32_0 : i32, i32
  }
  func.func @transform_3(%arg0: i32) -> (i32, i32) {
    %c0_i32 = arith.constant 0 : i32
    %c0_i32_0 = arith.constant 0 : i32
    %c0_i32_1 = arith.constant 0 : i32
    return %c0_i32, %c0_i32_0 : i32, i32
  }
  func.func @transform_4(%arg0: i32) -> (i32, i32) {
    %c0_i32 = arith.constant 0 : i32
    %c0_i32_0 = arith.constant 0 : i32
    %c0_i32_1 = arith.constant 0 : i32
    return %c0_i32, %c0_i32_0 : i32, i32
  }
  func.func @transform_5(%arg0: i32) -> (i32, i32) {
    %c0_i32 = arith.constant 0 : i32
    %c0_i32_0 = arith.constant 0 : i32
    %c0_i32_1 = arith.constant 0 : i32
    return %c0_i32, %c0_i32_0 : i32, i32
  }
  func.func @transform_6(%arg0: i32) -> (i32, i32) {
    %c0_i32 = arith.constant 0 : i32
    %c0_i32_0 = arith.constant 0 : i32
    %c0_i32_1 = arith.constant 0 : i32
    return %c0_i32, %c0_i32_0 : i32, i32
  }
  func.func @transform_7(%arg0: i32) -> (i32, i32) {
    %c0_i32 = arith.constant 0 : i32
    %c0_i32_0 = arith.constant 0 : i32
    %c0_i32_1 = arith.constant 0 : i32
    return %c0_i32, %c0_i32_0 : i32, i32
  }
  func.func @transform_8(%arg0: i32) -> (i32, i32) {
    %c0_i32 = arith.constant 0 : i32
    %c0_i32_0 = arith.constant 0 : i32
    %c0_i32_1 = arith.constant 0 : i32
    return %c0_i32, %c0_i32_0 : i32, i32
  }
  func.func @transform_9(%arg0: i32) -> (i32, i32) {
    %c0_i32 = arith.constant 0 : i32
    %c0_i32_0 = arith.constant 0 : i32
    %c0_i32_1 = arith.constant 0 : i32
    return %c0_i32, %c0_i32_0 : i32, i32
  }
  func.func @transform_10(%arg0: i32) -> (i32, i32) {
    %c0_i32 = arith.constant 0 : i32
    %c0_i32_0 = arith.constant 0 : i32
    %c0_i32_1 = arith.constant 0 : i32
    return %c0_i32, %c0_i32_0 : i32, i32
  }
  func.func @transform_11(%arg0: i32) -> (i32, i32) {
    %c0_i32 = arith.constant 0 : i32
    %c0_i32_0 = arith.constant 0 : i32
    %c0_i32_1 = arith.constant 0 : i32
    return %c0_i32, %c0_i32_0 : i32, i32
  }
  func.func @transform_12(%arg0: i32) -> (i32, i32) {
    %c0_i32 = arith.constant 0 : i32
    %c0_i32_0 = arith.constant 0 : i32
    %c0_i32_1 = arith.constant 0 : i32
    return %c0_i32, %c0_i32_0 : i32, i32
  }
  func.func @transform_13(%arg0: i32) -> (i32, i32) {
    %c0_i32 = arith.constant 0 : i32
    %c0_i32_0 = arith.constant 0 : i32
    %c0_i32_1 = arith.constant 0 : i32
    return %c0_i32, %c0_i32_0 : i32, i32
  }
  func.func @transform_14(%arg0: i32) -> (i32, i32) {
    %c0_i32 = arith.constant 0 : i32
    %c0_i32_0 = arith.constant 0 : i32
    %c0_i32_1 = arith.constant 0 : i32
    return %c0_i32, %c0_i32_0 : i32, i32
  }
  func.func @transform_15(%arg0: i32) -> (i32, i32) {
    %c0_i32 = arith.constant 0 : i32
    %c0_i32_0 = arith.constant 0 : i32
    %c0_i32_1 = arith.constant 0 : i32
    return %c0_i32, %c0_i32_0 : i32, i32
  }
  func.func @transform_16(%arg0: i32) -> (i32, i32) {
    %c0_i32 = arith.constant 0 : i32
    %c0_i32_0 = arith.constant 0 : i32
    %c0_i32_1 = arith.constant 0 : i32
    return %c0_i32, %c0_i32_0 : i32, i32
  }
  func.func @transform_17(%arg0: i32) -> (i32, i32) {
    %c0_i32 = arith.constant 0 : i32
    %c0_i32_0 = arith.constant 0 : i32
    %c0_i32_1 = arith.constant 0 : i32
    return %c0_i32, %c0_i32_0 : i32, i32
  }
  func.func @transform_18(%arg0: i32) -> (i32, i32) {
    %c0_i32 = arith.constant 0 : i32
    %c0_i32_0 = arith.constant 0 : i32
    %c0_i32_1 = arith.constant 0 : i32
    return %c0_i32, %c0_i32_0 : i32, i32
  }
  func.func @transform_19(%arg0: i32) -> (i32, i32) {
    %c0_i32 = arith.constant 0 : i32
    %c0_i32_0 = arith.constant 0 : i32
    %c0_i32_1 = arith.constant 0 : i32
    return %c0_i32, %c0_i32_0 : i32, i32
  }
  func.func @transform_20(%arg0: i32) -> (i32, i32) {
    %c0_i32 = arith.constant 0 : i32
    %c0_i32_0 = arith.constant 0 : i32
    %c0_i32_1 = arith.constant 0 : i32
    return %c0_i32, %c0_i32_0 : i32, i32
  }
  func.func @transform_21(%arg0: i32) -> (i32, i32) {
    %c0_i32 = arith.constant 0 : i32
    %c0_i32_0 = arith.constant 0 : i32
    %c0_i32_1 = arith.constant 0 : i32
    return %c0_i32, %c0_i32_0 : i32, i32
  }
  func.func @transform_22(%arg0: i32) -> (i32, i32) {
    %c0_i32 = arith.constant 0 : i32
    %c0_i32_0 = arith.constant 0 : i32
    %c0_i32_1 = arith.constant 0 : i32
    return %c0_i32, %c0_i32_0 : i32, i32
  }
  func.func @transform_23(%arg0: i32) -> (i32, i32) {
    %c0_i32 = arith.constant 0 : i32
    %c0_i32_0 = arith.constant 0 : i32
    %c0_i32_1 = arith.constant 0 : i32
    return %c0_i32, %c0_i32_0 : i32, i32
  }
  func.func @transform_24(%arg0: i32) -> (i32, i32) {
    %c0_i32 = arith.constant 0 : i32
    %c0_i32_0 = arith.constant 0 : i32
    %c0_i32_1 = arith.constant 0 : i32
    return %c0_i32, %c0_i32_0 : i32, i32
  }
  func.func @transform_25(%arg0: i32) -> (i32, i32) {
    %c0_i32 = arith.constant 0 : i32
    %c0_i32_0 = arith.constant 0 : i32
    %c0_i32_1 = arith.constant 0 : i32
    return %c0_i32, %c0_i32_0 : i32, i32
  }
  func.func @transform_26(%arg0: i32) -> (i32, i32) {
    %c0_i32 = arith.constant 0 : i32
    %c0_i32_0 = arith.constant 0 : i32
    %c0_i32_1 = arith.constant 0 : i32
    return %c0_i32, %c0_i32_0 : i32, i32
  }
  func.func @transform_27(%arg0: i32) -> (i32, i32) {
    %c0_i32 = arith.constant 0 : i32
    %c0_i32_0 = arith.constant 0 : i32
    %c0_i32_1 = arith.constant 0 : i32
    return %c0_i32, %c0_i32_0 : i32, i32
  }
  func.func @transform_28(%arg0: i32) -> (i32, i32) {
    %c0_i32 = arith.constant 0 : i32
    %c0_i32_0 = arith.constant 0 : i32
    %c0_i32_1 = arith.constant 0 : i32
    return %c0_i32, %c0_i32_0 : i32, i32
  }
  func.func @transform_29(%arg0: i32) -> (i32, i32) {
    %c0_i32 = arith.constant 0 : i32
    %c0_i32_0 = arith.constant 0 : i32
    %c0_i32_1 = arith.constant 0 : i32
    return %c0_i32, %c0_i32_0 : i32, i32
  }
  func.func @transform_30(%arg0: i32) -> (i32, i32) {
    %c0_i32 = arith.constant 0 : i32
    %c0_i32_0 = arith.constant 0 : i32
    %c0_i32_1 = arith.constant 0 : i32
    return %c0_i32, %c0_i32_0 : i32, i32
  }
  func.func @transform_31(%arg0: i32) -> (i32, i32) {
    %c0_i32 = arith.constant 0 : i32
    %c0_i32_0 = arith.constant 0 : i32
    %c0_i32_1 = arith.constant 0 : i32
    return %c0_i32, %c0_i32_0 : i32, i32
  }
  func.func @transform_32(%arg0: i32) -> (i32, i32) {
    %c0_i32 = arith.constant 0 : i32
    %c0_i32_0 = arith.constant 0 : i32
    %c0_i32_1 = arith.constant 0 : i32
    return %c0_i32, %c0_i32_0 : i32, i32
  }
  func.func @transform_33(%arg0: i32) -> (i32, i32, i32) {
    %c0_i32 = arith.constant 0 : i32
    %c0_i32_0 = arith.constant 0 : i32
    %c0_i32_1 = arith.constant 0 : i32
    %c0_i32_2 = arith.constant 0 : i32
    return %c0_i32, %c0_i32_0, %c0_i32_1 : i32, i32, i32
  }
  func.func @transform_34(%arg0: i32) -> (i32, i32, i32) {
    %c0_i32 = arith.constant 0 : i32
    %c0_i32_0 = arith.constant 0 : i32
    %c0_i32_1 = arith.constant 0 : i32
    %c0_i32_2 = arith.constant 0 : i32
    return %c0_i32, %c0_i32_0, %c0_i32_1 : i32, i32, i32
  }
  func.func @transform_35(%arg0: i32) -> (i32, i32, i32) {
    %c0_i32 = arith.constant 0 : i32
    %c0_i32_0 = arith.constant 0 : i32
    %c0_i32_1 = arith.constant 0 : i32
    %c0_i32_2 = arith.constant 0 : i32
    return %c0_i32, %c0_i32_0, %c0_i32_1 : i32, i32, i32
  }
  func.func @transform_36(%arg0: i32) -> (i32, i32, i32) {
    %c0_i32 = arith.constant 0 : i32
    %c0_i32_0 = arith.constant 0 : i32
    %c0_i32_1 = arith.constant 0 : i32
    return %arg0, %c0_i32, %c0_i32_0 : i32, i32, i32
  }
}

</mosaic_0001>

<bundles_post_ra>
// kernel: shadow_unet_pose_cond_forward.1
= control target key start
LH: loop header
LB: loop body
LE: loop exit
PB: predicated region body
PF: predicated region fallthrough
CT: control target
= control target key end

     0   :  { %s14909_s6 = smov 1   ;;  %s14910_s10 = smov 2   ;;  %s18093_s0 = inlined_call_operand.smem [shape: u32[37], index: -1, kind: input, shape index: {}] }
   0x1   :  { %s14981_s5 = sld [smem:[%s18093_s0]]   ;;  %s14911_s14 = smov 3  }
   0x2   :  { %s14986_s9 = sld [smem:[%s18093_s0 + %s14909_s6]]   ;;  %s14912_s18 = smov 4  }
   0x3   :  { %s14991_s13 = sld [smem:[%s18093_s0 + %s14910_s10]]   ;;  %s14913_s22 = smov 5  }
   0x4   :  { %s14996_s17 = sld [smem:[%s18093_s0 + %s14911_s14]]   ;;  %s14914_s26 = smov 6  }
   0x5   :  { %s15001_s21 = sld [smem:[%s18093_s0 + %s14912_s18]]   ;;  %s14915_s30 = smov 7  }
   0x6   :  { %s15006_s25 = sld [smem:[%s18093_s0 + %s14913_s22]]   ;;  %s14916_s4 = smov 8  }
   0x7   :  { %18238 = sst [smem:[#allocation23_spill]] %s14981_s5  ;;  %s14917_s10 = smov 9  }
   0x8   :  { %18239 = sst [smem:[#allocation24_spill]] %s14986_s9  ;;  %s14918_s15 = smov 10  }
   0x9   :  { %s15011_s29 = sld [smem:[%s18093_s0 + %s14914_s26]]   ;;  %s14919_s20 = smov 11  }
   0xa   :  { %s15016_s3 = sld [smem:[%s18093_s0 + %s14915_s30]]   ;;  %s14920_s26 = smov 12  }
   0xb   :  { %s15021_s8 = sld [smem:[%s18093_s0 + %s14916_s4]]   ;;  %s14921_s1 = smov 13  }
   0xc   :  { %18240 = sst [smem:[#allocation25_spill]] %s15006_s25  ;;  %s14922_s7 = smov 14  }
   0xd   :  { %s15026_s14 = sld [smem:[%s18093_s0 + %s14917_s10]]   ;;  %s14924_s22 = smov 16  }
   0xe   :  { %s15031_s19 = sld [smem:[%s18093_s0 + %s14918_s15]]   ;;  %s14923_s15 = smov 15  }
   0xf   :  { %18241 = sst [smem:[#allocation26_spill]] %s15011_s29  ;;  %s14925_s28 = smov 17  }
  0x10   :  { %18242 = sst [smem:[#allocation27_spill]] %s15016_s3 }
  0x11   :  { %18243 = sst [smem:[#allocation28_spill]] %s15021_s8 }
  0x12   :  { %s15036_s24 = sld [smem:[%s18093_s0 + %s14919_s20]]  }
  0x13   :  { %18244 = sst [smem:[#allocation29_spill]] %s15026_s14 }
  0x14   :  { %18245 = sst [smem:[#allocation30_spill]] %s15031_s19 }
  0x15   :  { %s15041_s30 = sld [smem:[%s18093_s0 + %s14920_s26]]  }
  0x16   :  { %s15046_s6 = sld [smem:[%s18093_s0 + %s14921_s1]]  }
  0x17   :  { %s15051_s12 = sld [smem:[%s18093_s0 + %s14922_s7]]   ;;  %s14926_s7 = smov 18  }
  0x18   :  { %18246 = sst [smem:[#allocation31_spill]] %s15036_s24 }
  0x19   :  { %s15056_s20 = sld [smem:[%s18093_s0 + %s14923_s15]]   ;;  %s14927_s15 = smov 19  }
  0x1a   :  { %s15061_s27 = sld [smem:[%s18093_s0 + %s14924_s22]]   ;;  %s14928_s22 = smov 20  }
  0x1b   :  { %s15066_s4 = sld [smem:[%s18093_s0 + %s14925_s28]]   ;;  %s14929_s28 = smov 21  }
  0x1c   :  { %18247 = sst [smem:[#allocation32_spill]] %s15046_s6 }
  0x1d   :  { %18248 = sst [smem:[#allocation33_spill]] %s15051_s12 }
  0x1e   :  { %s15071_s24 = sld [smem:[%s18093_s0 + %s14926_s7]]   ;;  %s14930_s7 = smov 22  }
  0x1f   :  { %s15076_s14 = sld [smem:[%s18093_s0 + %s14927_s15]]   ;;  %s14931_s15 = smov 23  }
  0x20   :  { %s15081_s19 = sld [smem:[%s18093_s0 + %s14928_s22]]   ;;  %s14932_s22 = smov 24  }
  0x21   :  { %18249 = sst [smem:[#allocation34_spill]] %s15066_s4 }
  0x22   :  { %s15086_s8 = sld [smem:[%s18093_s0 + %s14929_s28]]   ;;  %s14933_s28 = smov 25  }
  0x23   :  { %s15091_s9 = sld [smem:[%s18093_s0 + %s14930_s7]]   ;;  %s14934_s7 = smov 26  }
  0x24   :  { %18250 = sst [smem:[#allocation35_spill]] %s15071_s24 }
  0x25   :  { %18251 = sst [smem:[#allocation36_spill]] %s15076_s14 }
  0x26   :  { %18252 = sst [smem:[#allocation37_spill]] %s15081_s19 }
  0x27   :  { %s15096_s14 = sld [smem:[%s18093_s0 + %s14931_s15]]   ;;  %s14935_s15 = smov 27  }
  0x28   :  { %18253 = sst [smem:[#allocation38_spill]] %s15086_s8 }
  0x29   :  { %18254 = sst [smem:[#allocation39_spill]] %s15091_s9 }
  0x2a   :  { %s15101_s19 = sld [smem:[%s18093_s0 + %s14932_s22]]   ;;  %s14936_s22 = smov 28  }
  0x2b   :  { %s15106_s24 = sld [smem:[%s18093_s0 + %s14933_s28]]   ;;  %s14937_s28 = smov 29  }
  0x2c   :  { %s15111_s9 = sld [smem:[%s18093_s0 + %s14934_s7]]   ;;  %s14938_s7 = smov 30  }
  0x2d   :  { %18255 = sst [smem:[#allocation40_spill]] %s15096_s14 }
  0x2e   :  { %s15116_s14 = sld [smem:[%s18093_s0 + %s14935_s15]]   ;;  %s14939_s15 = smov 31  }
  0x30   :  { %18256 = sst [smem:[#allocation41_spill]] %s15101_s19 }
  0x31   :  { %18257 = sst [smem:[#allocation42_spill]] %s15106_s24 }
  0x32   :  { %18258 = sst [smem:[#allocation43_spill]] %s15111_s9 }
  0x33   :  { %s15121_s19 = sld [smem:[%s18093_s0 + %s14936_s22]]   ;;  %s14940_s22 = smov 32  }
  0x34   :  { %18259 = sst [smem:[#allocation44_spill]] %s15116_s14 }
  0x35   :  { %s15126_s24 = sld [smem:[%s18093_s0 + %s14937_s28]]   ;;  %s14941_s28 = smov 33  }
  0x36   :  { %s15131_s9 = sld [smem:[%s18093_s0 + %s14938_s7]]   ;;  %s14942_s7 = smov 34  }
  0x37   :  { %s15136_s14 = sld [smem:[%s18093_s0 + %s14939_s15]]   ;;  %s14943_s15 = smov 35  }
  0x38   :  { %s15156_s25 = sld [smem:[%s18093_s0 + %s14943_s15]]  }
  0x39   :  { %18260 = sst [smem:[#allocation45_spill]] %s15121_s19 }
  0x3a   :  { %s15141_s19 = sld [smem:[%s18093_s0 + %s14940_s22]]   ;;  %s14944_s22 = smov 36  }
  0x3b   :  { %18261 = sst [smem:[#allocation46_spill]] %s15126_s24 }
  0x3c   :  { %18262 = sst [smem:[#allocation47_spill]] %s15131_s9 }
  0x3d   :  { %s15146_s24 = sld [smem:[%s18093_s0 + %s14941_s28]]  }
  0x3e   :  { %s15151_s9 = sld [smem:[%s18093_s0 + %s14942_s7]]  }
  0x3f   :  { %s15161_s4 = sld [smem:[%s18093_s0 + %s14944_s22]]  }
  0x44   :  { %18263 = sst [smem:[#allocation48_spill]] %s15151_s9 }
  0x45   :  { %18264 = sst [smem:[#allocation49_spill]] %s15161_s4 }
  0x46   :  { %78 = vsyncpa [#allocation3], 0 }
  0x47   :  { %79 = vsyncpa [#allocation6], 0 }
  0x48   :  { %80 = vsyncpa [#allocation9], 0 }
  0x49   :  { %81 = vsyncpa [#allocation12], 0 }
  0x4a   :  { %82 = vsyncpa [#allocation15], 0 }
  0x4b   :  { %83 = vsyncpa [#allocation4], 0 }
  0x4c   :  { %85 = vsyncpa [#allocation4 + $0x1], 0  ;;  %s15163_s28 = smov 0   ;;  %s15165_s1 = smov 0  }
  0x4d   :  { %18265 = sst [smem:[#allocation50_spill]] %s15163_s28  ;;  %s15167_s2 = smov 0  }
  0x4e   :  { %s15169_s7 = smov 0  }
  0x4f LB: > { %s18267_s4 = sld [smem:[#allocation49_spill]]  ;;  %s18269_s9 = sld [smem:[#allocation48_spill]]  ;;  %s14903_s2 = sphi %s15167_s2, %s18672_s2   ;;  %s14899_s1 = sphi %s15165_s1, %s18674_s1   ;;  %s14907_s7 = sphi %s15169_s7, %s18670_s7  }
  0x50   : > { %s18268_s12 = sld [smem:[#allocation33_spill]]  ;;  %s18270_s8 = sld [smem:[#allocation38_spill]] }
  0x51   : > { %s18271_s6 = sld [smem:[#allocation32_spill]]  ;;  %s18272_s3 = sld [smem:[#allocation27_spill]] }
  0x52   : > { %s18273_s29 = sld [smem:[#allocation26_spill]]  ;;  %18276 = sst [smem:[#allocation51_spill]] %s14903_s2 }
  0x53   : > { %s18274_s28 = sld [smem:[#allocation50_spill]]  ;;  %18277 = sst [smem:[#allocation52_spill]] %s14907_s7 }
  0x54   : > { %s15184_s0 = sadd.s32 4294967295, %s14907_s7   ;;  %s10678_s10 = sadd.s32 4294967294, %s14907_s7  }
  0x55   : > { %s15188_s11 = sadd.s32 1, %s14907_s7   ;;  %s864_s15 = sadd.s32 1, %s14903_s2 }
  0x56   : > { %18278 = sst [smem:[#allocation53_spill]] %s15188_s11  ;;  %s861_s16 = ssub.s32 %s14907_s7, %s15188_s11 }
  0x57   : > { %p874_p0 = scmp.ne.s32.totalorder %s14903_s2, %s14899_s1  ;;  %p862_p1 = scmp.eq.s32.totalorder %s861_s16, 0 }
  0x58   : > { %p875_p2 = scmp.eq.s32.totalorder %s15184_s0, 1  ;;  %p881_p4 = scmp.eq.s32.totalorder %s10678_s10, 1 }
  0x59   : > { %18275 = sst [smem:[#allocation50_spill]] %s18274_s28  ;;  %p880_p3 = scmp.ne.s32.totalorder %s14899_s1, %s18274_s28 }
  0x5a   : > { %s15199_s18 = scalar_select %p862_p1, %s14903_s2, %s864_s15  }
  0x5b   : > { %p15201_p5 = por %p875_p2, %p874_p0  ;;  %p15205_p6 = por %p881_p4, %p880_p3 }
  0x5c   : > { %18279 = sst [smem:[#allocation54_spill]] %s15199_s18  ;;  %p10679_p7 = scmp.ge.s32.totalorder %s14907_s7, 1 }
  0x5d   : > { %s18280_s22 = scalar_select %p15201_p5, 1, 0 }
  0x5e   : > { %s18282_s23 = scalar_select %p15205_p6, 1, 0 }
  0x5f   : > { %18281 = sst [smem:[#allocation55_spill]] %s18280_s22  ;;  %p888_p8 = scmp.lt.s32.totalorder %s14907_s7, 3 }
  0x60   : > { %18283 = sst [smem:[#allocation56_spill]] %s18282_s23  ;;  %p18116_p9 = scmp.eq.s32.totalorder %s15184_s0, 0 }
  0x61   : > { %p15212_p10 = pnand %p10679_p7, %p888_p8  ;;  %s14945_s10 = smov [#allocation5]  }
  0x62   : > { %s921_s15 = sshll.u32 %s14945_s10, 4  ;;  %s14946_s18 = smov [#allocation8]   ;;  %s922_s15 = int_to_ptr.vmem [resolvable:$true] %s921_s15 }
  0x63   : > { %s18284_s26 = scalar_select %p15212_p10, 1, 0 }
  0x64   : > { %p13847_p11 = pneg %p15212_p10  ;;  %s956_s2 = sshll.u32 %s14946_s18, 4  ;;  %s15224_s2 = int_to_ptr.vmem [resolvable:$true] %s956_s2 }
  0x65   : > { %s14601_s11 = scalar_lea.hbm %s18273_s29, 64 }
  0x66   : > { %p15220_p12 = pnand %p18116_p9, %p13847_p11  ;;  %p14602_p13 = scmp.ne.s32.totalorder %s18273_s29, %s14601_s11 }
  0x67   : > { %p14608_p3 = scmp.lt.u32.totalorder %s14601_s11, %s18273_s29 }
  0x68   : > { %p15230_p0 = pneg %p15220_p12 }
  0x6a   : > { %p14604_p1 = pnand %p15230_p0, %p14602_p13 }
  0x6c   : > { %p14605_p2 = pneg %p14604_p1 }
  0x6e   : > { %p14610_p4 = pnand %p14608_p3, %p14605_p2 }
  0x70   : > { %14613 = shalt.err (!%p14610_p4)
}
  0x71   : > { %s14614_s10 = scalar_lea.vmem %s922_s15, 64  ;;  %p14622_p9 = scmp.lt.s32.totalorder %s922_s15, %s922_s15 }
  0x72   : > { %p14615_p7 = scmp.ne.s32.totalorder %s922_s15, %s14614_s10  ;;  %p14623_p6 = scmp.lt.s32.totalorder %s14614_s10, %s14614_s10 }
  0x74   : > { %p14617_p8 = pnand %p14615_p7, %p15230_p0  ;;  %p14624_p5 = por %p14623_p6, %p14622_p9 }
  0x76   : > { %p14618_p11 = pneg %p14617_p8 }
  0x78   : > { %p14625_p10 = pnand %p14624_p5, %p14618_p11 }
  0x7a   : > { %14628 = shalt.err (!%p14625_p10)
}
  0x7b   : > { %13853 = dma.hbm_to_vmem [thread:$0]  (!%p15220_p12), %s18273_s29, 64, %s922_s15, [#allocation6]  }
  0x7c   : > { %s14629_s11 = scalar_lea.hbm %s15041_s30, 256 }
  0x7d   : > { %p14630_p13 = scmp.ne.s32.totalorder %s15041_s30, %s14629_s11  ;;  %p14636_p3 = scmp.lt.u32.totalorder %s14629_s11, %s15041_s30 }
  0x7f   : > { %p14632_p1 = pnand %p14630_p13, %p15230_p0 }
  0x81   : > { %p14633_p2 = pneg %p14632_p1 }
  0x83   : > { %p14638_p4 = pnand %p14636_p3, %p14633_p2 }
  0x85   : > { %14641 = shalt.err (!%p14638_p4)
}
  0x86   : > { %s14642_s18 = scalar_lea.vmem %s15224_s2, 256  ;;  %p14650_p10 = scmp.lt.s32.totalorder %s15224_s2, %s15224_s2 }
  0x87   : > { %p14643_p5 = scmp.ne.s32.totalorder %s15224_s2, %s14642_s18  ;;  %p14651_p7 = scmp.lt.s32.totalorder %s14642_s18, %s14642_s18 }
  0x89   : > { %p14645_p6 = pnand %p14643_p5, %p15230_p0  ;;  %p14652_p8 = por %p14651_p7, %p14650_p10 }
  0x8b   : > { %p14646_p9 = pneg %p14645_p6 }
  0x8d   : > { %p14653_p11 = pnand %p14652_p8, %p14646_p9 }
  0x8f   : > { %14656 = shalt.err (!%p14653_p11)
}
  0x90   : > { %s14947_s15 = smov 128   ;;  %s14948_s10 = smov 8  }
  0x91   : > { %13859 = dma.hbm_to_vmem [thread:$0]  (!%p15220_p12), %s15041_s30, 256, %s15224_s2, [#allocation9], %s14947_s15, %s14947_s15, %s14948_s10  }
  0x92   : > { %s14949_s11 = smov [#allocation11]   ;;  %s14950_s18 = smov [#allocation2]  }
  0x93   : > { %s1003_s29 = sshll.u32 %s14949_s11, 4  ;;  %s901_s28 = sshll.u32 %s14950_s18, 4  ;;  %s1004_s29 = int_to_ptr.vmem [resolvable:$true] %s1003_s29  ;;  %s15260_s28 = int_to_ptr.vmem [resolvable:$true] %s901_s28 }
  0x94   : > { %s14657_s7 = scalar_lea.hbm %s18270_s8, 256 }
  0x95   : > { %p14658_p13 = scmp.ne.s32.totalorder %s18270_s8, %s14657_s7  ;;  %p14664_p3 = scmp.lt.u32.totalorder %s14657_s7, %s18270_s8 }
  0x97   : > { %p14660_p1 = pnand %p14658_p13, %p15230_p0 }
  0x99   : > { %p14661_p2 = pneg %p14660_p1 }
  0x9b   : > { %p14666_p4 = pnand %p14664_p3, %p14661_p2 }
  0x9d   : > { %14669 = shalt.err (!%p14666_p4)
}
  0x9e   : > { %s14670_s22 = scalar_lea.vmem %s1004_s29, 256  ;;  %p14678_p10 = scmp.lt.s32.totalorder %s1004_s29, %s1004_s29 }
  0x9f   : > { %p14671_p5 = scmp.ne.s32.totalorder %s1004_s29, %s14670_s22  ;;  %p14679_p7 = scmp.lt.s32.totalorder %s14670_s22, %s14670_s22 }
  0xa1   : > { %p14673_p6 = pnand %p14671_p5, %p15230_p0  ;;  %p14680_p8 = por %p14679_p7, %p14678_p10 }
  0xa3   : > { %p14674_p9 = pneg %p14673_p6 }
  0xa5   : > { %p14681_p11 = pnand %p14680_p8, %p14674_p9 }
  0xa7   : > { %14684 = shalt.err (!%p14681_p11)
}
  0xa8   : > { %s18124_s2 = smov 64   ;;  %s18125_s7 = smov 4  }
  0xa9   : > { %13865 = dma.hbm_to_vmem [thread:$0]  (!%p15220_p12), %s18270_s8, 256, %s1004_s29, [#allocation12], %s18124_s2, %s18124_s2, %s18125_s7  }
  0xaa   : > { %s14685_s11 = scalar_lea.hbm %s14991_s13, 256 }
  0xab   : > { %p14686_p13 = scmp.ne.s32.totalorder %s14991_s13, %s14685_s11  ;;  %p14692_p3 = scmp.lt.u32.totalorder %s14685_s11, %s14991_s13 }
  0xad   : > { %p14688_p1 = pnand %p14686_p13, %p15230_p0 }
  0xaf   : > { %p14689_p2 = pneg %p14688_p1 }
  0xb1   : > { %p14694_p4 = pnand %p14692_p3, %p14689_p2 }
  0xb3   : > { %14697 = shalt.err (!%p14694_p4)
}
  0xb4   : > { %s14698_s22 = scalar_lea.vmem %s15260_s28, 256  ;;  %p14706_p10 = scmp.lt.s32.totalorder %s15260_s28, %s15260_s28 }
  0xb5   : > { %p14699_p5 = scmp.ne.s32.totalorder %s15260_s28, %s14698_s22  ;;  %p14707_p7 = scmp.lt.s32.totalorder %s14698_s22, %s14698_s22 }
  0xb7   : > { %p14701_p6 = pnand %p14699_p5, %p15230_p0  ;;  %p14708_p8 = por %p14707_p7, %p14706_p10 }
  0xb9   : > { %p14702_p9 = pneg %p14701_p6 }
  0xbb   : > { %p14709_p11 = pnand %p14708_p8, %p14702_p9 }
  0xbd   : > { %14712 = shalt.err (!%p14709_p11)
}
  0xbe   : > { %13850 = dma.hbm_to_vmem [thread:$0]  (!%p15220_p12), %s14991_s13, 256, %s15260_s28, [#allocation3]  }
  0xbf   : > { %s14953_s29 = smov [#allocation7]   ;;  %s14954_s11 = smov [#allocation10]  }
  0xc0   : > { %s931_s18 = sshll.u32 %s14953_s29, 4  ;;  %s969_s2 = sshll.u32 %s14954_s11, 4  ;;  %s932_s18 = int_to_ptr.vmem [resolvable:$true] %s931_s18  ;;  %s15290_s2 = int_to_ptr.vmem [resolvable:$true] %s969_s2 }
  0xc1   : > { %s14713_s22 = scalar_lea.hbm %s18272_s3, 256 }
  0xc2   : > { %p14714_p13 = scmp.ne.s32.totalorder %s18272_s3, %s14713_s22  ;;  %p14720_p3 = scmp.lt.u32.totalorder %s14713_s22, %s18272_s3 }
  0xc4   : > { %p14716_p1 = pnand %p14714_p13, %p15230_p0 }
  0xc6   : > { %p14717_p2 = pneg %p14716_p1 }
  0xc8   : > { %p14722_p4 = pnand %p14720_p3, %p14717_p2 }
  0xca   : > { %14725 = shalt.err (!%p14722_p4)
}
  0xcb   : > { %s14726_s7 = scalar_lea.vmem %s932_s18, 256  ;;  %p14734_p10 = scmp.lt.s32.totalorder %s932_s18, %s932_s18 }
  0xcc   : > { %p14727_p5 = scmp.ne.s32.totalorder %s932_s18, %s14726_s7  ;;  %p14735_p7 = scmp.lt.s32.totalorder %s14726_s7, %s14726_s7 }
  0xce   : > { %p14729_p6 = pnand %p14727_p5, %p15230_p0  ;;  %p14736_p8 = por %p14735_p7, %p14734_p10 }
  0xd0   : > { %p14730_p9 = pneg %p14729_p6 }
  0xd2   : > { %p14737_p11 = pnand %p14736_p8, %p14730_p9 }
  0xd4   : > { %14740 = shalt.err (!%p14737_p11)
}
  0xd5   : > { %13856 = dma.hbm_to_vmem [thread:$0]  (!%p15220_p12), %s18272_s3, 256, %s932_s18, [#allocation6], %s14947_s15, %s14947_s15, %s14948_s10  }
  0xd6   : > { %s14741_s28 = scalar_lea.hbm %s18271_s6, 256 }
  0xd7   : > { %p14742_p13 = scmp.ne.s32.totalorder %s18271_s6, %s14741_s28  ;;  %p14748_p3 = scmp.lt.u32.totalorder %s14741_s28, %s18271_s6 }
  0xd9   : > { %p14744_p1 = pnand %p14742_p13, %p15230_p0 }
  0xdb   : > { %p14745_p2 = pneg %p14744_p1 }
  0xdd   : > { %p14750_p4 = pnand %p14748_p3, %p14745_p2 }
  0xdf   : > { %14753 = shalt.err (!%p14750_p4)
}
  0xe0   : > { %s14754_s7 = scalar_lea.vmem %s15290_s2, 256  ;;  %p14762_p10 = scmp.lt.s32.totalorder %s15290_s2, %s15290_s2 }
  0xe1   : > { %p14755_p5 = scmp.ne.s32.totalorder %s15290_s2, %s14754_s7  ;;  %p14763_p7 = scmp.lt.s32.totalorder %s14754_s7, %s14754_s7 }
  0xe3   : > { %p14757_p6 = pnand %p14755_p5, %p15230_p0  ;;  %p14764_p8 = por %p14763_p7, %p14762_p10 }
  0xe5   : > { %p14758_p9 = pneg %p14757_p6 }
  0xe7   : > { %p14765_p11 = pnand %p14764_p8, %p14758_p9 }
  0xe9   : > { %14768 = shalt.err (!%p14765_p11)
}
  0xea   : > { %s18287_s15 = smov 4   ;;  %s18288_s10 = smov 64  }
  0xeb   : > { %13862 = dma.hbm_to_vmem [thread:$0]  (!%p15220_p12), %s18271_s6, 256, %s15290_s2, [#allocation9], %s18288_s10, %s18288_s10, %s18287_s15  }
  0xec   : > { %s14955_s29 = smov [#allocation13]   ;;  %s14956_s11 = smov [#allocation14]  }
  0xed   : > { %s1044_s18 = sshll.u32 %s14955_s29, 4  ;;  %s1055_s22 = sshll.u32 %s14956_s11, 4  ;;  %s1045_s18 = int_to_ptr.vmem [resolvable:$true] %s1044_s18  ;;  %s15323_s22 = int_to_ptr.vmem [resolvable:$true] %s1055_s22 }
  0xee   : > { %s14769_s28 = scalar_lea.hbm %s15136_s14, 48 }
  0xef   : > { %p14770_p13 = scmp.ne.s32.totalorder %s15136_s14, %s14769_s28  ;;  %p14776_p3 = scmp.lt.u32.totalorder %s14769_s28, %s15136_s14 }
  0xf1   : > { %p14772_p1 = pnand %p14770_p13, %p15230_p0 }
  0xf3   : > { %p14773_p2 = pneg %p14772_p1 }
  0xf5   : > { %p14778_p4 = pnand %p14776_p3, %p14773_p2 }
  0xf7   : > { %14781 = shalt.err (!%p14778_p4)
}
  0xf8   : > { %s14782_s7 = scalar_lea.vmem %s1045_s18, 48  ;;  %s14789_s2 = scalar_lea.vmem %s1045_s18, 64 }
  0xf9   : > { %p14783_p5 = scmp.ne.s32.totalorder %s1045_s18, %s14782_s7  ;;  %p14790_p10 = scmp.lt.s32.totalorder %s1045_s18, %s1045_s18 }
  0xfa   : > { %p14791_p7 = scmp.lt.s32.totalorder %s14789_s2, %s14782_s7 }
  0xfb   : > { %p14785_p6 = pnand %p14783_p5, %p15230_p0 }
  0xfc   : > { %p14792_p8 = por %p14791_p7, %p14790_p10 }
  0xfd   : > { %p14786_p9 = pneg %p14785_p6 }
  0xff   : > { %p14793_p11 = pnand %p14792_p8, %p14786_p9 }
 0x101   : > { %14796 = shalt.err (!%p14793_p11)
}
 0x102   : > { %13868 = dma.hbm_to_vmem [thread:$0]  (!%p15220_p12), %s15136_s14, 48, %s1045_s18, [#allocation12]  }
 0x103   : > { %s14797_s15 = scalar_lea.hbm %s15141_s19, 32 }
 0x104   : > { %p14798_p13 = scmp.ne.s32.totalorder %s15141_s19, %s14797_s15  ;;  %p14804_p3 = scmp.lt.u32.totalorder %s14797_s15, %s15141_s19 }
 0x106   : > { %p14800_p1 = pnand %p14798_p13, %p15230_p0 }
 0x108   : > { %p14801_p2 = pneg %p14800_p1 }
 0x10a   : > { %p14806_p4 = pnand %p14804_p3, %p14801_p2 }
 0x10c   : > { %14809 = shalt.err (!%p14806_p4)
}
 0x10d   : > { %s14810_s10 = scalar_lea.vmem %s15323_s22, 32  ;;  %p14818_p10 = scmp.lt.s32.totalorder %s15323_s22, %s15323_s22 }
 0x10e   : > { %p14811_p5 = scmp.ne.s32.totalorder %s15323_s22, %s14810_s10  ;;  %p14819_p7 = scmp.lt.s32.totalorder %s14810_s10, %s14810_s10 }
 0x110   : > { %p14813_p6 = pnand %p14811_p5, %p15230_p0  ;;  %p14820_p8 = por %p14819_p7, %p14818_p10 }
 0x112   : > { %p14814_p9 = pneg %p14813_p6 }
 0x114   : > { %p14821_p11 = pnand %p14820_p8, %p14814_p9 }
 0x116   : > { %14824 = shalt.err (!%p14821_p11)
}
 0x117   : > { %13871 = dma.hbm_to_vmem [thread:$0]  (!%p15220_p12), %s15141_s19, 32, %s15323_s22, [#allocation15]  }
 0x118   : > { %p18289_p13 = scmp.ne.s32.totalorder %s18284_s26, 0 }
 0x11a   : > { %1092 = sbr.rel (%p18289_p13) target bundleno = 6812 (0x1a9c), region = 164 }
 0x121   : > { %p18290_p1 = scmp.eq.s32.totalorder %s15184_s0, 0 }
 0x123   : > { %14870 = dma.done.wait (%p18290_p1), [#allocation3], 256   ;;  %p18291_p0 = pmov %p18290_p1 }
 0x125   : > { %14872 = vsyncadd (%p18291_p0), [#allocation3], 4294967040  ;;  %p18292_p2 = pmov %p18291_p0 }
 0x126   : > { %p18293_p3 = pmov %p18291_p0 }
 0x127   : > { %14874 = dma.done.wait (%p18292_p2), [#allocation6], 320  }
 0x128   : > { %14876 = vsyncadd (%p18293_p3), [#allocation6], 4294966976  ;;  %p18294_p4 = pmov %p18291_p0 }
 0x129   : > { %p18295_p12 = pmov %p18291_p0 }
 0x12a   : > { %14878 = dma.done.wait (%p18294_p4), [#allocation9], 512  }
 0x12b   : > { %14880 = vsyncadd (%p18295_p12), [#allocation9], 4294966784  ;;  %p18296_p5 = pmov %p18291_p0 }
 0x12c   : > { %p18297_p6 = pmov %p18291_p0 }
 0x12d   : > { %14882 = dma.done.wait (%p18296_p5), [#allocation12], 304  }
 0x12e   : > { %14884 = vsyncadd (%p18297_p6), [#allocation12], 4294966992  ;;  %p18298_p9 = pmov %p18291_p0 }
 0x12f   : > { %p18299_p10 = pmov %p18291_p0 }
 0x130   : > { %14886 = dma.done.wait (%p18298_p9), [#allocation15], 32  }
 0x131   : > { %14888 = vsyncadd (%p18299_p10), [#allocation15], 4294967264  ;;  %s18300_s5 = sld [smem:[#allocation23_spill]]  ;;  %p1214_p7 = scmp.lt.s32.totalorder %s15184_s0, 1  ;;  %v1247_v2 = vld [vmem:[#allocation2] sm:$0xff]  ;;  %v1248_v3 = vld [vmem:[#allocation2 + $0x8] sm:$0xff]  ;;  %v18134_v44 = vlaneseq }
 0x132   : > { %s18206_s29 = smov 15   ;;  %s18216_s18 = smov 17   ;;  %v18135_v7 = vmov 0   ;;  %v1494_v8 = vld [vmem:[%s14996_s17 + $0x80] sm:$0xff]  ;;  %v1495_v9 = vld [vmem:[%s14996_s17 + $0x88] sm:$0xff]  ;;  %v1496_v13 = vld [vmem:[%s14996_s17 + $0x90] sm:$0xff] }
 0x133   : > { %s15374_s23 = scalar_select %p1214_p7, %s15184_s0, 1  ;;  %1433 = vmatprep.mubr.bf16.mxu0 %v18135_v7  ;;  %14028 = vset.pattern.permute.xlu0 %v18135_v7  ;;  %v1478_v10 = vld [vmem:[%s14996_s17] sm:$0xff]  ;;  %v13356_v11 = vpack.c.bf16 %v1495_v9, %v1494_v8  ;;  %v1479_v12 = vld [vmem:[%s14996_s17 + $0x8] sm:$0xff]  ;;  %v1497_v14 = vld [vmem:[%s14996_s17 + $0x98] sm:$0xff]  ;;  %v15419_v45 = vand.u32 127, %v18134_v44  ;;  %v18303_v51 = vmov 0 }
 0x134   : > { %s18204_s11 = smov 1   ;;  %s18214_s22 = smov 16   ;;  %v13358_v15 = vpack.c.bf16 %v1479_v12, %v1478_v10  ;;  %v13360_v16 = vpack.c.bf16 %v1497_v14, %v1496_v13  ;;  %v1480_v17 = vld [vmem:[%s14996_s17 + $0x10] sm:$0xff]  ;;  %v1481_v18 = vld [vmem:[%s14996_s17 + $0x18] sm:$0xff]  ;;  %v1498_v19 = vld [vmem:[%s14996_s17 + $0xa0] sm:$0xff]  ;;  %v18306_v56 = vmov 0 }
 0x135   : > { %s11494_s26 = sshll.u32 %s15374_s23, 4  ;;  %s18218_s28 = smov 127   ;;  %13357 = vmatprep.subr.bf16.mxu1 %v13356_v11  ;;  %v1499_v20 = vld [vmem:[%s14996_s17 + $0xa8] sm:$0xff]  ;;  %v13362_v21 = vpack.c.bf16 %v1481_v18, %v1480_v17  ;;  %v1482_v23 = vld [vmem:[%s14996_s17 + $0x20] sm:$0xff]  ;;  %v1500_v25 = vld [vmem:[%s14996_s17 + $0xb0] sm:$0xff]  ;;  %18301 = vst [vmem:[#allocation57_spill] sm:$0xff] %v15419_v45 }
 0x136   : > { %s18176_s7 = smov 113   ;;  %s18174_s2 = smov 112   ;;  %13359 = vmatpush3.bf16.msra.mxu1 %v13358_v15  ;;  %v13364_v22 = vpack.c.bf16 %v1499_v20, %v1498_v19  ;;  %v1483_v24 = vld [vmem:[%s14996_s17 + $0x28] sm:$0xff]  ;;  %v1501_v26 = vld [vmem:[%s14996_s17 + $0xb8] sm:$0xff]  ;;  %v1484_v27 = vld [vmem:[%s14996_s17 + $0x30] sm:$0xff]  ;;  %v15422_v46 = vadd.s32 128, %v15419_v45 }
 0x137   : > { %s1218_s16 = scalar_lea.vmem %s18300_s5, %s11494_s26  ;;  %s18171_s15 = smov 111   ;;  %13361 = vmatprep.subr.bf16.mxu1 %v13360_v16  ;;  %v1485_v28 = vld [vmem:[%s14996_s17 + $0x38] sm:$0xff]  ;;  %v13366_v29 = vpack.c.bf16 %v1483_v24, %v1482_v23  ;;  %v1502_v30 = vld [vmem:[%s14996_s17 + $0xc0] sm:$0xff]  ;;  %v1503_v31 = vld [vmem:[%s14996_s17 + $0xc8] sm:$0xff]  ;;  %v13368_v32 = vpack.c.bf16 %v1501_v26, %v1500_v25  ;;  %v1227_v47 = vand.u32 15, %v15419_v45  ;;  %vm18128_vm0 = vcmp.ge.s32.totalorder %v15419_v45, 16 }
 0x138   : > { %v1245_v0 = vld [vmem:[%s1218_s16] sm:$0xff]  ;;  %v1246_v1 = vld [vmem:[%s1218_s16 + $0x8] sm:$0xff]  ;;  %v13370_v33 = vpack.c.bf16 %v1485_v28, %v1484_v27  ;;  %v13372_v34 = vpack.c.bf16 %v1503_v31, %v1502_v30  ;;  %v1504_v37 = vld [vmem:[%s14996_s17 + $0xd0] sm:$0xff]  ;;  %18302 = vst [vmem:[#allocation58_spill] sm:$0xff] %v15422_v46  ;;  %v1228_v48 = vand.u32 15, %v15422_v46  ;;  %vm18126_vm2 = vcmp.lt.s32.totalorder %v15419_v45, 15 }
 0x139   : > { %v15378_v4 = vsub.f32 %v1245_v0, %v1247_v2  ;;  %v15380_v5 = vsub.f32 %v1246_v1, %v1248_v3  ;;  %v1486_v35 = vld [vmem:[%s14996_s17 + $0x40] sm:$0xff]  ;;  %v1487_v36 = vld [vmem:[%s14996_s17 + $0x48] sm:$0xff]  ;;  %v1505_v38 = vld [vmem:[%s14996_s17 + $0xd8] sm:$0xff]  ;;  %vm15427_vm1 = vcmp.ge.s32.totalorder %v1227_v47, 1  ;;  %vm18130_vm4 = vcmp.lt.s32.totalorder %v15419_v45, 17  ;;  %s18366_s10 = sld [smem:[#allocation34_spill]] }
 0x13a   : > { %13363 = vmatpush3.bf16.msra.mxu1 %v13362_v21  ;;  %v13374_v39 = vpack.c.bf16 %v1487_v36, %v1486_v35  ;;  %v13376_v40 = vpack.c.bf16 %v1505_v38, %v1504_v37  ;;  %v1488_v41 = vld [vmem:[%s14996_s17 + $0x50] sm:$0xff]  ;;  %v1489_v42 = vld [vmem:[%s14996_s17 + $0x58] sm:$0xff]  ;;  %v18304_v51 = vsel %vm15427_vm1, 4294967295, %v18303_v51  ;;  %vm15432_vm3 = vcmp.ge.s32.totalorder %v1228_v48, 1  ;;  %vm15444_vm8 = vmand %vm18128_vm0, %vm15427_vm1  ;;  %s18367_s26 = sld [smem:[#allocation25_spill]]  ;;  %s18368_s16 = sld [smem:[#allocation35_spill]] }
 0x13b   : > { %v13998_v6 = vpack.i.bf16 %v15380_v5, %v15378_v4  ;;  %13365 = vmatprep.subr.bf16.mxu1 %v13364_v22  ;;  %v13378_v43 = vpack.c.bf16 %v1489_v42, %v1488_v41  ;;  %18305 = vst [vmem:[#allocation59_spill] sm:$0xff] %v18304_v51  ;;  %v18307_v56 = vsel %vm15432_vm3, 4294967295, %v18306_v56  ;;  %vm18127_vm5 = vcmp.lt.s32.totalorder %v15419_v45, 1  ;;  %vm15480_vm14 = vmpackc.low %vm18128_vm0, %vm15444_vm8  ;;  %v1492_v3 = vld [vmem:[%s14996_s17 + $0x70] sm:$0xff]  ;;  %v10735_v12 = vld [vmem:[%s15146_s24 + $0x40] sm:$0xff]  ;;  %s18425_s6 = smov 1  }
 0x13c   : > { %18308 = vst [vmem:[#allocation60_spill] sm:$0xff] %v18307_v56  ;;  %vm18129_vm6 = vcmp.lt.s32.totalorder %v15419_v45, 16  ;;  %vm18131_vm7 = vcmp.lt.s32.totalorder %v15419_v45, 127  ;;  %v18309_v59 = vmov 0  ;;  %vm15448_vm9 = vcmp.le.s32.totalorder %v1227_v47, 14  ;;  %v10807_v44 = vld [vmem:[%s15146_s24 + $0x200] sm:$0xff] }
 0x13d   : > { %13999 = vrot.lane.b32.xlu1 %v13998_v6, %s18206_s29  ;;  %13989 = vrot.lane.b32.xlu0 %v13998_v6, %s18216_s18  ;;  %v18310_v59 = vsel %vm15444_vm8, 4294967295, %v18309_v59  ;;  %v18312_v60 = vmov 0  ;;  %vm18173_vm10 = vcmp.lt.s32.totalorder %v15419_v45, 113  ;;  %vm14966_vm11 = vmmov 1   ;;  %vm15492_vm15 = vmand %vm18128_vm0, %vm15448_vm9  ;;  %s18426_s8 = smov 127  }
 0x13e   : > { %13367 = vmatpush3.bf16.msra.mxu1 %v13366_v29  ;;  %18311 = vst [vmem:[#allocation61_spill] sm:$0xff] %v18310_v59  ;;  %v18313_v60 = vsel %vm15448_vm9, 4294967295, %v18312_v60  ;;  %vm15460_vm12 = vmpackc.low %vm14966_vm11, %vm15432_vm3  ;;  %vm15464_vm13 = vcmp.le.s32.totalorder %v1228_v48, 14  ;;  %v18322_v19 = vmov 0  ;;  %vm18132_vm0 = vcmp.lt.s32.totalorder %v15419_v45, 112 }
 0x13f   : > { %13369 = vmatprep.subr.bf16.mxu1 %v13368_v32  ;;  %18314 = vst [vmem:[#allocation62_spill] sm:$0xff] %v18313_v60  ;;  %v18323_v19 = vsel %vm15492_vm15, 4294967295, %v18322_v19  ;;  %v18325_v36 = vmov 0  ;;  %v18328_v37 = vmov 0 }
 0x140   : > { %18324 = vst [vmem:[#allocation64_spill] sm:$0xff] %v18323_v19 }
 0x141   : > { %14004 = vrot.lane.b32.xlu1 %v13998_v6, %s18204_s11  ;;  %13994 = vrot.lane.b32.xlu0 %v13998_v6, %s18214_s22 }
 0x142   : > { %13371 = vmatpush3.bf16.msra.mxu1 %v13370_v33 }
 0x143   : > { %13373 = vmatprep.subr.bf16.mxu1 %v13372_v34 }
 0x145   : > { %14009 = vrot.lane.b32.xlu0 %v13998_v6, %s18218_s28  ;;  %14014 = vrot.lane.b32.xlu1 %v13998_v6, %s18176_s7 }
 0x146   : > { %13375 = vmatpush3.bf16.msra.mxu1 %v13374_v39 }
 0x147   : > { %13377 = vmatprep.subr.bf16.mxu1 %v13376_v40 }
 0x149   : > { %14019 = vrot.lane.b32.xlu0 %v13998_v6, %s18174_s2  ;;  %14024 = vrot.lane.b32.xlu1 %v13998_v6, %s18171_s15  ;;  %v18317_v6 = vmov 0  ;;  %s18369_s15 = sld [smem:[#allocation24_spill]]  ;;  %s10701_s2 = sshll.u32 %s15374_s23, 3 }
 0x14a   : > { %13379 = vmatpush3.bf16.msra.mxu1 %v13378_v43  ;;  %v18318_v6 = vsel %vm15464_vm13, 4294967295, %v18317_v6  ;;  %s18370_s23 = sld [smem:[#allocation36_spill]] }
 0x14b   : > { %18319 = vst [vmem:[#allocation63_spill] sm:$0xff] %v18318_v6  ;;  %v2388_v6 = vld [vmem:[%s15061_s27 + $0x18] sm:$0xff] }
 0x14f   : > { %s1222_s7 = scalar_lea.vmem %s18369_s15, %s10701_s2  ;;  %s18375_s2 = sld [smem:[#allocation39_spill]] }
 0x155   : > { %s18376_s11 = smov %s18375_s2 }
 0x1af   : > { %v14000_v49 = vpop.permute.xlu1 %13999  ;;  %v13990_v50 = vpop.permute.xlu0 %13989 }
 0x1b0   : > { %v14002_v52 = vunpack.i.h.bf16 %v14000_v49  ;;  %v14001_v53 = vunpack.i.l.bf16 %v14000_v49  ;;  %v13992_v54 = vunpack.i.h.bf16 %v13990_v50  ;;  %v13991_v55 = vunpack.i.l.bf16 %v13990_v50 }
 0x1b2   : > { %v1282_v1 = vsel %vm18126_vm2, %v14001_v53, %v14002_v52  ;;  %v1256_v2 = vsel %vm18130_vm4, %v13991_v55, %v13992_v54  ;;  %v1257_v10 = vsel %vm18130_vm4, %v13992_v54, %v13991_v55  ;;  %v1283_v13 = vsel %vm18126_vm2, %v14002_v52, %v14001_v53  ;;  %vm10710_vm2 = vmpackc.low %vm15432_vm3, %vm15464_vm13  ;;  %v14509_v53 = vld [vmem:[#allocation10] sm:$0xff]   ;;  %v14510_v54 = vld [vmem:[#allocation10 + $0x8] sm:$0xff]  }
 0x1b3   : > { %v14005_v57 = vpop.permute.xlu1 %14004  ;;  %v13995_v58 = vpop.permute.xlu0 %13994  ;;  %vm10713_vm4 = vmpackc.low %vm15427_vm1, %vm15492_vm15  ;;  %v1506_v55 = vld [vmem:[%s14996_s17 + $0xe0] sm:$0xff] }
 0x1b4   : > { %v14007_v61 = vunpack.i.h.bf16 %v14005_v57  ;;  %v14006_v62 = vunpack.i.l.bf16 %v14005_v57  ;;  %v13997_v63 = vunpack.i.h.bf16 %v13995_v58  ;;  %v13996_v0 = vunpack.i.l.bf16 %v13995_v58  ;;  %v1507_v57 = vld [vmem:[%s14996_s17 + $0xe8] sm:$0xff] }
 0x1b5   : > { %v13380_v58 = vpack.c.bf16 %v1507_v57, %v1506_v55  ;;  %v1375_v57 = vld [vmem:[%s18268_s12 + $0x30] sm:$0xff] }
 0x1b6   : > { %v1295_v8 = vsel %vm18127_vm5, %v14006_v62, %v14007_v61  ;;  %v1269_v9 = vsel %vm18129_vm6, %v13996_v0, %v13997_v63  ;;  %v1270_v11 = vsel %vm18129_vm6, %v13997_v63, %v13996_v0  ;;  %v1296_v14 = vsel %vm18127_vm5, %v14007_v61, %v14006_v62  ;;  %v1490_v61 = vld [vmem:[%s14996_s17 + $0x60] sm:$0xff]  ;;  %v1491_v62 = vld [vmem:[%s14996_s17 + $0x68] sm:$0xff]  ;;  %v1508_v0 = vld [vmem:[%s14996_s17 + $0xf0] sm:$0xff] }
 0x1b7   : > { %v10705_v15 = vpack.c.bf16 %v1269_v9, %v1256_v2  ;;  %v14010_v16 = vpop.permute.xlu0 %14009  ;;  %v10708_v17 = vpack.c.bf16 %v1270_v11, %v1257_v10  ;;  %v14015_v18 = vpop.permute.xlu1 %14014  ;;  %v10711_v24 = vpack.c.bf16 %v1295_v8, %v1282_v1  ;;  %vm18170_vm5 = vcmp.lt.s32.totalorder %v15422_v46, 240  ;;  %13381 = vmatprep.subr.bf16.mxu1 %v13380_v58  ;;  %v1509_v1 = vld [vmem:[%s14996_s17 + $0xf8] sm:$0xff]  ;;  %v1595_v10 = vld [vmem:[%s15146_s24] sm:$0xff]  ;;  %v1596_v11 = vld [vmem:[%s15146_s24 + $0x8] sm:$0xff] }
 0x1b8   : > { %v14012_v20 = vunpack.i.h.bf16 %v14010_v16  ;;  %v14011_v21 = vunpack.i.l.bf16 %v14010_v16  ;;  %v14017_v22 = vunpack.i.h.bf16 %v14015_v18  ;;  %v14016_v23 = vunpack.i.l.bf16 %v14015_v18  ;;  %v1493_v8 = vld [vmem:[%s14996_s17 + $0x78] sm:$0xff] }
 0x1b9   : > { %10706 = vmatprep.subr.msk.bf16.mxu0 %vm15460_vm12, %v10705_v15  ;;  %vm18133_vm6 = vcmp.lt.s32.totalorder %v15419_v45, 111  ;;  %v10714_v29 = vpack.c.bf16 %v1296_v14, %v1283_v13  ;;  %vm10716_vm12 = vmpackc.low %vm15464_vm13, %vm14966_vm11  ;;  %v13382_v63 = vpack.c.bf16 %v1491_v62, %v1490_v61  ;;  %v13384_v2 = vpack.c.bf16 %v1509_v1, %v1508_v0  ;;  %v10736_v14 = vld [vmem:[%s15146_s24 + $0x48] sm:$0xff]  ;;  %v1597_v15 = vld [vmem:[%s15146_s24 + $0x10] sm:$0xff] }
 0x1ba   : > { %v1309_v25 = vsel %vm18131_vm7, %v14012_v20, %v14011_v21  ;;  %10709 = vmatpush1.bf16.msk.msra.mxu0 %vm15480_vm14, %v10708_v17  ;;  %v1308_v26 = vsel %vm18131_vm7, %v14011_v21, %v14012_v20  ;;  %v1322_v27 = vsel %vm18173_vm10, %v14017_v22, %v14016_v23  ;;  %vm15533_vm14 = vmand %vm18170_vm5, %vm15464_vm13  ;;  %v1321_v43 = vsel %vm18173_vm10, %v14016_v23, %v14017_v22  ;;  %v1598_v16 = vld [vmem:[%s15146_s24 + $0x18] sm:$0xff]  ;;  %v1599_v20 = vld [vmem:[%s15146_s24 + $0x20] sm:$0xff] }
 0x1bb   : > { %10712 = vmatprep.subr.msk.bf16.mxu0 %vm10710_vm2, %v10711_v24  ;;  %v14020_v28 = vpop.permute.xlu0 %14019  ;;  %v10717_v30 = vpack.c.bf16 %v1309_v25, %v15380_v5  ;;  %v14025_v31 = vpop.permute.xlu1 %14024  ;;  %vm15525_vm2 = vmand %vm18170_vm5, %vm15432_vm3  ;;  %v18329_v37 = vsel %vm15533_vm14, 4294967295, %v18328_v37  ;;  %v10720_v39 = vpack.c.bf16 %v1308_v26, %v15378_v4  ;;  %13383 = vmatpush3.bf16.msra.mxu1 %v13382_v63  ;;  %v13386_v9 = vpack.c.bf16 %v1493_v8, %v1492_v3  ;;  %v1600_v21 = vld [vmem:[%s15146_s24 + $0x28] sm:$0xff]  ;;  %v1369_v23 = vld [vmem:[%s18268_s12] sm:$0xff] }
 0x1bc   : > { %v14022_v32 = vunpack.i.h.bf16 %v14020_v28  ;;  %v14021_v33 = vunpack.i.l.bf16 %v14020_v28  ;;  %v14027_v34 = vunpack.i.h.bf16 %v14025_v31  ;;  %v14026_v35 = vunpack.i.l.bf16 %v14025_v31  ;;  %18330 = vst [vmem:[#allocation66_spill] sm:$0xff] %v18329_v37  ;;  %vm10719_vm7 = vmpackc.low %vm15448_vm9, %vm14966_vm11  ;;  %13385 = vmatprep.subr.bf16.mxu1 %v13384_v2  ;;  %v1370_v24 = vld [vmem:[%s18268_s12 + $0x8] sm:$0xff]  ;;  %v1371_v26 = vld [vmem:[%s18268_s12 + $0x10] sm:$0xff] }
 0x1bd   : > { %v18326_v36 = vsel %vm15525_vm2, 4294967295, %v18325_v36  ;;  %v15583_v13 = vpack.c.bf16 %v1596_v11, %v1595_v10  ;;  %v15588_v17 = vpack.c.bf16 %v10736_v14, %v10735_v12  ;;  %v15590_v18 = vpack.c.bf16 %v1598_v16, %v1597_v15  ;;  %v1376_v63 = vld [vmem:[%s18268_s12 + $0x38] sm:$0xff] }
 0x1be   : > { %18327 = vst [vmem:[#allocation65_spill] sm:$0xff] %v18326_v36  ;;  %v1335_v5 = vsel %vm18132_vm0, %v14022_v32, %v14021_v33  ;;  %10715 = vmatpush1.bf16.msk.msra.mxu0 %vm10713_vm4, %v10714_v29  ;;  %v1348_v38 = vsel %vm18133_vm6, %v14027_v34, %v14026_v35  ;;  %v1347_v40 = vsel %vm18133_vm6, %v14026_v35, %v14027_v34  ;;  %vm10722_vm0 = vmpackc.low %vm18170_vm5, %vm15525_vm2  ;;  %vm18331_vm4 = vcmp.lt.s32.totalorder %v15419_v45, 112  ;;  %v1372_v29 = vld [vmem:[%s18268_s12 + $0x18] sm:$0xff]  ;;  %v10737_v35 = vld [vmem:[%s15146_s24 + $0x50] sm:$0xff] }
 0x1bf   : > { %v10723_v41 = vpack.c.bf16 %v1335_v5, %v1322_v27  ;;  %10718 = vmatprep.subr.msk.bf16.mxu0 %vm10716_vm12, %v10717_v30  ;;  %v1354_v42 = vsel %vm15533_vm14, %v1348_v38, 0.0  ;;  %v1353_v4 = vsel %vm15448_vm9, %v1347_v40, 0.0  ;;  %v1334_v47 = vsel %vm18331_vm4, %v14021_v33, %v14022_v32  ;;  %vm10725_vm12 = vmpackc.low %vm14966_vm11, %vm15427_vm1  ;;  %13387 = vmatpush3.bf16.msra.mxu1 %v13386_v9  ;;  %v10738_v5 = vld [vmem:[%s15146_s24 + $0x58] sm:$0xff]  ;;  %v10739_v40 = vld [vmem:[%s15146_s24 + $0x60] sm:$0xff] }
 0x1c0   : > { %v1364_v48 = vpack.c.bf16 %v1354_v42, %v1354_v42  ;;  %v1363_v49 = vpack.c.bf16 %v1353_v4, %v1353_v4  ;;  %v10726_v50 = vpack.c.bf16 %v1334_v47, %v1321_v43  ;;  %vm1394_vm6 = vcmask 1043456   ;;  %13405 = vmatprep.subr.bf16.mxu1 %v15588_v17  ;;  %v1373_v47 = vld [vmem:[%s18268_s12 + $0x20] sm:$0xff] }
 0x1c1   : > { %v15598_v22 = vpack.c.bf16 %v1600_v21, %v1599_v20 }
 0x1c2   : > { %10721 = vmatpush1.bf16.msk.msra.mxu0 %vm10719_vm7, %v10720_v39  ;;  %v1396_v52 = vsel %vm1394_vm6, %v1363_v49, 0 }
 0x1c3   : > { %10724 = vmatprep.subr.msk.bf16.mxu0 %vm10722_vm0, %v10723_v41  ;;  %vm1387_vm0 = vcmask 588800   ;;  %v10740_v41 = vld [vmem:[%s15146_s24 + $0x68] sm:$0xff] }
 0x1c6   : > { %10727 = vmatpush1.bf16.msk.msra.mxu0 %vm10725_vm12, %v10726_v50 }
 0x1c7   : > { %10728 = vmatprep.subr.msk.bf16.mxu0 %vm1394_vm6, %v1364_v48  ;;  %v15614_v48 = vpack.c.bf16 %v10738_v5, %v10737_v35  ;;  %v10747_v35 = vld [vmem:[%s15146_s24 + $0x80] sm:$0xff]  ;;  %v10748_v5 = vld [vmem:[%s15146_s24 + $0x88] sm:$0xff] }
 0x1ca   : > { %1410 = vmatpush1.bf16.msra.mxu0 %v1396_v52  ;;  %v1374_v52 = vld [vmem:[%s18268_s12 + $0x28] sm:$0xff]  ;;  %s18581_s12 = sld [smem:[#allocation47_spill]] }
 0x1cb   : > { %13389 = vmatprep.subr.bf16.mxu0 %v15583_v13 }
 0x1cd   : > { %10729 = vmatmul.mubr.msk.bf16.vlgmr.msra.gmra.mrb[0].mxu0 %vm1387_vm0, %v14509_v53  ;;  %v15622_v53 = vpack.c.bf16 %v10740_v41, %v10739_v40  ;;  %v10760_v40 = vld [vmem:[%s15146_s24 + $0xc8] sm:$0xff] }
 0x1ce   : > { %1443 = vmatprep.mubr.bf16.mxu0 %v18135_v7  ;;  %13391 = vmatpush3.bf16.msra.mxu0 %v15583_v13  ;;  %v10808_v7 = vld [vmem:[%s15146_s24 + $0x208] sm:$0xff] }
 0x1cf   : > { %13393 = vmatprep.subr.bf16.mxu0 %v15590_v18 }
 0x1d2   : > { %13395 = vmatpush3.bf16.msra.mxu0 %v15590_v18 }
 0x1d3   : > { %13397 = vmatprep.subr.bf16.mxu0 %v15598_v22 }
 0x1d5   : > { %10730 = vmatmul.mubr.msk.bf16.gmra.mrb[4].mxu0 %vm1387_vm0, %v14510_v54 }
 0x1d6   : > { %13399 = vmatpush3.bf16.msra.mxu0 %v15598_v22 }
 0x2a0   : > { %v1435_v25 = vpop.f32.mrb[0].mxu0 }
 0x2a1   : > { %v1436_v27 = vadd.f32 %v1435_v25, %v1369_v23  ;;  %v1437_v28 = vpop.f32.mrb[1].mxu0  ;;  %v10812_v25 = vld [vmem:[%s15146_s24 + $0x228] sm:$0xff] }
 0x2a2   : > { %v1438_v30 = vadd.f32 %v1437_v28, %v1370_v24  ;;  %v1439_v31 = vpop.f32.mrb[2].mxu0 }
 0x2a3   : > { %v1462_v32 = vmul.f32 0.2, %v1436_v27  ;;  %v1440_v33 = vadd.f32 %v1439_v31, %v1371_v26  ;;  %v1441_v34 = vpop.f32.mrb[3].mxu0  ;;  %vm1454_vm7 = vcmp.ge.f32.partialorder %v1436_v27, 0.0  ;;  %v10741_v31 = vld [vmem:[%s15146_s24 + $0x70] sm:$0xff] }
 0x2a4   : > { %vm1455_vm11 = vcmp.ge.f32.partialorder %v1438_v30, 0.0  ;;  %v1463_v38 = vmul.f32 0.2, %v1438_v30  ;;  %v1442_v39 = vadd.f32 %v1441_v34, %v1372_v29  ;;  %v1601_v29 = vld [vmem:[%s15146_s24 + $0x30] sm:$0xff] }
 0x2a5   : > { %vm1456_vm4 = vcmp.ge.f32.partialorder %v1440_v33, 0.0  ;;  %v1464_v42 = vmul.f32 0.2, %v1440_v33  ;;  %v15616_v49 = vsel %vm1454_vm7, %v1436_v27, %v1462_v32  ;;  %v10810_v27 = vld [vmem:[%s15146_s24 + $0x218] sm:$0xff] }
 0x2a6   : > { %v15611_v4 = vsel %vm1455_vm11, %v1438_v30, %v1463_v38  ;;  %vm1457_vm12 = vcmp.ge.f32.partialorder %v1442_v39, 0.0  ;;  %v1465_v43 = vmul.f32 0.2, %v1442_v39  ;;  %18333 = vst [vmem:[#allocation68_spill] sm:$0xff] %v15616_v49  ;;  %v1602_v30 = vld [vmem:[%s15146_s24 + $0x38] sm:$0xff]  ;;  %v10759_v38 = vld [vmem:[%s15146_s24 + $0xc0] sm:$0xff] }
 0x2a7   : > { %18332 = vst [vmem:[#allocation67_spill] sm:$0xff] %v15611_v4  ;;  %v15618_v50 = vsel %vm1456_vm4, %v1440_v33, %v1464_v42  ;;  %1574 = vmatprep.mubr.f32.mxu1 %v15611_v4  ;;  %v15675_v32 = vpack.c.bf16 %v1602_v30, %v1601_v29  ;;  %v10742_v33 = vld [vmem:[%s15146_s24 + $0x78] sm:$0xff]  ;;  %v15690_v41 = vpack.c.bf16 %v10760_v40, %v10759_v38  ;;  %v10765_v40 = vld [vmem:[%s15146_s24 + $0xf0] sm:$0xff] }
 0x2a8   : > { %18334 = vst [vmem:[#allocation69_spill] sm:$0xff] %v15618_v50  ;;  %v15624_v54 = vsel %vm1457_vm12, %v1442_v39, %v1465_v43  ;;  %v1445_v55 = vpop.f32.mrb[4].mxu0  ;;  %1575 = vmatmul.mubr.f32.vlgmr.msra.gmra.mrb[0].mxu1 %v15616_v49  ;;  %v15630_v58 = vpack.i.bf16 %v15618_v50, %v15616_v49  ;;  %v15678_v34 = vpack.c.bf16 %v10742_v33, %v10741_v31  ;;  %v10754_v38 = vld [vmem:[%s15146_s24 + $0xb8] sm:$0xff] }
 0x2a9   : > { %18335 = vst [vmem:[#allocation70_spill] sm:$0xff] %v15624_v54  ;;  %v1446_v61 = vadd.f32 %v1445_v55, %v1373_v47  ;;  %v1447_v62 = vpop.f32.mrb[5].mxu0  ;;  %1579 = vmatprep.mubr.f32.mxu1 %v15624_v54  ;;  %13407 = vmatpush3.bf16.msra.mxu1 %v15588_v17  ;;  %v15637_v0 = vpack.i.bf16 %v15624_v54, %v15611_v4  ;;  %v10750_v55 = vld [vmem:[%s15146_s24 + $0x98] sm:$0xff] }
 0x2aa   : > { %18336 = vst [vmem:[#allocation71_spill] sm:$0xff] %v15630_v58  ;;  %v1448_v1 = vadd.f32 %v1447_v62, %v1374_v52  ;;  %v1449_v2 = vpop.f32.mrb[6].mxu0  ;;  %13409 = vmatprep.subr.bf16.mxu1 %v15614_v48  ;;  %13401 = vmatprep.subr.bf16.mxu0 %v15675_v32  ;;  %v15687_v39 = vpack.c.bf16 %v10748_v5, %v10747_v35  ;;  %v10749_v52 = vld [vmem:[%s15146_s24 + $0x90] sm:$0xff] }
 0x2ab   : > { %18337 = vst [vmem:[#allocation72_spill] sm:$0xff] %v15637_v0  ;;  %vm1458_vm7 = vcmp.ge.f32.partialorder %v1446_v61, 0.0  ;;  %v1466_v3 = vmul.f32 0.2, %v1446_v61  ;;  %v1450_v8 = vadd.f32 %v1449_v2, %v1375_v57  ;;  %v1451_v9 = vpop.f32.mrb[7].mxu0  ;;  %13403 = vmatpush3.bf16.msra.mxu0 %v15675_v32  ;;  %v10761_v57 = vld [vmem:[%s15146_s24 + $0xd0] sm:$0xff]  ;;  %v15706_v2 = vpack.c.bf16 %v10750_v55, %v10749_v52 }
 0x2ac   : > { %vm1459_vm11 = vcmp.ge.f32.partialorder %v1448_v1, 0.0  ;;  %v1467_v10 = vmul.f32 0.2, %v1448_v1  ;;  %v1452_v11 = vadd.f32 %v1451_v9, %v1376_v63  ;;  %1580 = vmatmul.mubr.f32.gmra.mrb[2].mxu1 %v15618_v50  ;;  %13421 = vmatprep.subr.bf16.mxu0 %v15687_v39  ;;  %v10752_v9 = vld [vmem:[%s15146_s24 + $0xa8] sm:$0xff]  ;;  %v10753_v35 = vld [vmem:[%s15146_s24 + $0xb0] sm:$0xff]  ;;  %v10771_v55 = vld [vmem:[%s15146_s24 + $0x140] sm:$0xff] }
 0x2ad   : > { %v15641_v12 = vsel %vm1458_vm7, %v1446_v61, %v1466_v3  ;;  %vm1460_vm4 = vcmp.ge.f32.partialorder %v1450_v8, 0.0  ;;  %v1468_v14 = vmul.f32 0.2, %v1450_v8  ;;  %13411 = vmatpush3.bf16.msra.mxu1 %v15614_v48  ;;  %vm1603_vm7 = vcmask 523264   ;;  %v10762_v61 = vld [vmem:[%s15146_s24 + $0xd8] sm:$0xff] }
 0x2ae   : > { %18338 = vst [vmem:[#allocation73_spill] sm:$0xff] %v15641_v12  ;;  %v15644_v15 = vsel %vm1459_vm11, %v1448_v1, %v1467_v10  ;;  %vm1461_vm12 = vcmp.ge.f32.partialorder %v1452_v11, 0.0  ;;  %v1469_v16 = vmul.f32 0.2, %v1452_v11  ;;  %13413 = vmatprep.subr.bf16.mxu1 %v15622_v53  ;;  %v15708_v3 = vpack.c.bf16 %v10762_v61, %v10761_v57  ;;  %v10763_v10 = vld [vmem:[%s15146_s24 + $0xe0] sm:$0xff] }
 0x2af   : > { %18339 = vst [vmem:[#allocation74_spill] sm:$0xff] %v15644_v15  ;;  %v15647_v20 = vsel %vm1460_vm4, %v1450_v8, %v1468_v14  ;;  %1584 = vmatprep.mubr.f32.mxu1 %v15644_v15  ;;  %v10751_v8 = vld [vmem:[%s15146_s24 + $0xa0] sm:$0xff]  ;;  %v15745_v57 = vpack.c.bf16 %v10754_v38, %v10753_v35  ;;  %v10785_v35 = vld [vmem:[%s15146_s24 + $0x190] sm:$0xff]  ;;  %vm18230_vm11 = vcmask 261120  }
 0x2b0   : > { %18340 = vst [vmem:[#allocation75_spill] sm:$0xff] %v15647_v20  ;;  %v15650_v21 = vsel %vm1461_vm12, %v1452_v11, %v1469_v16  ;;  %1585 = vmatmul.mubr.f32.gmra.mrb[4].mxu1 %v15641_v12  ;;  %v15655_v23 = vpack.i.bf16 %v15647_v20, %v15641_v12  ;;  %v10764_v11 = vld [vmem:[%s15146_s24 + $0xe8] sm:$0xff]  ;;  %v15726_v31 = vpack.c.bf16 %v10752_v9, %v10751_v8  ;;  %v10813_v9 = vld [vmem:[%s15146_s24 + $0x230] sm:$0xff]  ;;  %v10814_v16 = vld [vmem:[%s15146_s24 + $0x238] sm:$0xff] }
 0x2b1   : > { %18341 = vst [vmem:[#allocation76_spill] sm:$0xff] %v15650_v21  ;;  %1589 = vmatprep.mubr.f32.mxu1 %v15650_v21  ;;  %13415 = vmatpush3.bf16.msra.mxu1 %v15622_v53  ;;  %v15661_v24 = vpack.i.bf16 %v15650_v21, %v15644_v15  ;;  %v15728_v33 = vpack.c.bf16 %v10764_v11, %v10763_v10  ;;  %18344 = vst [vmem:[#allocation79_spill] sm:$0xff] %v15745_v57  ;;  %v10784_v8 = vld [vmem:[%s15146_s24 + $0x188] sm:$0xff] }
 0x2b2   : > { %18342 = vst [vmem:[#allocation77_spill] sm:$0xff] %v15655_v23  ;;  %13417 = vmatprep.subr.bf16.mxu1 %v15678_v34 }
 0x2b3   : > { %18343 = vst [vmem:[#allocation78_spill] sm:$0xff] %v15661_v24 }
 0x2b4   : > { %1590 = vmatmul.mubr.f32.gmra.mrb[6].mxu1 %v15647_v20 }
 0x2b5   : > { %13419 = vmatpush3.bf16.msra.mxu1 %v15678_v34 }
 0x2b6   : > { %13437 = vmatprep.subr.bf16.mxu1 %v15690_v41 }
 0x37b   : > { %v11528_v42 = vpop.f32.mrb[0].mxu1 }
 0x37c   : > { %v11529_v43 = vpop.f32.mrb[1].mxu1 }
 0x37d   : > { %v15694_v47 = vadd.f32 %v11529_v43, %v11528_v42  ;;  %v10766_v42 = vld [vmem:[%s15146_s24 + $0xf8] sm:$0xff] }
 0x37e   : > { %v15747_v61 = vpack.c.bf16 %v10766_v42, %v10765_v40  ;;  %v10775_v42 = vld [vmem:[%s15146_s24 + $0x160] sm:$0xff] }
 0x37f   : > { %v11531_v62 = vpop.f32.mrb[2].mxu1  ;;  %12404 = vmatprep.mubr.msk.f32.mxu0 %vm1603_vm7, %v15694_v47  ;;  %12426 = vmatprep.mubr.msk.f32.mxu1 %vm1603_vm7, %v15694_v47 }
 0x380   : > { %v11532_v63 = vpop.f32.mrb[3].mxu1  ;;  %18345 = vst [vmem:[#allocation80_spill] sm:$0xff] %v15747_v61 }
 0x381   : > { %v15704_v1 = vadd.f32 %v11532_v63, %v11531_v62  ;;  %v10772_v62 = vld [vmem:[%s15146_s24 + $0x148] sm:$0xff]  ;;  %v10783_v63 = vld [vmem:[%s15146_s24 + $0x180] sm:$0xff] }
 0x382   : > { %v15764_v10 = vpack.c.bf16 %v10772_v62, %v10771_v55  ;;  %v15766_v11 = vpack.c.bf16 %v10784_v8, %v10783_v63  ;;  %v10787_v55 = vld [vmem:[%s15146_s24 + $0x1a0] sm:$0xff]  ;;  %v10788_v62 = vld [vmem:[%s15146_s24 + $0x1a8] sm:$0xff] }
 0x383   : > { %v11534_v14 = vpop.f32.mrb[4].mxu1  ;;  %12405 = vmatmul.mubr.msk.f32.vlgmr.msra.gmra.mrb[8].mxu0 %vm1603_vm7, %v15704_v1  ;;  %12427 = vmatmul.mubr.msk.f32.vlgmr.msra.gmra.mrb[8].mxu1 %vm1603_vm7, %v15704_v1  ;;  %v15800_v8 = vpack.c.bf16 %v10788_v62, %v10787_v55  ;;  %v10795_v55 = vld [vmem:[%s15146_s24 + $0x1c0] sm:$0xff]  ;;  %v10796_v62 = vld [vmem:[%s15146_s24 + $0x1c8] sm:$0xff] }
 0x384   : > { %13423 = vmatpush3.bf16.msra.mxu0 %v15687_v39  ;;  %13439 = vmatpush3.bf16.msra.mxu1 %v15690_v41  ;;  %v11535_v29 = vpop.f32.mrb[5].mxu1  ;;  %18346 = vst [vmem:[#allocation81_spill] sm:$0xff] %v15764_v10  ;;  %18347 = vst [vmem:[#allocation82_spill] sm:$0xff] %v15766_v11  ;;  %v15830_v28 = vpack.c.bf16 %v10796_v62, %v10795_v55  ;;  %v10811_v62 = vld [vmem:[%s15146_s24 + $0x220] sm:$0xff] }
 0x385   : > { %v15722_v30 = vadd.f32 %v11535_v29, %v11534_v14  ;;  %13425 = vmatprep.subr.bf16.mxu0 %v15706_v2  ;;  %13441 = vmatprep.subr.bf16.mxu1 %v15708_v3  ;;  %v10773_v14 = vld [vmem:[%s15146_s24 + $0x150] sm:$0xff]  ;;  %v10774_v29 = vld [vmem:[%s15146_s24 + $0x158] sm:$0xff]  ;;  %18351 = vst [vmem:[#allocation86_spill] sm:$0xff] %v15800_v8 }
 0x386   : > { %v15778_v38 = vpack.c.bf16 %v10774_v29, %v10773_v14  ;;  %v10777_v14 = vld [vmem:[%s15146_s24 + $0x170] sm:$0xff]  ;;  %v10778_v29 = vld [vmem:[%s15146_s24 + $0x178] sm:$0xff]  ;;  %18354 = vst [vmem:[#allocation89_spill] sm:$0xff] %v15830_v28 }
 0x387   : > { %v11537_v5 = vpop.f32.mrb[6].mxu1  ;;  %12407 = vmatprep.mubr.msk.f32.mxu0 %vm1603_vm7, %v15722_v30  ;;  %12429 = vmatprep.mubr.msk.f32.mxu1 %vm1603_vm7, %v15722_v30 }
 0x388   : > { %13427 = vmatpush3.bf16.msra.mxu0 %v15706_v2  ;;  %13443 = vmatpush3.bf16.msra.mxu1 %v15708_v3  ;;  %v11538_v43 = vpop.f32.mrb[7].mxu1  ;;  %18348 = vst [vmem:[#allocation83_spill] sm:$0xff] %v15778_v38 }
 0x389   : > { %v15740_v52 = vadd.f32 %v11538_v43, %v11537_v5  ;;  %13429 = vmatprep.subr.bf16.mxu0 %v15726_v31  ;;  %13445 = vmatprep.subr.bf16.mxu1 %v15728_v33  ;;  %v10786_v5 = vld [vmem:[%s15146_s24 + $0x198] sm:$0xff]  ;;  %v10776_v43 = vld [vmem:[%s15146_s24 + $0x168] sm:$0xff] }
 0x38a   : > { %v15780_v40 = vpack.c.bf16 %v10786_v5, %v10785_v35  ;;  %v15798_v63 = vpack.c.bf16 %v10776_v43, %v10775_v42  ;;  %v10789_v35 = vld [vmem:[%s15146_s24 + $0x1b0] sm:$0xff]  ;;  %v10790_v5 = vld [vmem:[%s15146_s24 + $0x1b8] sm:$0xff]  ;;  %v15818_v42 = vpack.c.bf16 %v10778_v29, %v10777_v14  ;;  %v15832_v14 = vpack.c.bf16 %v10808_v7, %v10807_v44  ;;  %v10799_v7 = vld [vmem:[%s15146_s24 + $0x1e0] sm:$0xff] }
 0x38b   : > { %12408 = vmatmul.mubr.msk.f32.gmra.mrb[10].mxu0 %vm1603_vm7, %v15740_v52  ;;  %12430 = vmatmul.mubr.msk.f32.gmra.mrb[10].mxu1 %vm1603_vm7, %v15740_v52  ;;  %v15820_v43 = vpack.c.bf16 %v10790_v5, %v10789_v35  ;;  %v10797_v29 = vld [vmem:[%s15146_s24 + $0x1d0] sm:$0xff]  ;;  %v10798_v35 = vld [vmem:[%s15146_s24 + $0x1d8] sm:$0xff]  ;;  %v10800_v44 = vld [vmem:[%s15146_s24 + $0x1e8] sm:$0xff]  ;;  %v18363_v37 = vpack.c.bf16 %v15740_v52, %v15722_v30 }
 0x38c   : > { %13431 = vmatpush3.bf16.msra.mxu0 %v15726_v31  ;;  %13447 = vmatpush3.bf16.msra.mxu1 %v15728_v33  ;;  %18349 = vst [vmem:[#allocation84_spill] sm:$0xff] %v15780_v40  ;;  %18350 = vst [vmem:[#allocation85_spill] sm:$0xff] %v15798_v63  ;;  %v10809_v5 = vld [vmem:[%s15146_s24 + $0x210] sm:$0xff]  ;;  %v15842_v26 = vpack.c.bf16 %v10798_v35, %v10797_v29  ;;  %v15864_v29 = vpack.c.bf16 %v10812_v25, %v10811_v62 }
 0x38d   : > { %12448 = vmatprep.mubr.msk.f32.mxu0 %vm1603_vm7, %v15694_v47  ;;  %12470 = vmatprep.mubr.msk.f32.mxu1 %vm1603_vm7, %v15694_v47  ;;  %18352 = vst [vmem:[#allocation87_spill] sm:$0xff] %v15818_v42  ;;  %18353 = vst [vmem:[#allocation88_spill] sm:$0xff] %v15820_v43  ;;  %v15844_v55 = vpack.c.bf16 %v10810_v27, %v10809_v5  ;;  %v15862_v27 = vpack.c.bf16 %v10800_v44, %v10799_v7  ;;  %v10801_v35 = vld [vmem:[%s15146_s24 + $0x1f0] sm:$0xff]  ;;  %v10802_v5 = vld [vmem:[%s15146_s24 + $0x1f8] sm:$0xff] }
 0x38e   : > { %13433 = vmatprep.subr.bf16.mxu0 %v15745_v57  ;;  %13449 = vmatprep.subr.bf16.mxu1 %v15747_v61  ;;  %18355 = vst [vmem:[#allocation90_spill] sm:$0xff] %v15832_v14  ;;  %18356 = vst [vmem:[#allocation91_spill] sm:$0xff] %v15842_v26  ;;  %v15882_v25 = vpack.c.bf16 %v10802_v5, %v10801_v35  ;;  %v15884_v7 = vpack.c.bf16 %v10814_v16, %v10813_v9  ;;  %v14514_v16 = vld [vmem:[%s15056_s20 + $0x8] ss:$12 sps:$4 sm:$0xff]  }
 0x38f   : > { %18357 = vst [vmem:[#allocation92_spill] sm:$0xff] %v15844_v55  ;;  %18358 = vst [vmem:[#allocation93_spill] sm:$0xff] %v15862_v27  ;;  %v18362_v44 = vpack.c.bf16 %v15704_v1, %v15694_v47 }
 0x390   : > { %13435 = vmatpush3.bf16.msra.mxu0 %v15745_v57  ;;  %13451 = vmatpush3.bf16.msra.mxu1 %v15747_v61  ;;  %18359 = vst [vmem:[#allocation94_spill] sm:$0xff] %v15864_v29  ;;  %18360 = vst [vmem:[#allocation95_spill] sm:$0xff] %v15882_v25 }
 0x391   : > { %13453 = vmatprep.subr.bf16.mxu0 %v15764_v10  ;;  %13469 = vmatprep.subr.bf16.mxu1 %v15766_v11  ;;  %18361 = vst [vmem:[#allocation96_spill] sm:$0xff] %v15884_v7 }
 0x393   : > { %12449 = vmatmul.mubr.msk.f32.vlgmr.msra.gmra.mrb[12].mxu0 %vm1603_vm7, %v15704_v1  ;;  %12471 = vmatmul.mubr.msk.f32.vlgmr.msra.gmra.mrb[12].mxu1 %vm1603_vm7, %v15704_v1 }
 0x394   : > { %12451 = vmatprep.mubr.msk.f32.mxu0 %vm1603_vm7, %v15722_v30  ;;  %12473 = vmatprep.mubr.msk.f32.mxu1 %vm1603_vm7, %v15722_v30 }
 0x395   : > { %13455 = vmatpush3.bf16.msra.mxu0 %v15764_v10  ;;  %13471 = vmatpush3.bf16.msra.mxu1 %v15766_v11 }
 0x396   : > { %13457 = vmatprep.subr.bf16.mxu0 %v15778_v38  ;;  %13473 = vmatprep.subr.bf16.mxu1 %v15780_v40 }
 0x397   : > { %12452 = vmatmul.mubr.msk.f32.gmra.mrb[14].mxu0 %vm1603_vm7, %v15740_v52  ;;  %12474 = vmatmul.mubr.msk.f32.gmra.mrb[14].mxu1 %vm1603_vm7, %v15740_v52 }
 0x398   : > { %12492 = vmatprep.mubr.msk.f32.mxu0 %vm1603_vm7, %v15694_v47  ;;  %12514 = vmatprep.mubr.msk.f32.mxu1 %vm1603_vm7, %v15694_v47 }
 0x399   : > { %13459 = vmatpush3.bf16.msra.mxu0 %v15778_v38  ;;  %13475 = vmatpush3.bf16.msra.mxu1 %v15780_v40 }
 0x39a   : > { %13461 = vmatprep.subr.bf16.mxu0 %v15798_v63  ;;  %13477 = vmatprep.subr.bf16.mxu1 %v15800_v8 }
 0x39d   : > { %13463 = vmatpush3.bf16.msra.mxu0 %v15798_v63  ;;  %13479 = vmatpush3.bf16.msra.mxu1 %v15800_v8 }
 0x39e   : > { %13465 = vmatprep.subr.bf16.mxu0 %v15818_v42  ;;  %13481 = vmatprep.subr.bf16.mxu1 %v15820_v43 }
 0x3a1   : > { %13467 = vmatpush3.bf16.msra.mxu0 %v15818_v42  ;;  %13483 = vmatpush3.bf16.msra.mxu1 %v15820_v43 }
 0x3a2   : > { %13485 = vmatprep.subr.bf16.mxu0 %v15830_v28  ;;  %13501 = vmatprep.subr.bf16.mxu1 %v15832_v14 }
 0x3a4   : > { %12493 = vmatmul.mubr.msk.f32.vlgmr.msra.gmra.mrb[16].mxu0 %vm1603_vm7, %v15704_v1  ;;  %12515 = vmatmul.mubr.msk.f32.vlgmr.msra.gmra.mrb[16].mxu1 %vm1603_vm7, %v15704_v1 }
 0x3a5   : > { %12495 = vmatprep.mubr.msk.f32.mxu0 %vm1603_vm7, %v15722_v30  ;;  %12517 = vmatprep.mubr.msk.f32.mxu1 %vm1603_vm7, %v15722_v30 }
 0x3a6   : > { %13487 = vmatpush3.bf16.msra.mxu0 %v15830_v28  ;;  %13503 = vmatpush3.bf16.msra.mxu1 %v15832_v14 }
 0x3a7   : > { %13489 = vmatprep.subr.bf16.mxu0 %v15842_v26  ;;  %13505 = vmatprep.subr.bf16.mxu1 %v15844_v55 }
 0x3a8   : > { %12496 = vmatmul.mubr.msk.f32.gmra.mrb[18].mxu0 %vm1603_vm7, %v15740_v52  ;;  %12518 = vmatmul.mubr.msk.f32.gmra.mrb[18].mxu1 %vm1603_vm7, %v15740_v52 }
 0x3a9   : > { %12536 = vmatprep.mubr.msk.f32.mxu0 %vm1603_vm7, %v15694_v47  ;;  %12558 = vmatprep.mubr.msk.f32.mxu1 %vm1603_vm7, %v15694_v47  ;;  %v14513_v47 = vld [vmem:[%s15056_s20 + $0x4] ss:$12 sps:$4 sm:$0xff]  }
 0x3aa   : > { %13491 = vmatpush3.bf16.msra.mxu0 %v15842_v26  ;;  %13507 = vmatpush3.bf16.msra.mxu1 %v15844_v55 }
 0x3ab   : > { %13493 = vmatprep.subr.bf16.mxu0 %v15862_v27  ;;  %13509 = vmatprep.subr.bf16.mxu1 %v15864_v29 }
 0x3ae   : > { %13495 = vmatpush3.bf16.msra.mxu0 %v15862_v27  ;;  %13511 = vmatpush3.bf16.msra.mxu1 %v15864_v29 }
 0x3af   : > { %13497 = vmatprep.subr.bf16.mxu0 %v15882_v25  ;;  %13513 = vmatprep.subr.bf16.mxu1 %v15884_v7 }
 0x3b2   : > { %13499 = vmatpush3.bf16.msra.mxu0 %v15882_v25  ;;  %13515 = vmatpush3.bf16.msra.mxu1 %v15884_v7 }
 0x3b3   : > { %11636 = vmatprep.subr.bf16.mxu0 %v18362_v44 }
 0x3b5   : > { %12537 = vmatmul.mubr.msk.f32.vlgmr.msra.gmra.mrb[20].mxu0 %vm1603_vm7, %v15704_v1  ;;  %12559 = vmatmul.mubr.msk.f32.vlgmr.msra.gmra.mrb[20].mxu1 %vm1603_vm7, %v15704_v1 }
 0x3b6   : > { %12539 = vmatprep.mubr.msk.f32.mxu0 %vm1603_vm7, %v15722_v30  ;;  %12561 = vmatprep.mubr.msk.f32.mxu1 %vm1603_vm7, %v15722_v30 }
 0x3b9   : > { %12540 = vmatmul.mubr.msk.f32.gmra.mrb[22].mxu0 %vm1603_vm7, %v15740_v52  ;;  %12562 = vmatmul.mubr.msk.f32.gmra.mrb[22].mxu1 %vm1603_vm7, %v15740_v52 }
 0x3ba   : > { %2458 = vmatprep.mubr.bf16.mxu0 %v14513_v47  ;;  %12568 = vmatprep.mubr.msk.bf16.mxu1 %vm18230_vm11, %v14514_v16 }
 0x456   : > { %v12406_v9 = vpop.f32.mrb[8].mxu0  ;;  %v12428_v1 = vpop.f32.mrb[8].mxu1 }
 0x457   : > { %v1682_v62 = vpop.f32.mrb[9].mxu0  ;;  %v1776_v35 = vpop.f32.mrb[9].mxu1 }
 0x458   : > { %v2359_v5 = vpack.c.bf16 %v12406_v9, %v1682_v62  ;;  %v2361_v44 = vpack.c.bf16 %v12428_v1, %v1776_v35 }
 0x45a   : > { %11637 = vmatpush3.bf16.msra.mxu0 %v2359_v5 }
 0x45b   : > { %11638 = vmatprep.subr.bf16.mxu0 %v18363_v37 }
 0x45e   : > { %v12409_v46 = vpop.f32.mrb[10].mxu0  ;;  %v12431_v36 = vpop.f32.mrb[10].mxu1 }
 0x45f   : > { %v1692_v60 = vpop.f32.mrb[11].mxu0  ;;  %v1786_v12 = vpop.f32.mrb[11].mxu1 }
 0x460   : > { %v2360_v47 = vpack.c.bf16 %v12409_v46, %v1692_v60  ;;  %v2362_v20 = vpack.c.bf16 %v12431_v36, %v1786_v12 }
 0x462   : > { %11639 = vmatpush3.bf16.msra.mxu0 %v2360_v47 }
 0x466   : > { %v12450_v15 = vpop.f32.mrb[12].mxu0  ;;  %v12472_v16 = vpop.f32.mrb[12].mxu1 }
 0x467   : > { %v1870_v21 = vpop.f32.mrb[13].mxu0  ;;  %v1964_v49 = vpop.f32.mrb[13].mxu1 }
 0x468   : > { %v2363_v50 = vpack.c.bf16 %v12450_v15, %v1870_v21  ;;  %v2365_v4 = vpack.c.bf16 %v12472_v16, %v1964_v49 }
 0x46a   : > { %v12453_v9 = vpop.f32.mrb[14].mxu0  ;;  %v12475_v1 = vpop.f32.mrb[14].mxu1 }
 0x46b   : > { %v1880_v62 = vpop.f32.mrb[15].mxu0  ;;  %v1974_v35 = vpop.f32.mrb[15].mxu1 }
 0x46c   : > { %v2364_v5 = vpack.c.bf16 %v12453_v9, %v1880_v62  ;;  %v2366_v30 = vpack.c.bf16 %v12475_v1, %v1974_v35  ;;  %v2537_v62 = vld [vmem:[%s15001_s21 + $0x8] sm:$0xff] }
 0x477   : > { %v12494_v37 = vpop.f32.mrb[16].mxu0  ;;  %v12516_v52 = vpop.f32.mrb[16].mxu1 }
 0x478   : > { %v2058_v54 = vpop.f32.mrb[17].mxu0  ;;  %v2152_v51 = vpop.f32.mrb[17].mxu1 }
 0x479   : > { %v2369_v19 = vpack.c.bf16 %v12494_v37, %v2058_v54  ;;  %v2371_v46 = vpack.c.bf16 %v12516_v52, %v2152_v51 }
 0x47b   : > { %v12497_v60 = vpop.f32.mrb[18].mxu0  ;;  %v12519_v36 = vpop.f32.mrb[18].mxu1  ;;  %11640 = vmatprep.subr.bf16.mxu0 %v2369_v19  ;;  %v2536_v19 = vld [vmem:[%s15001_s21] sm:$0xff] }
 0x47c   : > { %v2068_v12 = vpop.f32.mrb[19].mxu0  ;;  %v2162_v47 = vpop.f32.mrb[19].mxu1  ;;  %11641 = vmatpush3.bf16.msra.mxu0 %v2361_v44  ;;  %v13516_v52 = vpack.c.bf16 %v2537_v62, %v2536_v19  ;;  %v10835_v19 = vld [vmem:[%s18269_s9 + $0x10] sm:$0xff] }
 0x47d   : > { %v2370_v49 = vpack.c.bf16 %v12497_v60, %v2068_v12  ;;  %v2372_v15 = vpack.c.bf16 %v12519_v36, %v2162_v47  ;;  %v14515_v60 = vld [vmem:[%s15056_s20 + $0x20] ss:$12 sps:$4 sm:$0xff]   ;;  %v14516_v36 = vld [vmem:[%s15056_s20 + $0x1c] ss:$12 sps:$4 sm:$0xff]   ;;  %v2538_v12 = vld [vmem:[%s15001_s21 + $0x10] sm:$0xff] }
 0x47e   : > { %v2539_v47 = vld [vmem:[%s15001_s21 + $0x18] sm:$0xff] }
 0x47f   : > { %11642 = vmatprep.subr.bf16.mxu0 %v2370_v49  ;;  %v13520_v49 = vpack.c.bf16 %v2539_v47, %v2538_v12  ;;  %v2386_v12 = vld [vmem:[%s15061_s27 + $0x8] sm:$0xff] }
 0x480   : > { %11643 = vmatpush3.bf16.msra.mxu0 %v2362_v20 }
 0x481   : > { %11644 = vmatprep.subr.bf16.mxu0 %v2371_v46  ;;  %v14511_v46 = vld [vmem:[%s15056_s20] ss:$12 sps:$4 sm:$0xff]  }
 0x484   : > { %11645 = vmatpush3.bf16.msra.mxu0 %v2363_v50 }
 0x485   : > { %11646 = vmatprep.subr.bf16.mxu0 %v2372_v15  ;;  %v2541_v15 = vld [vmem:[%s15001_s21 + $0x28] sm:$0xff] }
 0x488   : > { %v12538_v21 = vpop.f32.mrb[20].mxu0  ;;  %v12560_v16 = vpop.f32.mrb[20].mxu1  ;;  %11647 = vmatpush3.bf16.msra.mxu0 %v2364_v5 }
 0x489   : > { %v2246_v54 = vpop.f32.mrb[21].mxu0  ;;  %v2340_v51 = vpop.f32.mrb[21].mxu1 }
 0x48a   : > { %v2373_v9 = vpack.c.bf16 %v12538_v21, %v2246_v54  ;;  %v2375_v1 = vpack.c.bf16 %v12560_v16, %v2340_v51  ;;  %v2542_v16 = vld [vmem:[%s15001_s21 + $0x30] sm:$0xff]  ;;  %v2543_v54 = vld [vmem:[%s15001_s21 + $0x38] sm:$0xff] }
 0x48b   : > { %v13528_v51 = vpack.c.bf16 %v2543_v54, %v2542_v16 }
 0x48c   : > { %v12541_v44 = vpop.f32.mrb[22].mxu0  ;;  %v12563_v35 = vpop.f32.mrb[22].mxu1  ;;  %11648 = vmatprep.subr.bf16.mxu0 %v2373_v9  ;;  %12564 = vmatprep.subr.bf16.mxu1 %v2375_v1  ;;  %v2641_v9 = vld [vmem:[%s18269_s9] sm:$0xff] }
 0x48d   : > { %v2256_v20 = vpop.f32.mrb[23].mxu0  ;;  %v2350_v37 = vpop.f32.mrb[23].mxu1  ;;  %11649 = vmatpush3.bf16.msra.mxu0 %v2365_v4  ;;  %12565 = vmatpush3.bf16.msra.mxu1 %v2375_v1  ;;  %v14518_v4 = vld [vmem:[%s15056_s20 + $0x18] ss:$12 sps:$4 sm:$0xff]   ;;  %v2642_v1 = vld [vmem:[%s18269_s9 + $0x8] sm:$0xff] }
 0x48e   : > { %v2374_v50 = vpack.c.bf16 %v12541_v44, %v2256_v20  ;;  %v2376_v5 = vpack.c.bf16 %v12563_v35, %v2350_v37  ;;  %v15929_v62 = vpack.c.bf16 %v2642_v1, %v2641_v9  ;;  %v10836_v44 = vld [vmem:[%s18269_s9 + $0x18] sm:$0xff]  ;;  %v2387_v9 = vld [vmem:[%s15061_s27 + $0x10] sm:$0xff] }
 0x48f   : > { %v15932_v35 = vpack.c.bf16 %v10836_v44, %v10835_v19 }
 0x490   : > { %11650 = vmatprep.subr.bf16.mxu0 %v2374_v50  ;;  %12566 = vmatprep.subr.bf16.mxu1 %v2376_v5 }
 0x491   : > { %11651 = vmatpush3.bf16.msra.mxu0 %v2366_v30  ;;  %12567 = vmatpush3.bf16.msra.mxu1 %v2376_v5  ;;  %v2540_v30 = vld [vmem:[%s15001_s21 + $0x20] sm:$0xff] }
 0x492   : > { %13517 = vmatprep.subr.bf16.mxu1 %v13516_v52  ;;  %v13524_v21 = vpack.c.bf16 %v2541_v15, %v2540_v30  ;;  %13537 = vmatprep.subr.bf16.mxu0 %v15932_v35  ;;  %v2385_v5 = vld [vmem:[%s15061_s27] sm:$0xff] }
 0x494   : > { %2459 = vmatmul.mubr.bf16.vlgmr.msra.gmra.mrb[24].mxu0 %v14511_v46  ;;  %12569 = vmatmul.mubr.msk.bf16.vlgmr.msra.gmra.mrb[24].mxu1 %vm18230_vm11, %v14515_v60 }
 0x495   : > { %2466 = vmatprep.mubr.bf16.mxu0 %v14516_v36  ;;  %13519 = vmatpush3.bf16.msra.mxu1 %v13516_v52 }
 0x496   : > { %13521 = vmatprep.subr.bf16.mxu1 %v13520_v49  ;;  %13539 = vmatpush3.bf16.msra.mxu0 %v15932_v35 }
 0x499   : > { %13523 = vmatpush3.bf16.msra.mxu1 %v13520_v49 }
 0x49a   : > { %13525 = vmatprep.subr.bf16.mxu1 %v13524_v21 }
 0x49c   : > { %2467 = vmatmul.mubr.bf16.gmra.mrb[28].mxu0 %v14518_v4 }
 0x49d   : > { %13527 = vmatpush3.bf16.msra.mxu1 %v13524_v21 }
 0x49e   : > { %13529 = vmatprep.subr.bf16.mxu1 %v13528_v51 }
 0x4a1   : > { %13531 = vmatpush3.bf16.msra.mxu1 %v13528_v51 }
 0x4a2   : > { %13533 = vmatprep.subr.bf16.mxu1 %v15929_v62 }
 0x567   : > { %v11652_v20 = vpop.f32.mrb[24].mxu0  ;;  %v12570_v37 = vpop.f32.mrb[24].mxu1 }
 0x568   : > { %v11653_v50 = vpop.f32.mrb[25].mxu0  ;;  %v2509_v52 = vpop.f32.mrb[25].mxu1 }
 0x569   : > { %v11654_v46 = vadd.f32 %v11653_v50, %v11652_v20  ;;  %v11655_v60 = vpop.f32.mrb[26].mxu0  ;;  %v12571_v36 = vpop.f32.mrb[26].mxu1 }
 0x56a   : > { %v11656_v4 = vpop.f32.mrb[27].mxu0  ;;  %v2512_v47 = vpop.f32.mrb[27].mxu1 }
 0x56b   : > { %v11657_v49 = vadd.f32 %v11656_v4, %v11655_v60  ;;  %v2461_v30 = vadd.f32 %v11654_v46, %v2385_v5 }
 0x56d   : > { %v2510_v15 = vadd.f32 %v2509_v52, %v2461_v30  ;;  %v2464_v21 = vadd.f32 %v11657_v49, %v2386_v12 }
 0x56f   : > { %vm2524_vm4 = vcmp.ge.f32.partialorder %v2510_v15, 0.0  ;;  %v2528_v16 = vmul.f32 0.2, %v2510_v15  ;;  %v2513_v54 = vadd.f32 %v2512_v47, %v2464_v21  ;;  %v11658_v51 = vpop.f32.mrb[28].mxu0 }
 0x570   : > { %v11659_v1 = vpop.f32.mrb[29].mxu0 }
 0x571   : > { %v15940_v19 = vsel %vm2524_vm4, %v2510_v15, %v2528_v16  ;;  %vm2525_vm12 = vcmp.ge.f32.partialorder %v2513_v54, 0.0  ;;  %v2529_v44 = vmul.f32 0.2, %v2513_v54  ;;  %v11660_v20 = vadd.f32 %v11659_v1, %v11658_v51  ;;  %v11661_v50 = vpop.f32.mrb[30].mxu0  ;;  %v10847_v15 = vld [vmem:[%s18269_s9 + $0x30] sm:$0xff]  ;;  %v10854_v51 = vld [vmem:[%s18269_s9 + $0x58] sm:$0xff] }
 0x572   : > { %v11662_v59 = vpop.f32.mrb[31].mxu0  ;;  %12588 = vmatprep.mubr.msk.f32.mxu1 %vm1603_vm7, %v15940_v19  ;;  %v10860_v1 = vld [vmem:[%s18269_s9 + $0x68] sm:$0xff] }
 0x573   : > { %v15945_v5 = vsel %vm2525_vm12, %v2513_v54, %v2529_v44  ;;  %v2469_v52 = vadd.f32 %v11660_v20, %v2387_v9  ;;  %v11663_v46 = vadd.f32 %v11662_v59, %v11661_v50  ;;  %v10853_v54 = vld [vmem:[%s18269_s9 + $0x50] sm:$0xff]  ;;  %v10859_v9 = vld [vmem:[%s18269_s9 + $0x60] sm:$0xff] }
 0x574   : > { %12589 = vmatmul.mubr.msk.f32.vlgmr.msra.gmra.mrb[28].mxu1 %vm1603_vm7, %v15945_v5  ;;  %v15972_v50 = vpack.c.bf16 %v10854_v51, %v10853_v54  ;;  %v14521_v54 = vld [vmem:[%s18366_s10 + $0x4] ss:$12 sps:$4 sm:$0xff]   ;;  %v14522_v51 = vld [vmem:[%s18366_s10 + $0x8] ss:$12 sps:$4 sm:$0xff]  }
 0x575   : > { %v2518_v60 = vadd.f32 %v12570_v37, %v2469_v52  ;;  %v2472_v4 = vadd.f32 %v11663_v46, %v2388_v6  ;;  %13535 = vmatpush3.bf16.msra.mxu1 %v15929_v62  ;;  %v10841_v6 = vld [vmem:[%s18269_s9 + $0x20] sm:$0xff]  ;;  %v10842_v37 = vld [vmem:[%s18269_s9 + $0x28] sm:$0xff]  ;;  %v15974_v52 = vpack.c.bf16 %v10860_v1, %v10859_v9 }
 0x576   : > { %v15961_v21 = vpack.c.bf16 %v10842_v37, %v10841_v6  ;;  %v10871_v6 = vld [vmem:[%s18269_s9 + $0x80] sm:$0xff]  ;;  %v10872_v37 = vld [vmem:[%s18269_s9 + $0x88] sm:$0xff] }
 0x577   : > { %vm2526_vm4 = vcmp.ge.f32.partialorder %v2518_v60, 0.0  ;;  %v2530_v12 = vmul.f32 0.2, %v2518_v60  ;;  %v2521_v47 = vadd.f32 %v12571_v36, %v2472_v4  ;;  %v10848_v36 = vld [vmem:[%s18269_s9 + $0x38] sm:$0xff] }
 0x578   : > { %v15964_v16 = vpack.c.bf16 %v10848_v36, %v10847_v15  ;;  %13541 = vmatprep.subr.bf16.mxu1 %v15961_v21  ;;  %v15996_v36 = vpack.c.bf16 %v10872_v37, %v10871_v6 }
 0x579   : > { %v15950_v49 = vsel %vm2526_vm4, %v2518_v60, %v2530_v12  ;;  %vm2527_vm12 = vcmp.ge.f32.partialorder %v2521_v47, 0.0  ;;  %v2531_v59 = vmul.f32 0.2, %v2521_v47  ;;  %vm18229_vm4 = vcmask 130048   ;;  %v10865_v12 = vld [vmem:[%s18269_s9 + $0x70] sm:$0xff] }
 0x57a   : > { %18364 = vst [vmem:[#allocation97_spill] sm:$0xff] %v15950_v49  ;;  %12591 = vmatprep.mubr.msk.f32.mxu1 %vm1603_vm7, %v15950_v49  ;;  %13545 = vmatprep.subr.bf16.mxu0 %v15964_v16 }
 0x57b   : > { %v15954_v30 = vsel %vm2527_vm12, %v2521_v47, %v2531_v59  ;;  %v10866_v59 = vld [vmem:[%s18269_s9 + $0x78] sm:$0xff]  ;;  %s18427_s9 = smov 113  }
 0x57c   : > { %18365 = vst [vmem:[#allocation98_spill] sm:$0xff] %v15954_v30  ;;  %12592 = vmatmul.mubr.msk.f32.gmra.mrb[30].mxu1 %vm1603_vm7, %v15954_v30  ;;  %v15994_v15 = vpack.c.bf16 %v10866_v59, %v10865_v12 }
 0x647   : > { %v12590_v44 = vpop.f32.mrb[28].mxu1 }
 0x648   : > { %v2622_v20 = vpop.f32.mrb[29].mxu1 }
 0x649   : > { %12598 = vmatprep.mubr.msk.f32.mxu1 %vm18229_vm4, %v2622_v20  ;;  %12608 = vmatprep.mubr.msk.f32.mxu0 %vm18229_vm4, %v2622_v20  ;;  %v3365_v46 = vpack.c.bf16 %v12590_v44, %v2622_v20 }
 0x64a   : > { %12599 = vmatmul.mubr.msk.f32.vlgmr.msra.gmra.mrb[32].mxu1 %vm18229_vm4, %v12590_v44  ;;  %12609 = vmatmul.mubr.msk.f32.vlgmr.msra.gmra.mrb[32].mxu0 %vm18229_vm4, %v12590_v44 }
 0x64b   : > { %13543 = vmatpush3.bf16.msra.mxu1 %v15961_v21  ;;  %13547 = vmatpush3.bf16.msra.mxu0 %v15964_v16 }
 0x64c   : > { %13549 = vmatprep.subr.bf16.mxu1 %v15972_v50  ;;  %13553 = vmatprep.subr.bf16.mxu0 %v15974_v52 }
 0x64f   : > { %v12593_v60 = vpop.f32.mrb[30].mxu1 }
 0x650   : > { %v2632_v4 = vpop.f32.mrb[31].mxu1 }
 0x651   : > { %12601 = vmatprep.mubr.msk.f32.mxu1 %vm18229_vm4, %v2632_v4  ;;  %12611 = vmatprep.mubr.msk.f32.mxu0 %vm18229_vm4, %v2632_v4  ;;  %v3366_v47 = vpack.c.bf16 %v12593_v60, %v2632_v4 }
 0x652   : > { %12602 = vmatmul.mubr.msk.f32.gmra.mrb[34].mxu1 %vm18229_vm4, %v12593_v60  ;;  %12612 = vmatmul.mubr.msk.f32.gmra.mrb[34].mxu0 %vm18229_vm4, %v12593_v60 }
 0x653   : > { %12618 = vmatprep.mubr.msk.f32.mxu1 %vm18229_vm4, %v2622_v20  ;;  %12628 = vmatprep.mubr.msk.f32.mxu0 %vm18229_vm4, %v2622_v20 }
 0x656   : > { %12619 = vmatmul.mubr.msk.f32.vlgmr.msra.gmra.mrb[36].mxu1 %vm18229_vm4, %v12590_v44  ;;  %12629 = vmatmul.mubr.msk.f32.vlgmr.msra.gmra.mrb[36].mxu0 %vm18229_vm4, %v12590_v44 }
 0x657   : > { %12621 = vmatprep.mubr.msk.f32.mxu1 %vm18229_vm4, %v2632_v4  ;;  %12631 = vmatprep.mubr.msk.f32.mxu0 %vm18229_vm4, %v2632_v4 }
 0x658   : > { %13551 = vmatpush3.bf16.msra.mxu1 %v15972_v50  ;;  %13555 = vmatpush3.bf16.msra.mxu0 %v15974_v52 }
 0x659   : > { %13557 = vmatprep.subr.bf16.mxu1 %v15994_v15  ;;  %13561 = vmatprep.subr.bf16.mxu0 %v15996_v36 }
 0x65a   : > { %12622 = vmatmul.mubr.msk.f32.gmra.mrb[38].mxu1 %vm18229_vm4, %v12593_v60  ;;  %12632 = vmatmul.mubr.msk.f32.gmra.mrb[38].mxu0 %vm18229_vm4, %v12593_v60 }
 0x65b   : > { %12638 = vmatprep.mubr.msk.f32.mxu1 %vm18229_vm4, %v2622_v20  ;;  %12648 = vmatprep.mubr.msk.f32.mxu0 %vm18229_vm4, %v2622_v20 }
 0x65e   : > { %12639 = vmatmul.mubr.msk.f32.vlgmr.msra.gmra.mrb[40].mxu1 %vm18229_vm4, %v12590_v44  ;;  %12649 = vmatmul.mubr.msk.f32.vlgmr.msra.gmra.mrb[40].mxu0 %vm18229_vm4, %v12590_v44 }
 0x65f   : > { %13559 = vmatpush3.bf16.msra.mxu1 %v15994_v15  ;;  %12641 = vmatprep.mubr.msk.f32.mxu1 %vm18229_vm4, %v2632_v4 }
 0x660   : > { %12651 = vmatprep.mubr.msk.f32.mxu0 %vm18229_vm4, %v2632_v4  ;;  %11728 = vmatprep.subr.bf16.mxu1 %v3365_v46 }
 0x661   : > { %13563 = vmatpush3.bf16.msra.mxu0 %v15996_v36 }
 0x662   : > { %12642 = vmatmul.mubr.msk.f32.gmra.mrb[42].mxu1 %vm18229_vm4, %v12593_v60  ;;  %12652 = vmatmul.mubr.msk.f32.gmra.mrb[42].mxu0 %vm18229_vm4, %v12593_v60 }
 0x663   : > { %12658 = vmatprep.mubr.msk.f32.mxu1 %vm18229_vm4, %v2622_v20  ;;  %12668 = vmatprep.mubr.msk.f32.mxu0 %vm18229_vm4, %v2622_v20 }
 0x666   : > { %12659 = vmatmul.mubr.msk.f32.vlgmr.msra.gmra.mrb[44].mxu1 %vm18229_vm4, %v12590_v44  ;;  %12669 = vmatmul.mubr.msk.f32.vlgmr.msra.gmra.mrb[44].mxu0 %vm18229_vm4, %v12590_v44 }
 0x667   : > { %12661 = vmatprep.mubr.msk.f32.mxu1 %vm18229_vm4, %v2632_v4  ;;  %12671 = vmatprep.mubr.msk.f32.mxu0 %vm18229_vm4, %v2632_v4 }
 0x66a   : > { %12662 = vmatmul.mubr.msk.f32.gmra.mrb[46].mxu1 %vm18229_vm4, %v12593_v60  ;;  %12672 = vmatmul.mubr.msk.f32.gmra.mrb[46].mxu0 %vm18229_vm4, %v12593_v60 }
 0x66b   : > { %3455 = vmatprep.mubr.bf16.mxu1 %v14521_v54  ;;  %12678 = vmatprep.mubr.msk.bf16.mxu0 %vm18230_vm11, %v14522_v51 }
 0x71d   : > { %v12600_v9 = vpop.f32.mrb[32].mxu1  ;;  %v12610_v1 = vpop.f32.mrb[32].mxu0 }
 0x71e   : > { %v2722_v20 = vpop.f32.mrb[33].mxu1  ;;  %v2810_v46 = vpop.f32.mrb[33].mxu0 }
 0x71f   : > { %v3357_v12 = vpack.c.bf16 %v12600_v9, %v2722_v20  ;;  %v3359_v59 = vpack.c.bf16 %v12610_v1, %v2810_v46 }
 0x721   : > { %11729 = vmatpush3.bf16.msra.mxu1 %v3357_v12 }
 0x722   : > { %11730 = vmatprep.subr.bf16.mxu1 %v3366_v47 }
 0x725   : > { %v12603_v44 = vpop.f32.mrb[34].mxu1  ;;  %v12613_v6 = vpop.f32.mrb[34].mxu0 }
 0x726   : > { %v2732_v4 = vpop.f32.mrb[35].mxu1  ;;  %v2820_v37 = vpop.f32.mrb[35].mxu0 }
 0x727   : > { %v3358_v45 = vpack.c.bf16 %v12603_v44, %v2732_v4  ;;  %v3360_v56 = vpack.c.bf16 %v12613_v6, %v2820_v37 }
 0x729   : > { %v12620_v60 = vpop.f32.mrb[36].mxu1  ;;  %v12630_v24 = vpop.f32.mrb[36].mxu0  ;;  %11731 = vmatpush3.bf16.msra.mxu1 %v3358_v45 }
 0x72a   : > { %v2898_v54 = vpop.f32.mrb[37].mxu1  ;;  %v2986_v23 = vpop.f32.mrb[37].mxu0 }
 0x72b   : > { %v3361_v51 = vpack.c.bf16 %v12620_v60, %v2898_v54  ;;  %v3363_v0 = vpack.c.bf16 %v12630_v24, %v2986_v23 }
 0x72d   : > { %v12623_v58 = vpop.f32.mrb[38].mxu1  ;;  %v12633_v7 = vpop.f32.mrb[38].mxu0 }
 0x72e   : > { %v2908_v25 = vpop.f32.mrb[39].mxu1  ;;  %v2996_v9 = vpop.f32.mrb[39].mxu0 }
 0x72f   : > { %v3362_v1 = vpack.c.bf16 %v12623_v58, %v2908_v25  ;;  %v3364_v20 = vpack.c.bf16 %v12633_v7, %v2996_v9 }
 0x731   : > { %v12640_v47 = vpop.f32.mrb[40].mxu1  ;;  %v12650_v46 = vpop.f32.mrb[40].mxu0 }
 0x732   : > { %v3074_v12 = vpop.f32.mrb[41].mxu1  ;;  %v3162_v29 = vpop.f32.mrb[41].mxu0 }
 0x733   : > { %v3367_v27 = vpack.c.bf16 %v12640_v47, %v3074_v12  ;;  %v3369_v44 = vpack.c.bf16 %v12650_v46, %v3162_v29  ;;  %v14526_v12 = vld [vmem:[%s18366_s10 + $0x18] ss:$12 sps:$4 sm:$0xff]  }
 0x735   : > { %v12643_v6 = vpop.f32.mrb[42].mxu1  ;;  %v12653_v4 = vpop.f32.mrb[42].mxu0  ;;  %11732 = vmatprep.subr.bf16.mxu1 %v3367_v27 }
 0x736   : > { %v3084_v45 = vpop.f32.mrb[43].mxu1  ;;  %v3172_v37 = vpop.f32.mrb[43].mxu0  ;;  %11733 = vmatpush3.bf16.msra.mxu1 %v3359_v59 }
 0x737   : > { %v3368_v60 = vpack.c.bf16 %v12643_v6, %v3084_v45  ;;  %v3370_v23 = vpack.c.bf16 %v12653_v4, %v3172_v37  ;;  %v3534_v6 = vld [vmem:[%s18367_s26 + $0x8] sm:$0xff] }
 0x739   : > { %v12660_v24 = vpop.f32.mrb[44].mxu1  ;;  %v12670_v54 = vpop.f32.mrb[44].mxu0  ;;  %11734 = vmatprep.subr.bf16.mxu1 %v3368_v60 }
 0x73a   : > { %v3250_v55 = vpop.f32.mrb[45].mxu1  ;;  %v3338_v58 = vpop.f32.mrb[45].mxu0  ;;  %11735 = vmatpush3.bf16.msra.mxu1 %v3360_v56  ;;  %v14523_v56 = vld [vmem:[%s18366_s10 + $0x20] ss:$12 sps:$4 sm:$0xff]  }
 0x73b   : > { %v3371_v25 = vpack.c.bf16 %v12660_v24, %v3250_v55  ;;  %v3373_v7 = vpack.c.bf16 %v12670_v54, %v3338_v58  ;;  %11736 = vmatprep.subr.bf16.mxu1 %v3369_v44  ;;  %v14519_v55 = vld [vmem:[%s18366_s10] ss:$12 sps:$4 sm:$0xff]  }
 0x73c   : > { %v3533_v44 = vld [vmem:[%s18367_s26] sm:$0xff] }
 0x73d   : > { %v12663_v9 = vpop.f32.mrb[46].mxu1  ;;  %v12673_v29 = vpop.f32.mrb[46].mxu0  ;;  %12674 = vmatprep.subr.bf16.mxu0 %v3373_v7  ;;  %v13564_v4 = vpack.c.bf16 %v3534_v6, %v3533_v44  ;;  %v3383_v24 = vld [vmem:[%s18368_s16] sm:$0xff] }
 0x73e   : > { %v3260_v27 = vpop.f32.mrb[47].mxu1  ;;  %v3348_v47 = vpop.f32.mrb[47].mxu0  ;;  %11737 = vmatpush3.bf16.msra.mxu1 %v3361_v51  ;;  %12675 = vmatpush3.bf16.msra.mxu0 %v3373_v7  ;;  %v14524_v51 = vld [vmem:[%s18366_s10 + $0x1c] ss:$12 sps:$4 sm:$0xff]   ;;  %s18428_s10 = smov 112  }
 0x73f   : > { %v3372_v59 = vpack.c.bf16 %v12663_v9, %v3260_v27  ;;  %v3374_v46 = vpack.c.bf16 %v12673_v29, %v3348_v47  ;;  %11738 = vmatprep.subr.bf16.mxu1 %v3370_v23  ;;  %v3384_v7 = vld [vmem:[%s18368_s16 + $0x8] sm:$0xff] }
 0x741   : > { %12676 = vmatprep.subr.bf16.mxu0 %v3374_v46 }
 0x742   : > { %11739 = vmatpush3.bf16.msra.mxu1 %v3362_v1  ;;  %12677 = vmatpush3.bf16.msra.mxu0 %v3374_v46  ;;  %v16037_v1 = vld [vmem:[%s15156_s25 + $0xc] sm:$0xf] }
 0x743   : > { %11740 = vmatprep.subr.bf16.mxu1 %v3371_v25  ;;  %13565 = vmatprep.subr.bf16.mxu0 %v13564_v4 }
 0x745   : > { %12679 = vmatmul.mubr.msk.bf16.vlgmr.msra.gmra.mrb[48].mxu0 %vm18230_vm11, %v14523_v56 }
 0x746   : > { %11741 = vmatpush3.bf16.msra.mxu1 %v3363_v0  ;;  %13567 = vmatpush3.bf16.msra.mxu0 %v13564_v4 }
 0x747   : > { %11742 = vmatprep.subr.bf16.mxu1 %v3372_v59 }
 0x74a   : > { %11743 = vmatpush3.bf16.msra.mxu1 %v3364_v20 }
 0x74b   : > { %12716 = vmatprep.subr.msk.mxu1 %vm1394_vm6, %v16037_v1 }
 0x74d   : > { %3456 = vmatmul.mubr.bf16.vlgmr.msra.gmra.mrb[48].mxu1 %v14519_v55  ;;  %v3385_v55 = vld [vmem:[%s18368_s16 + $0x10] sm:$0xff] }
 0x74e   : > { %3463 = vmatprep.mubr.bf16.mxu1 %v14524_v51  ;;  %12717 = vmatpush3.msk.msra.mxu1 %vm1394_vm6, %v16037_v1 }
 0x755   : > { %3464 = vmatmul.mubr.bf16.gmra.mrb[52].mxu1 %v14526_v12 }
 0x818   : > { %v12680_v0 = vpop.f32.mrb[48].mxu0 }
 0x819   : > { %v3506_v20 = vpop.f32.mrb[49].mxu0 }
 0x81a   : > { %v12681_v45 = vpop.f32.mrb[50].mxu0 }
 0x81b   : > { %v3509_v37 = vpop.f32.mrb[51].mxu0 }
 0x820   : > { %v11744_v60 = vpop.f32.mrb[48].mxu1 }
 0x821   : > { %v11745_v23 = vpop.f32.mrb[49].mxu1 }
 0x822   : > { %v11746_v54 = vadd.f32 %v11745_v23, %v11744_v60  ;;  %v11747_v58 = vpop.f32.mrb[50].mxu1  ;;  %v3386_v60 = vld [vmem:[%s18368_s16 + $0x18] sm:$0xff] }
 0x823   : > { %v11748_v25 = vpop.f32.mrb[51].mxu1 }
 0x824   : > { %v11749_v9 = vadd.f32 %v11748_v25, %v11747_v58  ;;  %v3458_v29 = vadd.f32 %v11746_v54, %v3383_v24 }
 0x826   : > { %v3507_v27 = vadd.f32 %v3506_v20, %v3458_v29  ;;  %v3461_v47 = vadd.f32 %v11749_v9, %v3384_v7 }
 0x828   : > { %vm3521_vm12 = vcmp.ge.f32.partialorder %v3507_v27, 0.0  ;;  %v3525_v59 = vmul.f32 0.2, %v3507_v27  ;;  %v3510_v46 = vadd.f32 %v3509_v37, %v3461_v47  ;;  %v11750_v56 = vpop.f32.mrb[52].mxu1  ;;  %v16076_v47 = vld [vmem:[%s15156_s25 + $0x18] sm:$0xf] }
 0x829   : > { %v11751_v51 = vpop.f32.mrb[53].mxu1  ;;  %12732 = vmatprep.subr.msk.mxu1 %vm1394_vm6, %v16076_v47 }
 0x82a   : > { %v16046_v12 = vsel %vm3521_vm12, %v3507_v27, %v3525_v59  ;;  %vm3522_vm5 = vcmp.ge.f32.partialorder %v3510_v46, 0.0  ;;  %v3526_v44 = vmul.f32 0.2, %v3510_v46  ;;  %v11752_v6 = vadd.f32 %v11751_v51, %v11750_v56  ;;  %v11753_v4 = vpop.f32.mrb[54].mxu1  ;;  %v4540_v59 = vld [vmem:[%s1222_s7] sm:$0xff]  ;;  %s18373_s7 = sld [smem:[#allocation37_spill]] }
 0x82b   : > { %v11754_v23 = vpop.f32.mrb[55].mxu1  ;;  %12686 = vmatprep.mubr.msk.f32.mxu0 %vm18229_vm4, %v16046_v12  ;;  %4543 = vperm.xlu0 %14028, %v4540_v59   ;;  %v16088_v51 = vld [vmem:[%s15156_s25 + $0x20] sm:$0xf] }
 0x82c   : > { %v16051_v20 = vsel %vm3522_vm5, %v3510_v46, %v3526_v44  ;;  %v3466_v24 = vadd.f32 %v11752_v6, %v3385_v55  ;;  %v11755_v54 = vadd.f32 %v11754_v23, %v11753_v4  ;;  %vm3633_vm5 = vcmask 31744   ;;  %v16085_v55 = vld [vmem:[%s15156_s25 + $0x8] sm:$0xf]  ;;  %v16109_v23 = vld [vmem:[%s15156_s25 + $0x14] sm:$0xf] }
 0x82d   : > { %12687 = vmatmul.mubr.msk.f32.vlgmr.msra.gmra.mrb[52].mxu0 %vm18229_vm4, %v16051_v20 }
 0x82e   : > { %v3515_v37 = vadd.f32 %v12680_v0, %v3466_v24  ;;  %v3469_v58 = vadd.f32 %v11755_v54, %v3386_v60  ;;  %v16064_v0 = vld [vmem:[%s15156_s25] sm:$0xf]  ;;  %v16126_v24 = vld [vmem:[%s15156_s25 + $0x1c] sm:$0xf]  ;;  %v14527_v54 = vld [vmem:[%s18370_s23 + $0x8] ss:$12 sps:$4 sm:$0xff]  }
 0x82f   : > { %12692 = vmatprep.subr.msk.mxu0 %vm1394_vm6, %v16064_v0 }
 0x830   : > { %vm3523_vm12 = vcmp.ge.f32.partialorder %v3515_v37, 0.0  ;;  %v3527_v25 = vmul.f32 0.2, %v3515_v37  ;;  %v3518_v7 = vadd.f32 %v12681_v45, %v3469_v58  ;;  %12693 = vmatpush3.msk.msra.mxu0 %vm1394_vm6, %v16064_v0  ;;  %v16071_v45 = vld [vmem:[%s15156_s25 + $0x4] sm:$0xf]  ;;  %s18374_s15 = smov %s18373_s7 }
 0x831   : > { %12700 = vmatprep.subr.msk.mxu0 %vm1394_vm6, %v16071_v45 }
 0x832   : > { %v16055_v9 = vsel %vm3523_vm12, %v3515_v37, %v3527_v25  ;;  %vm3524_vm10 = vcmp.ge.f32.partialorder %v3518_v7, 0.0  ;;  %v3528_v29 = vmul.f32 0.2, %v3518_v7  ;;  %v14531_v37 = vld [vmem:[%s18370_s23 + $0x4] ss:$12 sps:$4 sm:$0xff]  }
 0x833   : > { %12689 = vmatprep.mubr.msk.f32.mxu0 %vm18229_vm4, %v16055_v9 }
 0x834   : > { %v16059_v27 = vsel %vm3524_vm10, %v3518_v7, %v3528_v29  ;;  %vm14968_vm10 = vmmov 0  }
 0x835   : > { %12690 = vmatmul.mubr.msk.f32.gmra.mrb[54].mxu0 %vm18229_vm4, %v16059_v27 }
 0x900   : > { %v12688_v46 = vpop.f32.mrb[52].mxu0 }
 0x901   : > { %v3613_v56 = vpop.f32.mrb[53].mxu0 }
 0x902   : > { %12694 = vmatprep.mubr.msk.f32.mxu0 %vm3633_vm5, %v3613_v56  ;;  %12718 = vmatprep.mubr.msk.f32.mxu1 %vm3633_vm5, %v3613_v56  ;;  %v4372_v44 = vpack.c.bf16 %v12688_v46, %v3613_v56 }
 0x903   : > { %12695 = vmatmul.mubr.msk.f32.vlgmr.msra.gmra.mrb[56].mxu0 %vm3633_vm5, %v12688_v46  ;;  %12719 = vmatmul.mubr.msk.f32.vlgmr.msra.gmra.mrb[56].mxu1 %vm3633_vm5, %v12688_v46 }
 0x904   : > { %12701 = vmatpush3.msk.msra.mxu0 %vm1394_vm6, %v16071_v45  ;;  %12733 = vmatpush3.msk.msra.mxu1 %vm1394_vm6, %v16076_v47 }
 0x905   : > { %12708 = vmatprep.subr.msk.mxu0 %vm1394_vm6, %v16085_v55  ;;  %12748 = vmatprep.subr.msk.mxu1 %vm1394_vm6, %v16088_v51 }
 0x908   : > { %v12691_v6 = vpop.f32.mrb[54].mxu0 }
 0x909   : > { %v3623_v4 = vpop.f32.mrb[55].mxu0 }
 0x90a   : > { %12697 = vmatprep.mubr.msk.f32.mxu0 %vm3633_vm5, %v3623_v4  ;;  %12721 = vmatprep.mubr.msk.f32.mxu1 %vm3633_vm5, %v3623_v4  ;;  %v4373_v60 = vpack.c.bf16 %v12691_v6, %v3623_v4 }
 0x90b   : > { %12698 = vmatmul.mubr.msk.f32.gmra.mrb[58].mxu0 %vm3633_vm5, %v12691_v6  ;;  %12722 = vmatmul.mubr.msk.f32.gmra.mrb[58].mxu1 %vm3633_vm5, %v12691_v6 }
 0x90c   : > { %12702 = vmatprep.mubr.msk.f32.mxu0 %vm3633_vm5, %v3613_v56  ;;  %12734 = vmatprep.mubr.msk.f32.mxu1 %vm3633_vm5, %v3613_v56 }
 0x90f   : > { %12703 = vmatmul.mubr.msk.f32.vlgmr.msra.gmra.mrb[60].mxu0 %vm3633_vm5, %v12688_v46  ;;  %12735 = vmatmul.mubr.msk.f32.vlgmr.msra.gmra.mrb[60].mxu1 %vm3633_vm5, %v12688_v46 }
 0x910   : > { %12705 = vmatprep.mubr.msk.f32.mxu0 %vm3633_vm5, %v3623_v4  ;;  %12737 = vmatprep.mubr.msk.f32.mxu1 %vm3633_vm5, %v3623_v4 }
 0x911   : > { %12709 = vmatpush3.msk.msra.mxu0 %vm1394_vm6, %v16085_v55  ;;  %12749 = vmatpush3.msk.msra.mxu1 %vm1394_vm6, %v16088_v51 }
 0x912   : > { %12724 = vmatprep.subr.msk.mxu0 %vm1394_vm6, %v16109_v23 }
 0x913   : > { %12706 = vmatmul.mubr.msk.f32.gmra.mrb[62].mxu0 %vm3633_vm5, %v12691_v6  ;;  %12738 = vmatmul.mubr.msk.f32.gmra.mrb[62].mxu1 %vm3633_vm5, %v12691_v6 }
 0x914   : > { %12710 = vmatprep.mubr.msk.f32.mxu0 %vm3633_vm5, %v3613_v56  ;;  %12750 = vmatprep.mubr.msk.f32.mxu1 %vm3633_vm5, %v3613_v56 }
 0x917   : > { %12711 = vmatmul.mubr.msk.f32.vlgmr.msra.gmra.mrb[64].mxu0 %vm3633_vm5, %v12688_v46  ;;  %12751 = vmatmul.mubr.msk.f32.vlgmr.msra.gmra.mrb[64].mxu1 %vm3633_vm5, %v12688_v46 }
 0x918   : > { %12713 = vmatprep.mubr.msk.f32.mxu0 %vm3633_vm5, %v3623_v4  ;;  %12753 = vmatprep.mubr.msk.f32.mxu1 %vm3633_vm5, %v3623_v4 }
 0x919   : > { %12725 = vmatpush3.msk.msra.mxu0 %vm1394_vm6, %v16109_v23 }
 0x91a   : > { %12740 = vmatprep.subr.msk.mxu0 %vm1394_vm6, %v16126_v24 }
 0x91b   : > { %12714 = vmatmul.mubr.msk.f32.gmra.mrb[66].mxu0 %vm3633_vm5, %v12691_v6  ;;  %12754 = vmatmul.mubr.msk.f32.gmra.mrb[66].mxu1 %vm3633_vm5, %v12691_v6 }
 0x91c   : > { %12726 = vmatprep.mubr.msk.f32.mxu0 %vm3633_vm5, %v3613_v56  ;;  %12760 = vmatprep.mubr.msk.bf16.mxu1 %vm18230_vm11, %v14527_v54 }
 0x91f   : > { %12727 = vmatmul.mubr.msk.f32.vlgmr.msra.gmra.mrb[68].mxu0 %vm3633_vm5, %v12688_v46 }
 0x920   : > { %12741 = vmatpush3.msk.msra.mxu0 %vm1394_vm6, %v16126_v24  ;;  %12729 = vmatprep.mubr.msk.f32.mxu0 %vm3633_vm5, %v3623_v4 }
 0x921   : > { %11806 = vmatprep.subr.bf16.mxu0 %v4372_v44 }
 0x923   : > { %12730 = vmatmul.mubr.msk.f32.gmra.mrb[70].mxu0 %vm3633_vm5, %v12691_v6 }
 0x924   : > { %12742 = vmatprep.mubr.msk.f32.mxu0 %vm3633_vm5, %v3613_v56 }
 0x927   : > { %12743 = vmatmul.mubr.msk.f32.vlgmr.msra.gmra.mrb[72].mxu0 %vm3633_vm5, %v12688_v46 }
 0x928   : > { %12745 = vmatprep.mubr.msk.f32.mxu0 %vm3633_vm5, %v3623_v4 }
 0x92b   : > { %12746 = vmatmul.mubr.msk.f32.gmra.mrb[74].mxu0 %vm3633_vm5, %v12691_v6 }
 0x92c   : > { %4462 = vmatprep.mubr.bf16.mxu0 %v14531_v37 }
 0x9d6   : > { %v12696_v58 = vpop.f32.mrb[56].mxu0  ;;  %v16149_v25 = vpop.f32.mrb[56].mxu1 }
 0x9d7   : > { %v3715_v7 = vpop.f32.mrb[57].mxu0  ;;  %v16151_v29 = vpop.f32.mrb[57].mxu1 }
 0x9d8   : > { %v4364_v59 = vpack.c.bf16 %v12696_v58, %v3715_v7 }
 0x9da   : > { %11807 = vmatpush3.bf16.msra.mxu0 %v4364_v59 }
 0x9db   : > { %11808 = vmatprep.subr.bf16.mxu0 %v4373_v60 }
 0x9de   : > { %v12699_v46 = vpop.f32.mrb[58].mxu0  ;;  %v16155_v44 = vpop.f32.mrb[58].mxu1 }
 0x9df   : > { %v3725_v6 = vpop.f32.mrb[59].mxu0  ;;  %v16157_v4 = vpop.f32.mrb[59].mxu1 }
 0x9e0   : > { %v4365_v54 = vpack.c.bf16 %v12699_v46, %v3725_v6 }
 0x9e2   : > { %v12704_v26 = vpop.f32.mrb[60].mxu0  ;;  %v12736_v14 = vpop.f32.mrb[60].mxu1  ;;  %11809 = vmatpush3.bf16.msra.mxu0 %v4365_v54 }
 0x9e3   : > { %v3805_v28 = vpop.f32.mrb[61].mxu0  ;;  %v4165_v58 = vpop.f32.mrb[61].mxu1 }
 0x9e4   : > { %v4366_v7 = vpack.c.bf16 %v12704_v26, %v3805_v28  ;;  %v4376_v43 = vpack.c.bf16 %v12736_v14, %v4165_v58  ;;  %v14528_v58 = vld [vmem:[%s18370_s23 + $0x20] ss:$12 sps:$4 sm:$0xff]  }
 0x9e6   : > { %v12707_v56 = vpop.f32.mrb[62].mxu0  ;;  %v12739_v59 = vpop.f32.mrb[62].mxu1 }
 0x9e7   : > { %v3815_v60 = vpop.f32.mrb[63].mxu0  ;;  %v4175_v42 = vpop.f32.mrb[63].mxu1 }
 0x9e8   : > { %v4367_v8 = vpack.c.bf16 %v12707_v56, %v3815_v60  ;;  %v4377_v63 = vpack.c.bf16 %v12739_v59, %v4175_v42  ;;  %v18208_v59 = vmov 0.0  }
 0x9ea   : > { %v12712_v40 = vpop.f32.mrb[64].mxu0  ;;  %v12752_v38 = vpop.f32.mrb[64].mxu1 }
 0x9eb   : > { %v3895_v46 = vpop.f32.mrb[65].mxu0  ;;  %v4345_v6 = vpop.f32.mrb[65].mxu1 }
 0x9ec   : > { %v4368_v11 = vpack.c.bf16 %v12712_v40, %v3895_v46  ;;  %v4380_v37 = vpack.c.bf16 %v12752_v38, %v4345_v6 }
 0x9ee   : > { %v12715_v10 = vpop.f32.mrb[66].mxu0  ;;  %v12755_v30 = vpop.f32.mrb[66].mxu1  ;;  %12756 = vmatprep.subr.bf16.mxu1 %v4380_v37 }
 0x9ef   : > { %v3905_v54 = vpop.f32.mrb[67].mxu0  ;;  %v4355_v61 = vpop.f32.mrb[67].mxu1  ;;  %12757 = vmatpush3.bf16.msra.mxu1 %v4380_v37 }
 0x9f0   : > { %v4369_v26 = vpack.c.bf16 %v12715_v10, %v3905_v54  ;;  %v4381_v28 = vpack.c.bf16 %v12755_v30, %v4355_v61  ;;  %v16169_v30 = vpop.permute.xlu0 %4543 }
 0x9f2   : > { %v12728_v14 = vpop.f32.mrb[68].mxu0  ;;  %12758 = vmatprep.subr.bf16.mxu1 %v4381_v28 }
 0x9f3   : > { %v4075_v56 = vpop.f32.mrb[69].mxu0  ;;  %12759 = vmatpush3.bf16.msra.mxu1 %v4381_v28 }
 0x9f4   : > { %v4374_v42 = vpack.c.bf16 %v12728_v14, %v4075_v56  ;;  %12764 = vmatprep.subr.mxu1 %v18208_v59 }
 0x9f6   : > { %v12731_v60 = vpop.f32.mrb[70].mxu0  ;;  %11810 = vmatprep.subr.bf16.mxu0 %v4374_v42  ;;  %12761 = vmatmul.mubr.msk.bf16.vlgmr.msra.gmra.mrb[68].mxu1 %vm18230_vm11, %v14528_v58 }
 0x9f7   : > { %v4085_v38 = vpop.f32.mrb[71].mxu0  ;;  %11811 = vmatpush3.bf16.msra.mxu0 %v4366_v7  ;;  %12765 = vmatpush3.msk.msra.mxu1 %vm1394_vm6, %v16064_v0 }
 0x9f8   : > { %v4375_v10 = vpack.c.bf16 %v12731_v60, %v4085_v38  ;;  %12766 = vmatprep.mubr.msk.f32.mxu1 %vm14968_vm10, %v18208_v59  ;;  %12769 = vmatprep.subr.mxu1 %v18208_v59 }
 0x9fa   : > { %v12744_v61 = vpop.f32.mrb[72].mxu0  ;;  %11812 = vmatprep.subr.bf16.mxu0 %v4375_v10 }
 0x9fb   : > { %v4255_v40 = vpop.f32.mrb[73].mxu0  ;;  %11813 = vmatpush3.bf16.msra.mxu0 %v4367_v8  ;;  %v18372_v8 = vpack.c.bf16 %v16155_v44, %v16157_v4 }
 0x9fc   : > { %v4378_v37 = vpack.c.bf16 %v12744_v61, %v4255_v40  ;;  %11814 = vmatprep.subr.bf16.mxu0 %v4376_v43  ;;  %v14532_v43 = vld [vmem:[%s18370_s23 + $0x1c] ss:$12 sps:$4 sm:$0xff]  }
 0x9fe   : > { %v12747_v46 = vpop.f32.mrb[74].mxu0  ;;  %12767 = vmatmul.mubr.msk.f32.vlgmr.msra.gmra.mrb[72].mxu1 %vm3633_vm5, %v16169_v30 }
 0x9ff   : > { %v4265_v7 = vpop.f32.mrb[75].mxu0  ;;  %11815 = vmatpush3.bf16.msra.mxu0 %v4368_v11  ;;  %12770 = vmatpush3.msk.msra.mxu1 %vm1394_vm6, %v16071_v45  ;;  %v18371_v11 = vpack.c.bf16 %v16149_v25, %v16151_v29  ;;  %v14534_v25 = vld [vmem:[%s18370_s23 + $0x18] ss:$12 sps:$4 sm:$0xff]  }
 0xa00   : > { %v4379_v6 = vpack.c.bf16 %v12747_v46, %v4265_v7  ;;  %11816 = vmatprep.subr.bf16.mxu0 %v4377_v63  ;;  %12771 = vmatprep.mubr.msk.f32.mxu1 %vm14968_vm10, %v18208_v59  ;;  %v14529_v63 = vld [vmem:[%s18370_s23] ss:$12 sps:$4 sm:$0xff]   ;;  %v14535_v29 = vld [vmem:[#allocation11] sm:$0xff]  }
 0xa01   : > { %12774 = vmatprep.subr.mxu1 %v18208_v59  ;;  %v4390_v7 = vld [vmem:[%s18373_s7] sm:$0xff]  ;;  %s18377_s7 = sld [smem:[#allocation40_spill]] }
 0xa02   : > { %12772 = vmatmul.mubr.msk.f32.vlgmr.msra.gmra.mrb[74].mxu1 %vm3633_vm5, %v16169_v30 }
 0xa03   : > { %11817 = vmatpush3.bf16.msra.mxu0 %v4369_v26  ;;  %12775 = vmatpush3.msk.msra.mxu1 %vm1394_vm6, %v16085_v55 }
 0xa04   : > { %11818 = vmatprep.subr.bf16.mxu0 %v4378_v37  ;;  %12776 = vmatprep.mubr.msk.f32.mxu1 %vm14968_vm10, %v18208_v59 }
 0xa05   : > { %12779 = vmatprep.subr.mxu1 %v18208_v59 }
 0xa06   : > { %12777 = vmatmul.mubr.msk.f32.vlgmr.msra.gmra.mrb[76].mxu1 %vm3633_vm5, %v16169_v30 }
 0xa07   : > { %11819 = vmatpush3.bf16.msra.mxu0 %v18371_v11  ;;  %12780 = vmatpush3.msk.msra.mxu1 %vm1394_vm6, %v16037_v1  ;;  %s18378_s29 = smov %s18377_s7 }
 0xa08   : > { %11820 = vmatprep.subr.bf16.mxu0 %v4379_v6  ;;  %12781 = vmatprep.mubr.msk.f32.mxu1 %vm14968_vm10, %v18208_v59 }
 0xa09   : > { %12784 = vmatprep.subr.mxu1 %v18208_v59 }
 0xa0a   : > { %12782 = vmatmul.mubr.msk.f32.vlgmr.msra.gmra.mrb[78].mxu1 %vm3633_vm5, %v16169_v30 }
 0xa0b   : > { %11821 = vmatpush3.bf16.msra.mxu0 %v18372_v8  ;;  %12785 = vmatpush3.msk.msra.mxu1 %vm1394_vm6, %v16109_v23 }
 0xa0c   : > { %12786 = vmatprep.mubr.msk.f32.mxu1 %vm14968_vm10, %v18208_v59  ;;  %12789 = vmatprep.subr.mxu1 %v18208_v59 }
 0xa0d   : > { %12799 = vmatprep.subr.mxu0 %v18208_v59 }
 0xa0e   : > { %4463 = vmatmul.mubr.bf16.vlgmr.msra.gmra.mrb[76].mxu0 %v14529_v63  ;;  %12787 = vmatmul.mubr.msk.f32.vlgmr.msra.gmra.mrb[80].mxu1 %vm3633_vm5, %v16169_v30 }
 0xa0f   : > { %12790 = vmatpush3.msk.msra.mxu1 %vm1394_vm6, %v16076_v47  ;;  %12791 = vmatprep.mubr.msk.f32.mxu1 %vm14968_vm10, %v18208_v59 }
 0xa10   : > { %12800 = vmatpush3.msk.msra.mxu0 %vm1394_vm6, %v16088_v51  ;;  %12794 = vmatprep.subr.mxu1 %v18208_v59 }
 0xa11   : > { %4470 = vmatprep.mubr.bf16.mxu0 %v14532_v43  ;;  %12818 = vmatprep.subr.msk.mxu0 %vm1394_vm6, %v16064_v0  ;;  %v4391_v43 = vld [vmem:[%s18374_s15 + $0x8] sm:$0xff] }
 0xa12   : > { %12792 = vmatmul.mubr.msk.f32.vlgmr.msra.gmra.mrb[82].mxu1 %vm3633_vm5, %v16169_v30 }
 0xa13   : > { %12795 = vmatpush3.msk.msra.mxu1 %vm1394_vm6, %v16126_v24  ;;  %12796 = vmatprep.mubr.msk.f32.mxu1 %vm14968_vm10, %v18208_v59 }
 0xa16   : > { %4471 = vmatmul.mubr.bf16.gmra.mrb[80].mxu0 %v14534_v25  ;;  %12797 = vmatmul.mubr.msk.f32.vlgmr.msra.gmra.mrb[84].mxu1 %vm3633_vm5, %v16169_v30 }
 0xa17   : > { %12801 = vmatprep.mubr.msk.f32.mxu0 %vm14968_vm10, %v18208_v59  ;;  %12814 = vmatprep.mubr.msk.bf16.mxu1 %vm1387_vm0, %v14535_v29 }
 0xa1e   : > { %12802 = vmatmul.mubr.msk.f32.vlgmr.msra.gmra.mrb[84].mxu0 %vm3633_vm5, %v16169_v30 }
 0xa1f   : > { %12819 = vmatpush3.msk.msra.mxu0 %vm1394_vm6, %v16064_v0 }
 0xa20   : > { %12832 = vmatprep.subr.msk.mxu0 %vm1394_vm6, %v16071_v45 }
 0xac9   : > { %v12762_v44 = vpop.f32.mrb[68].mxu1 }
 0xaca   : > { %v4513_v4 = vpop.f32.mrb[69].mxu1 }
 0xacb   : > { %v16237_v54 = vpop.f32.mrb[70].mxu1 }
 0xacc   : > { %v4516_v26 = vpop.f32.mrb[71].mxu1 }
 0xad1   : > { %v4614_v28 = vpop.f32.mrb[72].mxu1 }
 0xad2   : > { %v12768_v14 = vpop.f32.mrb[73].mxu1 }
 0xad5   : > { %v4684_v58 = vpop.f32.mrb[74].mxu1 }
 0xad6   : > { %v5108_v56 = vpack.c.bf16 %v4684_v58, %v4614_v28  ;;  %v12773_v42 = vpop.f32.mrb[75].mxu1 }
 0xad8   : > { %12804 = vmatprep.subr.bf16.mxu1 %v5108_v56 }
 0xad9   : > { %v4754_v60 = vpop.f32.mrb[76].mxu1  ;;  %12805 = vmatpush3.bf16.msra.mxu1 %v5108_v56 }
 0xada   : > { %v12778_v0 = vpop.f32.mrb[77].mxu1 }
 0xadd   : > { %v4824_v38 = vpop.f32.mrb[78].mxu1 }
 0xade   : > { %v5109_v10 = vpack.c.bf16 %v4824_v38, %v4754_v60  ;;  %v12783_v61 = vpop.f32.mrb[79].mxu1 }
 0xadf   : > { %v4392_v61 = vld [vmem:[%s18374_s15 + $0x10] sm:$0xff] }
 0xae0   : > { %12806 = vmatprep.subr.bf16.mxu1 %v5109_v10 }
 0xae1   : > { %v11822_v40 = vpop.f32.mrb[76].mxu0  ;;  %v4894_v37 = vpop.f32.mrb[80].mxu1  ;;  %12807 = vmatpush3.bf16.msra.mxu1 %v5109_v10 }
 0xae2   : > { %v5110_v46 = vpack.c.bf16 %v4894_v37, %v16169_v30  ;;  %v11823_v6 = vpop.f32.mrb[77].mxu0  ;;  %v12788_v11 = vpop.f32.mrb[81].mxu1 }
 0xae3   : > { %v11824_v63 = vadd.f32 %v11823_v6, %v11822_v40  ;;  %v11825_v8 = vpop.f32.mrb[78].mxu0 }
 0xae4   : > { %v11826_v25 = vpop.f32.mrb[79].mxu0  ;;  %12808 = vmatprep.subr.bf16.mxu1 %v5110_v46 }
 0xae5   : > { %v4465_v29 = vadd.f32 %v11824_v63, %v4390_v7  ;;  %v11827_v28 = vadd.f32 %v11826_v25, %v11825_v8  ;;  %v4964_v14 = vpop.f32.mrb[82].mxu1  ;;  %12809 = vmatpush3.bf16.msra.mxu1 %v5110_v46  ;;  %v4393_v46 = vld [vmem:[%s18374_s15 + $0x18] sm:$0xff] }
 0xae6   : > { %v12793_v58 = vpop.f32.mrb[83].mxu1 }
 0xae7   : > { %v4514_v56 = vadd.f32 %v4513_v4, %v4465_v29  ;;  %v4468_v42 = vadd.f32 %v11827_v28, %v4391_v43 }
 0xae9   : > { %vm4528_vm12 = vcmp.ge.f32.partialorder %v4514_v56, 0.0  ;;  %v4532_v60 = vmul.f32 0.2, %v4514_v56  ;;  %v4517_v30 = vadd.f32 %v4516_v26, %v4468_v42  ;;  %v11828_v0 = vpop.f32.mrb[80].mxu0  ;;  %v5034_v38 = vpop.f32.mrb[84].mxu1 }
 0xaea   : > { %v5111_v10 = vpack.c.bf16 %v5034_v38, %v4964_v14  ;;  %v11829_v40 = vpop.f32.mrb[81].mxu0  ;;  %v12798_v37 = vpop.f32.mrb[85].mxu1 }
 0xaeb   : > { %v16243_v6 = vsel %vm4528_vm12, %v4514_v56, %v4532_v60  ;;  %vm4529_vm10 = vcmp.ge.f32.partialorder %v4517_v30, 0.0  ;;  %v4533_v7 = vmul.f32 0.2, %v4517_v30  ;;  %v11830_v11 = vadd.f32 %v11829_v40, %v11828_v0  ;;  %v11831_v63 = vpop.f32.mrb[82].mxu0  ;;  %v5117_v40 = vld [vmem:[%s18375_s2] sm:$0xff]  ;;  %s18384_s2 = sld [smem:[#allocation41_spill]] }
 0xaec   : > { %v11832_v8 = vpop.f32.mrb[83].mxu0  ;;  %12810 = vmatprep.subr.bf16.mxu1 %v5111_v10  ;;  %12820 = vmatprep.mubr.msk.f32.mxu0 %vm3633_vm5, %v16243_v6 }
 0xaed   : > { %v16248_v4 = vsel %vm4529_vm10, %v4517_v30, %v4533_v7  ;;  %v4473_v26 = vadd.f32 %v11830_v11, %v4392_v61  ;;  %v11833_v43 = vadd.f32 %v11832_v8, %v11831_v63  ;;  %12811 = vmatpush3.bf16.msra.mxu1 %v5111_v10  ;;  %v5118_v63 = vld [vmem:[%s18376_s11 + $0x8] sm:$0xff] }
 0xaee   : > { %12821 = vmatmul.mubr.msk.f32.vlgmr.msra.gmra.mrb[86].mxu0 %vm3633_vm5, %v16248_v4 }
 0xaef   : > { %v4522_v25 = vadd.f32 %v12762_v44, %v4473_v26  ;;  %v4476_v29 = vadd.f32 %v11833_v43, %v4393_v46  ;;  %12833 = vmatpush3.msk.msra.mxu0 %vm1394_vm6, %v16071_v45  ;;  %v14536_v45 = vld [vmem:[#allocation11 + $0x8] sm:$0xff]  }
 0xaf0   : > { %12860 = vmatprep.subr.msk.mxu0 %vm1394_vm6, %v16037_v1  ;;  %v5119_v46 = vld [vmem:[%s18376_s11 + $0x10] sm:$0xff] }
 0xaf1   : > { %vm4530_vm12 = vcmp.ge.f32.partialorder %v4522_v25, 0.0  ;;  %v4534_v28 = vmul.f32 0.2, %v4522_v25  ;;  %v4525_v14 = vadd.f32 %v16237_v54, %v4476_v29  ;;  %v5104_v58 = vpop.f32.mrb[84].mxu0  ;;  %v5120_v29 = vld [vmem:[%s18376_s11 + $0x18] sm:$0xff]  ;;  %s18385_s22 = smov %s18384_s2  ;;  %s18429_s11 = smov 111  }
 0xaf2   : > { %v5112_v56 = vpack.c.bf16 %v5104_v58, %v5104_v58  ;;  %v12803_v42 = vpop.f32.mrb[85].mxu0 }
 0xaf3   : > { %v16257_v60 = vsel %vm4530_vm12, %v4522_v25, %v4534_v28  ;;  %vm4531_vm10 = vcmp.ge.f32.partialorder %v4525_v14, 0.0  ;;  %v4535_v30 = vmul.f32 0.2, %v4525_v14 }
 0xaf4   : > { %v5138_v44 = vsel %vm1394_vm6, %v5112_v56, 0  ;;  %13812 = vmatprep.subr.msk.bf16.mxu1 %vm1394_vm6, %v5112_v56  ;;  %12823 = vmatprep.mubr.msk.f32.mxu0 %vm3633_vm5, %v16257_v60 }
 0xaf5   : > { %v16263_v0 = vsel %vm4531_vm10, %v4525_v14, %v4535_v30  ;;  %12813 = vmatpush3.bf16.msra.mxu1 %v5138_v44 }
 0xaf6   : > { %12824 = vmatmul.mubr.msk.f32.gmra.mrb[88].mxu0 %vm3633_vm5, %v16263_v0  ;;  %12846 = vmatprep.subr.msk.mxu1 %vm1394_vm6, %v16085_v55 }
 0xaf8   : > { %12815 = vmatmul.mubr.msk.bf16.vlgmr.msra.gmra.mrb[88].mxu1 %vm1387_vm0, %v14536_v45 }
 0xaf9   : > { %12848 = vmatprep.mubr.msk.f32.mxu1 %vm3633_vm5, %v16243_v6  ;;  %12847 = vmatpush3.msk.msra.mxu1 %vm1394_vm6, %v16085_v55 }
 0xafa   : > { %12874 = vmatprep.subr.msk.mxu1 %vm1394_vm6, %v16109_v23 }
 0xb00   : > { %12849 = vmatmul.mubr.msk.f32.vlgmr.msra.gmra.mrb[86].mxu1 %vm3633_vm5, %v16248_v4 }
 0xb01   : > { %12851 = vmatprep.mubr.msk.f32.mxu1 %vm3633_vm5, %v16257_v60  ;;  %12875 = vmatpush3.msk.msra.mxu1 %vm1394_vm6, %v16109_v23 }
 0xb02   : > { %12902 = vmatprep.subr.msk.mxu1 %vm1394_vm6, %v16126_v24 }
 0xb04   : > { %12852 = vmatmul.mubr.msk.f32.gmra.mrb[92].mxu1 %vm3633_vm5, %v16263_v0 }
 0xbc1   : > { %v12822_v55 = vpop.f32.mrb[86].mxu0 }
 0xbc2   : > { %v5279_v54 = vpop.f32.mrb[87].mxu0 }
 0xbc3   : > { %v6053_v38 = vpack.c.bf16 %v12822_v55, %v5279_v54 }
 0xbc9   : > { %v12825_v10 = vpop.f32.mrb[88].mxu0 }
 0xbca   : > { %v5289_v61 = vpop.f32.mrb[89].mxu0 }
 0xbcb   : > { %v6054_v37 = vpack.c.bf16 %v12825_v10, %v5289_v61  ;;  %v12816_v7 = vpop.f32.mrb[88].mxu1 }
 0xbcc   : > { %v5174_v11 = vpop.f32.mrb[89].mxu1  ;;  %v16297_v25 = vadd.f32 %v12816_v7, %v5119_v46 }
 0xbcd   : > { %v16289_v8 = vadd.f32 %v5174_v11, %v5117_v40  ;;  %v12817_v23 = vpop.f32.mrb[90].mxu1 }
 0xbce   : > { %v5177_v26 = vpop.f32.mrb[91].mxu1  ;;  %v16310_v14 = vadd.f32 %v12817_v23, %v5120_v29 }
 0xbcf   : > { %v16291_v43 = vadd.f32 %v5177_v26, %v5118_v63  ;;  %12826 = vmatprep.mubr.msk.f32.mxu0 %vm3633_vm5, %v16289_v8  ;;  %12854 = vmatprep.mubr.msk.f32.mxu1 %vm3633_vm5, %v16289_v8 }
 0xbd1   : > { %12827 = vmatmul.mubr.msk.f32.gmra.mrb[90].mxu0 %vm3633_vm5, %v16291_v43  ;;  %12855 = vmatmul.mubr.msk.f32.gmra.mrb[94].mxu1 %vm3633_vm5, %v16291_v43 }
 0xbd2   : > { %12829 = vmatprep.mubr.msk.f32.mxu0 %vm3633_vm5, %v16297_v25  ;;  %12857 = vmatprep.mubr.msk.f32.mxu1 %vm3633_vm5, %v16297_v25 }
 0xbd3   : > { %v12850_v58 = vpop.f32.mrb[86].mxu1 }
 0xbd4   : > { %v5489_v56 = vpop.f32.mrb[87].mxu1 }
 0xbd5   : > { %v6061_v42 = vpack.c.bf16 %v12850_v58, %v5489_v56  ;;  %12830 = vmatmul.mubr.msk.f32.gmra.mrb[92].mxu0 %vm3633_vm5, %v16310_v14  ;;  %12858 = vmatmul.mubr.msk.f32.gmra.mrb[96].mxu1 %vm3633_vm5, %v16310_v14 }
 0xbd6   : > { %12834 = vmatprep.mubr.msk.f32.mxu0 %vm3633_vm5, %v16243_v6  ;;  %12876 = vmatprep.mubr.msk.f32.mxu1 %vm3633_vm5, %v16243_v6 }
 0xbd7   : > { %v12853_v30 = vpop.f32.mrb[92].mxu1 }
 0xbd8   : > { %v5499_v44 = vpop.f32.mrb[93].mxu1 }
 0xbd9   : > { %v6062_v45 = vpack.c.bf16 %v12853_v30, %v5499_v44  ;;  %12835 = vmatmul.mubr.msk.f32.vlgmr.msra.gmra.mrb[94].mxu0 %vm3633_vm5, %v16248_v4  ;;  %12877 = vmatmul.mubr.msk.f32.vlgmr.msra.gmra.mrb[98].mxu1 %vm3633_vm5, %v16248_v4 }
 0xbda   : > { %12903 = vmatpush3.msk.msra.mxu1 %vm1394_vm6, %v16126_v24  ;;  %12837 = vmatprep.mubr.msk.f32.mxu0 %vm3633_vm5, %v16257_v60 }
 0xbdb   : > { %12879 = vmatprep.mubr.msk.f32.mxu1 %vm3633_vm5, %v16257_v60  ;;  %11933 = vmatprep.subr.bf16.mxu1 %v6061_v42 }
 0xbdc   : > { %12861 = vmatpush3.msk.msra.mxu0 %vm1394_vm6, %v16037_v1  ;;  %v14539_v1 = vld [vmem:[%s18377_s7 + $0x4] ss:$20 sps:$4 sm:$0xff]   ;;  %s18386_s7 = sld [smem:[#allocation42_spill]] }
 0xbdd   : > { %12838 = vmatmul.mubr.msk.f32.gmra.mrb[96].mxu0 %vm3633_vm5, %v16263_v0  ;;  %12880 = vmatmul.mubr.msk.f32.gmra.mrb[100].mxu1 %vm3633_vm5, %v16263_v0 }
 0xbde   : > { %12840 = vmatprep.mubr.msk.f32.mxu0 %vm3633_vm5, %v16289_v8  ;;  %12882 = vmatprep.mubr.msk.f32.mxu1 %vm3633_vm5, %v16289_v8 }
 0xbdf   : > { %12888 = vmatprep.subr.msk.mxu0 %vm1394_vm6, %v16076_v47 }
 0xbe1   : > { %12841 = vmatmul.mubr.msk.f32.gmra.mrb[98].mxu0 %vm3633_vm5, %v16291_v43  ;;  %12883 = vmatmul.mubr.msk.f32.gmra.mrb[102].mxu1 %vm3633_vm5, %v16291_v43 }
 0xbe2   : > { %12843 = vmatprep.mubr.msk.f32.mxu0 %vm3633_vm5, %v16297_v25  ;;  %12885 = vmatprep.mubr.msk.f32.mxu1 %vm3633_vm5, %v16297_v25  ;;  %s18387_s18 = smov %s18386_s7 }
 0xbe5   : > { %12844 = vmatmul.mubr.msk.f32.gmra.mrb[100].mxu0 %vm3633_vm5, %v16310_v14  ;;  %12886 = vmatmul.mubr.msk.f32.gmra.mrb[104].mxu1 %vm3633_vm5, %v16310_v14 }
 0xbe6   : > { %12862 = vmatprep.mubr.msk.f32.mxu0 %vm3633_vm5, %v16243_v6  ;;  %12904 = vmatprep.mubr.msk.f32.mxu1 %vm3633_vm5, %v16243_v6 }
 0xbe9   : > { %12863 = vmatmul.mubr.msk.f32.vlgmr.msra.gmra.mrb[102].mxu0 %vm3633_vm5, %v16248_v4  ;;  %12905 = vmatmul.mubr.msk.f32.vlgmr.msra.gmra.mrb[106].mxu1 %vm3633_vm5, %v16248_v4 }
 0xbea   : > { %11934 = vmatpush3.bf16.msra.mxu1 %v6053_v38  ;;  %12865 = vmatprep.mubr.msk.f32.mxu0 %vm3633_vm5, %v16257_v60 }
 0xbeb   : > { %12907 = vmatprep.mubr.msk.f32.mxu1 %vm3633_vm5, %v16257_v60  ;;  %11935 = vmatprep.subr.bf16.mxu1 %v6062_v45 }
 0xbec   : > { %12889 = vmatpush3.msk.msra.mxu0 %vm1394_vm6, %v16076_v47  ;;  %v14545_v47 = vld [vmem:[%s18378_s29 + $0xc] ss:$20 sps:$4 sm:$0xff]  }
 0xbed   : > { %12866 = vmatmul.mubr.msk.f32.gmra.mrb[104].mxu0 %vm3633_vm5, %v16263_v0  ;;  %12908 = vmatmul.mubr.msk.f32.gmra.mrb[108].mxu1 %vm3633_vm5, %v16263_v0 }
 0xbee   : > { %11936 = vmatpush3.bf16.msra.mxu1 %v6054_v37  ;;  %12868 = vmatprep.mubr.msk.f32.mxu0 %vm3633_vm5, %v16289_v8 }
 0xbef   : > { %12910 = vmatprep.mubr.msk.f32.mxu1 %vm3633_vm5, %v16289_v8  ;;  %12916 = vmatprep.subr.msk.mxu0 %vm1394_vm6, %v16088_v51 }
 0xbf1   : > { %12869 = vmatmul.mubr.msk.f32.gmra.mrb[106].mxu0 %vm3633_vm5, %v16291_v43  ;;  %12911 = vmatmul.mubr.msk.f32.gmra.mrb[110].mxu1 %vm3633_vm5, %v16291_v43 }
 0xbf2   : > { %12871 = vmatprep.mubr.msk.f32.mxu0 %vm3633_vm5, %v16297_v25  ;;  %12913 = vmatprep.mubr.msk.f32.mxu1 %vm3633_vm5, %v16297_v25 }
 0xbf5   : > { %12872 = vmatmul.mubr.msk.f32.gmra.mrb[108].mxu0 %vm3633_vm5, %v16310_v14  ;;  %12914 = vmatmul.mubr.msk.f32.gmra.mrb[112].mxu1 %vm3633_vm5, %v16310_v14 }
 0xbf6   : > { %12890 = vmatprep.mubr.msk.f32.mxu0 %vm3633_vm5, %v16243_v6  ;;  %6193 = vmatprep.mubr.bf16.mxu1 %v14539_v1 }
 0xbf9   : > { %12891 = vmatmul.mubr.msk.f32.vlgmr.msra.gmra.mrb[110].mxu0 %vm3633_vm5, %v16248_v4 }
 0xbfa   : > { %12893 = vmatprep.mubr.msk.f32.mxu0 %vm3633_vm5, %v16257_v60  ;;  %12917 = vmatpush3.msk.msra.mxu0 %vm1394_vm6, %v16088_v51 }
 0xbfd   : > { %12894 = vmatmul.mubr.msk.f32.gmra.mrb[112].mxu0 %vm3633_vm5, %v16263_v0 }
 0xbfe   : > { %12896 = vmatprep.mubr.msk.f32.mxu0 %vm3633_vm5, %v16289_v8 }
 0xc01   : > { %12897 = vmatmul.mubr.msk.f32.gmra.mrb[114].mxu0 %vm3633_vm5, %v16291_v43 }
 0xc02   : > { %12899 = vmatprep.mubr.msk.f32.mxu0 %vm3633_vm5, %v16297_v25 }
 0xc05   : > { %12900 = vmatmul.mubr.msk.f32.gmra.mrb[116].mxu0 %vm3633_vm5, %v16310_v14 }
 0xc06   : > { %12918 = vmatprep.mubr.msk.f32.mxu0 %vm3633_vm5, %v16243_v6 }
 0xc09   : > { %12919 = vmatmul.mubr.msk.f32.vlgmr.msra.gmra.mrb[118].mxu0 %vm3633_vm5, %v16248_v4 }
 0xc0a   : > { %12921 = vmatprep.mubr.msk.f32.mxu0 %vm3633_vm5, %v16257_v60 }
 0xc0d   : > { %12922 = vmatmul.mubr.msk.f32.gmra.mrb[120].mxu0 %vm3633_vm5, %v16263_v0 }
 0xc0e   : > { %12924 = vmatprep.mubr.msk.f32.mxu0 %vm3633_vm5, %v16289_v8 }
 0xc11   : > { %12925 = vmatmul.mubr.msk.f32.gmra.mrb[122].mxu0 %vm3633_vm5, %v16291_v43 }
 0xc12   : > { %12927 = vmatprep.mubr.msk.f32.mxu0 %vm3633_vm5, %v16297_v25 }
 0xc15   : > { %12928 = vmatmul.mubr.msk.f32.gmra.mrb[124].mxu0 %vm3633_vm5, %v16310_v14 }
 0xc16   : > { %6242 = vmatprep.mubr.bf16.mxu0 %v14545_v47 }
 0xca4   : > { %v12828_v51 = vpop.f32.mrb[90].mxu0  ;;  %v12856_v24 = vpop.f32.mrb[94].mxu1 }
 0xca5   : > { %v5299_v55 = vpop.f32.mrb[91].mxu0  ;;  %v5509_v54 = vpop.f32.mrb[95].mxu1 }
 0xca6   : > { %v6055_v38 = vpack.c.bf16 %v12828_v51, %v5299_v55  ;;  %v6063_v10 = vpack.c.bf16 %v12856_v24, %v5509_v54 }
 0xca8   : > { %v12831_v61 = vpop.f32.mrb[92].mxu0  ;;  %v12859_v40 = vpop.f32.mrb[96].mxu1  ;;  %11937 = vmatprep.subr.bf16.mxu1 %v6063_v10 }
 0xca9   : > { %v5309_v37 = vpop.f32.mrb[93].mxu0  ;;  %v5519_v7 = vpop.f32.mrb[97].mxu1  ;;  %11938 = vmatpush3.bf16.msra.mxu1 %v6055_v38 }
 0xcaa   : > { %v6056_v11 = vpack.c.bf16 %v12831_v61, %v5309_v37  ;;  %v6064_v63 = vpack.c.bf16 %v12859_v40, %v5519_v7 }
 0xcac   : > { %v12836_v46 = vpop.f32.mrb[94].mxu0  ;;  %v16426_v23 = vpop.f32.mrb[98].mxu1  ;;  %11939 = vmatprep.subr.bf16.mxu1 %v6064_v63 }
 0xcad   : > { %v5384_v26 = vpop.f32.mrb[95].mxu0  ;;  %v16428_v29 = vpop.f32.mrb[99].mxu1  ;;  %11940 = vmatpush3.bf16.msra.mxu1 %v6056_v11 }
 0xcae   : > { %v6057_v58 = vpack.c.bf16 %v12836_v46, %v5384_v26 }
 0xcb0   : > { %v12839_v42 = vpop.f32.mrb[96].mxu0  ;;  %v16432_v30 = vpop.f32.mrb[100].mxu1 }
 0xcb1   : > { %v5394_v44 = vpop.f32.mrb[97].mxu0  ;;  %v16434_v45 = vpop.f32.mrb[101].mxu1 }
 0xcb2   : > { %v6058_v1 = vpack.c.bf16 %v12839_v42, %v5394_v44 }
 0xcb4   : > { %v12842_v51 = vpop.f32.mrb[98].mxu0  ;;  %v16438_v24 = vpop.f32.mrb[102].mxu1 }
 0xcb5   : > { %v5404_v55 = vpop.f32.mrb[99].mxu0  ;;  %v16440_v54 = vpop.f32.mrb[103].mxu1 }
 0xcb6   : > { %v6059_v38 = vpack.c.bf16 %v12842_v51, %v5404_v55 }
 0xcb8   : > { %v12845_v61 = vpop.f32.mrb[100].mxu0  ;;  %v16444_v40 = vpop.f32.mrb[104].mxu1 }
 0xcb9   : > { %v5414_v37 = vpop.f32.mrb[101].mxu0  ;;  %v16446_v7 = vpop.f32.mrb[105].mxu1 }
 0xcba   : > { %v6060_v11 = vpack.c.bf16 %v12845_v61, %v5414_v37 }
 0xcbc   : > { %v12864_v46 = vpop.f32.mrb[102].mxu0  ;;  %v16450_v26 = vpop.f32.mrb[106].mxu1 }
 0xcbd   : > { %v5594_v42 = vpop.f32.mrb[103].mxu0  ;;  %v16452_v44 = vpop.f32.mrb[107].mxu1 }
 0xcbe   : > { %v6065_v51 = vpack.c.bf16 %v12864_v46, %v5594_v42  ;;  %v6081_v55 = vpack.c.bf16 %v16450_v26, %v16452_v44 }
 0xcc0   : > { %v12867_v59 = vpop.f32.mrb[104].mxu0  ;;  %v16456_v10 = vpop.f32.mrb[108].mxu1  ;;  %11941 = vmatprep.subr.bf16.mxu1 %v6065_v51 }
 0xcc1   : > { %v5604_v47 = vpop.f32.mrb[105].mxu0  ;;  %v16458_v56 = vpop.f32.mrb[109].mxu1  ;;  %11942 = vmatpush3.bf16.msra.mxu1 %v6057_v58 }
 0xcc2   : > { %v6066_v61 = vpack.c.bf16 %v12867_v59, %v5604_v47  ;;  %v6082_v37 = vpack.c.bf16 %v16456_v10, %v16458_v56 }
 0xcc4   : > { %v12870_v63 = vpop.f32.mrb[106].mxu0  ;;  %v16462_v28 = vpop.f32.mrb[110].mxu1  ;;  %11943 = vmatprep.subr.bf16.mxu1 %v6066_v61  ;;  %v14537_v61 = vld [vmem:[%s18378_s29] ss:$20 sps:$4 sm:$0xff]  }
 0xcc5   : > { %v5614_v46 = vpop.f32.mrb[107].mxu0  ;;  %v5929_v42 = vpop.f32.mrb[111].mxu1  ;;  %11944 = vmatpush3.bf16.msra.mxu1 %v6058_v1  ;;  %v14540_v1 = vld [vmem:[%s18378_s29 + $0x2c] ss:$20 sps:$4 sm:$0xff]  }
 0xcc6   : > { %v6067_v26 = vpack.c.bf16 %v12870_v63, %v5614_v46  ;;  %v6083_v44 = vpack.c.bf16 %v16462_v28, %v5929_v42  ;;  %v6069_v28 = vpack.c.bf16 %v16248_v4, %v16243_v6  ;;  %v18379_v4 = vpack.c.bf16 %v16291_v43, %v16289_v8 }
 0xcc8   : > { %v12873_v51 = vpop.f32.mrb[108].mxu0  ;;  %v16465_v57 = vpop.f32.mrb[112].mxu1  ;;  %11945 = vmatprep.subr.bf16.mxu1 %v6067_v26 }
 0xcc9   : > { %v5624_v59 = vpop.f32.mrb[109].mxu0  ;;  %v5939_v58 = vpop.f32.mrb[113].mxu1  ;;  %11946 = vmatpush3.bf16.msra.mxu1 %v6059_v38 }
 0xcca   : > { %v6068_v56 = vpack.c.bf16 %v12873_v51, %v5624_v59  ;;  %v6084_v47 = vpack.c.bf16 %v16465_v57, %v5939_v58  ;;  %v6070_v57 = vpack.c.bf16 %v16263_v0, %v16257_v60  ;;  %v14542_v51 = vld [vmem:[%s18378_s29 + $0x28] ss:$20 sps:$4 sm:$0xff]   ;;  %v14546_v59 = vld [vmem:[%s18378_s29 + $0x10] ss:$20 sps:$4 sm:$0xff]   ;;  %v6072_v60 = vpack.c.bf16 %v16310_v14, %v16297_v25 }
 0xccb   : > { %v18381_v14 = vpack.c.bf16 %v16432_v30, %v16434_v45  ;;  %v18383_v30 = vpack.c.bf16 %v16444_v40, %v16446_v7  ;;  %v14548_v45 = vld [vmem:[%s18378_s29 + $0x34] ss:$20 sps:$4 sm:$0xff]  }
 0xccc   : > { %v12892_v10 = vpop.f32.mrb[110].mxu0  ;;  %11947 = vmatprep.subr.bf16.mxu1 %v6068_v56 }
 0xccd   : > { %v5804_v49 = vpop.f32.mrb[111].mxu0  ;;  %11948 = vmatpush3.bf16.msra.mxu1 %v6060_v11 }
 0xcce   : > { %v6077_v63 = vpack.c.bf16 %v12892_v10, %v5804_v49 }
 0xcd0   : > { %v12895_v46 = vpop.f32.mrb[112].mxu0  ;;  %11961 = vmatprep.subr.bf16.mxu0 %v6077_v63  ;;  %6194 = vmatmul.mubr.bf16.vlgmr.msra.gmra.mrb[116].mxu1 %v14537_v61 }
 0xcd1   : > { %v5814_v42 = vpop.f32.mrb[113].mxu0  ;;  %11962 = vmatpush3.bf16.msra.mxu0 %v6069_v28  ;;  %6201 = vmatprep.mubr.bf16.mxu1 %v14540_v1  ;;  %v18380_v28 = vpack.c.bf16 %v16426_v23, %v16428_v29  ;;  %v18382_v29 = vpack.c.bf16 %v16438_v24, %v16440_v54  ;;  %v14550_v24 = vld [vmem:[%s18378_s29 + $0x30] ss:$20 sps:$4 sm:$0xff]  }
 0xcd2   : > { %v6078_v38 = vpack.c.bf16 %v12895_v46, %v5814_v42  ;;  %v14543_v42 = vld [vmem:[%s18378_s29 + $0x8] ss:$20 sps:$4 sm:$0xff]   ;;  %v6320_v54 = vld [vmem:[#allocation5] sm:$0xf] }
 0xcd4   : > { %v12898_v26 = vpop.f32.mrb[114].mxu0  ;;  %11963 = vmatprep.subr.bf16.mxu0 %v6078_v38  ;;  %v14547_v38 = vld [vmem:[%s18378_s29 + $0x38] ss:$20 sps:$4 sm:$0xff]  }
 0xcd5   : > { %v5824_v11 = vpop.f32.mrb[115].mxu0  ;;  %11964 = vmatpush3.bf16.msra.mxu0 %v6070_v57 }
 0xcd6   : > { %v6079_v49 = vpack.c.bf16 %v12898_v26, %v5824_v11 }
 0xcd8   : > { %v12901_v58 = vpop.f32.mrb[116].mxu0  ;;  %11965 = vmatprep.subr.bf16.mxu0 %v6079_v49  ;;  %6202 = vmatmul.mubr.bf16.gmra.mrb[120].mxu1 %v14542_v51 }
 0xcd9   : > { %v5834_v6 = vpop.f32.mrb[117].mxu0  ;;  %11966 = vmatpush3.bf16.msra.mxu0 %v18379_v4  ;;  %12938 = vmatprep.mubr.msk.bf16.mxu1 %vm1603_vm7, %v14546_v59 }
 0xcda   : > { %v6080_v56 = vpack.c.bf16 %v12901_v58, %v5834_v6  ;;  %v6101_v6 = vld [vmem:[%s18384_s2] sm:$0xff]  ;;  %s18388_s2 = sld [smem:[#allocation43_spill]] }
 0xcdc   : > { %v12920_v0 = vpop.f32.mrb[118].mxu0  ;;  %11967 = vmatprep.subr.bf16.mxu0 %v6080_v56 }
 0xcdd   : > { %v6014_v10 = vpop.f32.mrb[119].mxu0  ;;  %11968 = vmatpush3.bf16.msra.mxu0 %v6072_v60  ;;  %v6102_v60 = vld [vmem:[%s18385_s22 + $0x8] sm:$0xff] }
 0xcde   : > { %v6085_v61 = vpack.c.bf16 %v12920_v0, %v6014_v10  ;;  %11969 = vmatprep.subr.bf16.mxu0 %v6081_v55 }
 0xce0   : > { %v12923_v1 = vpop.f32.mrb[120].mxu0  ;;  %12930 = vmatprep.subr.bf16.mxu1 %v6085_v61  ;;  %s18389_s28 = smov %s18388_s2 }
 0xce1   : > { %v6024_v63 = vpop.f32.mrb[121].mxu0  ;;  %11970 = vmatpush3.bf16.msra.mxu0 %v18380_v28  ;;  %12931 = vmatpush3.bf16.msra.mxu1 %v6085_v61 }
 0xce2   : > { %v6086_v8 = vpack.c.bf16 %v12923_v1, %v6024_v63  ;;  %11971 = vmatprep.subr.bf16.mxu0 %v6082_v37 }
 0xce4   : > { %v12926_v43 = vpop.f32.mrb[122].mxu0  ;;  %12932 = vmatprep.subr.bf16.mxu1 %v6086_v8 }
 0xce5   : > { %v6034_v25 = vpop.f32.mrb[123].mxu0  ;;  %11972 = vmatpush3.bf16.msra.mxu0 %v18381_v14  ;;  %12933 = vmatpush3.bf16.msra.mxu1 %v6086_v8 }
 0xce6   : > { %v6087_v55 = vpack.c.bf16 %v12926_v43, %v6034_v25  ;;  %11973 = vmatprep.subr.bf16.mxu0 %v6083_v44 }
 0xce8   : > { %v12929_v46 = vpop.f32.mrb[124].mxu0  ;;  %12934 = vmatprep.subr.bf16.mxu1 %v6087_v55 }
 0xce9   : > { %v6044_v23 = vpop.f32.mrb[125].mxu0  ;;  %11974 = vmatpush3.bf16.msra.mxu0 %v18382_v29  ;;  %12935 = vmatpush3.bf16.msra.mxu1 %v6087_v55 }
 0xcea   : > { %v6088_v37 = vpack.c.bf16 %v12929_v46, %v6044_v23  ;;  %11975 = vmatprep.subr.bf16.mxu0 %v6084_v47  ;;  %v6103_v46 = vld [vmem:[%s18385_s22 + $0x10] sm:$0xff] }
 0xcec   : > { %12936 = vmatprep.subr.bf16.mxu1 %v6088_v37 }
 0xced   : > { %11976 = vmatpush3.bf16.msra.mxu0 %v18383_v30  ;;  %12937 = vmatpush3.bf16.msra.mxu1 %v6088_v37 }
 0xcee   : > { %13569 = vmatprep.subr.bf16.mxu0 %v15929_v62  ;;  %12942 = vmatprep.subr.msk.mxu1 %vm1394_vm6, %v6320_v54 }
 0xcf0   : > { %6243 = vmatmul.mubr.bf16.vlgmr.msra.gmra.mrb[128].mxu0 %v14543_v42  ;;  %12939 = vmatmul.mubr.msk.bf16.vlgmr.msra.gmra.mrb[124].mxu1 %vm1603_vm7, %v14547_v38 }
 0xcf1   : > { %6250 = vmatprep.mubr.bf16.mxu0 %v14548_v45  ;;  %13571 = vmatpush3.bf16.msra.mxu0 %v15929_v62  ;;  %v6104_v45 = vld [vmem:[%s18385_s22 + $0x18] sm:$0xff] }
 0xcf2   : > { %13577 = vmatprep.subr.bf16.mxu0 %v15961_v21  ;;  %12943 = vmatpush3.msk.msra.mxu1 %vm1394_vm6, %v6320_v54 }
 0xcf3   : > { %13573 = vmatprep.subr.bf16.mxu1 %v15932_v35 }
 0xcf8   : > { %6251 = vmatmul.mubr.bf16.gmra.mrb[132].mxu0 %v14550_v24 }
 0xda3   : > { %v11949_v40 = vpop.f32.mrb[116].mxu1 }
 0xda4   : > { %v11950_v7 = vpop.f32.mrb[117].mxu1 }
 0xda5   : > { %v11951_v44 = vadd.f32 %v11950_v7, %v11949_v40  ;;  %v11952_v47 = vpop.f32.mrb[118].mxu1 }
 0xda6   : > { %v11953_v57 = vpop.f32.mrb[119].mxu1 }
 0xda7   : > { %v11954_v26 = vadd.f32 %v11953_v57, %v11952_v47  ;;  %v6196_v61 = vadd.f32 %v11951_v44, %v6101_v6 }
 0xda9   : > { %v6199_v25 = vadd.f32 %v11954_v26, %v6102_v60 }
 0xdab   : > { %v11955_v62 = vpop.f32.mrb[120].mxu1 }
 0xdac   : > { %v11956_v51 = vpop.f32.mrb[121].mxu1 }
 0xdad   : > { %v11957_v11 = vadd.f32 %v11956_v51, %v11955_v62  ;;  %v11958_v59 = vpop.f32.mrb[122].mxu1 }
 0xdae   : > { %v11959_v49 = vpop.f32.mrb[123].mxu1 }
 0xdaf   : > { %v11960_v58 = vadd.f32 %v11959_v49, %v11958_v59  ;;  %v6204_v30 = vadd.f32 %v11957_v11, %v6103_v46 }
 0xdb1   : > { %v6207_v57 = vadd.f32 %v11960_v58, %v6104_v45 }
 0xdc3   : > { %v11977_v4 = vpop.f32.mrb[128].mxu0  ;;  %v12940_v56 = vpop.f32.mrb[124].mxu1 }
 0xdc4   : > { %v11978_v0 = vpop.f32.mrb[129].mxu0  ;;  %v6293_v10 = vpop.f32.mrb[125].mxu1 }
 0xdc5   : > { %v11979_v1 = vadd.f32 %v11978_v0, %v11977_v4  ;;  %v11980_v63 = vpop.f32.mrb[130].mxu0  ;;  %v12941_v28 = vpop.f32.mrb[126].mxu1 }
 0xdc6   : > { %v11981_v8 = vpop.f32.mrb[131].mxu0  ;;  %v6296_v43 = vpop.f32.mrb[127].mxu1 }
 0xdc7   : > { %v11982_v14 = vadd.f32 %v11981_v8, %v11980_v63  ;;  %v6245_v55 = vadd.f32 %v11979_v1, %v6196_v61 }
 0xdc9   : > { %v6294_v23 = vadd.f32 %v6293_v10, %v6245_v55  ;;  %v6248_v29 = vadd.f32 %v11982_v14, %v6199_v25 }
 0xdcb   : > { %vm6308_vm6 = vcmp.ge.f32.partialorder %v6294_v23, 0.0  ;;  %v6312_v37 = vmul.f32 0.2, %v6294_v23  ;;  %v6297_v42 = vadd.f32 %v6296_v43, %v6248_v29  ;;  %v11983_v38 = vpop.f32.mrb[132].mxu0 }
 0xdcc   : > { %v11984_v24 = vpop.f32.mrb[133].mxu0 }
 0xdcd   : > { %vm6309_vm0 = vcmp.ge.f32.partialorder %v6297_v42, 0.0  ;;  %v6313_v54 = vmul.f32 0.2, %v6297_v42  ;;  %v11985_v40 = vadd.f32 %v11984_v24, %v11983_v38  ;;  %v11986_v7 = vpop.f32.mrb[134].mxu0  ;;  %v6316_v44 = vsel %vm6308_vm6, %v6294_v23, %v6312_v37 }
 0xdce   : > { %v11987_v47 = vpop.f32.mrb[135].mxu0  ;;  %12944 = vmatprep.mubr.msk.f32.mxu1 %vm3633_vm5, %v6316_v44 }
 0xdcf   : > { %v6317_v26 = vsel %vm6309_vm0, %v6297_v42, %v6313_v54  ;;  %v6253_v62 = vadd.f32 %v11985_v40, %v6204_v30  ;;  %v11988_v51 = vadd.f32 %v11987_v47, %v11986_v7 }
 0xdd0   : > { %12945 = vmatmul.mubr.msk.f32.vlgmr.msra.gmra.mrb[114].mxu1 %vm3633_vm5, %v6317_v26 }
 0xdd1   : > { %v6302_v59 = vadd.f32 %v12940_v56, %v6253_v62  ;;  %v6256_v49 = vadd.f32 %v11988_v51, %v6207_v57  ;;  %13575 = vmatpush3.bf16.msra.mxu1 %v15932_v35 }
 0xdd2   : > { %13581 = vmatprep.subr.bf16.mxu1 %v15964_v16 }
 0xdd3   : > { %v6305_v11 = vadd.f32 %v12941_v28, %v6256_v49  ;;  %vm6310_vm12 = vcmp.ge.f32.partialorder %v6302_v59, 0.0  ;;  %v6314_v6 = vmul.f32 0.2, %v6302_v59 }
 0xdd5   : > { %v6318_v4 = vsel %vm6310_vm12, %v6302_v59, %v6314_v6  ;;  %vm6311_vm10 = vcmp.ge.f32.partialorder %v6305_v11, 0.0  ;;  %v6315_v60 = vmul.f32 0.2, %v6305_v11 }
 0xdd6   : > { %12947 = vmatprep.mubr.msk.f32.mxu1 %vm3633_vm5, %v6318_v4 }
 0xdd7   : > { %v6319_v58 = vsel %vm6311_vm10, %v6305_v11, %v6315_v60 }
 0xdd8   : > { %12948 = vmatmul.mubr.msk.f32.gmra.mrb[128].mxu1 %vm3633_vm5, %v6319_v58 }
 0xea3   : > { %v16515_v0 = vpop.f32.mrb[114].mxu1 }
 0xea4   : > { %v16517_v10 = vpop.f32.mrb[115].mxu1 }
 0xea5   : > { %12954 = vmatprep.mubr.msk.f32.mxu0 %vm18229_vm4, %v16517_v10  ;;  %12970 = vmatprep.mubr.msk.f32.mxu1 %vm18229_vm4, %v16517_v10  ;;  %v7289_v35 = vpack.c.bf16 %v16515_v0, %v16517_v10 }
 0xea6   : > { %12955 = vmatmul.mubr.msk.f32.vlgmr.msra.gmra.mrb[126].mxu0 %vm18229_vm4, %v16515_v0  ;;  %12971 = vmatmul.mubr.msk.f32.vlgmr.msra.gmra.mrb[130].mxu1 %vm18229_vm4, %v16515_v0 }
 0xea7   : > { %13579 = vmatpush3.bf16.msra.mxu0 %v15961_v21  ;;  %13583 = vmatpush3.bf16.msra.mxu1 %v15964_v16  ;;  %v14553_v21 = vld [vmem:[%s18386_s7 + $0x4] ss:$20 sps:$4 sm:$0xff]   ;;  %v14556_v16 = vld [vmem:[%s18387_s18 + $0xc] ss:$20 sps:$4 sm:$0xff]   ;;  %s18410_s7 = sld [smem:[#allocation44_spill]] }
 0xea8   : > { %13585 = vmatprep.subr.bf16.mxu0 %v15972_v50  ;;  %13589 = vmatprep.subr.bf16.mxu1 %v15974_v52 }
 0xeab   : > { %v16533_v56 = vpop.f32.mrb[128].mxu1 }
 0xeac   : > { %v16535_v61 = vpop.f32.mrb[129].mxu1 }
 0xead   : > { %12957 = vmatprep.mubr.msk.f32.mxu0 %vm18229_vm4, %v16535_v61  ;;  %12973 = vmatprep.mubr.msk.f32.mxu1 %vm18229_vm4, %v16535_v61  ;;  %v7290_v1 = vpack.c.bf16 %v16533_v56, %v16535_v61  ;;  %s18411_s3 = smov %s18410_s7 }
 0xeae   : > { %12958 = vmatmul.mubr.msk.f32.gmra.mrb[136].mxu0 %vm18229_vm4, %v16533_v56  ;;  %12974 = vmatmul.mubr.msk.f32.gmra.mrb[132].mxu1 %vm18229_vm4, %v16533_v56 }
 0xeaf   : > { %12960 = vmatprep.mubr.msk.f32.mxu0 %vm18229_vm4, %v16046_v12  ;;  %12976 = vmatprep.mubr.msk.f32.mxu1 %vm18229_vm4, %v16046_v12 }
 0xeb2   : > { %12961 = vmatmul.mubr.msk.f32.gmra.mrb[138].mxu0 %vm18229_vm4, %v16051_v20  ;;  %12977 = vmatmul.mubr.msk.f32.gmra.mrb[134].mxu1 %vm18229_vm4, %v16051_v20 }
 0xeb3   : > { %12963 = vmatprep.mubr.msk.f32.mxu0 %vm18229_vm4, %v16055_v9  ;;  %12979 = vmatprep.mubr.msk.f32.mxu1 %vm18229_vm4, %v16055_v9 }
 0xeb6   : > { %12964 = vmatmul.mubr.msk.f32.gmra.mrb[140].mxu0 %vm18229_vm4, %v16059_v27  ;;  %12980 = vmatmul.mubr.msk.f32.gmra.mrb[136].mxu1 %vm18229_vm4, %v16059_v27 }
 0xeb7   : > { %12986 = vmatprep.mubr.msk.f32.mxu0 %vm18229_vm4, %v16517_v10  ;;  %13002 = vmatprep.mubr.msk.f32.mxu1 %vm18229_vm4, %v16517_v10 }
 0xeba   : > { %12987 = vmatmul.mubr.msk.f32.vlgmr.msra.gmra.mrb[142].mxu0 %vm18229_vm4, %v16515_v0  ;;  %13003 = vmatmul.mubr.msk.f32.vlgmr.msra.gmra.mrb[138].mxu1 %vm18229_vm4, %v16515_v0 }
 0xebb   : > { %12989 = vmatprep.mubr.msk.f32.mxu0 %vm18229_vm4, %v16535_v61  ;;  %13005 = vmatprep.mubr.msk.f32.mxu1 %vm18229_vm4, %v16535_v61 }
 0xebc   : > { %13587 = vmatpush3.bf16.msra.mxu0 %v15972_v50  ;;  %13591 = vmatpush3.bf16.msra.mxu1 %v15974_v52 }
 0xebd   : > { %13593 = vmatprep.subr.bf16.mxu0 %v15994_v15  ;;  %13597 = vmatprep.subr.bf16.mxu1 %v15996_v36 }
 0xebe   : > { %12990 = vmatmul.mubr.msk.f32.gmra.mrb[144].mxu0 %vm18229_vm4, %v16533_v56  ;;  %13006 = vmatmul.mubr.msk.f32.gmra.mrb[140].mxu1 %vm18229_vm4, %v16533_v56 }
 0xebf   : > { %12992 = vmatprep.mubr.msk.f32.mxu0 %vm18229_vm4, %v16046_v12  ;;  %13008 = vmatprep.mubr.msk.f32.mxu1 %vm18229_vm4, %v16046_v12 }
 0xec2   : > { %12993 = vmatmul.mubr.msk.f32.gmra.mrb[146].mxu0 %vm18229_vm4, %v16051_v20  ;;  %13009 = vmatmul.mubr.msk.f32.gmra.mrb[142].mxu1 %vm18229_vm4, %v16051_v20 }
 0xec3   : > { %12995 = vmatprep.mubr.msk.f32.mxu0 %vm18229_vm4, %v16055_v9  ;;  %13011 = vmatprep.mubr.msk.f32.mxu1 %vm18229_vm4, %v16055_v9 }
 0xec6   : > { %12996 = vmatmul.mubr.msk.f32.gmra.mrb[148].mxu0 %vm18229_vm4, %v16059_v27  ;;  %13012 = vmatmul.mubr.msk.f32.gmra.mrb[144].mxu1 %vm18229_vm4, %v16059_v27 }
 0xec7   : > { %13018 = vmatprep.mubr.msk.f32.mxu0 %vm18229_vm4, %v16517_v10  ;;  %13034 = vmatprep.mubr.msk.f32.mxu1 %vm18229_vm4, %v16517_v10 }
 0xeca   : > { %13019 = vmatmul.mubr.msk.f32.vlgmr.msra.gmra.mrb[150].mxu0 %vm18229_vm4, %v16515_v0  ;;  %13035 = vmatmul.mubr.msk.f32.vlgmr.msra.gmra.mrb[146].mxu1 %vm18229_vm4, %v16515_v0 }
 0xecb   : > { %13021 = vmatprep.mubr.msk.f32.mxu0 %vm18229_vm4, %v16535_v61  ;;  %13037 = vmatprep.mubr.msk.f32.mxu1 %vm18229_vm4, %v16535_v61 }
 0xecc   : > { %13595 = vmatpush3.bf16.msra.mxu0 %v15994_v15  ;;  %13599 = vmatpush3.bf16.msra.mxu1 %v15996_v36 }
 0xece   : > { %13022 = vmatmul.mubr.msk.f32.gmra.mrb[152].mxu0 %vm18229_vm4, %v16533_v56  ;;  %13038 = vmatmul.mubr.msk.f32.gmra.mrb[148].mxu1 %vm18229_vm4, %v16533_v56 }
 0xecf   : > { %13024 = vmatprep.mubr.msk.f32.mxu0 %vm18229_vm4, %v16046_v12  ;;  %13040 = vmatprep.mubr.msk.f32.mxu1 %vm18229_vm4, %v16046_v12 }
 0xed2   : > { %13025 = vmatmul.mubr.msk.f32.gmra.mrb[154].mxu0 %vm18229_vm4, %v16051_v20  ;;  %13041 = vmatmul.mubr.msk.f32.gmra.mrb[150].mxu1 %vm18229_vm4, %v16051_v20 }
 0xed3   : > { %13027 = vmatprep.mubr.msk.f32.mxu0 %vm18229_vm4, %v16055_v9  ;;  %13043 = vmatprep.mubr.msk.f32.mxu1 %vm18229_vm4, %v16055_v9 }
 0xed6   : > { %13028 = vmatmul.mubr.msk.f32.gmra.mrb[156].mxu0 %vm18229_vm4, %v16059_v27  ;;  %13044 = vmatmul.mubr.msk.f32.gmra.mrb[152].mxu1 %vm18229_vm4, %v16059_v27 }
 0xed7   : > { %13050 = vmatprep.mubr.msk.f32.mxu0 %vm18229_vm4, %v16517_v10  ;;  %13066 = vmatprep.mubr.msk.f32.mxu1 %vm18229_vm4, %v16517_v10 }
 0xeda   : > { %13051 = vmatmul.mubr.msk.f32.vlgmr.msra.gmra.mrb[158].mxu0 %vm18229_vm4, %v16515_v0  ;;  %13067 = vmatmul.mubr.msk.f32.vlgmr.msra.gmra.mrb[154].mxu1 %vm18229_vm4, %v16515_v0 }
 0xedb   : > { %13053 = vmatprep.mubr.msk.f32.mxu0 %vm18229_vm4, %v16535_v61  ;;  %13069 = vmatprep.mubr.msk.f32.mxu1 %vm18229_vm4, %v16535_v61 }
 0xede   : > { %13054 = vmatmul.mubr.msk.f32.gmra.mrb[160].mxu0 %vm18229_vm4, %v16533_v56  ;;  %13070 = vmatmul.mubr.msk.f32.gmra.mrb[156].mxu1 %vm18229_vm4, %v16533_v56 }
 0xedf   : > { %13056 = vmatprep.mubr.msk.f32.mxu0 %vm18229_vm4, %v16046_v12  ;;  %13072 = vmatprep.mubr.msk.f32.mxu1 %vm18229_vm4, %v16046_v12 }
 0xee2   : > { %13057 = vmatmul.mubr.msk.f32.gmra.mrb[162].mxu0 %vm18229_vm4, %v16051_v20  ;;  %13073 = vmatmul.mubr.msk.f32.gmra.mrb[158].mxu1 %vm18229_vm4, %v16051_v20 }
 0xee3   : > { %13059 = vmatprep.mubr.msk.f32.mxu0 %vm18229_vm4, %v16055_v9  ;;  %13075 = vmatprep.mubr.msk.f32.mxu1 %vm18229_vm4, %v16055_v9 }
 0xee6   : > { %13060 = vmatmul.mubr.msk.f32.gmra.mrb[164].mxu0 %vm18229_vm4, %v16059_v27  ;;  %13076 = vmatmul.mubr.msk.f32.gmra.mrb[160].mxu1 %vm18229_vm4, %v16059_v27 }
 0xee7   : > { %7413 = vmatprep.mubr.bf16.mxu0 %v14553_v21  ;;  %7462 = vmatprep.mubr.bf16.mxu1 %v14556_v16 }
 0xf79   : > { %v12956_v50 = vpop.f32.mrb[126].mxu0  ;;  %v16667_v52 = vpop.f32.mrb[130].mxu1 }
 0xf7a   : > { %v6499_v15 = vpop.f32.mrb[127].mxu0  ;;  %v16669_v36 = vpop.f32.mrb[131].mxu1 }
 0xf7b   : > { %v7273_v63 = vpack.c.bf16 %v12956_v50, %v6499_v15  ;;  %v7277_v28 = vpack.c.bf16 %v16667_v52, %v16669_v36 }
 0xf81   : > { %v12959_v8 = vpop.f32.mrb[136].mxu0  ;;  %v16673_v43 = vpop.f32.mrb[132].mxu1 }
 0xf82   : > { %v6509_v25 = vpop.f32.mrb[137].mxu0  ;;  %v16675_v14 = vpop.f32.mrb[133].mxu1 }
 0xf83   : > { %v7274_v55 = vpack.c.bf16 %v12959_v8, %v6509_v25  ;;  %v7278_v46 = vpack.c.bf16 %v16673_v43, %v16675_v14 }
 0xf85   : > { %v12962_v23 = vpop.f32.mrb[138].mxu0  ;;  %v16679_v29 = vpop.f32.mrb[134].mxu1 }
 0xf86   : > { %v6519_v37 = vpop.f32.mrb[139].mxu0  ;;  %v16681_v42 = vpop.f32.mrb[135].mxu1 }
 0xf87   : > { %v7275_v38 = vpack.c.bf16 %v12962_v23, %v6519_v37  ;;  %v7279_v30 = vpack.c.bf16 %v16679_v29, %v16681_v42  ;;  %v14557_v29 = vld [vmem:[%s18387_s18 + $0x2c] ss:$20 sps:$4 sm:$0xff]  }
 0xf89   : > { %v12965_v45 = vpop.f32.mrb[140].mxu0  ;;  %v16685_v24 = vpop.f32.mrb[136].mxu1 }
 0xf8a   : > { %v6529_v54 = vpop.f32.mrb[141].mxu0  ;;  %v16687_v40 = vpop.f32.mrb[137].mxu1 }
 0xf8b   : > { %v7276_v7 = vpack.c.bf16 %v12965_v45, %v6529_v54  ;;  %v7280_v44 = vpack.c.bf16 %v16685_v24, %v16687_v40 }
 0xf8d   : > { %v12988_v47 = vpop.f32.mrb[142].mxu0  ;;  %v13004_v57 = vpop.f32.mrb[138].mxu1 }
 0xf8e   : > { %v6709_v26 = vpop.f32.mrb[143].mxu0  ;;  %v6814_v62 = vpop.f32.mrb[139].mxu1 }
 0xf8f   : > { %v7281_v51 = vpack.c.bf16 %v12988_v47, %v6709_v26  ;;  %v7285_v59 = vpack.c.bf16 %v13004_v57, %v6814_v62 }
 0xf91   : > { %v12991_v49 = vpop.f32.mrb[144].mxu0  ;;  %v13007_v11 = vpop.f32.mrb[140].mxu1  ;;  %12080 = vmatprep.subr.bf16.mxu0 %v7281_v51 }
 0xf92   : > { %v6719_v6 = vpop.f32.mrb[145].mxu0  ;;  %v6824_v4 = vpop.f32.mrb[141].mxu1  ;;  %12081 = vmatpush3.bf16.msra.mxu0 %v7273_v63 }
 0xf93   : > { %v7282_v60 = vpack.c.bf16 %v12991_v49, %v6719_v6  ;;  %v7286_v58 = vpack.c.bf16 %v13007_v11, %v6824_v4 }
 0xf95   : > { %v12994_v21 = vpop.f32.mrb[146].mxu0  ;;  %v13010_v16 = vpop.f32.mrb[142].mxu1  ;;  %12082 = vmatprep.subr.bf16.mxu0 %v7282_v60 }
 0xf96   : > { %v6729_v50 = vpop.f32.mrb[147].mxu0  ;;  %v6834_v52 = vpop.f32.mrb[143].mxu1  ;;  %12083 = vmatpush3.bf16.msra.mxu0 %v7274_v55 }
 0xf97   : > { %v7283_v15 = vpack.c.bf16 %v12994_v21, %v6729_v50  ;;  %v7287_v36 = vpack.c.bf16 %v13010_v16, %v6834_v52 }
 0xf99   : > { %v12997_v8 = vpop.f32.mrb[148].mxu0  ;;  %v13013_v25 = vpop.f32.mrb[144].mxu1  ;;  %12084 = vmatprep.subr.bf16.mxu0 %v7283_v15 }
 0xf9a   : > { %v6739_v23 = vpop.f32.mrb[149].mxu0  ;;  %v6844_v37 = vpop.f32.mrb[145].mxu1  ;;  %12085 = vmatpush3.bf16.msra.mxu0 %v7275_v38 }
 0xf9b   : > { %v7284_v45 = vpack.c.bf16 %v12997_v8, %v6739_v23  ;;  %v7288_v54 = vpack.c.bf16 %v13013_v25, %v6844_v37 }
 0xf9d   : > { %v13020_v47 = vpop.f32.mrb[150].mxu0  ;;  %v13036_v63 = vpop.f32.mrb[146].mxu1  ;;  %12086 = vmatprep.subr.bf16.mxu0 %v7284_v45 }
 0xf9e   : > { %v6919_v57 = vpop.f32.mrb[151].mxu0  ;;  %v7024_v26 = vpop.f32.mrb[147].mxu1  ;;  %12087 = vmatpush3.bf16.msra.mxu0 %v7276_v7 }
 0xf9f   : > { %v7293_v62 = vpack.c.bf16 %v13020_v47, %v6919_v57  ;;  %v7297_v51 = vpack.c.bf16 %v13036_v63, %v7024_v26  ;;  %12088 = vmatprep.subr.bf16.mxu0 %v7285_v59 }
 0xfa1   : > { %v13023_v55 = vpop.f32.mrb[152].mxu0  ;;  %v13039_v49 = vpop.f32.mrb[148].mxu1  ;;  %12108 = vmatprep.subr.bf16.mxu1 %v7297_v51  ;;  %v14562_v51 = vld [vmem:[%s18387_s18 + $0x30] ss:$20 sps:$4 sm:$0xff]  }
 0xfa2   : > { %v6929_v11 = vpop.f32.mrb[153].mxu0  ;;  %v7034_v6 = vpop.f32.mrb[149].mxu1  ;;  %12089 = vmatpush3.bf16.msra.mxu0 %v7277_v28  ;;  %12109 = vmatpush3.bf16.msra.mxu1 %v7289_v35  ;;  %v7291_v35 = vpack.c.bf16 %v16051_v20, %v16046_v12  ;;  %v14551_v12 = vld [vmem:[%s18387_s18] ss:$20 sps:$4 sm:$0xff]  }
 0xfa3   : > { %v7294_v38 = vpack.c.bf16 %v13023_v55, %v6929_v11  ;;  %v7298_v4 = vpack.c.bf16 %v13039_v49, %v7034_v6  ;;  %12090 = vmatprep.subr.bf16.mxu0 %v7286_v58  ;;  %v14563_v55 = vld [vmem:[%s18387_s18 + $0x10] ss:$20 sps:$4 sm:$0xff]   ;;  %v7541_v49 = vld [vmem:[#allocation7 + $0x8] sm:$0xff] }
 0xfa5   : > { %v16694_v60 = vpop.f32.mrb[154].mxu0  ;;  %v13042_v21 = vpop.f32.mrb[150].mxu1  ;;  %12110 = vmatprep.subr.bf16.mxu1 %v7298_v4 }
 0xfa6   : > { %v6939_v7 = vpop.f32.mrb[155].mxu0  ;;  %v7044_v16 = vpop.f32.mrb[151].mxu1  ;;  %12091 = vmatpush3.bf16.msra.mxu0 %v7278_v46  ;;  %12111 = vmatpush3.bf16.msra.mxu1 %v7290_v1  ;;  %v7292_v1 = vpack.c.bf16 %v16059_v27, %v16055_v9 }
 0xfa7   : > { %v7295_v0 = vpack.c.bf16 %v16694_v60, %v6939_v7  ;;  %v7299_v10 = vpack.c.bf16 %v13042_v21, %v7044_v16  ;;  %12092 = vmatprep.subr.bf16.mxu0 %v7287_v36 }
 0xfa9   : > { %v13029_v28 = vpop.f32.mrb[156].mxu0  ;;  %v13045_v59 = vpop.f32.mrb[152].mxu1  ;;  %12112 = vmatprep.subr.bf16.mxu1 %v7299_v10 }
 0xfaa   : > { %v6949_v58 = vpop.f32.mrb[157].mxu0  ;;  %v7054_v50 = vpop.f32.mrb[153].mxu1  ;;  %12093 = vmatpush3.bf16.msra.mxu0 %v7279_v30  ;;  %12113 = vmatpush3.bf16.msra.mxu1 %v7291_v35 }
 0xfab   : > { %v7296_v56 = vpack.c.bf16 %v13029_v28, %v6949_v58  ;;  %v7300_v61 = vpack.c.bf16 %v13045_v59, %v7054_v50  ;;  %12094 = vmatprep.subr.bf16.mxu0 %v7288_v54  ;;  %v7321_v58 = vld [vmem:[%s18388_s2] sm:$0xff]  ;;  %v7322_v50 = vld [vmem:[%s18389_s28 + $0x8] sm:$0xff]  ;;  %s18412_s2 = sld [smem:[#allocation28_spill]] }
 0xfad   : > { %v13052_v43 = vpop.f32.mrb[158].mxu0  ;;  %v13068_v14 = vpop.f32.mrb[154].mxu1  ;;  %12114 = vmatprep.subr.bf16.mxu1 %v7300_v61 }
 0xfae   : > { %v7129_v20 = vpop.f32.mrb[159].mxu0  ;;  %v7234_v46 = vpop.f32.mrb[155].mxu1  ;;  %12095 = vmatpush3.bf16.msra.mxu0 %v7280_v44  ;;  %12115 = vmatpush3.bf16.msra.mxu1 %v7292_v1  ;;  %v14559_v44 = vld [vmem:[%s18387_s18 + $0x28] ss:$20 sps:$4 sm:$0xff]  }
 0xfaf   : > { %v7301_v42 = vpack.c.bf16 %v13052_v43, %v7129_v20  ;;  %v7305_v30 = vpack.c.bf16 %v13068_v14, %v7234_v46  ;;  %13605 = vmatprep.subr.bf16.mxu0 %v15583_v13 }
 0xfb1   : > { %v13055_v52 = vpop.f32.mrb[160].mxu0  ;;  %v13071_v15 = vpop.f32.mrb[156].mxu1  ;;  %12116 = vmatprep.subr.bf16.mxu1 %v7301_v42  ;;  %7414 = vmatmul.mubr.bf16.vlgmr.msra.gmra.mrb[168].mxu0 %v14551_v12  ;;  %v7323_v42 = vld [vmem:[%s18389_s28 + $0x10] sm:$0xff]  ;;  %s18413_s5 = smov %s18412_s2 }
 0xfb2   : > { %v7139_v9 = vpop.f32.mrb[161].mxu0  ;;  %v7244_v27 = vpop.f32.mrb[157].mxu1  ;;  %12117 = vmatpush3.bf16.msra.mxu1 %v7293_v62  ;;  %7421 = vmatprep.mubr.bf16.mxu0 %v14557_v29  ;;  %v14560_v62 = vld [vmem:[%s18387_s18 + $0x34] ss:$20 sps:$4 sm:$0xff]  }
 0xfb3   : > { %v7302_v36 = vpack.c.bf16 %v13055_v52, %v7139_v9  ;;  %v7306_v8 = vpack.c.bf16 %v13071_v15, %v7244_v27  ;;  %13607 = vmatpush3.bf16.msra.mxu0 %v15583_v13  ;;  %v7324_v52 = vld [vmem:[%s18389_s28 + $0x18] sm:$0xff] }
 0xfb4   : > { %13609 = vmatprep.subr.bf16.mxu0 %v15590_v18 }
 0xfb5   : > { %v13058_v24 = vpop.f32.mrb[162].mxu0  ;;  %v13074_v40 = vpop.f32.mrb[158].mxu1  ;;  %12118 = vmatprep.subr.bf16.mxu1 %v7302_v36 }
 0xfb6   : > { %v7149_v25 = vpop.f32.mrb[163].mxu0  ;;  %v7254_v23 = vpop.f32.mrb[159].mxu1  ;;  %12119 = vmatpush3.bf16.msra.mxu1 %v7294_v38 }
 0xfb7   : > { %v7303_v37 = vpack.c.bf16 %v13058_v24, %v7149_v25  ;;  %v7307_v45 = vpack.c.bf16 %v13074_v40, %v7254_v23  ;;  %13611 = vmatpush3.bf16.msra.mxu0 %v15590_v18  ;;  %v14554_v18 = vld [vmem:[%s18387_s18 + $0x8] ss:$20 sps:$4 sm:$0xff]  }
 0xfb8   : > { %13613 = vmatprep.subr.bf16.mxu0 %v15598_v22 }
 0xfb9   : > { %v13061_v54 = vpop.f32.mrb[164].mxu0  ;;  %v13077_v47 = vpop.f32.mrb[160].mxu1  ;;  %12120 = vmatprep.subr.bf16.mxu1 %v7303_v37  ;;  %7422 = vmatmul.mubr.bf16.gmra.mrb[172].mxu0 %v14559_v44 }
 0xfba   : > { %v7159_v13 = vpop.f32.mrb[165].mxu0  ;;  %v7264_v63 = vpop.f32.mrb[161].mxu1  ;;  %12121 = vmatpush3.bf16.msra.mxu1 %v7295_v0 }
 0xfbb   : > { %v7304_v57 = vpack.c.bf16 %v13061_v54, %v7159_v13  ;;  %v7308_v26 = vpack.c.bf16 %v13077_v47, %v7264_v63  ;;  %13615 = vmatpush3.bf16.msra.mxu0 %v15598_v22  ;;  %v14564_v22 = vld [vmem:[%s18387_s18 + $0x38] ss:$20 sps:$4 sm:$0xff]  }
 0xfbc   : > { %13617 = vmatprep.subr.bf16.mxu0 %v15675_v32 }
 0xfbd   : > { %12122 = vmatprep.subr.bf16.mxu1 %v7304_v57 }
 0xfbe   : > { %12123 = vmatpush3.bf16.msra.mxu1 %v7296_v56 }
 0xfbf   : > { %13078 = vmatprep.subr.bf16.mxu1 %v7305_v30  ;;  %13619 = vmatpush3.bf16.msra.mxu0 %v15675_v32  ;;  %v7540_v32 = vld [vmem:[#allocation7] sm:$0xff] }
 0xfc0   : > { %13637 = vmatprep.subr.bf16.mxu0 %v15687_v39  ;;  %v13600_v11 = vpack.c.bf16 %v7541_v49, %v7540_v32 }
 0xfc1   : > { %7463 = vmatmul.mubr.bf16.vlgmr.msra.gmra.mrb[164].mxu1 %v14554_v18 }
 0xfc2   : > { %13079 = vmatpush3.bf16.msra.mxu1 %v7305_v30  ;;  %7470 = vmatprep.mubr.bf16.mxu1 %v14560_v62 }
 0xfc3   : > { %13080 = vmatprep.subr.bf16.mxu1 %v7306_v8 }
 0xfc6   : > { %13081 = vmatpush3.bf16.msra.mxu1 %v7306_v8 }
 0xfc7   : > { %13082 = vmatprep.subr.bf16.mxu1 %v7307_v45 }
 0xfc9   : > { %7471 = vmatmul.mubr.bf16.gmra.mrb[168].mxu1 %v14562_v51 }
 0xfca   : > { %13083 = vmatpush3.bf16.msra.mxu1 %v7307_v45  ;;  %13086 = vmatprep.mubr.msk.bf16.mxu1 %vm1603_vm7, %v14563_v55 }
 0xfcb   : > { %13084 = vmatprep.subr.bf16.mxu1 %v7308_v26 }
 0xfce   : > { %13085 = vmatpush3.bf16.msra.mxu1 %v7308_v26 }
 0xfcf   : > { %13601 = vmatprep.subr.bf16.mxu1 %v13600_v11 }
 0xfd1   : > { %13087 = vmatmul.mubr.msk.bf16.vlgmr.msra.gmra.mrb[172].mxu1 %vm1603_vm7, %v14564_v22 }
 0xfd2   : > { %13603 = vmatpush3.bf16.msra.mxu1 %v13600_v11 }
 0xfd3   : > { %13621 = vmatprep.subr.bf16.mxu1 %v15588_v17 }
0x1084   : > { %v12096_v6 = vpop.f32.mrb[168].mxu0 }
0x1085   : > { %v12097_v38 = vpop.f32.mrb[169].mxu0 }
0x1086   : > { %v12098_v4 = vadd.f32 %v12097_v38, %v12096_v6  ;;  %v12099_v60 = vpop.f32.mrb[170].mxu0 }
0x1087   : > { %v12100_v21 = vpop.f32.mrb[171].mxu0 }
0x1088   : > { %v12101_v7 = vadd.f32 %v12100_v21, %v12099_v60  ;;  %v7416_v56 = vadd.f32 %v12098_v4, %v7321_v58  ;;  %v18396_v4 = vld [vmem:[#allocation83_spill] sm:$0xff]  ;;  %v18397_v60 = vld [vmem:[#allocation84_spill] sm:$0xff]  ;;  %v18398_v21 = vld [vmem:[#allocation85_spill] sm:$0xff] }
0x1089   : > { %v18406_v58 = vld [vmem:[#allocation93_spill] sm:$0xff] }
0x108a   : > { %v7419_v43 = vadd.f32 %v12101_v7, %v7322_v50  ;;  %v18399_v7 = vld [vmem:[#allocation86_spill] sm:$0xff] }
0x108b   : > { %v18407_v50 = vld [vmem:[#allocation94_spill] sm:$0xff] }
0x108c   : > { %v12102_v16 = vpop.f32.mrb[172].mxu0 }
0x108d   : > { %v12103_v0 = vpop.f32.mrb[173].mxu0 }
0x108e   : > { %v12104_v10 = vadd.f32 %v12103_v0, %v12102_v16  ;;  %v12105_v35 = vpop.f32.mrb[174].mxu0  ;;  %v18400_v16 = vld [vmem:[#allocation87_spill] sm:$0xff]  ;;  %v18401_v0 = vld [vmem:[#allocation88_spill] sm:$0xff] }
0x108f   : > { %v12106_v28 = vpop.f32.mrb[175].mxu0 }
0x1090   : > { %v12107_v59 = vadd.f32 %v12106_v28, %v12105_v35  ;;  %v7424_v15 = vadd.f32 %v12104_v10, %v7323_v42  ;;  %v18402_v10 = vld [vmem:[#allocation89_spill] sm:$0xff]  ;;  %v18403_v35 = vld [vmem:[#allocation90_spill] sm:$0xff]  ;;  %v18404_v28 = vld [vmem:[#allocation91_spill] sm:$0xff] }
0x1092   : > { %v7427_v36 = vadd.f32 %v12107_v59, %v7324_v52  ;;  %v18405_v59 = vld [vmem:[#allocation92_spill] sm:$0xff] }
0x1094   : > { %v12124_v61 = vpop.f32.mrb[164].mxu1 }
0x1095   : > { %v12125_v1 = vpop.f32.mrb[165].mxu1 }
0x1096   : > { %v12126_v14 = vadd.f32 %v12125_v1, %v12124_v61  ;;  %v12127_v12 = vpop.f32.mrb[166].mxu1  ;;  %v18409_v61 = vld [vmem:[#allocation96_spill] sm:$0xff] }
0x1097   : > { %v12128_v20 = vpop.f32.mrb[167].mxu1  ;;  %v14567_v1 = vld [vmem:[%s18410_s7 + $0x4] ss:$20 sps:$4 sm:$0xff]   ;;  %s18415_s7 = sld [smem:[#allocation45_spill]] }
0x1098   : > { %v12129_v46 = vadd.f32 %v12128_v20, %v12127_v12  ;;  %v7465_v29 = vadd.f32 %v12126_v14, %v7416_v56  ;;  %v18408_v56 = vld [vmem:[#allocation95_spill] sm:$0xff] }
0x109a   : > { %v7468_v30 = vadd.f32 %v12129_v46, %v7419_v43  ;;  %v14573_v43 = vld [vmem:[%s18411_s3 + $0xc] ss:$20 sps:$4 sm:$0xff]  }
0x109c   : > { %v12130_v9 = vpop.f32.mrb[168].mxu1 }
0x109d   : > { %v12131_v27 = vpop.f32.mrb[169].mxu1 }
0x109e   : > { %v12132_v8 = vadd.f32 %v12131_v27, %v12130_v9  ;;  %v12133_v24 = vpop.f32.mrb[170].mxu1 }
0x109f   : > { %v12134_v40 = vpop.f32.mrb[171].mxu1 }
0x10a0   : > { %v12135_v44 = vadd.f32 %v12134_v40, %v12133_v24  ;;  %v7473_v25 = vadd.f32 %v12132_v8, %v7424_v15 }
0x10a2   : > { %v7476_v23 = vadd.f32 %v12135_v44, %v7427_v36 }
0x10a4   : > { %v13088_v37 = vpop.f32.mrb[172].mxu1 }
0x10a5   : > { %v7522_v45 = vadd.f32 %v13088_v37, %v7473_v25  ;;  %v7513_v54 = vpop.f32.mrb[173].mxu1 }
0x10a6   : > { %v7514_v47 = vadd.f32 %v7513_v54, %v7465_v29  ;;  %v13089_v13 = vpop.f32.mrb[174].mxu1 }
0x10a7   : > { %v7525_v63 = vadd.f32 %v13089_v13, %v7476_v23  ;;  %v7516_v57 = vpop.f32.mrb[175].mxu1  ;;  %v7534_v62 = vmul.f32 0.2, %v7522_v45  ;;  %vm7530_vm6 = vcmp.ge.f32.partialorder %v7522_v45, 0.0 }
0x10a8   : > { %vm7528_vm5 = vcmp.ge.f32.partialorder %v7514_v47, 0.0  ;;  %v7532_v26 = vmul.f32 0.2, %v7514_v47  ;;  %v7517_v18 = vadd.f32 %v7516_v57, %v7468_v30 }
0x10a9   : > { %v7535_v22 = vmul.f32 0.2, %v7525_v63  ;;  %vm7531_vm12 = vcmp.ge.f32.partialorder %v7525_v63, 0.0  ;;  %v7538_v49 = vsel %vm7530_vm6, %v7522_v45, %v7534_v62 }
0x10aa   : > { %vm7529_vm0 = vcmp.ge.f32.partialorder %v7517_v18, 0.0  ;;  %v7533_v51 = vmul.f32 0.2, %v7517_v18  ;;  %v7536_v55 = vsel %vm7528_vm5, %v7514_v47, %v7532_v26 }
0x10ab   : > { %13094 = vmatprep.mubr.msk.f32.mxu1 %vm18229_vm4, %v7536_v55  ;;  %v7539_v11 = vsel %vm7531_vm12, %v7525_v63, %v7535_v22  ;;  %vm17186_vm12 = vmpackc.low %vm15432_vm3, %vm15432_vm3 }
0x10ac   : > { %v7537_v32 = vsel %vm7529_vm0, %v7517_v18, %v7533_v51  ;;  %vm17203_vm3 = vmpackc.low %vm15444_vm8, %vm15444_vm8 }
0x10ad   : > { %13095 = vmatmul.mubr.msk.f32.vlgmr.msra.gmra.mrb[162].mxu1 %vm18229_vm4, %v7537_v32 }
0x10ae   : > { %13097 = vmatprep.mubr.msk.f32.mxu1 %vm18229_vm4, %v7538_v49  ;;  %13623 = vmatpush3.bf16.msra.mxu1 %v15588_v17 }
0x10af   : > { %13625 = vmatprep.subr.bf16.mxu1 %v15614_v48 }
0x10b1   : > { %13098 = vmatmul.mubr.msk.f32.gmra.mrb[176].mxu1 %vm18229_vm4, %v7539_v11 }
0x10b2   : > { %13627 = vmatpush3.bf16.msra.mxu1 %v15614_v48 }
0x10b3   : > { %13629 = vmatprep.subr.bf16.mxu1 %v15622_v53 }
0x10b6   : > { %13631 = vmatpush3.bf16.msra.mxu1 %v15622_v53 }
0x10b7   : > { %13633 = vmatprep.subr.bf16.mxu1 %v15678_v34 }
0x10ba   : > { %13635 = vmatpush3.bf16.msra.mxu1 %v15678_v34 }
0x10bb   : > { %13653 = vmatprep.subr.bf16.mxu1 %v15690_v41 }
0x1180   : > { %v16749_v6 = vpop.f32.mrb[162].mxu1 }
0x1181   : > { %v16751_v17 = vpop.f32.mrb[163].mxu1 }
0x1182   : > { %13116 = vmatprep.mubr.msk.f32.mxu0 %vm1603_vm7, %v16751_v17  ;;  %13144 = vmatprep.mubr.msk.f32.mxu1 %vm1603_vm7, %v16751_v17  ;;  %v8507_v48 = vpack.c.bf16 %v16749_v6, %v16751_v17 }
0x1183   : > { %13117 = vmatmul.mubr.msk.f32.vlgmr.msra.gmra.mrb[166].mxu0 %vm1603_vm7, %v16749_v6  ;;  %13145 = vmatmul.mubr.msk.f32.vlgmr.msra.gmra.mrb[178].mxu1 %vm1603_vm7, %v16749_v6 }
0x1184   : > { %v16763_v53 = vpop.f32.mrb[176].mxu1  ;;  %13639 = vmatpush3.bf16.msra.mxu0 %v15687_v39  ;;  %13655 = vmatpush3.bf16.msra.mxu1 %v15690_v41  ;;  %v18390_v39 = vld [vmem:[#allocation97_spill] sm:$0xff]  ;;  %v18391_v41 = vld [vmem:[#allocation79_spill] sm:$0xff] }
0x1185   : > { %v16767_v34 = vpop.f32.mrb[177].mxu1  ;;  %13641 = vmatprep.subr.bf16.mxu0 %v15706_v2  ;;  %13657 = vmatprep.subr.bf16.mxu1 %v15708_v3 }
0x1186   : > { %13119 = vmatprep.mubr.msk.f32.mxu0 %vm1603_vm7, %v16767_v34  ;;  %13147 = vmatprep.mubr.msk.f32.mxu1 %vm1603_vm7, %v16767_v34  ;;  %v8508_v38 = vpack.c.bf16 %v16763_v53, %v16767_v34 }
0x1187   : > { %13120 = vmatmul.mubr.msk.f32.gmra.mrb[176].mxu0 %vm1603_vm7, %v16763_v53  ;;  %13148 = vmatmul.mubr.msk.f32.gmra.mrb[180].mxu1 %vm1603_vm7, %v16763_v53 }
0x1188   : > { %13122 = vmatprep.mubr.msk.f32.mxu0 %vm1603_vm7, %v15940_v19  ;;  %13150 = vmatprep.mubr.msk.f32.mxu1 %vm1603_vm7, %v15940_v19 }
0x1189   : > { %13643 = vmatpush3.bf16.msra.mxu0 %v15706_v2  ;;  %13659 = vmatpush3.bf16.msra.mxu1 %v15708_v3  ;;  %v18392_v2 = vld [vmem:[#allocation80_spill] sm:$0xff]  ;;  %v18393_v3 = vld [vmem:[#allocation98_spill] sm:$0xff] }
0x118a   : > { %13645 = vmatprep.subr.bf16.mxu0 %v15726_v31  ;;  %13661 = vmatprep.subr.bf16.mxu1 %v15728_v33 }
0x118b   : > { %13123 = vmatmul.mubr.msk.f32.gmra.mrb[178].mxu0 %vm1603_vm7, %v15945_v5  ;;  %13151 = vmatmul.mubr.msk.f32.gmra.mrb[182].mxu1 %vm1603_vm7, %v15945_v5 }
0x118c   : > { %13125 = vmatprep.mubr.msk.f32.mxu0 %vm1603_vm7, %v18390_v39  ;;  %13153 = vmatprep.mubr.msk.f32.mxu1 %vm1603_vm7, %v18390_v39 }
0x118d   : > { %13647 = vmatpush3.bf16.msra.mxu0 %v15726_v31  ;;  %13663 = vmatpush3.bf16.msra.mxu1 %v15728_v33  ;;  %v18394_v31 = vld [vmem:[#allocation81_spill] sm:$0xff]  ;;  %v18395_v33 = vld [vmem:[#allocation82_spill] sm:$0xff] }
0x118e   : > { %13649 = vmatprep.subr.bf16.mxu0 %v18391_v41  ;;  %13665 = vmatprep.subr.bf16.mxu1 %v18392_v2 }
0x118f   : > { %13126 = vmatmul.mubr.msk.f32.gmra.mrb[180].mxu0 %vm1603_vm7, %v18393_v3  ;;  %13154 = vmatmul.mubr.msk.f32.gmra.mrb[184].mxu1 %vm1603_vm7, %v18393_v3 }
0x1190   : > { %13172 = vmatprep.mubr.msk.f32.mxu0 %vm1603_vm7, %v16751_v17  ;;  %13200 = vmatprep.mubr.msk.f32.mxu1 %vm1603_vm7, %v16751_v17 }
0x1191   : > { %13651 = vmatpush3.bf16.msra.mxu0 %v18391_v41  ;;  %13667 = vmatpush3.bf16.msra.mxu1 %v18392_v2 }
0x1192   : > { %13669 = vmatprep.subr.bf16.mxu0 %v18394_v31  ;;  %13685 = vmatprep.subr.bf16.mxu1 %v18395_v33 }
0x1194   : > { %13173 = vmatmul.mubr.msk.f32.vlgmr.msra.gmra.mrb[182].mxu0 %vm1603_vm7, %v16749_v6  ;;  %13201 = vmatmul.mubr.msk.f32.vlgmr.msra.gmra.mrb[186].mxu1 %vm1603_vm7, %v16749_v6 }
0x1195   : > { %13175 = vmatprep.mubr.msk.f32.mxu0 %vm1603_vm7, %v16767_v34  ;;  %13203 = vmatprep.mubr.msk.f32.mxu1 %vm1603_vm7, %v16767_v34 }
0x1196   : > { %13671 = vmatpush3.bf16.msra.mxu0 %v18394_v31  ;;  %13687 = vmatpush3.bf16.msra.mxu1 %v18395_v33 }
0x1197   : > { %13673 = vmatprep.subr.bf16.mxu0 %v18396_v4  ;;  %13689 = vmatprep.subr.bf16.mxu1 %v18397_v60 }
0x1198   : > { %13176 = vmatmul.mubr.msk.f32.gmra.mrb[184].mxu0 %vm1603_vm7, %v16763_v53  ;;  %13204 = vmatmul.mubr.msk.f32.gmra.mrb[188].mxu1 %vm1603_vm7, %v16763_v53 }
0x1199   : > { %13178 = vmatprep.mubr.msk.f32.mxu0 %vm1603_vm7, %v15940_v19  ;;  %13206 = vmatprep.mubr.msk.f32.mxu1 %vm1603_vm7, %v15940_v19 }
0x119a   : > { %13675 = vmatpush3.bf16.msra.mxu0 %v18396_v4  ;;  %13691 = vmatpush3.bf16.msra.mxu1 %v18397_v60 }
0x119b   : > { %13677 = vmatprep.subr.bf16.mxu0 %v18398_v21  ;;  %13693 = vmatprep.subr.bf16.mxu1 %v18399_v7 }
0x119c   : > { %13179 = vmatmul.mubr.msk.f32.gmra.mrb[186].mxu0 %vm1603_vm7, %v15945_v5  ;;  %13207 = vmatmul.mubr.msk.f32.gmra.mrb[190].mxu1 %vm1603_vm7, %v15945_v5 }
0x119d   : > { %13181 = vmatprep.mubr.msk.f32.mxu0 %vm1603_vm7, %v18390_v39  ;;  %13209 = vmatprep.mubr.msk.f32.mxu1 %vm1603_vm7, %v18390_v39 }
0x119e   : > { %13679 = vmatpush3.bf16.msra.mxu0 %v18398_v21  ;;  %13695 = vmatpush3.bf16.msra.mxu1 %v18399_v7 }
0x119f   : > { %13681 = vmatprep.subr.bf16.mxu0 %v18400_v16  ;;  %13697 = vmatprep.subr.bf16.mxu1 %v18401_v0 }
0x11a0   : > { %13182 = vmatmul.mubr.msk.f32.gmra.mrb[188].mxu0 %vm1603_vm7, %v18393_v3  ;;  %13210 = vmatmul.mubr.msk.f32.gmra.mrb[192].mxu1 %vm1603_vm7, %v18393_v3 }
0x11a1   : > { %13228 = vmatprep.mubr.msk.f32.mxu0 %vm1603_vm7, %v16751_v17  ;;  %13256 = vmatprep.mubr.msk.f32.mxu1 %vm1603_vm7, %v16751_v17 }
0x11a2   : > { %13683 = vmatpush3.bf16.msra.mxu0 %v18400_v16  ;;  %13699 = vmatpush3.bf16.msra.mxu1 %v18401_v0 }
0x11a3   : > { %13701 = vmatprep.subr.bf16.mxu0 %v18402_v10  ;;  %13717 = vmatprep.subr.bf16.mxu1 %v18403_v35 }
0x11a5   : > { %13229 = vmatmul.mubr.msk.f32.vlgmr.msra.gmra.mrb[190].mxu0 %vm1603_vm7, %v16749_v6  ;;  %13257 = vmatmul.mubr.msk.f32.vlgmr.msra.gmra.mrb[194].mxu1 %vm1603_vm7, %v16749_v6 }
0x11a6   : > { %13231 = vmatprep.mubr.msk.f32.mxu0 %vm1603_vm7, %v16767_v34  ;;  %13259 = vmatprep.mubr.msk.f32.mxu1 %vm1603_vm7, %v16767_v34 }
0x11a7   : > { %13703 = vmatpush3.bf16.msra.mxu0 %v18402_v10  ;;  %13719 = vmatpush3.bf16.msra.mxu1 %v18403_v35 }
0x11a8   : > { %13705 = vmatprep.subr.bf16.mxu0 %v18404_v28  ;;  %13721 = vmatprep.subr.bf16.mxu1 %v18405_v59 }
0x11a9   : > { %13232 = vmatmul.mubr.msk.f32.gmra.mrb[192].mxu0 %vm1603_vm7, %v16763_v53  ;;  %13260 = vmatmul.mubr.msk.f32.gmra.mrb[196].mxu1 %vm1603_vm7, %v16763_v53 }
0x11aa   : > { %13234 = vmatprep.mubr.msk.f32.mxu0 %vm1603_vm7, %v15940_v19  ;;  %13262 = vmatprep.mubr.msk.f32.mxu1 %vm1603_vm7, %v15940_v19 }
0x11ab   : > { %13707 = vmatpush3.bf16.msra.mxu0 %v18404_v28  ;;  %13723 = vmatpush3.bf16.msra.mxu1 %v18405_v59 }
0x11ac   : > { %13709 = vmatprep.subr.bf16.mxu0 %v18406_v58  ;;  %13725 = vmatprep.subr.bf16.mxu1 %v18407_v50 }
0x11ad   : > { %13235 = vmatmul.mubr.msk.f32.gmra.mrb[194].mxu0 %vm1603_vm7, %v15945_v5  ;;  %13263 = vmatmul.mubr.msk.f32.gmra.mrb[198].mxu1 %vm1603_vm7, %v15945_v5 }
0x11ae   : > { %13237 = vmatprep.mubr.msk.f32.mxu0 %vm1603_vm7, %v18390_v39  ;;  %13265 = vmatprep.mubr.msk.f32.mxu1 %vm1603_vm7, %v18390_v39 }
0x11af   : > { %13711 = vmatpush3.bf16.msra.mxu0 %v18406_v58  ;;  %13727 = vmatpush3.bf16.msra.mxu1 %v18407_v50 }
0x11b0   : > { %13713 = vmatprep.subr.bf16.mxu0 %v18408_v56  ;;  %13729 = vmatprep.subr.bf16.mxu1 %v18409_v61 }
0x11b1   : > { %13238 = vmatmul.mubr.msk.f32.gmra.mrb[196].mxu0 %vm1603_vm7, %v18393_v3  ;;  %13266 = vmatmul.mubr.msk.f32.gmra.mrb[200].mxu1 %vm1603_vm7, %v18393_v3 }
0x11b2   : > { %13284 = vmatprep.mubr.msk.f32.mxu0 %vm1603_vm7, %v16751_v17  ;;  %13312 = vmatprep.mubr.msk.f32.mxu1 %vm1603_vm7, %v16751_v17 }
0x11b3   : > { %13715 = vmatpush3.bf16.msra.mxu0 %v18408_v56  ;;  %13731 = vmatpush3.bf16.msra.mxu1 %v18409_v61 }
0x11b6   : > { %13285 = vmatmul.mubr.msk.f32.vlgmr.msra.gmra.mrb[198].mxu0 %vm1603_vm7, %v16749_v6  ;;  %13313 = vmatmul.mubr.msk.f32.vlgmr.msra.gmra.mrb[202].mxu1 %vm1603_vm7, %v16749_v6 }
0x11b7   : > { %13287 = vmatprep.mubr.msk.f32.mxu0 %vm1603_vm7, %v16767_v34  ;;  %13315 = vmatprep.mubr.msk.f32.mxu1 %vm1603_vm7, %v16767_v34 }
0x11ba   : > { %13288 = vmatmul.mubr.msk.f32.gmra.mrb[200].mxu0 %vm1603_vm7, %v16763_v53  ;;  %13316 = vmatmul.mubr.msk.f32.gmra.mrb[204].mxu1 %vm1603_vm7, %v16763_v53 }
0x11bb   : > { %13290 = vmatprep.mubr.msk.f32.mxu0 %vm1603_vm7, %v15940_v19  ;;  %13318 = vmatprep.mubr.msk.f32.mxu1 %vm1603_vm7, %v15940_v19 }
0x11be   : > { %13291 = vmatmul.mubr.msk.f32.gmra.mrb[202].mxu0 %vm1603_vm7, %v15945_v5  ;;  %13319 = vmatmul.mubr.msk.f32.gmra.mrb[206].mxu1 %vm1603_vm7, %v15945_v5 }
0x11bf   : > { %13293 = vmatprep.mubr.msk.f32.mxu0 %vm1603_vm7, %v18390_v39  ;;  %13321 = vmatprep.mubr.msk.f32.mxu1 %vm1603_vm7, %v18390_v39 }
0x11c2   : > { %13294 = vmatmul.mubr.msk.f32.gmra.mrb[204].mxu0 %vm1603_vm7, %v18393_v3  ;;  %13322 = vmatmul.mubr.msk.f32.gmra.mrb[208].mxu1 %vm1603_vm7, %v18393_v3 }
0x11c3   : > { %8631 = vmatprep.mubr.bf16.mxu0 %v14567_v1  ;;  %8680 = vmatprep.mubr.bf16.mxu1 %v14573_v43 }
0x1256   : > { %v13118_v14 = vpop.f32.mrb[166].mxu0  ;;  %v16937_v12 = vpop.f32.mrb[178].mxu1 }
0x1257   : > { %v7717_v20 = vpop.f32.mrb[167].mxu0  ;;  %v16939_v46 = vpop.f32.mrb[179].mxu1 }
0x1258   : > { %v8491_v29 = vpack.c.bf16 %v13118_v14, %v7717_v20  ;;  %v8495_v42 = vpack.c.bf16 %v16937_v12, %v16939_v46 }
0x125a   : > { %v13121_v30 = vpop.f32.mrb[176].mxu0  ;;  %v16943_v52 = vpop.f32.mrb[180].mxu1 }
0x125b   : > { %v7727_v15 = vpop.f32.mrb[177].mxu0  ;;  %v16945_v9 = vpop.f32.mrb[181].mxu1 }
0x125c   : > { %v8492_v27 = vpack.c.bf16 %v13121_v30, %v7727_v15  ;;  %v8496_v36 = vpack.c.bf16 %v16943_v52, %v16945_v9 }
0x125e   : > { %v13124_v8 = vpop.f32.mrb[178].mxu0  ;;  %v16949_v24 = vpop.f32.mrb[182].mxu1 }
0x125f   : > { %v7737_v40 = vpop.f32.mrb[179].mxu0  ;;  %v16951_v44 = vpop.f32.mrb[183].mxu1 }
0x1260   : > { %v8493_v25 = vpack.c.bf16 %v13124_v8, %v7737_v40  ;;  %v8497_v23 = vpack.c.bf16 %v16949_v24, %v16951_v44 }
0x1262   : > { %v13127_v37 = vpop.f32.mrb[180].mxu0  ;;  %v16955_v45 = vpop.f32.mrb[184].mxu1 }
0x1263   : > { %v7747_v54 = vpop.f32.mrb[181].mxu0  ;;  %v16957_v47 = vpop.f32.mrb[185].mxu1 }
0x1264   : > { %v8494_v13 = vpack.c.bf16 %v13127_v37, %v7747_v54  ;;  %v8498_v63 = vpack.c.bf16 %v16955_v45, %v16957_v47 }
0x1267   : > { %v13174_v57 = vpop.f32.mrb[182].mxu0  ;;  %v13202_v26 = vpop.f32.mrb[186].mxu1 }
0x1268   : > { %v7927_v18 = vpop.f32.mrb[183].mxu0  ;;  %v8032_v62 = vpop.f32.mrb[187].mxu1 }
0x1269   : > { %v8499_v51 = vpack.c.bf16 %v13174_v57, %v7927_v18  ;;  %v8503_v55 = vpack.c.bf16 %v13202_v26, %v8032_v62  ;;  %v14574_v26 = vld [vmem:[%s18411_s3 + $0x10] ss:$20 sps:$4 sm:$0xff]  }
0x126b   : > { %v13177_v22 = vpop.f32.mrb[184].mxu0  ;;  %v13205_v32 = vpop.f32.mrb[188].mxu1  ;;  %12276 = vmatprep.subr.bf16.mxu0 %v8499_v51 }
0x126c   : > { %v7937_v49 = vpop.f32.mrb[185].mxu0  ;;  %v8042_v11 = vpop.f32.mrb[189].mxu1  ;;  %12277 = vmatpush3.bf16.msra.mxu0 %v8491_v29 }
0x126d   : > { %v8500_v41 = vpack.c.bf16 %v13177_v22, %v7937_v49  ;;  %v8504_v2 = vpack.c.bf16 %v13205_v32, %v8042_v11 }
0x126f   : > { %v13180_v31 = vpop.f32.mrb[186].mxu0  ;;  %v13208_v33 = vpop.f32.mrb[190].mxu1  ;;  %12278 = vmatprep.subr.bf16.mxu0 %v8500_v41 }
0x1270   : > { %v7947_v4 = vpop.f32.mrb[187].mxu0  ;;  %v8052_v60 = vpop.f32.mrb[191].mxu1  ;;  %12279 = vmatpush3.bf16.msra.mxu0 %v8492_v27 }
0x1271   : > { %v8501_v21 = vpack.c.bf16 %v13180_v31, %v7947_v4  ;;  %v8505_v7 = vpack.c.bf16 %v13208_v33, %v8052_v60  ;;  %v14571_v4 = vld [vmem:[%s18411_s3 + $0x8] ss:$20 sps:$4 sm:$0xff]   ;;  %v14575_v60 = vld [vmem:[%s18411_s3 + $0x38] ss:$20 sps:$4 sm:$0xff]  }
0x1273   : > { %v13183_v16 = vpop.f32.mrb[188].mxu0  ;;  %v13211_v0 = vpop.f32.mrb[192].mxu1  ;;  %12280 = vmatprep.subr.bf16.mxu0 %v8501_v21  ;;  %v14576_v21 = vld [vmem:[%s18411_s3 + $0x34] ss:$20 sps:$4 sm:$0xff]  }
0x1274   : > { %v7957_v10 = vpop.f32.mrb[189].mxu0  ;;  %v8062_v35 = vpop.f32.mrb[193].mxu1  ;;  %12281 = vmatpush3.bf16.msra.mxu0 %v8493_v25 }
0x1275   : > { %v8502_v28 = vpack.c.bf16 %v13183_v16, %v7957_v10  ;;  %v8506_v59 = vpack.c.bf16 %v13211_v0, %v8062_v35  ;;  %v18414_v16 = vmov 0.0   ;;  %v8759_v0 = vld [vmem:[%s18412_s2 + $0x8] sm:$0xff]  ;;  %v8761_v10 = vld [vmem:[%s18413_s5 + $0x18] sm:$0xff]  ;;  %s18417_s2 = smov 17  }
0x1276   : > { %v13732_v35 = vpack.c.bf16 %v8761_v10, %v8759_v0 }
0x1277   : > { %12282 = vmatprep.subr.bf16.mxu0 %v8502_v28  ;;  %v8758_v28 = vld [vmem:[%s18413_s5] sm:$0xff] }
0x1278   : > { %v13230_v58 = vpop.f32.mrb[190].mxu0  ;;  %v13258_v50 = vpop.f32.mrb[194].mxu1  ;;  %12283 = vmatpush3.bf16.msra.mxu0 %v8494_v13 }
0x1279   : > { %v8137_v56 = vpop.f32.mrb[191].mxu0  ;;  %v8242_v61 = vpop.f32.mrb[195].mxu1  ;;  %12284 = vmatprep.subr.bf16.mxu0 %v8503_v55 }
0x127a   : > { %v8511_v1 = vpack.c.bf16 %v13230_v58, %v8137_v56  ;;  %v8515_v43 = vpack.c.bf16 %v13258_v50, %v8242_v61  ;;  %v8763_v50 = vld [vmem:[%s18413_s5 + $0x28] sm:$0xff]  ;;  %v8765_v56 = vld [vmem:[%s18413_s5 + $0x38] sm:$0xff] }
0x127b   : > { %v13736_v61 = vpack.c.bf16 %v8765_v56, %v8763_v50 }
0x127c   : > { %v16961_v14 = vpop.f32.mrb[192].mxu0  ;;  %v13261_v12 = vpop.f32.mrb[196].mxu1  ;;  %12304 = vmatprep.subr.bf16.mxu1 %v8515_v43  ;;  %12285 = vmatpush3.bf16.msra.mxu0 %v8495_v42  ;;  %v8764_v43 = vld [vmem:[%s18413_s5 + $0x30] sm:$0xff] }
0x127d   : > { %v8147_v20 = vpop.f32.mrb[193].mxu0  ;;  %v8252_v46 = vpop.f32.mrb[197].mxu1  ;;  %12305 = vmatpush3.bf16.msra.mxu1 %v8507_v48  ;;  %12286 = vmatprep.subr.bf16.mxu0 %v8504_v2  ;;  %v8509_v48 = vpack.c.bf16 %v15945_v5, %v15940_v19  ;;  %v14568_v19 = vld [vmem:[%s18411_s3 + $0x2c] ss:$20 sps:$4 sm:$0xff]  }
0x127e   : > { %v8512_v29 = vpack.c.bf16 %v16961_v14, %v8147_v20  ;;  %v8516_v30 = vpack.c.bf16 %v13261_v12, %v8252_v46  ;;  %v8767_v12 = vld [vmem:[%s18413_s5 + $0x48] sm:$0xff]  ;;  %v8769_v20 = vld [vmem:[%s18413_s5 + $0x58] sm:$0xff] }
0x127f   : > { %v13740_v46 = vpack.c.bf16 %v8769_v20, %v8767_v12 }
0x1280   : > { %v16967_v15 = vpop.f32.mrb[194].mxu0  ;;  %v13264_v27 = vpop.f32.mrb[198].mxu1  ;;  %12306 = vmatprep.subr.bf16.mxu1 %v8516_v30  ;;  %12287 = vmatpush3.bf16.msra.mxu0 %v8496_v36  ;;  %v14565_v36 = vld [vmem:[%s18411_s3] ss:$20 sps:$4 sm:$0xff]  }
0x1281   : > { %v8157_v8 = vpop.f32.mrb[195].mxu0  ;;  %v8262_v42 = vpop.f32.mrb[199].mxu1  ;;  %12307 = vmatpush3.bf16.msra.mxu1 %v8508_v38  ;;  %12288 = vmatprep.subr.bf16.mxu0 %v8505_v7  ;;  %v8510_v38 = vpack.c.bf16 %v18393_v3, %v18390_v39  ;;  %v14578_v7 = vld [vmem:[%s18411_s3 + $0x30] ss:$20 sps:$4 sm:$0xff]  }
0x1282   : > { %v8513_v6 = vpack.c.bf16 %v16967_v15, %v8157_v8  ;;  %v8517_v17 = vpack.c.bf16 %v13264_v27, %v8262_v42  ;;  %v8768_v30 = vld [vmem:[%s18413_s5 + $0x50] sm:$0xff]  ;;  %v8771_v27 = vld [vmem:[%s18413_s5 + $0x68] sm:$0xff]  ;;  %v8773_v8 = vld [vmem:[%s18413_s5 + $0x78] sm:$0xff] }
0x1283   : > { %v13744_v42 = vpack.c.bf16 %v8773_v8, %v8771_v27 }
0x1284   : > { %v13239_v40 = vpop.f32.mrb[196].mxu0  ;;  %v13267_v25 = vpop.f32.mrb[200].mxu1  ;;  %12308 = vmatprep.subr.bf16.mxu1 %v8517_v17  ;;  %12289 = vmatpush3.bf16.msra.mxu0 %v8497_v23  ;;  %v8772_v17 = vld [vmem:[%s18413_s5 + $0x70] sm:$0xff] }
0x1285   : > { %v8167_v52 = vpop.f32.mrb[197].mxu0  ;;  %v8272_v9 = vpop.f32.mrb[201].mxu1  ;;  %12309 = vmatpush3.bf16.msra.mxu1 %v8509_v48  ;;  %12290 = vmatprep.subr.bf16.mxu0 %v8506_v59  ;;  %v8760_v59 = vld [vmem:[%s18413_s5 + $0x10] sm:$0xff] }
0x1286   : > { %v8514_v53 = vpack.c.bf16 %v13239_v40, %v8167_v52  ;;  %v8518_v34 = vpack.c.bf16 %v13267_v25, %v8272_v9  ;;  %v13734_v58 = vpack.c.bf16 %v8760_v59, %v8758_v28 }
0x1288   : > { %12310 = vmatprep.subr.bf16.mxu1 %v8518_v34  ;;  %12291 = vmatpush3.bf16.msra.mxu0 %v8498_v63  ;;  %v14570_v63 = vld [vmem:[%s18411_s3 + $0x28] ss:$20 sps:$4 sm:$0xff]   ;;  %s18416_s3 = smov %s18415_s7 }
0x1289   : > { %v13286_v5 = vpop.f32.mrb[198].mxu0  ;;  %v13314_v37 = vpop.f32.mrb[202].mxu1  ;;  %12311 = vmatpush3.bf16.msra.mxu1 %v8510_v38 }
0x128a   : > { %v8347_v24 = vpop.f32.mrb[199].mxu0  ;;  %v8452_v44 = vpop.f32.mrb[203].mxu1 }
0x128b   : > { %v8519_v23 = vpack.c.bf16 %v13286_v5, %v8347_v24  ;;  %v8523_v54 = vpack.c.bf16 %v13314_v37, %v8452_v44  ;;  %8632 = vmatmul.mubr.bf16.vlgmr.msra.gmra.mrb[208].mxu0 %v14565_v36  ;;  %v8539_v44 = vld [vmem:[%s18415_s7] sm:$0xff]  ;;  %s18422_s7 = smov 16  }
0x128c   : > { %8639 = vmatprep.mubr.bf16.mxu0 %v14568_v19 }
0x128d   : > { %v13289_v13 = vpop.f32.mrb[200].mxu0  ;;  %v13317_v39 = vpop.f32.mrb[204].mxu1  ;;  %12312 = vmatprep.subr.bf16.mxu1 %v8519_v23  ;;  %13324 = vmatprep.subr.bf16.mxu0 %v8523_v54 }
0x128e   : > { %v8357_v3 = vpop.f32.mrb[201].mxu0  ;;  %v8462_v57 = vpop.f32.mrb[205].mxu1  ;;  %12313 = vmatpush3.bf16.msra.mxu1 %v8511_v1  ;;  %13325 = vmatpush3.bf16.msra.mxu0 %v8523_v54  ;;  %v8762_v1 = vld [vmem:[%s18413_s5 + $0x20] sm:$0xff] }
0x128f   : > { %v8520_v45 = vpack.c.bf16 %v13289_v13, %v8357_v3  ;;  %v8524_v47 = vpack.c.bf16 %v13317_v39, %v8462_v57  ;;  %v13738_v14 = vpack.c.bf16 %v8764_v43, %v8762_v1  ;;  %v8540_v13 = vld [vmem:[%s18416_s3 + $0x8] sm:$0xff] }
0x1291   : > { %v13292_v18 = vpop.f32.mrb[202].mxu0  ;;  %v13320_v62 = vpop.f32.mrb[206].mxu1  ;;  %12314 = vmatprep.subr.bf16.mxu1 %v8520_v45  ;;  %13326 = vmatprep.subr.bf16.mxu0 %v8524_v47 }
0x1292   : > { %v8367_v51 = vpop.f32.mrb[203].mxu0  ;;  %v8472_v55 = vpop.f32.mrb[207].mxu1  ;;  %12315 = vmatpush3.bf16.msra.mxu1 %v8512_v29  ;;  %13327 = vmatpush3.bf16.msra.mxu0 %v8524_v47  ;;  %v8766_v29 = vld [vmem:[%s18413_s5 + $0x40] sm:$0xff] }
0x1293   : > { %v8521_v22 = vpack.c.bf16 %v13292_v18, %v8367_v51  ;;  %v8525_v32 = vpack.c.bf16 %v13320_v62, %v8472_v55  ;;  %8640 = vmatmul.mubr.bf16.gmra.mrb[212].mxu0 %v14570_v63  ;;  %v13742_v15 = vpack.c.bf16 %v8768_v30, %v8766_v29 }
0x1294   : > { %13332 = vmatprep.mubr.msk.bf16.mxu0 %vm1603_vm7, %v14574_v26 }
0x1295   : > { %v13295_v49 = vpop.f32.mrb[204].mxu0  ;;  %v13323_v11 = vpop.f32.mrb[208].mxu1  ;;  %12316 = vmatprep.subr.bf16.mxu1 %v8521_v22  ;;  %13328 = vmatprep.subr.bf16.mxu0 %v8525_v32 }
0x1296   : > { %v8377_v41 = vpop.f32.mrb[205].mxu0  ;;  %v8482_v2 = vpop.f32.mrb[209].mxu1  ;;  %12317 = vmatpush3.bf16.msra.mxu1 %v8513_v6  ;;  %13329 = vmatpush3.bf16.msra.mxu0 %v8525_v32  ;;  %v8770_v6 = vld [vmem:[%s18413_s5 + $0x60] sm:$0xff]  ;;  %s18424_s5 = smov 15  }
0x1297   : > { %v8522_v31 = vpack.c.bf16 %v13295_v49, %v8377_v41  ;;  %v8526_v33 = vpack.c.bf16 %v13323_v11, %v8482_v2  ;;  %v13746_v48 = vpack.c.bf16 %v8772_v17, %v8770_v6  ;;  %v8541_v49 = vld [vmem:[%s18416_s3 + $0x10] sm:$0xff] }
0x1299   : > { %12318 = vmatprep.subr.bf16.mxu1 %v8522_v31  ;;  %13330 = vmatprep.subr.bf16.mxu0 %v8526_v33  ;;  %v8542_v31 = vld [vmem:[%s18416_s3 + $0x18] sm:$0xff]  ;;  %s18423_s3 = sld [smem:[#allocation46_spill]] }
0x129a   : > { %12319 = vmatpush3.bf16.msra.mxu1 %v8514_v53  ;;  %13331 = vmatpush3.bf16.msra.mxu0 %v8526_v33 }
0x129b   : > { %13733 = vmatprep.subr.bf16.mxu1 %v13732_v35 }
0x129d   : > { %8681 = vmatmul.mubr.bf16.vlgmr.msra.gmra.mrb[212].mxu1 %v14571_v4  ;;  %13333 = vmatmul.mubr.msk.bf16.vlgmr.msra.gmra.mrb[216].mxu0 %vm1603_vm7, %v14575_v60 }
0x129e   : > { %8688 = vmatprep.mubr.bf16.mxu1 %v14576_v21  ;;  %13735 = vmatpush1.bf16.msra.mxu1 %v13734_v58 }
0x129f   : > { %13737 = vmatprep.subr.bf16.mxu1 %v13736_v61 }
0x12a2   : > { %13739 = vmatpush1.bf16.msra.mxu1 %v13738_v14 }
0x12a3   : > { %13741 = vmatprep.subr.bf16.mxu1 %v13740_v46 }
0x12a5   : > { %8689 = vmatmul.mubr.bf16.gmra.mrb[216].mxu1 %v14578_v7 }
0x12a6   : > { %8850 = vmatprep.mubr.f32.mxu1 %v18414_v16  ;;  %13743 = vmatpush1.bf16.msra.mxu1 %v13742_v15 }
0x12a7   : > { %13745 = vmatprep.subr.bf16.mxu1 %v13744_v42 }
0x12aa   : > { %13747 = vmatpush1.bf16.msra.mxu1 %v13746_v48 }
0x135e   : > { %v12292_v40 = vpop.f32.mrb[208].mxu0 }
0x135f   : > { %v12293_v25 = vpop.f32.mrb[209].mxu0 }
0x1360   : > { %v12294_v52 = vadd.f32 %v12293_v25, %v12292_v40  ;;  %v12295_v9 = vpop.f32.mrb[210].mxu0 }
0x1361   : > { %v12296_v53 = vpop.f32.mrb[211].mxu0 }
0x1362   : > { %v12297_v34 = vadd.f32 %v12296_v53, %v12295_v9  ;;  %v8634_v57 = vadd.f32 %v12294_v52, %v8539_v44  ;;  %v18418_v53 = vld [vmem:[#allocation71_spill] sm:$0xff] }
0x1364   : > { %v8637_v62 = vadd.f32 %v12297_v34, %v8540_v13  ;;  %v18419_v34 = vld [vmem:[#allocation72_spill] sm:$0xff] }
0x1366   : > { %v12298_v38 = vpop.f32.mrb[212].mxu0 }
0x1367   : > { %v12299_v36 = vpop.f32.mrb[213].mxu0 }
0x1368   : > { %v12300_v19 = vadd.f32 %v12299_v36, %v12298_v38  ;;  %v12301_v5 = vpop.f32.mrb[214].mxu0  ;;  %v18420_v38 = vld [vmem:[#allocation77_spill] sm:$0xff]  ;;  %v18421_v36 = vld [vmem:[#allocation78_spill] sm:$0xff] }
0x1369   : > { %v12302_v37 = vpop.f32.mrb[215].mxu0 }
0x136a   : > { %v12303_v24 = vadd.f32 %v12302_v37, %v12301_v5  ;;  %v8642_v4 = vadd.f32 %v12300_v19, %v8541_v49  ;;  %v14581_v19 = vld [vmem:[%s18423_s3 + $0x4] ss:$20 sps:$4 sm:$0xff]  }
0x136b   : > { %9567 = vmatprep.mubr.bf16.mxu0 %v14581_v19 }
0x136c   : > { %v8645_v35 = vadd.f32 %v12303_v24, %v8542_v31 }
0x1370   : > { %v12320_v23 = vpop.f32.mrb[212].mxu1  ;;  %v13334_v54 = vpop.f32.mrb[216].mxu0 }
0x1371   : > { %v12321_v39 = vpop.f32.mrb[213].mxu1  ;;  %v8731_v3 = vpop.f32.mrb[217].mxu0 }
0x1372   : > { %v12322_v45 = vadd.f32 %v12321_v39, %v12320_v23  ;;  %v12323_v47 = vpop.f32.mrb[214].mxu1  ;;  %v13335_v63 = vpop.f32.mrb[218].mxu0 }
0x1373   : > { %v12324_v26 = vpop.f32.mrb[215].mxu1  ;;  %v8734_v18 = vpop.f32.mrb[219].mxu0 }
0x1374   : > { %v8683_v51 = vadd.f32 %v12322_v45, %v8634_v57  ;;  %v12325_v55 = vadd.f32 %v12324_v26, %v12323_v47 }
0x1376   : > { %v8732_v22 = vadd.f32 %v8731_v3, %v8683_v51  ;;  %v8686_v32 = vadd.f32 %v12325_v55, %v8637_v62  ;;  %v18433_v3 = vld [vmem:[#allocation57_spill] sm:$0xff] }
0x1378   : > { %vm8746_vm10 = vcmp.ge.f32.partialorder %v8732_v22, 0.0  ;;  %v8750_v11 = vmul.f32 0.2, %v8732_v22  ;;  %v8735_v41 = vadd.f32 %v8734_v18, %v8686_v32  ;;  %v12326_v2 = vpop.f32.mrb[216].mxu1 }
0x1379   : > { %v12327_v33 = vpop.f32.mrb[217].mxu1 }
0x137a   : > { %v8754_v60 = vsel %vm8746_vm10, %v8732_v22, %v8750_v11  ;;  %v8751_v21 = vmul.f32 0.2, %v8735_v41  ;;  %v12328_v7 = vadd.f32 %v12327_v33, %v12326_v2  ;;  %v12329_v0 = vpop.f32.mrb[218].mxu1  ;;  %vm8747_vm5 = vcmp.ge.f32.partialorder %v8735_v41, 0.0 }
0x137b   : > { %v12330_v10 = vpop.f32.mrb[219].mxu1  ;;  %11209 = vmatmul.mubr.msk.f32.vlgmr.msra.gmra.mrb[210].mxu1 %vm1603_vm7, %v8754_v60  ;;  %vm18434_vm10 = vcmp.lt.s32.totalorder %v18433_v3, 17 }
0x137c   : > { %v8691_v28 = vadd.f32 %v12328_v7, %v8642_v4  ;;  %v12331_v59 = vadd.f32 %v12330_v10, %v12329_v0  ;;  %8856 = vmatprep.mubr.f32.mxu1 %v18414_v16  ;;  %v8755_v56 = vsel %vm8747_vm5, %v8735_v41, %v8751_v21  ;;  %vm18435_vm5 = vmmov %vm18434_vm10 }
0x137e   : > { %v8740_v58 = vadd.f32 %v13334_v54, %v8691_v28  ;;  %v8694_v50 = vadd.f32 %v12331_v59, %v8645_v35 }
0x137f   : > { %11210 = vmatmul.mubr.msk.f32.gmra.mrb[220].mxu1 %vm1603_vm7, %v8755_v56 }
0x1380   : > { %v8743_v61 = vadd.f32 %v13335_v63, %v8694_v50  ;;  %8862 = vmatprep.mubr.f32.mxu1 %v18414_v16  ;;  %vm8748_vm6 = vcmp.ge.f32.partialorder %v8740_v58, 0.0  ;;  %v8752_v1 = vmul.f32 0.2, %v8740_v58 }
0x1382   : > { %v8756_v43 = vsel %vm8748_vm6, %v8740_v58, %v8752_v1  ;;  %v8753_v14 = vmul.f32 0.2, %v8743_v61  ;;  %vm8749_vm0 = vcmp.ge.f32.partialorder %v8743_v61, 0.0  ;;  %vm18436_vm6 = vmmov %vm18435_vm5 }
0x1383   : > { %11211 = vmatmul.mubr.msk.f32.gmra.mrb[222].mxu1 %vm1603_vm7, %v8756_v43 }
0x1384   : > { %8868 = vmatprep.mubr.f32.mxu1 %v18414_v16  ;;  %v8757_v12 = vsel %vm8749_vm0, %v8743_v61, %v8753_v14  ;;  %vm18437_vm0 = vmmov %vm18435_vm5 }
0x1385   : > { %vm18441_vm8 = vmmov %vm18437_vm0 }
0x1387   : > { %11212 = vmatmul.mubr.msk.f32.gmra.mrb[224].mxu1 %vm1603_vm7, %v8757_v12 }
0x144e   : > { %v17024_v20 = vpop.f32.mrb[210].mxu1 }
0x144f   : > { %v17026_v46 = vpop.f32.mrb[211].mxu1 }
0x1452   : > { %v17028_v29 = vpop.f32.mrb[220].mxu1 }
0x1453   : > { %v17030_v30 = vpop.f32.mrb[221].mxu1  ;;  %v17034_v15 = vpack.i.bf16 %v17028_v29, %v17024_v20  ;;  %v9419_v6 = vpack.c.bf16 %v17028_v29, %v17024_v20  ;;  %v18504_v20 = vld [vmem:[#allocation70_spill] sm:$0xff]  ;;  %v18505_v29 = vld [vmem:[#allocation67_spill] sm:$0xff] }
0x1454   : > { %v17038_v27 = vpack.i.bf16 %v17030_v30, %v17026_v46  ;;  %v9420_v42 = vpack.c.bf16 %v17030_v30, %v17026_v46  ;;  %v14584_v46 = vld [vmem:[%s18423_s3 + $0x28] ss:$20 sps:$4 sm:$0xff]  }
0x1455   : > { %14030 = vrot.lane.b32.xlu1 %v17034_v15, %s18417_s2 }
0x1456   : > { %v17042_v16 = vpop.f32.mrb[222].mxu1 }
0x1457   : > { %v17044_v8 = vpop.f32.mrb[223].mxu1 }
0x1459   : > { %14035 = vrot.lane.b32.xlu1 %v17038_v27, %s18417_s2 }
0x145a   : > { %v17052_v17 = vpop.f32.mrb[224].mxu1 }
0x145b   : > { %v17054_v48 = vpop.f32.mrb[225].mxu1  ;;  %v17058_v40 = vpack.i.bf16 %v17052_v17, %v17042_v16  ;;  %v9421_v9 = vpack.c.bf16 %v17052_v17, %v17042_v16  ;;  %v18509_v16 = vld [vmem:[#allocation69_spill] sm:$0xff]  ;;  %v18510_v17 = vld [vmem:[#allocation68_spill] sm:$0xff] }
0x145c   : > { %v17062_v25 = vpack.i.bf16 %v17054_v48, %v17044_v8  ;;  %v9422_v52 = vpack.c.bf16 %v17054_v48, %v17044_v8 }
0x145d   : > { %14040 = vrot.lane.b32.xlu0 %v17058_v40, %s18417_s2 }
0x145e   : > { %14050 = vrot.lane.b32.xlu1 %v17062_v25, %s18417_s2 }
0x1461   : > { %14045 = vrot.lane.b32.xlu0 %v18418_v53, %s18417_s2 }
0x1462   : > { %14055 = vrot.lane.b32.xlu1 %v18419_v34, %s18417_s2 }
0x1465   : > { %14060 = vrot.lane.b32.xlu0 %v18420_v38, %s18417_s2 }
0x1466   : > { %14065 = vrot.lane.b32.xlu1 %v18421_v36, %s18417_s2 }
0x1469   : > { %14070 = vrot.lane.b32.xlu0 %v17034_v15, %s18422_s7 }
0x146a   : > { %14075 = vrot.lane.b32.xlu1 %v17038_v27, %s18422_s7 }
0x146d   : > { %14080 = vrot.lane.b32.xlu0 %v17058_v40, %s18422_s7 }
0x146e   : > { %14090 = vrot.lane.b32.xlu1 %v17062_v25, %s18422_s7 }
0x1471   : > { %14085 = vrot.lane.b32.xlu0 %v18418_v53, %s18422_s7 }
0x1472   : > { %14095 = vrot.lane.b32.xlu1 %v18419_v34, %s18422_s7 }
0x1475   : > { %14100 = vrot.lane.b32.xlu0 %v18420_v38, %s18422_s7 }
0x1476   : > { %14105 = vrot.lane.b32.xlu1 %v18421_v36, %s18422_s7 }
0x1479   : > { %14110 = vrot.lane.b32.xlu0 %v17034_v15, %s18424_s5 }
0x147a   : > { %14115 = vrot.lane.b32.xlu1 %v17038_v27, %s18424_s5 }
0x147d   : > { %14120 = vrot.lane.b32.xlu0 %v17058_v40, %s18424_s5 }
0x147e   : > { %14130 = vrot.lane.b32.xlu1 %v17062_v25, %s18424_s5 }
0x1481   : > { %14125 = vrot.lane.b32.xlu0 %v18418_v53, %s18424_s5 }
0x1482   : > { %14135 = vrot.lane.b32.xlu1 %v18419_v34, %s18424_s5 }
0x1485   : > { %14140 = vrot.lane.b32.xlu0 %v18420_v38, %s18424_s5 }
0x1486   : > { %14145 = vrot.lane.b32.xlu1 %v18421_v36, %s18424_s5 }
0x1489   : > { %14150 = vrot.lane.b32.xlu0 %v17034_v15, %s18425_s6 }
0x148a   : > { %14155 = vrot.lane.b32.xlu1 %v17038_v27, %s18425_s6 }
0x148d   : > { %14160 = vrot.lane.b32.xlu0 %v17058_v40, %s18425_s6 }
0x148e   : > { %14170 = vrot.lane.b32.xlu1 %v17062_v25, %s18425_s6 }
0x1491   : > { %14165 = vrot.lane.b32.xlu0 %v18418_v53, %s18425_s6 }
0x1492   : > { %14175 = vrot.lane.b32.xlu1 %v18419_v34, %s18425_s6 }
0x1495   : > { %14180 = vrot.lane.b32.xlu0 %v18420_v38, %s18425_s6 }
0x1496   : > { %14185 = vrot.lane.b32.xlu1 %v18421_v36, %s18425_s6 }
0x1499   : > { %14190 = vrot.lane.b32.xlu0 %v17034_v15, %s18426_s8 }
0x149a   : > { %14195 = vrot.lane.b32.xlu1 %v17038_v27, %s18426_s8 }
0x149d   : > { %14200 = vrot.lane.b32.xlu0 %v17058_v40, %s18426_s8 }
0x149e   : > { %14210 = vrot.lane.b32.xlu1 %v17062_v25, %s18426_s8 }
0x14a1   : > { %14205 = vrot.lane.b32.xlu0 %v18418_v53, %s18426_s8 }
0x14a2   : > { %14215 = vrot.lane.b32.xlu1 %v18419_v34, %s18426_s8 }
0x14a5   : > { %14220 = vrot.lane.b32.xlu0 %v18420_v38, %s18426_s8 }
0x14a6   : > { %14225 = vrot.lane.b32.xlu1 %v18421_v36, %s18426_s8 }
0x14a9   : > { %14230 = vrot.lane.b32.xlu0 %v17034_v15, %s18427_s9 }
0x14aa   : > { %14235 = vrot.lane.b32.xlu1 %v17038_v27, %s18427_s9 }
0x14ad   : > { %14240 = vrot.lane.b32.xlu0 %v17058_v40, %s18427_s9 }
0x14ae   : > { %14250 = vrot.lane.b32.xlu1 %v17062_v25, %s18427_s9 }
0x14b1   : > { %14245 = vrot.lane.b32.xlu0 %v18418_v53, %s18427_s9 }
0x14b2   : > { %14255 = vrot.lane.b32.xlu1 %v18419_v34, %s18427_s9 }
0x14b5   : > { %14260 = vrot.lane.b32.xlu0 %v18420_v38, %s18427_s9 }
0x14b6   : > { %14265 = vrot.lane.b32.xlu1 %v18421_v36, %s18427_s9 }
0x14b9   : > { %14270 = vrot.lane.b32.xlu0 %v17034_v15, %s18428_s10 }
0x14ba   : > { %14275 = vrot.lane.b32.xlu1 %v17038_v27, %s18428_s10 }
0x14bd   : > { %14280 = vrot.lane.b32.xlu0 %v17058_v40, %s18428_s10 }
0x14be   : > { %14290 = vrot.lane.b32.xlu1 %v17062_v25, %s18428_s10 }
0x14c1   : > { %14285 = vrot.lane.b32.xlu0 %v18418_v53, %s18428_s10 }
0x14c2   : > { %14295 = vrot.lane.b32.xlu1 %v18419_v34, %s18428_s10 }
0x14c5   : > { %14300 = vrot.lane.b32.xlu0 %v18420_v38, %s18428_s10 }
0x14c6   : > { %14305 = vrot.lane.b32.xlu1 %v18421_v36, %s18428_s10 }
0x14c7   : > { %v14031_v5 = vpop.permute.xlu1 %14030 }
0x14c8   : > { %v14033_v24 = vunpack.i.h.bf16 %v14031_v5  ;;  %v14032_v44 = vunpack.i.l.bf16 %v14031_v5 }
0x14c9   : > { %14310 = vrot.lane.b32.xlu0 %v17034_v15, %s18429_s11 }
0x14ca   : > { %14315 = vrot.lane.b32.xlu1 %v17038_v27, %s18429_s11 }
0x14cb   : > { %v14036_v37 = vpop.permute.xlu1 %14035 }
0x14cc   : > { %v14038_v23 = vunpack.i.h.bf16 %v14036_v37  ;;  %v14037_v54 = vunpack.i.l.bf16 %v14036_v37 }
0x14cd   : > { %14320 = vrot.lane.b32.xlu0 %v17058_v40, %s18429_s11 }
0x14ce   : > { %v8908_v57 = vsel %vm18434_vm10, %v14033_v24, %v14038_v23  ;;  %v8916_v45 = vsel %vm18435_vm5, %v14038_v23, %v14033_v24  ;;  %v8907_v47 = vsel %vm18436_vm6, %v14032_v44, %v14037_v54  ;;  %v8915_v63 = vsel %vm18437_vm0, %v14037_v54, %v14032_v44  ;;  %14330 = vrot.lane.b32.xlu1 %v17062_v25, %s18429_s11  ;;  %vm18442_vm10 = vmmov %vm18437_vm0 }
0x14cf   : > { %v11224_v62 = vpack.c.bf16 %v8908_v57, %v8907_v47  ;;  %v11227_v51 = vpack.c.bf16 %v8916_v45, %v8915_v63  ;;  %v14041_v55 = vpop.permute.xlu0 %14040  ;;  %vm18443_vm5 = vmmov %vm18437_vm0 }
0x14d0   : > { %v14043_v22 = vunpack.i.h.bf16 %v14041_v55  ;;  %v14042_v32 = vunpack.i.l.bf16 %v14041_v55  ;;  %v14051_v49 = vpop.permute.xlu1 %14050  ;;  %vm18444_vm6 = vmmov %vm18437_vm0 }
0x14d1   : > { %v14053_v11 = vunpack.i.h.bf16 %v14051_v49  ;;  %v14052_v41 = vunpack.i.l.bf16 %v14051_v49  ;;  %11225 = vmatprep.subr.msk.bf16.mxu0 %vm17186_vm12, %v11224_v62  ;;  %14325 = vrot.lane.b32.xlu0 %v18418_v53, %s18429_s11 }
0x14d2   : > { %11228 = vmatpush1.bf16.msk.msra.mxu0 %vm17203_vm3, %v11227_v51  ;;  %14335 = vrot.lane.b32.xlu1 %v18419_v34, %s18429_s11 }
0x14d3   : > { %v8910_v2 = vsel %vm18441_vm8, %v14043_v22, %v14053_v11  ;;  %v8918_v31 = vsel %vm18442_vm10, %v14053_v11, %v14043_v22  ;;  %v8909_v33 = vsel %vm18443_vm5, %v14042_v32, %v14052_v41  ;;  %v8917_v4 = vsel %vm18444_vm6, %v14052_v41, %v14042_v32  ;;  %v14046_v60 = vpop.permute.xlu0 %14045  ;;  %vm18445_vm8 = vmmov %vm18437_vm0 }
0x14d4   : > { %v11230_v21 = vpack.c.bf16 %v8910_v2, %v8909_v33  ;;  %v11233_v7 = vpack.c.bf16 %v8918_v31, %v8917_v4  ;;  %v14048_v0 = vunpack.i.h.bf16 %v14046_v60  ;;  %v14047_v10 = vunpack.i.l.bf16 %v14046_v60  ;;  %v14056_v35 = vpop.permute.xlu1 %14055  ;;  %vm18446_vm10 = vmmov %vm18437_vm0 }
0x14d5   : > { %v14058_v28 = vunpack.i.h.bf16 %v14056_v35  ;;  %v14057_v59 = vunpack.i.l.bf16 %v14056_v35  ;;  %14340 = vrot.lane.b32.xlu0 %v18420_v38, %s18429_s11  ;;  %vm18447_vm5 = vmmov %vm18437_vm0 }
0x14d6   : > { %14345 = vrot.lane.b32.xlu1 %v18421_v36, %s18429_s11  ;;  %11231 = vmatprep.subr.msk.bf16.mxu0 %vm17186_vm12, %v11230_v21  ;;  %vm18448_vm6 = vmmov %vm18437_vm0 }
0x14d7   : > { %v8912_v58 = vsel %vm18437_vm0, %v14048_v0, %v14058_v28  ;;  %v8920_v50 = vsel %vm18445_vm8, %v14058_v28, %v14048_v0  ;;  %v8911_v56 = vsel %vm18446_vm10, %v14047_v10, %v14057_v59  ;;  %v8919_v61 = vsel %vm18447_vm5, %v14057_v59, %v14047_v10  ;;  %v14061_v1 = vpop.permute.xlu0 %14060  ;;  %11234 = vmatpush1.bf16.msk.msra.mxu0 %vm17203_vm3, %v11233_v7  ;;  %vm18449_vm8 = vmmov %vm18437_vm0 }
0x14d8   : > { %v11236_v43 = vpack.c.bf16 %v8912_v58, %v8911_v56  ;;  %v11239_v14 = vpack.c.bf16 %v8920_v50, %v8919_v61  ;;  %v14063_v12 = vunpack.i.h.bf16 %v14061_v1  ;;  %v14062_v15 = vunpack.i.l.bf16 %v14061_v1  ;;  %v14066_v27 = vpop.permute.xlu1 %14065  ;;  %vm18450_vm10 = vmmov %vm18437_vm0 }
0x14d9   : > { %v14068_v40 = vunpack.i.h.bf16 %v14066_v27  ;;  %v14067_v25 = vunpack.i.l.bf16 %v14066_v27  ;;  %vm18451_vm5 = vcmp.lt.s32.totalorder %v18433_v3, 16 }
0x14da   : > { %11237 = vmatprep.subr.msk.bf16.mxu0 %vm17186_vm12, %v11236_v43 }
0x14db   : > { %v8914_v53 = vsel %vm18448_vm6, %v14063_v12, %v14068_v40  ;;  %v8922_v34 = vsel %vm18437_vm0, %v14068_v40, %v14063_v12  ;;  %v8913_v38 = vsel %vm18449_vm8, %v14062_v15, %v14067_v25  ;;  %v8921_v36 = vsel %vm18450_vm10, %v14067_v25, %v14062_v15  ;;  %v14071_v19 = vpop.permute.xlu0 %14070  ;;  %11240 = vmatpush1.bf16.msk.msra.mxu0 %vm17203_vm3, %v11239_v14  ;;  %vm18452_vm6 = vmmov %vm18451_vm5 }
0x14dc   : > { %v11242_v5 = vpack.c.bf16 %v8914_v53, %v8913_v38  ;;  %v11245_v37 = vpack.c.bf16 %v8922_v34, %v8921_v36  ;;  %v14073_v24 = vunpack.i.h.bf16 %v14071_v19  ;;  %v14072_v44 = vunpack.i.l.bf16 %v14071_v19  ;;  %v14076_v23 = vpop.permute.xlu1 %14075  ;;  %vm18453_vm0 = vmmov %vm18451_vm5 }
0x14dd   : > { %v14078_v54 = vunpack.i.h.bf16 %v14076_v23  ;;  %v14077_v13 = vunpack.i.l.bf16 %v14076_v23  ;;  %vm18454_vm8 = vmmov %vm18453_vm0  ;;  %vm18455_vm10 = vcmp.ge.s32.totalorder %v18433_v3, 16 }
0x14de   : > { %11243 = vmatprep.subr.msk.bf16.mxu0 %vm17186_vm12, %v11242_v5 }
0x14df   : > { %v8980_v57 = vsel %vm18451_vm5, %v14078_v54, %v14073_v24  ;;  %v8979_v45 = vsel %vm18452_vm6, %v14077_v13, %v14072_v44  ;;  %v14081_v47 = vpop.permute.xlu0 %14080  ;;  %11246 = vmatpush1.bf16.msk.msra.mxu0 %vm17203_vm3, %v11245_v37  ;;  %v8971_v63 = vsel %vm18453_vm0, %v14072_v44, %v14077_v13  ;;  %v8972_v26 = vsel %vm18454_vm8, %v14073_v24, %v14078_v54  ;;  %vm17266_vm5 = vmpackc.low %vm18455_vm10, %vm18455_vm10 }
0x14e0   : > { %v11248_v62 = vpack.c.bf16 %v8980_v57, %v8979_v45  ;;  %v14083_v51 = vunpack.i.h.bf16 %v14081_v47  ;;  %v14082_v55 = vunpack.i.l.bf16 %v14081_v47  ;;  %v14091_v22 = vpop.permute.xlu1 %14090  ;;  %v9396_v32 = vpack.c.bf16 %v8972_v26, %v8971_v63  ;;  %vm18458_vm6 = vmmov %vm18453_vm0 }
0x14e1   : > { %v14093_v11 = vunpack.i.h.bf16 %v14091_v22  ;;  %v14092_v41 = vunpack.i.l.bf16 %v14091_v22  ;;  %vm18459_vm8 = vmmov %vm18453_vm0 }
0x14e2   : > { %9543 = vmatprep.subr.bf16.mxu0 %v9396_v32  ;;  %vm18460_vm10 = vmmov %vm18453_vm0 }
0x14e3   : > { %v8982_v2 = vsel %vm18458_vm6, %v14093_v11, %v14083_v51  ;;  %v8981_v31 = vsel %vm18453_vm0, %v14092_v41, %v14082_v55  ;;  %v14086_v33 = vpop.permute.xlu0 %14085  ;;  %11249 = vmatpush1.bf16.msk.msra.mxu0 %vm17266_vm5, %v11248_v62  ;;  %v8973_v4 = vsel %vm18459_vm8, %v14082_v55, %v14092_v41  ;;  %v8974_v60 = vsel %vm18460_vm10, %v14083_v51, %v14093_v11  ;;  %vm18461_vm6 = vmmov %vm18453_vm0 }
0x14e4   : > { %v11251_v21 = vpack.c.bf16 %v8982_v2, %v8981_v31  ;;  %v14088_v7 = vunpack.i.h.bf16 %v14086_v33  ;;  %v14087_v0 = vunpack.i.l.bf16 %v14086_v33  ;;  %v14096_v10 = vpop.permute.xlu1 %14095  ;;  %v9398_v35 = vpack.c.bf16 %v8974_v60, %v8973_v4  ;;  %vm18462_vm8 = vmmov %vm18453_vm0 }
0x14e5   : > { %v14098_v28 = vunpack.i.h.bf16 %v14096_v10  ;;  %v14097_v59 = vunpack.i.l.bf16 %v14096_v10  ;;  %vm18463_vm10 = vmmov %vm18453_vm0 }
0x14e6   : > { %9545 = vmatprep.subr.bf16.mxu0 %v9398_v35 }
0x14e7   : > { %v8984_v58 = vsel %vm18461_vm6, %v14098_v28, %v14088_v7  ;;  %v8983_v50 = vsel %vm18453_vm0, %v14097_v59, %v14087_v0  ;;  %v14101_v56 = vpop.permute.xlu0 %14100  ;;  %11252 = vmatpush1.bf16.msk.msra.mxu0 %vm17266_vm5, %v11251_v21  ;;  %v8975_v61 = vsel %vm18462_vm8, %v14087_v0, %v14097_v59  ;;  %v8976_v1 = vsel %vm18463_vm10, %v14088_v7, %v14098_v28  ;;  %vm18464_vm6 = vmmov %vm18453_vm0 }
0x14e8   : > { %v11254_v43 = vpack.c.bf16 %v8984_v58, %v8983_v50  ;;  %v14103_v14 = vunpack.i.h.bf16 %v14101_v56  ;;  %v14102_v12 = vunpack.i.l.bf16 %v14101_v56  ;;  %v14106_v15 = vpop.permute.xlu1 %14105  ;;  %v9400_v27 = vpack.c.bf16 %v8976_v1, %v8975_v61  ;;  %vm18465_vm8 = vmmov %vm18453_vm0 }
0x14e9   : > { %v14108_v40 = vunpack.i.h.bf16 %v14106_v15  ;;  %v14107_v25 = vunpack.i.l.bf16 %v14106_v15  ;;  %vm18466_vm10 = vmmov %vm18453_vm0 }
0x14ea   : > { %9547 = vmatprep.subr.bf16.mxu0 %v9400_v27 }
0x14eb   : > { %v8986_v53 = vsel %vm18464_vm6, %v14108_v40, %v14103_v14  ;;  %v8985_v34 = vsel %vm18453_vm0, %v14107_v25, %v14102_v12  ;;  %v14111_v38 = vpop.permute.xlu0 %14110  ;;  %11255 = vmatpush1.bf16.msk.msra.mxu0 %vm17266_vm5, %v11254_v43  ;;  %v8977_v36 = vsel %vm18465_vm8, %v14102_v12, %v14107_v25  ;;  %v8978_v19 = vsel %vm18466_vm10, %v14103_v14, %v14108_v40  ;;  %vm17303_vm6 = vmpackc.low %vm15464_vm13, %vm15464_vm13 }
0x14ec   : > { %v11257_v5 = vpack.c.bf16 %v8986_v53, %v8985_v34  ;;  %v14113_v37 = vunpack.i.h.bf16 %v14111_v38  ;;  %v14112_v24 = vunpack.i.l.bf16 %v14111_v38  ;;  %v14116_v44 = vpop.permute.xlu1 %14115  ;;  %v9402_v23 = vpack.c.bf16 %v8978_v19, %v8977_v36  ;;  %vm17320_vm13 = vmpackc.low %vm15492_vm15, %vm15492_vm15 }
0x14ed   : > { %v14118_v54 = vunpack.i.h.bf16 %v14116_v44  ;;  %v14117_v13 = vunpack.i.l.bf16 %v14116_v44  ;;  %vm18470_vm0 = vcmp.lt.s32.totalorder %v18433_v3, 15 }
0x14ee   : > { %9549 = vmatprep.subr.bf16.mxu0 %v9402_v23  ;;  %vm18471_vm8 = vmmov %vm18470_vm0 }
0x14ef   : > { %v9036_v47 = vsel %vm18470_vm0, %v14113_v37, %v14118_v54  ;;  %v9044_v63 = vsel %vm18471_vm8, %v14118_v54, %v14113_v37  ;;  %vm18472_vm10 = vmmov %vm18470_vm0  ;;  %v14121_v51 = vpop.permute.xlu0 %14120  ;;  %11258 = vmatpush1.bf16.msk.msra.mxu0 %vm17266_vm5, %v11257_v5 }
0x14f0   : > { %v9035_v26 = vsel %vm18472_vm10, %v14112_v24, %v14117_v13  ;;  %vm18473_vm4 = vmmov %vm18470_vm0  ;;  %v14123_v41 = vunpack.i.h.bf16 %v14121_v51  ;;  %v14122_v2 = vunpack.i.l.bf16 %v14121_v51  ;;  %v14131_v31 = vpop.permute.xlu1 %14130 }
0x14f1   : > { %v9043_v62 = vsel %vm18473_vm4, %v14117_v13, %v14112_v24  ;;  %v11260_v32 = vpack.c.bf16 %v9036_v47, %v9035_v26  ;;  %v14133_v33 = vunpack.i.h.bf16 %v14131_v31  ;;  %v14132_v4 = vunpack.i.l.bf16 %v14131_v31  ;;  %vm18477_vm4 = vmmov %vm18470_vm0 }
0x14f2   : > { %v11263_v11 = vpack.c.bf16 %v9044_v63, %v9043_v62  ;;  %vm18478_vm15 = vmmov %vm18470_vm0 }
0x14f3   : > { %11261 = vmatprep.subr.msk.bf16.mxu0 %vm17303_vm6, %v11260_v32  ;;  %v9038_v60 = vsel %vm18477_vm4, %v14123_v41, %v14133_v33  ;;  %v9046_v21 = vsel %vm18470_vm0, %v14133_v33, %v14123_v41  ;;  %v9037_v7 = vsel %vm18478_vm15, %v14122_v2, %v14132_v4  ;;  %vm18479_vm8 = vmmov %vm18470_vm0  ;;  %v14126_v10 = vpop.permute.xlu0 %14125 }
0x14f4   : > { %v9045_v0 = vsel %vm18479_vm8, %v14132_v4, %v14122_v2  ;;  %11264 = vmatpush1.bf16.msk.msra.mxu0 %vm17320_vm13, %v11263_v11  ;;  %v11266_v35 = vpack.c.bf16 %v9038_v60, %v9037_v7  ;;  %v14128_v59 = vunpack.i.h.bf16 %v14126_v10  ;;  %v14127_v58 = vunpack.i.l.bf16 %v14126_v10  ;;  %v14136_v50 = vpop.permute.xlu1 %14135  ;;  %vm18480_vm10 = vmmov %vm18470_vm0 }
0x14f5   : > { %v11269_v28 = vpack.c.bf16 %v9046_v21, %v9045_v0  ;;  %v14138_v56 = vunpack.i.h.bf16 %v14136_v50  ;;  %v14137_v61 = vunpack.i.l.bf16 %v14136_v50  ;;  %vm18481_vm4 = vmmov %vm18470_vm0 }
0x14f6   : > { %11267 = vmatprep.subr.msk.bf16.mxu0 %vm17303_vm6, %v11266_v35  ;;  %vm18482_vm15 = vmmov %vm18470_vm0 }
0x14f7   : > { %v9040_v1 = vsel %vm18480_vm10, %v14128_v59, %v14138_v56  ;;  %v9048_v43 = vsel %vm18481_vm4, %v14138_v56, %v14128_v59  ;;  %v9039_v14 = vsel %vm18470_vm0, %v14127_v58, %v14137_v61  ;;  %v9047_v12 = vsel %vm18482_vm15, %v14137_v61, %v14127_v58  ;;  %v14141_v15 = vpop.permute.xlu0 %14140  ;;  %vm18483_vm8 = vmmov %vm18470_vm0 }
0x14f8   : > { %11270 = vmatpush1.bf16.msk.msra.mxu0 %vm17320_vm13, %v11269_v28  ;;  %v11272_v27 = vpack.c.bf16 %v9040_v1, %v9039_v14  ;;  %v11275_v40 = vpack.c.bf16 %v9048_v43, %v9047_v12  ;;  %v14143_v25 = vunpack.i.h.bf16 %v14141_v15  ;;  %v14142_v53 = vunpack.i.l.bf16 %v14141_v15  ;;  %v14146_v34 = vpop.permute.xlu1 %14145  ;;  %vm18484_vm10 = vmmov %vm18470_vm0 }
0x14f9   : > { %v14148_v38 = vunpack.i.h.bf16 %v14146_v34  ;;  %v14147_v36 = vunpack.i.l.bf16 %v14146_v34  ;;  %vm18485_vm4 = vmmov %vm18470_vm0  ;;  %vm18486_vm15 = vcmp.lt.s32.totalorder %v18433_v3, 1 }
0x14fa   : > { %11273 = vmatprep.subr.msk.bf16.mxu0 %vm17303_vm6, %v11272_v27 }
0x14fb   : > { %v9042_v19 = vsel %vm18483_vm8, %v14143_v25, %v14148_v38  ;;  %v9050_v5 = vsel %vm18484_vm10, %v14148_v38, %v14143_v25  ;;  %v9041_v37 = vsel %vm18485_vm4, %v14142_v53, %v14147_v36  ;;  %v9049_v24 = vsel %vm18470_vm0, %v14147_v36, %v14142_v53  ;;  %v14151_v44 = vpop.permute.xlu0 %14150  ;;  %vm18487_vm8 = vmmov %vm18486_vm15 }
0x14fc   : > { %11276 = vmatpush1.bf16.msk.msra.mxu0 %vm17320_vm13, %v11275_v40  ;;  %v11278_v23 = vpack.c.bf16 %v9042_v19, %v9041_v37  ;;  %v11281_v54 = vpack.c.bf16 %v9050_v5, %v9049_v24  ;;  %v14153_v13 = vunpack.i.h.bf16 %v14151_v44  ;;  %v14152_v57 = vunpack.i.l.bf16 %v14151_v44  ;;  %v14156_v47 = vpop.permute.xlu1 %14155  ;;  %vm18488_vm10 = vmmov %vm18487_vm8 }
0x14fd   : > { %v14158_v63 = vunpack.i.h.bf16 %v14156_v47  ;;  %v14157_v26 = vunpack.i.l.bf16 %v14156_v47  ;;  %vm18489_vm4 = vmmov %vm18487_vm8 }
0x14fe   : > { %11279 = vmatprep.subr.msk.bf16.mxu0 %vm17303_vm6, %v11278_v23  ;;  %vm17375_vm0 = vmpackc.low %vm15427_vm1, %vm15427_vm1 }
0x14ff   : > { %v9100_v62 = vsel %vm18486_vm15, %v14153_v13, %v14158_v63  ;;  %v9108_v51 = vsel %vm18487_vm8, %v14158_v63, %v14153_v13  ;;  %v9099_v55 = vsel %vm18488_vm10, %v14152_v57, %v14157_v26  ;;  %v9107_v32 = vsel %vm18489_vm4, %v14157_v26, %v14152_v57  ;;  %v14161_v11 = vpop.permute.xlu0 %14160  ;;  %vm18493_vm15 = vmmov %vm18489_vm4 }
0x1500   : > { %11282 = vmatpush1.bf16.msk.msra.mxu0 %vm17320_vm13, %v11281_v54  ;;  %v11284_v31 = vpack.c.bf16 %v9100_v62, %v9099_v55  ;;  %v11287_v33 = vpack.c.bf16 %v9108_v51, %v9107_v32  ;;  %v14163_v4 = vunpack.i.h.bf16 %v14161_v11  ;;  %v14162_v60 = vunpack.i.l.bf16 %v14161_v11  ;;  %v14171_v21 = vpop.permute.xlu1 %14170  ;;  %vm18494_vm8 = vmmov %vm18489_vm4  ;;  %v14579_v62 = vld [vmem:[%s18423_s3] ss:$20 sps:$4 sm:$0xff]  }
0x1501   : > { %v14173_v7 = vunpack.i.h.bf16 %v14171_v21  ;;  %v14172_v0 = vunpack.i.l.bf16 %v14171_v21  ;;  %vm18495_vm1 = vmmov %vm18489_vm4  ;;  %v14582_v32 = vld [vmem:[%s18423_s3 + $0x2c] ss:$20 sps:$4 sm:$0xff]  }
0x1502   : > { %11285 = vmatprep.subr.msk.bf16.mxu0 %vm17186_vm12, %v11284_v31  ;;  %vm18496_vm10 = vmmov %vm18495_vm1  ;;  %v14587_v21 = vld [vmem:[%s18423_s3 + $0xc] ss:$20 sps:$4 sm:$0xff]  }
0x1503   : > { %v9102_v10 = vsel %vm18493_vm15, %v14163_v4, %v14173_v7  ;;  %v9110_v35 = vsel %vm18494_vm8, %v14173_v7, %v14163_v4  ;;  %v9101_v28 = vsel %vm18495_vm1, %v14162_v60, %v14172_v0  ;;  %v9109_v59 = vsel %vm18496_vm10, %v14172_v0, %v14162_v60  ;;  %v14166_v58 = vpop.permute.xlu0 %14165  ;;  %vm18497_vm4 = vmmov %vm18495_vm1 }
0x1504   : > { %11288 = vmatpush1.bf16.msk.msra.mxu0 %vm17375_vm0, %v11287_v33  ;;  %v11290_v50 = vpack.c.bf16 %v9102_v10, %v9101_v28  ;;  %v11293_v56 = vpack.c.bf16 %v9110_v35, %v9109_v59  ;;  %v14168_v61 = vunpack.i.h.bf16 %v14166_v58  ;;  %v14167_v1 = vunpack.i.l.bf16 %v14166_v58  ;;  %v14176_v43 = vpop.permute.xlu1 %14175  ;;  %vm18498_vm15 = vmmov %vm18495_vm1  ;;  %v18512_v59 = vld [vmem:[#allocation76_spill] sm:$0xff]  ;;  %v18513_v58 = vld [vmem:[#allocation74_spill] sm:$0xff] }
0x1505   : > { %v14178_v14 = vunpack.i.h.bf16 %v14176_v43  ;;  %v14177_v12 = vunpack.i.l.bf16 %v14176_v43  ;;  %vm18499_vm8 = vmmov %vm18495_vm1 }
0x1506   : > { %11291 = vmatprep.subr.msk.bf16.mxu0 %vm17186_vm12, %v11290_v50  ;;  %vm18500_vm10 = vmmov %vm18495_vm1  ;;  %v18514_v50 = vpack.c.bf16 %v18512_v59, %v18513_v58 }
0x1507   : > { %v9104_v15 = vsel %vm18497_vm4, %v14168_v61, %v14178_v14  ;;  %v9112_v27 = vsel %vm18498_vm15, %v14178_v14, %v14168_v61  ;;  %v9103_v40 = vsel %vm18499_vm8, %v14167_v1, %v14177_v12  ;;  %v9111_v25 = vsel %vm18495_vm1, %v14177_v12, %v14167_v1  ;;  %v14181_v53 = vpop.permute.xlu0 %14180  ;;  %vm18501_vm4 = vmmov %vm18495_vm1 }
0x1508   : > { %11294 = vmatpush1.bf16.msk.msra.mxu0 %vm17375_vm0, %v11293_v56  ;;  %v11296_v34 = vpack.c.bf16 %v9104_v15, %v9103_v40  ;;  %v11299_v38 = vpack.c.bf16 %v9112_v27, %v9111_v25  ;;  %v14183_v36 = vunpack.i.h.bf16 %v14181_v53  ;;  %v14182_v19 = vunpack.i.l.bf16 %v14181_v53  ;;  %v14186_v5 = vpop.permute.xlu1 %14185  ;;  %vm18502_vm15 = vmmov %vm18495_vm1  ;;  %v18518_v53 = vld [vmem:[#allocation75_spill] sm:$0xff] }
0x1509   : > { %v14188_v37 = vunpack.i.h.bf16 %v14186_v5  ;;  %v14187_v24 = vunpack.i.l.bf16 %v14186_v5  ;;  %vm18503_vm8 = vmmov %vm18495_vm1  ;;  %vm18507_vm1 = vcmp.lt.s32.totalorder %v18433_v3, 127 }
0x150a   : > { %11297 = vmatprep.subr.msk.bf16.mxu0 %vm17186_vm12, %v11296_v34  ;;  %v18519_v34 = vld [vmem:[#allocation73_spill] sm:$0xff] }
0x150b   : > { %v9106_v44 = vsel %vm18500_vm10, %v14183_v36, %v14188_v37  ;;  %v9114_v23 = vsel %vm18501_vm4, %v14188_v37, %v14183_v36  ;;  %v9105_v54 = vsel %vm18502_vm15, %v14182_v19, %v14187_v24  ;;  %v9113_v13 = vsel %vm18503_vm8, %v14187_v24, %v14182_v19  ;;  %v14191_v57 = vpop.permute.xlu0 %14190  ;;  %vm18508_vm10 = vmmov %vm18507_vm1 }
0x150c   : > { %11300 = vmatpush1.bf16.msk.msra.mxu0 %vm17375_vm0, %v11299_v38  ;;  %v11302_v47 = vpack.c.bf16 %v9106_v44, %v9105_v54  ;;  %v11305_v63 = vpack.c.bf16 %v9114_v23, %v9113_v13  ;;  %v14196_v26 = vpop.permute.xlu1 %14195  ;;  %v14193_v31 = vunpack.i.h.bf16 %v14191_v57  ;;  %v14192_v33 = vunpack.i.l.bf16 %v14191_v57  ;;  %vm18515_vm4 = vmmov %vm18507_vm1 }
0x150d   : > { %v14198_v4 = vunpack.i.h.bf16 %v14196_v26  ;;  %v14197_v60 = vunpack.i.l.bf16 %v14196_v26  ;;  %vm18516_vm15 = vmmov %vm18507_vm1  ;;  %v18520_v38 = vpack.c.bf16 %v18518_v53, %v18519_v34 }
0x150e   : > { %11303 = vmatprep.subr.msk.bf16.mxu0 %vm17186_vm12, %v11302_v47  ;;  %vm18517_vm8 = vmmov %vm18507_vm1 }
0x150f   : > { %v14201_v51 = vpop.permute.xlu0 %14200  ;;  %v9172_v8 = vsel %vm18507_vm1, %v14198_v4, %v14193_v31  ;;  %v9171_v48 = vsel %vm18508_vm10, %v14197_v60, %v14192_v33  ;;  %v9164_v56 = vsel %vm18515_vm4, %v14193_v31, %v14198_v4  ;;  %v9163_v61 = vsel %vm18516_vm15, %v14192_v33, %v14197_v60  ;;  %vm17470_vm10 = vmpackc.low %vm15448_vm9, %vm15448_vm9 }
0x1510   : > { %11306 = vmatpush1.bf16.msk.msra.mxu0 %vm17375_vm0, %v11305_v63  ;;  %v14211_v55 = vpop.permute.xlu1 %14210  ;;  %v14202_v7 = vunpack.i.l.bf16 %v14201_v51  ;;  %v11308_v1 = vpack.c.bf16 %v9172_v8, %v9171_v48  ;;  %v11311_v37 = vpack.c.bf16 %v9164_v56, %v9163_v61  ;;  %vm18524_vm4 = vmmov %vm18507_vm1 }
0x1511   : > { %9588 = vmatprep.subr.bf16.mxu0 %v9420_v42  ;;  %v14213_v0 = vunpack.i.h.bf16 %v14211_v55  ;;  %v14212_v10 = vunpack.i.l.bf16 %v14211_v55  ;;  %vm18525_vm15 = vmmov %vm18507_vm1 }
0x1512   : > { %vm18527_vm9 = vmmov %vm18507_vm1 }
0x1513   : > { %9568 = vmatmul.mubr.bf16.vlgmr.msra.gmra.mrb[220].mxu0 %v14579_v62  ;;  %v14206_v11 = vpop.permute.xlu0 %14205  ;;  %v9173_v40 = vsel %vm18507_vm1, %v14212_v10, %v14202_v7  ;;  %v9165_v44 = vsel %vm18525_vm15, %v14202_v7, %v14212_v10  ;;  %vm18529_vm15 = vmmov %vm18507_vm1 }
0x1514   : > { %9589 = vmatpush1.bf16.msra.mxu0 %v9419_v6  ;;  %v14216_v41 = vpop.permute.xlu1 %14215  ;;  %9577 = vmatprep.mubr.bf16.mxu0 %v14582_v32  ;;  %v18506_v6 = vpack.c.bf16 %v18504_v20, %v18505_v29  ;;  %v14208_v43 = vunpack.i.h.bf16 %v14206_v11  ;;  %v14207_v14 = vunpack.i.l.bf16 %v14206_v11 }
0x1515   : > { %9590 = vmatprep.subr.bf16.mxu0 %v9422_v52  ;;  %v14203_v52 = vunpack.i.h.bf16 %v14201_v51  ;;  %v14218_v12 = vunpack.i.h.bf16 %v14216_v41  ;;  %v14217_v15 = vunpack.i.l.bf16 %v14216_v41 }
0x1517   : > { %v17431_v30 = vpop.permute.xlu0 %14220  ;;  %v9174_v27 = vsel %vm18517_vm8, %v14213_v0, %v14203_v52  ;;  %v9166_v24 = vsel %vm18524_vm4, %v14203_v52, %v14213_v0  ;;  %vm18526_vm8 = vmmov %vm18507_vm1  ;;  %v9175_v13 = vsel %vm18527_vm9, %v14217_v15, %v14207_v14  ;;  %v9168_v32 = vsel %vm18507_vm1, %v14208_v43, %v14218_v12 }
0x1518   : > { %9591 = vmatpush1.bf16.msra.mxu0 %v9421_v9  ;;  %v14226_v42 = vpop.permute.xlu1 %14225  ;;  %v18511_v9 = vpack.c.bf16 %v18509_v16, %v18510_v17  ;;  %v11314_v23 = vpack.c.bf16 %v9174_v27, %v9173_v40  ;;  %v9176_v54 = vsel %vm18526_vm8, %v14218_v12, %v14208_v43  ;;  %v14223_v57 = vunpack.i.h.bf16 %v17431_v30  ;;  %vm18528_vm4 = vmmov %vm18507_vm1 }
0x1519   : > { %9592 = vmatprep.subr.bf16.mxu0 %v18506_v6  ;;  %v14222_v47 = vunpack.i.l.bf16 %v17431_v30  ;;  %v14228_v63 = vunpack.i.h.bf16 %v14226_v42  ;;  %v14227_v26 = vunpack.i.l.bf16 %v14226_v42  ;;  %v11317_v55 = vpack.c.bf16 %v9166_v24, %v9165_v44  ;;  %vm18530_vm8 = vmmov %vm18507_vm1 }
0x151a   : > { %v9167_v11 = vsel %vm18528_vm4, %v14207_v14, %v14217_v15  ;;  %v11320_v41 = vpack.c.bf16 %v9176_v54, %v9175_v13  ;;  %vm18531_vm9 = vmmov %vm18507_vm1  ;;  %vm18532_vm4 = vcmp.lt.s32.totalorder %v18433_v3, 113 }
0x151b   : > { %9578 = vmatmul.mubr.bf16.gmra.mrb[224].mxu0 %v14584_v46  ;;  %v17444_v35 = vpop.permute.xlu0 %14230  ;;  %v9178_v46 = vsel %vm18529_vm15, %v14228_v63, %v14223_v57  ;;  %v9177_v30 = vsel %vm18530_vm8, %v14227_v26, %v14222_v47  ;;  %v11323_v29 = vpack.c.bf16 %v9168_v32, %v9167_v11  ;;  %v9170_v6 = vsel %vm18531_vm9, %v14223_v57, %v14228_v63  ;;  %vm18533_vm15 = vmmov %vm18532_vm4 }
0x151c   : > { %9593 = vmatpush1.bf16.msra.mxu0 %v18511_v9  ;;  %v17449_v28 = vpop.permute.xlu1 %14235  ;;  %9620 = vmatprep.mubr.bf16.mxu0 %v14587_v21  ;;  %v14233_v31 = vunpack.i.h.bf16 %v17444_v35  ;;  %v14232_v33 = vunpack.i.l.bf16 %v17444_v35  ;;  %v9169_v21 = vsel %vm18507_vm1, %v14222_v47, %v14227_v26  ;;  %v11326_v8 = vpack.c.bf16 %v9178_v46, %v9177_v30  ;;  %vm17537_vm8 = vmpackc.low %vm15525_vm2, %vm15525_vm2 }
0x151d   : > { %9594 = vmatprep.subr.bf16.mxu0 %v18514_v50  ;;  %v14238_v4 = vunpack.i.h.bf16 %v17449_v28  ;;  %v14237_v60 = vunpack.i.l.bf16 %v17449_v28  ;;  %v11329_v59 = vpack.c.bf16 %v9170_v6, %v9169_v21  ;;  %vm18537_vm9 = vmmov %vm18532_vm4 }
0x151e   : > { %vm18538_vm1 = vmmov %vm18532_vm4 }
0x151f   : > { %v17462_v25 = vpop.permute.xlu0 %14240  ;;  %v9236_v48 = vsel %vm18532_vm4, %v14238_v4, %v14233_v31  ;;  %v9235_v52 = vsel %vm18533_vm15, %v14237_v60, %v14232_v33  ;;  %v9228_v58 = vsel %vm18537_vm9, %v14233_v31, %v14238_v4  ;;  %v9227_v50 = vsel %vm18538_vm1, %v14232_v33, %v14237_v60  ;;  %vm18539_vm2 = vmmov %vm18538_vm1 }
0x1520   : > { %9595 = vmatpush1.bf16.msra.mxu0 %v18520_v38  ;;  %v17474_v5 = vpop.permute.xlu1 %14250  ;;  %v14243_v7 = vunpack.i.h.bf16 %v17462_v25  ;;  %v14242_v0 = vunpack.i.l.bf16 %v17462_v25  ;;  %v11332_v56 = vpack.c.bf16 %v9236_v48, %v9235_v52  ;;  %vm18540_vm4 = vmmov %vm18538_vm1  ;;  %v11335_v25 = vpack.c.bf16 %v9228_v58, %v9227_v50 }
0x1521   : > { %11309 = vmatprep.subr.msk.bf16.mxu0 %vm17303_vm6, %v11308_v1  ;;  %v14253_v10 = vunpack.i.h.bf16 %v17474_v5  ;;  %v14252_v35 = vunpack.i.l.bf16 %v17474_v5  ;;  %vm18541_vm15 = vmmov %vm18538_vm1 }
0x1522   : > { %vm18542_vm9 = vmmov %vm18538_vm1 }
0x1523   : > { %v17488_v62 = vpop.permute.xlu0 %14245  ;;  %v9238_v12 = vsel %vm18539_vm2, %v14253_v10, %v14243_v7  ;;  %v9237_v15 = vsel %vm18540_vm4, %v14252_v35, %v14242_v0  ;;  %v9230_v53 = vsel %vm18541_vm15, %v14243_v7, %v14253_v10  ;;  %v9229_v34 = vsel %vm18542_vm9, %v14242_v0, %v14252_v35  ;;  %vm18543_vm2 = vmmov %vm18538_vm1  ;;  %v18553_v10 = vld [vmem:[#allocation58_spill] sm:$0xff] }
0x1524   : > { %11312 = vmatpush1.bf16.msk.msra.mxu0 %vm17470_vm10, %v11311_v37  ;;  %v17492_v51 = vpop.permute.xlu1 %14255  ;;  %v14248_v61 = vunpack.i.h.bf16 %v17488_v62  ;;  %v14247_v1 = vunpack.i.l.bf16 %v17488_v62  ;;  %v11338_v38 = vpack.c.bf16 %v9238_v12, %v9237_v15  ;;  %v11341_v57 = vpack.c.bf16 %v9230_v53, %v9229_v34  ;;  %vm18544_vm4 = vmmov %vm18538_vm1 }
0x1525   : > { %11315 = vmatprep.subr.msk.bf16.mxu0 %vm17303_vm6, %v11314_v23  ;;  %v14258_v43 = vunpack.i.h.bf16 %v17492_v51  ;;  %v14257_v14 = vunpack.i.l.bf16 %v17492_v51  ;;  %vm18545_vm15 = vmmov %vm18538_vm1 }
0x1526   : > { %vm18546_vm9 = vmmov %vm18538_vm1 }
0x1527   : > { %v17508_v42 = vpop.permute.xlu0 %14260  ;;  %v9240_v36 = vsel %vm18538_vm1, %v14258_v43, %v14248_v61  ;;  %v9239_v5 = vsel %vm18543_vm2, %v14257_v14, %v14247_v1  ;;  %v9232_v47 = vsel %vm18544_vm4, %v14248_v61, %v14258_v43  ;;  %v9231_v63 = vsel %vm18545_vm15, %v14247_v1, %v14257_v14  ;;  %vm18547_vm2 = vmmov %vm18538_vm1 }
0x1528   : > { %11318 = vmatpush1.bf16.msk.msra.mxu0 %vm17470_vm10, %v11317_v55  ;;  %v17512_v20 = vpop.permute.xlu1 %14265  ;;  %v14263_v37 = vunpack.i.h.bf16 %v17508_v42  ;;  %v14262_v24 = vunpack.i.l.bf16 %v17508_v42  ;;  %v11344_v26 = vpack.c.bf16 %v9240_v36, %v9239_v5  ;;  %v11347_v4 = vpack.c.bf16 %v9232_v47, %v9231_v63  ;;  %vm18548_vm4 = vmmov %vm18538_vm1 }
0x1529   : > { %11321 = vmatprep.subr.msk.bf16.mxu0 %vm17303_vm6, %v11320_v41  ;;  %v14268_v44 = vunpack.i.h.bf16 %v17512_v20  ;;  %v14267_v23 = vunpack.i.l.bf16 %v17512_v20  ;;  %vm18549_vm15 = vcmp.lt.s32.totalorder %v18433_v3, 112 }
0x152b   : > { %v17528_v16 = vpop.permute.xlu0 %14270  ;;  %v9242_v11 = vsel %vm18546_vm9, %v14268_v44, %v14263_v37  ;;  %v9241_v41 = vsel %vm18538_vm1, %v14267_v23, %v14262_v24  ;;  %v9234_v60 = vsel %vm18547_vm2, %v14263_v37, %v14268_v44  ;;  %v9233_v46 = vsel %vm18548_vm4, %v14262_v24, %v14267_v23  ;;  %vm18550_vm9 = vmmov %vm18549_vm15 }
0x152c   : > { %11324 = vmatpush1.bf16.msk.msra.mxu0 %vm17470_vm10, %v11323_v29  ;;  %v14276_v17 = vpop.permute.xlu1 %14275  ;;  %v14273_v62 = vunpack.i.h.bf16 %v17528_v16  ;;  %v14272_v51 = vunpack.i.l.bf16 %v17528_v16  ;;  %v11350_v30 = vpack.c.bf16 %v9242_v11, %v9241_v41  ;;  %v11353_v48 = vpack.c.bf16 %v9234_v60, %v9233_v46  ;;  %vm18551_vm1 = vmmov %vm18550_vm9 }
0x152d   : > { %11327 = vmatprep.subr.msk.bf16.mxu0 %vm17303_vm6, %v11326_v8  ;;  %v14278_v55 = vunpack.i.h.bf16 %v14276_v17  ;;  %v14277_v32 = vunpack.i.l.bf16 %v14276_v17  ;;  %vm18552_vm2 = vmmov %vm18551_vm1  ;;  %vm18554_vm4 = vcmp.lt.s32.totalorder %v18553_v10, 240 }
0x152e   : > { %vm18560_vm11 = vmmov %vm18551_vm1 }
0x152f   : > { %v17553_v27 = vpop.permute.xlu0 %14280  ;;  %v9300_v42 = vsel %vm18549_vm15, %v14278_v55, %v14273_v62  ;;  %v9299_v20 = vsel %vm18550_vm9, %v14277_v32, %v14272_v51  ;;  %v9292_v52 = vsel %vm18551_vm1, %v14273_v62, %v14278_v55  ;;  %v9291_v7 = vsel %vm18552_vm2, %v14272_v51, %v14277_v32  ;;  %vm17612_vm15 = vmpackc.low %vm18554_vm4, %vm18554_vm4 }
0x1530   : > { %11330 = vmatpush1.bf16.msk.msra.mxu0 %vm17470_vm10, %v11329_v59  ;;  %v14291_v40 = vpop.permute.xlu1 %14290  ;;  %v14283_v29 = vunpack.i.h.bf16 %v17553_v27  ;;  %v14282_v6 = vunpack.i.l.bf16 %v17553_v27  ;;  %v11356_v0 = vpack.c.bf16 %v9300_v42, %v9299_v20  ;;  %vm18557_vm9 = vmmov %vm18551_vm1  ;;  %v9443_v1 = vpack.c.bf16 %v9292_v52, %v9291_v7 }
0x1531   : > { %11333 = vmatprep.subr.msk.bf16.mxu0 %vm17537_vm8, %v11332_v56  ;;  %v14293_v21 = vunpack.i.h.bf16 %v14291_v40  ;;  %v14292_v8 = vunpack.i.l.bf16 %v14291_v40  ;;  %vm18558_vm2 = vmmov %vm18551_vm1 }
0x1532   : > { %vm18559_vm4 = vmmov %vm18551_vm1 }
0x1533   : > { %v17571_v54 = vpop.permute.xlu0 %14285  ;;  %v9302_v56 = vsel %vm18557_vm9, %v14293_v21, %v14283_v29  ;;  %v9301_v61 = vsel %vm18551_vm1, %v14292_v8, %v14282_v6  ;;  %v9294_v43 = vsel %vm18558_vm2, %v14283_v29, %v14293_v21  ;;  %v9293_v14 = vsel %vm18559_vm4, %v14282_v6, %v14292_v8  ;;  %vm18561_vm9 = vmmov %vm18551_vm1 }
0x1534   : > { %11336 = vmatpush1.bf16.msk.msra.mxu0 %vm17375_vm0, %v11335_v25  ;;  %v14296_v13 = vpop.permute.xlu1 %14295  ;;  %v14288_v16 = vunpack.i.h.bf16 %v17571_v54  ;;  %v14287_v17 = vunpack.i.l.bf16 %v17571_v54  ;;  %v11359_v12 = vpack.c.bf16 %v9302_v56, %v9301_v61  ;;  %v9445_v5 = vpack.c.bf16 %v9294_v43, %v9293_v14  ;;  %vm18562_vm2 = vmmov %vm18551_vm1 }
0x1535   : > { %11339 = vmatprep.subr.msk.bf16.mxu0 %vm17537_vm8, %v11338_v38  ;;  %v14298_v9 = vunpack.i.h.bf16 %v14296_v13  ;;  %v14297_v59 = vunpack.i.l.bf16 %v14296_v13  ;;  %vm18564_vm4 = vmmov %vm18551_vm1 }
0x1537   : > { %v14301_v31 = vpop.permute.xlu0 %14300  ;;  %v9304_v15 = vsel %vm18560_vm11, %v14298_v9, %v14288_v16  ;;  %v9303_v27 = vsel %vm18561_vm9, %v14297_v59, %v14287_v17  ;;  %v9296_v37 = vsel %vm18551_vm1, %v14288_v16, %v14298_v9  ;;  %v9295_v24 = vsel %vm18562_vm2, %v14287_v17, %v14297_v59  ;;  %vm18563_vm11 = vmmov %vm18551_vm1  ;;  %v14588_v17 = vld [vmem:[%s18423_s3 + $0x34] ss:$20 sps:$4 sm:$0xff]  }
0x1538   : > { %11342 = vmatpush1.bf16.msk.msra.mxu0 %vm17375_vm0, %v11341_v57  ;;  %v14306_v33 = vpop.permute.xlu1 %14305  ;;  %v14303_v40 = vunpack.i.h.bf16 %v14301_v31  ;;  %v14302_v25 = vunpack.i.l.bf16 %v14301_v31  ;;  %v11362_v44 = vpack.c.bf16 %v9304_v15, %v9303_v27  ;;  %vm18565_vm9 = vmmov %vm18551_vm1  ;;  %vm18566_vm2 = vcmp.lt.s32.totalorder %v18433_v3, 111 }
0x1539   : > { %11345 = vmatprep.subr.msk.bf16.mxu0 %vm17537_vm8, %v11344_v26  ;;  %v14308_v53 = vunpack.i.h.bf16 %v14306_v33  ;;  %v14307_v34 = vunpack.i.l.bf16 %v14306_v33  ;;  %v9447_v26 = vpack.c.bf16 %v9296_v37, %v9295_v24 }
0x153b   : > { %v14311_v58 = vpop.permute.xlu0 %14310  ;;  %v9306_v47 = vsel %vm18563_vm11, %v14308_v53, %v14303_v40  ;;  %v9305_v63 = vsel %vm18564_vm4, %v14307_v34, %v14302_v25  ;;  %v9298_v62 = vsel %vm18565_vm9, %v14303_v40, %v14308_v53  ;;  %v9297_v51 = vsel %vm18551_vm1, %v14302_v25, %v14307_v34  ;;  %vm18567_vm11 = vmmov %vm18566_vm2 }
0x153c   : > { %11348 = vmatpush1.bf16.msk.msra.mxu0 %vm17375_vm0, %v11347_v4  ;;  %v14316_v50 = vpop.permute.xlu1 %14315  ;;  %v14313_v23 = vunpack.i.h.bf16 %v14311_v58  ;;  %v14312_v54 = vunpack.i.l.bf16 %v14311_v58  ;;  %v11365_v55 = vpack.c.bf16 %v9306_v47, %v9305_v63  ;;  %vm18568_vm4 = vmmov %vm18566_vm2  ;;  %v14592_v47 = vld [vmem:[%s18423_s3 + $0x38] ss:$20 sps:$4 sm:$0xff]   ;;  %v9471_v63 = vld [vmem:[%s18581_s12] sm:$0xff] }
0x153d   : > { %11351 = vmatprep.subr.msk.bf16.mxu0 %vm17537_vm8, %v11350_v30  ;;  %v14318_v13 = vunpack.i.h.bf16 %v14316_v50  ;;  %v14317_v57 = vunpack.i.l.bf16 %v14316_v50  ;;  %v9449_v30 = vpack.c.bf16 %v9298_v62, %v9297_v51  ;;  %vm18569_vm9 = vmmov %vm18566_vm2  ;;  %v9473_v51 = vld [vmem:[%s18581_s12 + $0x10] sm:$0xff] }
0x153e   : > { %vm17663_vm1 = vmpackc.low %vm15533_vm14, %vm15533_vm14 }
0x153f   : > { %v14321_v38 = vpop.permute.xlu0 %14320  ;;  %v9364_v32 = vsel %vm18566_vm2, %v14318_v13, %v14313_v23  ;;  %v9363_v11 = vsel %vm18567_vm11, %v14317_v57, %v14312_v54  ;;  %v9356_v42 = vsel %vm18568_vm4, %v14313_v23, %v14318_v13  ;;  %v9355_v20 = vsel %vm18569_vm9, %v14312_v54, %v14317_v57  ;;  %vm18573_vm11 = vmmov %vm18566_vm2  ;;  %v14591_v57 = vld [vmem:[%s18423_s3 + $0x10] ss:$20 sps:$4 sm:$0xff]  }
0x1540   : > { %11354 = vmatpush1.bf16.msk.msra.mxu0 %vm17375_vm0, %v11353_v48  ;;  %v14331_v36 = vpop.permute.xlu1 %14330  ;;  %v14323_v33 = vunpack.i.h.bf16 %v14321_v38  ;;  %v14322_v4 = vunpack.i.l.bf16 %v14321_v38  ;;  %v11368_v29 = vpack.c.bf16 %v9364_v32, %v9363_v11  ;;  %v11371_v58 = vpack.c.bf16 %v9356_v42, %v9355_v20  ;;  %vm18574_vm14 = vmmov %vm18566_vm2  ;;  %v14590_v38 = vld [vmem:[%s18423_s3 + $0x30] ss:$20 sps:$4 sm:$0xff]   ;;  %v9474_v11 = vld [vmem:[%s18581_s12 + $0x18] sm:$0xff] }
0x1541   : > { %11357 = vmatprep.subr.msk.bf16.mxu0 %vm17612_vm15, %v11356_v0  ;;  %v14333_v60 = vunpack.i.h.bf16 %v14331_v36  ;;  %v14332_v46 = vunpack.i.l.bf16 %v14331_v36  ;;  %v14585_v0 = vld [vmem:[%s18423_s3 + $0x8] ss:$20 sps:$4 sm:$0xff]   ;;  %vm18575_vm4 = vmmov %vm18566_vm2  ;;  %v18583_v54 = vmov 0   ;;  %s11495_s3 = sshll.u32 %s15184_s0, 9  ;;  %s14970_s0 = smov [#allocation16]  }
0x1542   : > { %vm18576_vm9 = vmmov %vm18566_vm2 }
0x1543   : > { %v14326_v41 = vpop.permute.xlu0 %14325  ;;  %v9366_v10 = vsel %vm18566_vm2, %v14333_v60, %v14323_v33  ;;  %v9365_v16 = vsel %vm18573_vm11, %v14332_v46, %v14322_v4  ;;  %v9358_v50 = vsel %vm18574_vm14, %v14323_v33, %v14333_v60  ;;  %v9357_v56 = vsel %vm18575_vm4, %v14322_v4, %v14332_v46  ;;  %vm18577_vm11 = vmmov %vm18566_vm2 }
0x1544   : > { %9613 = vmatpush1.bf16.msra.mxu0 %v9443_v1  ;;  %v14336_v31 = vpop.permute.xlu1 %14335  ;;  %v14328_v8 = vunpack.i.h.bf16 %v14326_v41  ;;  %v14327_v48 = vunpack.i.l.bf16 %v14326_v41  ;;  %v11374_v61 = vpack.c.bf16 %v9366_v10, %v9365_v16  ;;  %v11377_v40 = vpack.c.bf16 %v9358_v50, %v9357_v56  ;;  %vm18578_vm14 = vmmov %vm18566_vm2  ;;  %v9477_v10 = vld [vmem:[%s18581_s12 + $0x30] sm:$0xff] }
0x1545   : > { %11360 = vmatprep.subr.msk.bf16.mxu0 %vm17612_vm15, %v11359_v12  ;;  %v14338_v52 = vunpack.i.h.bf16 %v14336_v31  ;;  %v14337_v7 = vunpack.i.l.bf16 %v14336_v31  ;;  %vm18579_vm4 = vmmov %vm18566_vm2 }
0x1547   : > { %v14341_v9 = vpop.permute.xlu0 %14340  ;;  %v9368_v1 = vsel %vm18576_vm9, %v14338_v52, %v14328_v8  ;;  %v9367_v43 = vsel %vm18566_vm2, %v14337_v7, %v14327_v48  ;;  %v9360_v25 = vsel %vm18577_vm11, %v14328_v8, %v14338_v52  ;;  %v9359_v53 = vsel %vm18578_vm14, %v14327_v48, %v14337_v7  ;;  %vm18580_vm9 = vmmov %vm18566_vm2  ;;  %v9476_v52 = vld [vmem:[%s18581_s12 + $0x28] sm:$0xff] }
0x1548   : > { %9615 = vmatpush1.bf16.msra.mxu0 %v9445_v5  ;;  %v14346_v59 = vpop.permute.xlu1 %14345  ;;  %v14343_v14 = vunpack.i.h.bf16 %v14341_v9  ;;  %v14342_v12 = vunpack.i.l.bf16 %v14341_v9  ;;  %v11380_v34 = vpack.c.bf16 %v9368_v1, %v9367_v43  ;;  %v11383_v37 = vpack.c.bf16 %v9360_v25, %v9359_v53  ;;  %vm18582_vm11 = vmmov %vm18566_vm2 }
0x1549   : > { %11363 = vmatprep.subr.msk.bf16.mxu0 %vm17612_vm15, %v11362_v44  ;;  %v14348_v15 = vunpack.i.h.bf16 %v14346_v59  ;;  %v14347_v27 = vunpack.i.l.bf16 %v14346_v59  ;;  %v9478_v59 = vld [vmem:[%s18581_s12 + $0x38] sm:$0xff] }
0x154b   : > { %v9370_v36 = vsel %vm18579_vm4, %v14348_v15, %v14343_v14  ;;  %v9369_v5 = vsel %vm18580_vm9, %v14347_v27, %v14342_v12  ;;  %v9362_v24 = vsel %vm18566_vm2, %v14343_v14, %v14348_v15  ;;  %v9361_v44 = vsel %vm18582_vm11, %v14342_v12, %v14347_v27 }
0x154c   : > { %9617 = vmatpush1.bf16.msra.mxu0 %v9447_v26  ;;  %v11386_v23 = vpack.c.bf16 %v9370_v36, %v9369_v5  ;;  %v11389_v13 = vpack.c.bf16 %v9362_v24, %v9361_v44  ;;  %v9472_v26 = vld [vmem:[%s18581_s12 + $0x8] sm:$0xff] }
0x154d   : > { %11366 = vmatprep.subr.msk.bf16.mxu0 %vm17612_vm15, %v11365_v55 }
0x1550   : > { %9619 = vmatpush1.bf16.msra.mxu0 %v9449_v30 }
0x1551   : > { %11369 = vmatprep.subr.msk.bf16.mxu0 %vm17663_vm1, %v11368_v29  ;;  %v9475_v29 = vld [vmem:[%s18581_s12 + $0x20] sm:$0xff] }
0x1553   : > { %9621 = vmatmul.mubr.bf16.vlgmr.msra.gmra.mrb[220].mxu0 %v14585_v0 }
0x1554   : > { %11372 = vmatpush1.bf16.msk.msra.mxu0 %vm17470_vm10, %v11371_v58  ;;  %9630 = vmatprep.mubr.bf16.mxu0 %v14588_v17 }
0x1555   : > { %11375 = vmatprep.subr.msk.bf16.mxu0 %vm17663_vm1, %v11374_v61 }
0x1558   : > { %11378 = vmatpush1.bf16.msk.msra.mxu0 %vm17470_vm10, %v11377_v40 }
0x1559   : > { %11381 = vmatprep.subr.msk.bf16.mxu0 %vm17663_vm1, %v11380_v34 }
0x155b   : > { %9631 = vmatmul.mubr.bf16.gmra.mrb[224].mxu0 %v14590_v38 }
0x155c   : > { %11384 = vmatpush1.bf16.msk.msra.mxu0 %vm17470_vm10, %v11383_v37  ;;  %9673 = vmatprep.mubr.bf16.mxu0 %v18583_v54 }
0x155d   : > { %11387 = vmatprep.subr.msk.bf16.mxu0 %vm17663_vm1, %v11386_v23  ;;  %v11393_v23 = vld.sshfl [vmem:[#allocation13] sm:$0x13 pattern:$0x75316420] }
0x1560   : > { %11390 = vmatpush1.bf16.msk.msra.mxu0 %vm17470_vm10, %v11389_v13  ;;  %v14969_v13 = vmov 1966171168  }
0x1563   : > { %11391 = vmatmul.mubr.msk.bf16.vlgmr.msra.gmra.mrb[220].mxu0 %vm1603_vm7, %v14591_v57  ;;  %v10022_v57 = vunpack.c.l.s4 %v14969_v13 }
0x1564   : > { %9683 = vmatprep.mubr.bf16.mxu0 %v18583_v54 }
0x156b   : > { %11392 = vmatmul.mubr.msk.bf16.gmra.mrb[224].mxu0 %vm1603_vm7, %v14592_v47  ;;  %v18584_v47 = vlaneseq }
0x1636   : > { %v9675_v62 = vpop.f32.mrb[220].mxu0 }
0x1637   : > { %v13788_v55 = vadd.f32 %v9675_v62, %v9471_v63  ;;  %v9677_v32 = vpop.f32.mrb[221].mxu0  ;;  %v17786_v63 = vshrl.u32 %v18584_v47, 7  ;;  %v10023_v62 = vunpack.c.0.s8 %v10022_v57 }
0x1638   : > { %v13789_v41 = vadd.f32 %v9677_v32, %v9472_v26  ;;  %v9679_v31 = vpop.f32.mrb[222].mxu0  ;;  %v10020_v26 = vcombine.high %v11393_v23, %v11393_v23 }
0x1639   : > { %v9702_v33 = vmul.f32 0.2, %v13788_v55  ;;  %v13790_v4 = vadd.f32 %v9679_v31, %v9473_v51  ;;  %v9681_v60 = vpop.f32.mrb[223].mxu0  ;;  %vm9694_vm14 = vcmp.ge.f32.partialorder %v13788_v55, 0.0  ;;  %v10026_v51 = vsub.s32 %v10023_v62, %v17786_v63 }
0x163a   : > { %vm9695_vm4 = vcmp.ge.f32.partialorder %v13789_v41, 0.0  ;;  %v9703_v46 = vmul.f32 0.2, %v13789_v41  ;;  %v13791_v30 = vadd.f32 %v9681_v60, %v9474_v11 }
0x163b   : > { %vm9696_vm7 = vcmp.ge.f32.partialorder %v13790_v4, 0.0  ;;  %v9704_v42 = vmul.f32 0.2, %v13790_v4  ;;  %v17721_v6 = vsel %vm9694_vm14, %v13788_v55, %v9702_v33  ;;  %v17792_v55 = vrot.slane %v11393_v23, %v10026_v51 }
0x163c   : > { %vm9697_vm9 = vcmp.ge.f32.partialorder %v13791_v30, 0.0  ;;  %v9705_v20 = vmul.f32 0.2, %v13791_v30  ;;  %v17723_v8 = vsel %vm9695_vm4, %v13789_v41, %v9703_v46  ;;  %v10034_v32 = vrot.slane %v10020_v26, %v10026_v51 }
0x163d   : > { %v17725_v48 = vsel %vm9696_vm7, %v13790_v4, %v9704_v42  ;;  %vm18585_vm7 = vcmp.lt.s32.totalorder %v18433_v3, 17 }
0x163e   : > { %v17728_v7 = vsel %vm9697_vm9, %v13791_v30, %v9705_v20  ;;  %v9685_v0 = vpop.f32.mrb[224].mxu0  ;;  %v14349_v16 = vpack.i.bf16 %v17725_v48, %v17721_v6  ;;  %v9990_v37 = vpack.c.bf16 %v17725_v48, %v17721_v6  ;;  %10084 = vmatprep.mubr.bf16.mxu1 %v10034_v32  ;;  %vm18586_vm9 = vmmov %vm18585_vm7 }
0x163f   : > { %v13792_v17 = vadd.f32 %v9685_v0, %v9475_v29  ;;  %v9687_v9 = vpop.f32.mrb[225].mxu0  ;;  %v14354_v58 = vpack.i.bf16 %v17728_v7, %v17723_v8  ;;  %v9991_v5 = vpack.c.bf16 %v17728_v7, %v17723_v8 }
0x1640   : > { %v13793_v50 = vadd.f32 %v9687_v9, %v9476_v52  ;;  %v9689_v56 = vpop.f32.mrb[226].mxu0  ;;  %14350 = vrot.lane.b32.xlu0 %v14349_v16, %s18417_s2 }
0x1641   : > { %vm9698_vm2 = vcmp.ge.f32.partialorder %v13792_v17, 0.0  ;;  %v9706_v61 = vmul.f32 0.2, %v13792_v17  ;;  %v13794_v1 = vadd.f32 %v9689_v56, %v9477_v10  ;;  %v9691_v43 = vpop.f32.mrb[227].mxu0  ;;  %14355 = vrot.lane.b32.xlu1 %v14354_v58, %s18417_s2 }
0x1642   : > { %vm9699_vm11 = vcmp.ge.f32.partialorder %v13793_v50, 0.0  ;;  %v9707_v14 = vmul.f32 0.2, %v13793_v50  ;;  %v13795_v12 = vadd.f32 %v9691_v43, %v9478_v59 }
0x1643   : > { %v17738_v15 = vsel %vm9698_vm2, %v13792_v17, %v9706_v61  ;;  %vm9700_vm14 = vcmp.ge.f32.partialorder %v13794_v1, 0.0  ;;  %v9708_v27 = vmul.f32 0.2, %v13794_v1  ;;  %vm18587_vm2 = vmmov %vm18585_vm7 }
0x1644   : > { %v17740_v40 = vsel %vm9699_vm11, %v13793_v50, %v9707_v14  ;;  %vm9701_vm4 = vcmp.ge.f32.partialorder %v13795_v12, 0.0  ;;  %v9709_v25 = vmul.f32 0.2, %v13795_v12  ;;  %vm18588_vm11 = vmmov %vm18587_vm2 }
0x1645   : > { %v17742_v53 = vsel %vm9700_vm14, %v13794_v1, %v9708_v27  ;;  %vm18589_vm14 = vmmov %vm18587_vm2 }
0x1646   : > { %v17744_v34 = vsel %vm9701_vm4, %v13795_v12, %v9709_v25  ;;  %v14359_v38 = vpack.i.bf16 %v17742_v53, %v17738_v15  ;;  %v9992_v44 = vpack.c.bf16 %v17742_v53, %v17738_v15  ;;  %vm18590_vm4 = vmmov %vm18587_vm2 }
0x1647   : > { %v14369_v36 = vpack.i.bf16 %v17744_v34, %v17740_v40  ;;  %v9993_v24 = vpack.c.bf16 %v17744_v34, %v17740_v40 }
0x1648   : > { %14360 = vrot.lane.b32.xlu0 %v14359_v38, %s18417_s2 }
0x1649   : > { %14370 = vrot.lane.b32.xlu1 %v14369_v36, %s18417_s2 }
0x164c   : > { %14365 = vrot.lane.b32.xlu0 %v14349_v16, %s18422_s7 }
0x164d   : > { %14375 = vrot.lane.b32.xlu1 %v14354_v58, %s18422_s7 }
0x1650   : > { %14380 = vrot.lane.b32.xlu0 %v14359_v38, %s18422_s7 }
0x1651   : > { %14390 = vrot.lane.b32.xlu1 %v14369_v36, %s18422_s7 }
0x1654   : > { %14385 = vrot.lane.b32.xlu0 %v14349_v16, %s18424_s5 }
0x1655   : > { %14395 = vrot.lane.b32.xlu1 %v14354_v58, %s18424_s5 }
0x1658   : > { %14400 = vrot.lane.b32.xlu0 %v14359_v38, %s18424_s5 }
0x1659   : > { %14410 = vrot.lane.b32.xlu1 %v14369_v36, %s18424_s5  ;;  %s18646_s5 = sld [smem:[#allocation30_spill]] }
0x165c   : > { %14405 = vrot.lane.b32.xlu0 %v14349_v16, %s18425_s6 }
0x165d   : > { %14415 = vrot.lane.b32.xlu1 %v14354_v58, %s18425_s6 }
0x165f   : > { %v10165_v21 = vld [vmem:[%s18646_s5 + $0x8] sm:$0xff] }
0x1660   : > { %14420 = vrot.lane.b32.xlu0 %v14359_v38, %s18425_s6 }
0x1661   : > { %14425 = vrot.lane.b32.xlu1 %v14369_v36, %s18425_s6  ;;  %s1211_s6 = sand.u32 1, %s14899_s1  }
0x1664   : > { %14430 = vrot.lane.b32.xlu0 %v14349_v16, %s18426_s8 }
0x1665   : > { %14435 = vrot.lane.b32.xlu1 %v14354_v58, %s18426_s8 }
0x1668   : > { %14440 = vrot.lane.b32.xlu0 %v14359_v38, %s18426_s8 }
0x1669   : > { %14450 = vrot.lane.b32.xlu1 %v14369_v36, %s18426_s8  ;;  %s18651_s8 = sld [smem:[#allocation31_spill]] }
0x166c   : > { %14445 = vrot.lane.b32.xlu0 %v14349_v16, %s18427_s9 }
0x166d   : > { %14455 = vrot.lane.b32.xlu1 %v14354_v58, %s18427_s9 }
0x1670   : > { %14460 = vrot.lane.b32.xlu0 %v14359_v38, %s18427_s9 }
0x1671   : > { %14470 = vrot.lane.b32.xlu1 %v14369_v36, %s18427_s9  ;;  %s18650_s9 = sld [smem:[#allocation29_spill]] }
0x1674   : > { %14465 = vrot.lane.b32.xlu0 %v14349_v16, %s18428_s10 }
0x1675   : > { %14475 = vrot.lane.b32.xlu1 %v14354_v58, %s18428_s10 }
0x1678   : > { %14480 = vrot.lane.b32.xlu0 %v14359_v38, %s18428_s10 }
0x1679   : > { %14490 = vrot.lane.b32.xlu1 %v14369_v36, %s18428_s10  ;;  %s18660_s10 = sld [smem:[#allocation55_spill]] }
0x167c   : > { %14485 = vrot.lane.b32.xlu0 %v14349_v16, %s18429_s11 }
0x167d   : > { %14495 = vrot.lane.b32.xlu1 %v14354_v58, %s18429_s11 }
0x167f   : > { %p18665_p11 = scmp.ne.s32.totalorder %s18660_s10, 0 }
0x1680   : > { %14500 = vrot.lane.b32.xlu0 %v14359_v38, %s18429_s11 }
0x1681   : > { %14505 = vrot.lane.b32.xlu1 %v14369_v36, %s18429_s11  ;;  %s10698_s11 = sshll.u32 %s1211_s6, 5 }
0x1682   : > { %s1213_s2 = scalar_lea.vmem [#allocation16], %s10698_s11  ;;  %s18056_s11 = scalar_lea.sflag [#allocation4], %s1211_s6 }
0x1683   : > { %s10489_s7 = sshll.u32 %s1213_s2, 4  ;;  %s18049_s7 = int_to_ptr.vmem [resolvable:$true] %s10489_s7 }
0x16b2   : > { %v14351_v11 = vpop.permute.xlu0 %14350 }
0x16b3   : > { %v14353_v41 = vunpack.i.h.bf16 %v14351_v11  ;;  %v14352_v31 = vunpack.i.l.bf16 %v14351_v11  ;;  %v14356_v33 = vpop.permute.xlu1 %14355 }
0x16b4   : > { %v14358_v4 = vunpack.i.h.bf16 %v14356_v33  ;;  %v14357_v60 = vunpack.i.l.bf16 %v14356_v33 }
0x16b6   : > { %v9734_v46 = vsel %vm18585_vm7, %v14352_v31, %v14357_v60  ;;  %v9735_v30 = vsel %vm18586_vm9, %v14353_v41, %v14358_v4  ;;  %v9738_v42 = vsel %vm18587_vm2, %v14357_v60, %v14352_v31  ;;  %v9739_v20 = vsel %vm18588_vm11, %v14358_v4, %v14353_v41  ;;  %vm18591_vm7 = vmmov %vm18587_vm2 }
0x16b7   : > { %v11395_v29 = vpack.c.bf16 %v9735_v30, %v9734_v46  ;;  %v11398_v52 = vpack.c.bf16 %v9739_v20, %v9738_v42  ;;  %vm18592_vm9 = vmmov %vm18587_vm2  ;;  %vm18593_vm2 = vcmp.lt.s32.totalorder %v18433_v3, 16 }
0x16b8   : > { %vm18594_vm11 = vmmov %vm18593_vm2 }
0x16b9   : > { %11396 = vmatprep.subr.msk.bf16.mxu1 %vm17186_vm12, %v11395_v29 }
0x16ba   : > { %v14361_v0 = vpop.permute.xlu0 %14360  ;;  %11399 = vmatpush1.bf16.msk.msra.mxu1 %vm17203_vm3, %v11398_v52 }
0x16bb   : > { %v14363_v10 = vunpack.i.h.bf16 %v14361_v0  ;;  %v14362_v16 = vunpack.i.l.bf16 %v14361_v0  ;;  %v14371_v17 = vpop.permute.xlu1 %14370 }
0x16bc   : > { %v14373_v9 = vunpack.i.h.bf16 %v14371_v17  ;;  %v14372_v59 = vunpack.i.l.bf16 %v14371_v17 }
0x16be   : > { %v9736_v58 = vsel %vm18589_vm14, %v14362_v16, %v14372_v59  ;;  %v9737_v50 = vsel %vm18590_vm4, %v14363_v10, %v14373_v9  ;;  %v9740_v56 = vsel %vm18591_vm7, %v14372_v59, %v14362_v16  ;;  %v9741_v61 = vsel %vm18592_vm9, %v14373_v9, %v14363_v10  ;;  %v14366_v1 = vpop.permute.xlu0 %14365  ;;  %vm18595_vm14 = vmmov %vm18593_vm2 }
0x16bf   : > { %v11401_v43 = vpack.c.bf16 %v9737_v50, %v9736_v58  ;;  %v11404_v14 = vpack.c.bf16 %v9741_v61, %v9740_v56  ;;  %v14368_v12 = vunpack.i.h.bf16 %v14366_v1  ;;  %v14367_v27 = vunpack.i.l.bf16 %v14366_v1  ;;  %v14376_v25 = vpop.permute.xlu1 %14375  ;;  %vm18596_vm4 = vmmov %vm18593_vm2 }
0x16c0   : > { %v14378_v38 = vunpack.i.h.bf16 %v14376_v25  ;;  %v14377_v36 = vunpack.i.l.bf16 %v14376_v25  ;;  %vm18597_vm7 = vmmov %vm18593_vm2 }
0x16c1   : > { %11402 = vmatprep.subr.msk.bf16.mxu1 %vm17186_vm12, %v11401_v43  ;;  %vm18598_vm9 = vmmov %vm18593_vm2 }
0x16c2   : > { %v9770_v23 = vsel %vm18593_vm2, %v14377_v36, %v14367_v27  ;;  %v9771_v13 = vsel %vm18594_vm11, %v14378_v38, %v14368_v12  ;;  %v14381_v57 = vpop.permute.xlu0 %14380  ;;  %11405 = vmatpush1.bf16.msk.msra.mxu1 %vm17203_vm3, %v11404_v14  ;;  %v9766_v47 = vsel %vm18595_vm14, %v14367_v27, %v14377_v36  ;;  %v9767_v26 = vsel %vm18596_vm4, %v14368_v12, %v14378_v38  ;;  %vm18599_vm3 = vmmov %vm18593_vm2 }
0x16c3   : > { %v11407_v62 = vpack.c.bf16 %v9771_v13, %v9770_v23  ;;  %v14383_v51 = vunpack.i.h.bf16 %v14381_v57  ;;  %v14382_v32 = vunpack.i.l.bf16 %v14381_v57  ;;  %v14391_v11 = vpop.permute.xlu1 %14390  ;;  %v9979_v41 = vpack.c.bf16 %v9767_v26, %v9766_v47 }
0x16c4   : > { %v14393_v31 = vunpack.i.h.bf16 %v14391_v11  ;;  %v14392_v33 = vunpack.i.l.bf16 %v14391_v11  ;;  %vm18600_vm11 = vcmp.lt.s32.totalorder %v18433_v3, 15 }
0x16c5   : > { %10056 = vmatprep.subr.bf16.mxu1 %v9979_v41  ;;  %vm18601_vm14 = vmmov %vm18600_vm11 }
0x16c6   : > { %v9772_v4 = vsel %vm18597_vm7, %v14392_v33, %v14382_v32  ;;  %v9773_v18 = vsel %vm18598_vm9, %v14393_v31, %v14383_v51  ;;  %v14386_v60 = vpop.permute.xlu0 %14385  ;;  %11408 = vmatpush1.bf16.msk.msra.mxu1 %vm17266_vm5, %v11407_v62  ;;  %v9768_v46 = vsel %vm18599_vm3, %v14382_v32, %v14392_v33  ;;  %v9769_v30 = vsel %vm18593_vm2, %v14383_v51, %v14393_v31  ;;  %vm18602_vm4 = vmmov %vm18600_vm11 }
0x16c7   : > { %v11410_v42 = vpack.c.bf16 %v9773_v18, %v9772_v4  ;;  %v14388_v20 = vunpack.i.h.bf16 %v14386_v60  ;;  %v14387_v29 = vunpack.i.l.bf16 %v14386_v60  ;;  %v14396_v52 = vpop.permute.xlu1 %14395  ;;  %v9981_v0 = vpack.c.bf16 %v9769_v30, %v9768_v46  ;;  %vm18603_vm7 = vmmov %vm18602_vm4 }
0x16c8   : > { %v14398_v10 = vunpack.i.h.bf16 %v14396_v52  ;;  %v14397_v16 = vunpack.i.l.bf16 %v14396_v52  ;;  %vm18604_vm9 = vmmov %vm18602_vm4 }
0x16c9   : > { %10058 = vmatprep.subr.bf16.mxu1 %v9981_v0  ;;  %vm18605_vm3 = vmmov %vm18602_vm4 }
0x16ca   : > { %v9798_v17 = vsel %vm18600_vm11, %v14387_v29, %v14397_v16  ;;  %v9799_v9 = vsel %vm18601_vm14, %v14388_v20, %v14398_v10  ;;  %v9802_v59 = vsel %vm18602_vm4, %v14397_v16, %v14387_v29  ;;  %v9803_v58 = vsel %vm18603_vm7, %v14398_v10, %v14388_v20  ;;  %v14401_v50 = vpop.permute.xlu0 %14400  ;;  %11411 = vmatpush1.bf16.msk.msra.mxu1 %vm17266_vm5, %v11410_v42  ;;  %vm18606_vm2 = vmmov %vm18605_vm3 }
0x16cb   : > { %v11413_v56 = vpack.c.bf16 %v9799_v9, %v9798_v17  ;;  %v11416_v61 = vpack.c.bf16 %v9803_v58, %v9802_v59  ;;  %v14403_v1 = vunpack.i.h.bf16 %v14401_v50  ;;  %v14402_v43 = vunpack.i.l.bf16 %v14401_v50  ;;  %v14411_v14 = vpop.permute.xlu1 %14410  ;;  %vm18607_vm5 = vmmov %vm18606_vm2 }
0x16cc   : > { %v14413_v12 = vunpack.i.h.bf16 %v14411_v14  ;;  %v14412_v27 = vunpack.i.l.bf16 %v14411_v14  ;;  %vm18608_vm11 = vcmp.lt.s32.totalorder %v18433_v3, 1 }
0x16cd   : > { %11414 = vmatprep.subr.msk.bf16.mxu1 %vm17303_vm6, %v11413_v56  ;;  %vm18609_vm14 = vmmov %vm18608_vm11 }
0x16ce   : > { %v9800_v25 = vsel %vm18604_vm9, %v14402_v43, %v14412_v27  ;;  %v9801_v38 = vsel %vm18605_vm3, %v14403_v1, %v14413_v12  ;;  %v9804_v49 = vsel %vm18606_vm2, %v14412_v27, %v14402_v43  ;;  %v9805_v36 = vsel %vm18607_vm5, %v14413_v12, %v14403_v1  ;;  %v14406_v23 = vpop.permute.xlu0 %14405  ;;  %11417 = vmatpush1.bf16.msk.msra.mxu1 %vm17320_vm13, %v11416_v61  ;;  %vm18610_vm4 = vmmov %vm18608_vm11 }
0x16cf   : > { %v11419_v13 = vpack.c.bf16 %v9801_v38, %v9800_v25  ;;  %v11422_v57 = vpack.c.bf16 %v9805_v36, %v9804_v49  ;;  %v14408_v47 = vunpack.i.h.bf16 %v14406_v23  ;;  %v14407_v26 = vunpack.i.l.bf16 %v14406_v23  ;;  %v14416_v62 = vpop.permute.xlu1 %14415  ;;  %vm18611_vm7 = vmmov %vm18610_vm4 }
0x16d0   : > { %v14418_v51 = vunpack.i.h.bf16 %v14416_v62  ;;  %v14417_v32 = vunpack.i.l.bf16 %v14416_v62  ;;  %vm18612_vm9 = vmmov %vm18610_vm4  ;;  %vm18616_vm5 = vcmp.lt.s32.totalorder %v18433_v3, 127 }
0x16d1   : > { %11420 = vmatprep.subr.msk.bf16.mxu1 %vm17303_vm6, %v11419_v13  ;;  %vm18613_vm3 = vmmov %vm18610_vm4 }
0x16d2   : > { %v9830_v11 = vsel %vm18608_vm11, %v14407_v26, %v14417_v32  ;;  %v9831_v41 = vsel %vm18609_vm14, %v14408_v47, %v14418_v51  ;;  %v9834_v31 = vsel %vm18610_vm4, %v14417_v32, %v14407_v26  ;;  %v9835_v33 = vsel %vm18611_vm7, %v14418_v51, %v14408_v47  ;;  %v14421_v4 = vpop.permute.xlu0 %14420  ;;  %11423 = vmatpush1.bf16.msk.msra.mxu1 %vm17320_vm13, %v11422_v57  ;;  %vm18614_vm2 = vmmov %vm18613_vm3 }
0x16d3   : > { %v11425_v18 = vpack.c.bf16 %v9831_v41, %v9830_v11  ;;  %v11428_v60 = vpack.c.bf16 %v9835_v33, %v9834_v31  ;;  %v14423_v46 = vunpack.i.h.bf16 %v14421_v4  ;;  %v14422_v30 = vunpack.i.l.bf16 %v14421_v4  ;;  %v14426_v42 = vpop.permute.xlu1 %14425  ;;  %vm18615_vm13 = vmmov %vm18614_vm2 }
0x16d4   : > { %v14428_v20 = vunpack.i.h.bf16 %v14426_v42  ;;  %v14427_v29 = vunpack.i.l.bf16 %v14426_v42  ;;  %vm18617_vm11 = vmmov %vm18616_vm5 }
0x16d5   : > { %11426 = vmatprep.subr.msk.bf16.mxu1 %vm17186_vm12, %v11425_v18  ;;  %vm18619_vm14 = vmmov %vm18616_vm5 }
0x16d6   : > { %v9832_v52 = vsel %vm18612_vm9, %v14422_v30, %v14427_v29  ;;  %v9833_v0 = vsel %vm18613_vm3, %v14423_v46, %v14428_v20  ;;  %v9836_v22 = vsel %vm18614_vm2, %v14427_v29, %v14422_v30  ;;  %v9837_v10 = vsel %vm18615_vm13, %v14428_v20, %v14423_v46  ;;  %v14431_v16 = vpop.permute.xlu0 %14430  ;;  %11429 = vmatpush1.bf16.msk.msra.mxu1 %vm17375_vm0, %v11428_v60  ;;  %vm18620_vm4 = vmmov %vm18616_vm5 }
0x16d7   : > { %v11431_v17 = vpack.c.bf16 %v9833_v0, %v9832_v52  ;;  %v11434_v9 = vpack.c.bf16 %v9837_v10, %v9836_v22  ;;  %v14436_v59 = vpop.permute.xlu1 %14435  ;;  %v14433_v58 = vunpack.i.h.bf16 %v14431_v16  ;;  %v14432_v50 = vunpack.i.l.bf16 %v14431_v16  ;;  %vm18621_vm7 = vmmov %vm18620_vm4 }
0x16d8   : > { %v14438_v56 = vunpack.i.h.bf16 %v14436_v59  ;;  %v14437_v61 = vunpack.i.l.bf16 %v14436_v59  ;;  %vm18622_vm9 = vmmov %vm18620_vm4  ;;  %vm18624_vm2 = vcmp.lt.s32.totalorder %v18433_v3, 113 }
0x16d9   : > { %11432 = vmatprep.subr.msk.bf16.mxu1 %vm17186_vm12, %v11431_v17  ;;  %vm18618_vm12 = vmmov %vm18616_vm5 }
0x16da   : > { %v14441_v1 = vpop.permute.xlu0 %14440  ;;  %11435 = vmatpush1.bf16.msk.msra.mxu1 %vm17375_vm0, %v11434_v9  ;;  %v9866_v14 = vsel %vm18616_vm5, %v14437_v61, %v14432_v50  ;;  %v9867_v12 = vsel %vm18617_vm11, %v14438_v56, %v14433_v58  ;;  %v9862_v8 = vsel %vm18618_vm12, %v14432_v50, %v14437_v61  ;;  %v9863_v7 = vsel %vm18619_vm14, %v14433_v58, %v14438_v56  ;;  %vm18623_vm3 = vmmov %vm18620_vm4 }
0x16db   : > { %v14451_v43 = vpop.permute.xlu1 %14450  ;;  %10068 = vmatprep.subr.bf16.mxu1 %v9991_v5  ;;  %v14443_v27 = vunpack.i.h.bf16 %v14441_v1  ;;  %v14442_v25 = vunpack.i.l.bf16 %v14441_v1  ;;  %v11437_v5 = vpack.c.bf16 %v9867_v12, %v9866_v14  ;;  %v11440_v34 = vpack.c.bf16 %v9863_v7, %v9862_v8  ;;  %vm18625_vm13 = vmmov %vm18624_vm2 }
0x16dc   : > { %v14453_v38 = vunpack.i.h.bf16 %v14451_v43  ;;  %v14452_v39 = vunpack.i.l.bf16 %v14451_v43  ;;  %vm18626_vm5 = vmmov %vm18624_vm2 }
0x16dd   : > { %vm18627_vm11 = vmmov %vm18624_vm2 }
0x16de   : > { %v14446_v49 = vpop.permute.xlu0 %14445  ;;  %10069 = vmatpush1.bf16.msra.mxu1 %v9990_v37  ;;  %v9868_v6 = vsel %vm18620_vm4, %v14452_v39, %v14442_v25  ;;  %v9869_v48 = vsel %vm18621_vm7, %v14453_v38, %v14443_v27  ;;  %v9865_v26 = vsel %vm18623_vm3, %v14443_v27, %v14453_v38  ;;  %vm18628_vm12 = vmmov %vm18624_vm2  ;;  %vm18632_vm7 = vcmp.lt.s32.totalorder %v18433_v3, 112 }
0x16df   : > { %v14456_v36 = vpop.permute.xlu1 %14455  ;;  %10070 = vmatprep.subr.bf16.mxu1 %v9993_v24  ;;  %v14448_v23 = vunpack.i.h.bf16 %v14446_v49  ;;  %v14447_v13 = vunpack.i.l.bf16 %v14446_v49  ;;  %v9864_v24 = vsel %vm18622_vm9, %v14442_v25, %v14452_v39  ;;  %v11443_v62 = vpack.c.bf16 %v9869_v48, %v9868_v6  ;;  %vm18629_vm14 = vmmov %vm18624_vm2 }
0x16e0   : > { %v14458_v57 = vunpack.i.h.bf16 %v14456_v36  ;;  %v14457_v47 = vunpack.i.l.bf16 %v14456_v36  ;;  %v11446_v33 = vpack.c.bf16 %v9865_v26, %v9864_v24  ;;  %vm18631_vm4 = vmmov %vm18624_vm2 }
0x16e1   : > { %vm18633_vm9 = vmmov %vm18632_vm7 }
0x16e2   : > { %v14461_v37 = vpop.permute.xlu0 %14460  ;;  %10071 = vmatpush1.bf16.msra.mxu1 %v9992_v44  ;;  %v9898_v51 = vsel %vm18624_vm2, %v14457_v47, %v14447_v13  ;;  %v9899_v32 = vsel %vm18625_vm13, %v14458_v57, %v14448_v23  ;;  %v9894_v4 = vsel %vm18626_vm5, %v14447_v13, %v14457_v47  ;;  %v9895_v18 = vsel %vm18627_vm11, %v14448_v23, %v14458_v57  ;;  %vm18634_vm3 = vmmov %vm18632_vm7 }
0x16e3   : > { %v14471_v40 = vpop.permute.xlu1 %14470  ;;  %11438 = vmatprep.subr.msk.bf16.mxu1 %vm17303_vm6, %v11437_v5  ;;  %v14463_v15 = vunpack.i.h.bf16 %v14461_v37  ;;  %v14462_v53 = vunpack.i.l.bf16 %v14461_v37  ;;  %v11449_v60 = vpack.c.bf16 %v9899_v32, %v9898_v51  ;;  %v11452_v22 = vpack.c.bf16 %v9895_v18, %v9894_v4  ;;  %v10164_v4 = vld [vmem:[%s18646_s5] sm:$0xff] }
0x16e4   : > { %v14473_v44 = vunpack.i.h.bf16 %v14471_v40  ;;  %v14472_v11 = vunpack.i.l.bf16 %v14471_v40  ;;  %v13750_v18 = vpack.c.bf16 %v10165_v21, %v10164_v4 }
0x16e6   : > { %v14466_v41 = vpop.permute.xlu0 %14465  ;;  %11441 = vmatpush1.bf16.msk.msra.mxu1 %vm17470_vm10, %v11440_v34  ;;  %v9900_v29 = vsel %vm18628_vm12, %v14472_v11, %v14462_v53  ;;  %v9901_v52 = vsel %vm18629_vm14, %v14473_v44, %v14463_v15  ;;  %v9897_v16 = vsel %vm18631_vm4, %v14463_v15, %v14473_v44  ;;  %vm18640_vm12 = vcmp.lt.s32.totalorder %v18433_v3, 111 }
0x16e7   : > { %v14476_v31 = vpop.permute.xlu1 %14475  ;;  %11444 = vmatprep.subr.msk.bf16.mxu1 %vm17303_vm6, %v11443_v62  ;;  %v14468_v46 = vunpack.i.h.bf16 %v14466_v41  ;;  %v14467_v30 = vunpack.i.l.bf16 %v14466_v41  ;;  %vm18630_vm6 = vmmov %vm18624_vm2  ;;  %v11455_v17 = vpack.c.bf16 %v9901_v52, %v9900_v29  ;;  %v10035_v3 = vcombine.high %v17792_v55, %v17792_v55  ;;  %v10185_v29 = vld [vmem:[%s18646_s5 + $0xa8] sm:$0xff]  ;;  %v10168_v52 = vld [vmem:[%s18646_s5 + $0x20] sm:$0xff] }
0x16e8   : > { %v14478_v42 = vunpack.i.h.bf16 %v14476_v31  ;;  %v14477_v20 = vunpack.i.l.bf16 %v14476_v31  ;;  %v9896_v10 = vsel %vm18630_vm6, %v14462_v53, %v14472_v11  ;;  %vm18635_vm2 = vmmov %vm18634_vm3  ;;  %v10180_v31 = vld [vmem:[%s18646_s5 + $0x80] sm:$0xff] }
0x16e9   : > { %v11458_v14 = vpack.c.bf16 %v9897_v16, %v9896_v10  ;;  %vm18636_vm13 = vmmov %vm18635_vm2  ;;  %v10187_v10 = vld [vmem:[%s18646_s5 + $0xb8] sm:$0xff] }
0x16ea   : > { %v14481_v45 = vpop.permute.xlu0 %14480  ;;  %11447 = vmatpush1.bf16.msk.msra.mxu1 %vm17470_vm10, %v11446_v33  ;;  %v9930_v9 = vsel %vm18632_vm7, %v14477_v20, %v14467_v30  ;;  %v9931_v59 = vsel %vm18633_vm9, %v14478_v42, %v14468_v46  ;;  %v9926_v12 = vsel %vm18634_vm3, %v14467_v30, %v14477_v20  ;;  %v9927_v27 = vsel %vm18635_vm2, %v14468_v46, %v14478_v42  ;;  %vm18637_vm5 = vmmov %vm18635_vm2  ;;  %v10181_v33 = vld [vmem:[%s18646_s5 + $0x88] sm:$0xff]  ;;  %v10166_v46 = vld [vmem:[%s18646_s5 + $0x10] sm:$0xff] }
0x16eb   : > { %v14491_v0 = vpop.permute.xlu1 %14490  ;;  %11450 = vmatprep.subr.msk.bf16.mxu1 %vm17537_vm8, %v11449_v60  ;;  %v14483_v58 = vunpack.i.h.bf16 %v14481_v45  ;;  %v14482_v50 = vunpack.i.l.bf16 %v14481_v45  ;;  %v11461_v25 = vpack.c.bf16 %v9931_v59, %v9930_v9  ;;  %v10002_v23 = vpack.c.bf16 %v9927_v27, %v9926_v12  ;;  %vm18639_vm11 = vmmov %vm18635_vm2  ;;  %v10183_v60 = vld [vmem:[%s18646_s5 + $0x98] sm:$0xff]  ;;  %v10184_v20 = vld [vmem:[%s18646_s5 + $0xa0] sm:$0xff] }
0x16ec   : > { %v14493_v56 = vunpack.i.h.bf16 %v14491_v0  ;;  %v14492_v61 = vunpack.i.l.bf16 %v14491_v0  ;;  %vm18641_vm14 = vmmov %vm18640_vm12  ;;  %vm18649_vm3 = vcmask 261120   ;;  %v10167_v30 = vld [vmem:[%s18646_s5 + $0x18] sm:$0xff]  ;;  %v13756_v45 = vpack.c.bf16 %v10185_v29, %v10184_v20  ;;  %v10169_v0 = vld [vmem:[%s18646_s5 + $0x28] sm:$0xff] }
0x16ed   : > { %v13754_v42 = vpack.c.bf16 %v10167_v30, %v10166_v46  ;;  %v13758_v16 = vpack.c.bf16 %v10169_v0, %v10168_v52  ;;  %v10170_v9 = vld [vmem:[%s18646_s5 + $0x30] sm:$0xff]  ;;  %v10171_v59 = vld [vmem:[%s18646_s5 + $0x38] sm:$0xff]  ;;  %v10148_v52 = vld [vmem:[%s18650_s9] sm:$0xff] }
0x16ee   : > { %v14486_v1 = vpop.permute.xlu0 %14485  ;;  %11453 = vmatpush1.bf16.msk.msra.mxu1 %vm17375_vm0, %v11452_v22  ;;  %v9932_v8 = vsel %vm18636_vm13, %v14492_v61, %v14482_v50  ;;  %v9933_v7 = vsel %vm18637_vm5, %v14493_v56, %v14483_v58  ;;  %v9929_v57 = vsel %vm18639_vm11, %v14483_v58, %v14493_v56  ;;  %v10186_v22 = vld [vmem:[%s18646_s5 + $0xb0] sm:$0xff]  ;;  %v10188_v58 = vld [vmem:[%s18646_s5 + $0xc0] sm:$0xff]  ;;  %v13762_v56 = vpack.c.bf16 %v10171_v59, %v10170_v9  ;;  %v10191_v12 = vld [vmem:[%s18646_s5 + $0xd8] sm:$0xff] }
0x16ef   : > { %v14496_v43 = vpop.permute.xlu1 %14495  ;;  %11456 = vmatprep.subr.msk.bf16.mxu1 %vm17537_vm8, %v11455_v17  ;;  %v14488_v38 = vunpack.i.h.bf16 %v14486_v1  ;;  %v14487_v39 = vunpack.i.l.bf16 %v14486_v1  ;;  %vm18638_vm8 = vmmov %vm18635_vm2  ;;  %v11464_v47 = vpack.c.bf16 %v9933_v7, %v9932_v8  ;;  %v13760_v17 = vpack.c.bf16 %v10187_v10, %v10186_v22  ;;  %v10172_v1 = vld [vmem:[%s18646_s5 + $0x40] sm:$0xff] }
0x16f0   : > { %v14498_v49 = vunpack.i.h.bf16 %v14496_v43  ;;  %v14497_v36 = vunpack.i.l.bf16 %v14496_v43  ;;  %v9928_v13 = vsel %vm18638_vm8, %v14482_v50, %v14492_v61  ;;  %v10189_v50 = vld [vmem:[%s18646_s5 + $0xc8] sm:$0xff]  ;;  %v10271_v9 = vld [vmem:[%s18651_s8] sm:$0xff] }
0x16f1   : > { %v10004_v24 = vpack.c.bf16 %v9929_v57, %v9928_v13  ;;  %v13764_v61 = vpack.c.bf16 %v10189_v50, %v10188_v58  ;;  %v10173_v43 = vld [vmem:[%s18646_s5 + $0x48] sm:$0xff]  ;;  %v10195_v13 = vld [vmem:[%s18646_s5 + $0xf8] sm:$0xff] }
0x16f2   : > { %11459 = vmatpush1.bf16.msk.msra.mxu1 %vm17375_vm0, %v11458_v14  ;;  %v14501_v28 = vpop.permute.xlu0 %14500  ;;  %v9962_v6 = vsel %vm18640_vm12, %v14497_v36, %v14487_v39  ;;  %v9963_v2 = vsel %vm18641_vm14, %v14498_v49, %v14488_v38  ;;  %vm18642_vm0 = vmmov %vm18640_vm12  ;;  %v10190_v14 = vld [vmem:[%s18646_s5 + $0xd0] sm:$0xff]  ;;  %v13766_v27 = vpack.c.bf16 %v10173_v43, %v10172_v1  ;;  %v10372_v1 = vld [vmem:[#allocation8] sm:$0xff] }
0x16f3   : > { %v14506_v5 = vpop.permute.xlu1 %14505  ;;  %11462 = vmatprep.subr.msk.bf16.mxu1 %vm17612_vm15, %v11461_v25  ;;  %v14503_v48 = vunpack.i.h.bf16 %v14501_v28  ;;  %v14502_v37 = vunpack.i.l.bf16 %v14501_v28  ;;  %v9958_v26 = vsel %vm18642_vm0, %v14487_v39, %v14497_v36  ;;  %vm18643_vm6 = vmmov %vm18642_vm0  ;;  %v11467_v51 = vpack.c.bf16 %v9963_v2, %v9962_v6  ;;  %v10175_v39 = vld [vmem:[%s18646_s5 + $0x58] sm:$0xff]  ;;  %v10193_v36 = vld [vmem:[%s18646_s5 + $0xe8] sm:$0xff] }
0x16f4   : > { %v14508_v40 = vunpack.i.h.bf16 %v14506_v5  ;;  %v14507_v34 = vunpack.i.l.bf16 %v14506_v5  ;;  %v9959_v62 = vsel %vm18643_vm6, %v14488_v38, %v14498_v49  ;;  %vm18644_vm4 = vmmov %vm18642_vm0  ;;  %v13768_v25 = vpack.c.bf16 %v10191_v12, %v10190_v14  ;;  %v10174_v38 = vld [vmem:[%s18646_s5 + $0x50] sm:$0xff]  ;;  %v10192_v49 = vld [vmem:[%s18646_s5 + $0xe0] sm:$0xff] }
0x16f5   : > { %vm18645_vm7 = vmmov %vm18642_vm0  ;;  %v11470_v35 = vpack.c.bf16 %v9959_v62, %v9958_v26  ;;  %v13770_v8 = vpack.c.bf16 %v10175_v39, %v10174_v38  ;;  %v13772_v7 = vpack.c.bf16 %v10193_v36, %v10192_v49  ;;  %v10176_v28 = vld [vmem:[%s18646_s5 + $0x60] sm:$0xff]  ;;  %v10177_v5 = vld [vmem:[%s18646_s5 + $0x68] sm:$0xff] }
0x16f6   : > { %10081 = vmatpush1.bf16.msra.mxu1 %v10002_v23  ;;  %v9964_v32 = vsel %vm18644_vm4, %v14507_v34, %v14502_v37  ;;  %v9965_v15 = vsel %vm18645_vm7, %v14508_v40, %v14503_v48  ;;  %vm18648_vm9 = vmmov %vm18642_vm0  ;;  %v10194_v23 = vld [vmem:[%s18646_s5 + $0xf0] sm:$0xff]  ;;  %v13774_v57 = vpack.c.bf16 %v10177_v5, %v10176_v28  ;;  %v10179_v2 = vld [vmem:[%s18646_s5 + $0x78] sm:$0xff] }
0x16f7   : > { %11465 = vmatprep.subr.msk.bf16.mxu1 %vm17612_vm15, %v11464_v47  ;;  %vm18647_vm15 = vmmov %vm18642_vm0  ;;  %v9961_v44 = vsel %vm18648_vm9, %v14503_v48, %v14508_v40  ;;  %v11473_v11 = vpack.c.bf16 %v9965_v15, %v9964_v32  ;;  %v13776_v47 = vpack.c.bf16 %v10195_v13, %v10194_v23  ;;  %v10178_v6 = vld [vmem:[%s18646_s5 + $0x70] sm:$0xff]  ;;  %v10011_v40 = vld [vmem:[#allocation14] sm:$0x3] }
0x16f8   : > { %v9960_v53 = vsel %vm18647_vm15, %v14502_v37, %v14507_v34  ;;  %v13778_v48 = vpack.c.bf16 %v10179_v2, %v10178_v6  ;;  %v10041_v37 = vsub.s32 0, %v17786_v63  ;;  %v10373_v43 = vld [vmem:[#allocation8 + $0x8] sm:$0xff]  ;;  %v10274_v39 = vld [vmem:[%s18651_s8 + $0x18] sm:$0xff]  ;;  %vm18661_vm14 = vmmov %vm18649_vm3 }
0x16f9   : > { %v11476_v41 = vpack.c.bf16 %v9961_v44, %v9960_v53  ;;  %v10273_v38 = vld [vmem:[%s18651_s8 + $0x10] sm:$0xff]  ;;  %vm18662_vm0 = vmmov %vm18649_vm3 }
0x16fa   : > { %10083 = vmatpush1.bf16.msra.mxu1 %v10004_v24  ;;  %v10045_v24 = vsub.s32 1, %v17786_v63  ;;  %vm18663_vm6 = vmmov %vm18662_vm0 }
0x16fb   : > { %11468 = vmatprep.subr.msk.bf16.mxu1 %vm17663_vm1, %v11467_v51  ;;  %v10042_v51 = vrot.slane %v10011_v40, %v10041_v37  ;;  %vm18664_vm4 = vmmov %vm18662_vm0 }
0x16fc   : > { %v10046_v15 = vrot.slane %v10011_v40, %v10045_v24 }
0x16fd   : > { %10085 = vmatmul.mubr.bf16.vlgmr.msra.gmra.mrb[228].mxu1 %v17792_v55  ;;  %v10182_v55 = vld [vmem:[%s18646_s5 + $0x90] sm:$0xff]  ;;  %s18052_s5 = scalar_lea.hbm %s18267_s4, %s11495_s3 }
0x16fe   : > { %11471 = vmatpush1.bf16.msk.msra.mxu1 %vm17470_vm10, %v11470_v35  ;;  %10125 = vmatprep.mubr.bf16.mxu1 %v18583_v54  ;;  %v13748_v54 = vpack.c.bf16 %v10181_v33, %v10180_v31  ;;  %v13752_v19 = vpack.c.bf16 %v10183_v60, %v10182_v55 }
0x16ff   : > { %11474 = vmatprep.subr.msk.bf16.mxu1 %vm17663_vm1, %v11473_v11 }
0x1702   : > { %11477 = vmatpush1.bf16.msk.msra.mxu1 %vm17470_vm10, %v11476_v41  ;;  %vm18652_vm10 = vcmask 130048  }
0x1703   : > { %13749 = vmatprep.subr.bf16.mxu1 %v13748_v54  ;;  %vm18653_vm1 = vmmov %vm18652_vm10 }
0x1704   : > { %vm18654_vm2 = vmmov %vm18653_vm1 }
0x1705   : > { %11478 = vmatmul.mubr.msk.bf16.vlgmr.msra.gmra.mrb[232].mxu1 %vm18649_vm3, %v10035_v3  ;;  %vm18655_vm13 = vmmov %vm18653_vm1 }
0x1706   : > { %13751 = vmatpush3.bf16.msra.mxu1 %v13750_v18  ;;  %vm18656_vm5 = vmmov %vm18653_vm1 }
0x1707   : > { %13753 = vmatprep.subr.bf16.mxu1 %v13752_v19  ;;  %vm18657_vm8 = vmmov %vm18653_vm1 }
0x1708   : > { %vm18658_vm11 = vmmov %vm18653_vm1 }
0x1709   : > { %vm18659_vm12 = vmmov %vm18653_vm1 }
0x170a   : > { %13755 = vmatpush3.bf16.msra.mxu1 %v13754_v42  ;;  %v10149_v42 = vld [vmem:[%s18650_s9 + $0x8] sm:$0xff] }
0x170b   : > { %13757 = vmatprep.subr.bf16.mxu1 %v13756_v45  ;;  %v10151_v45 = vld [vmem:[%s18650_s9 + $0x18] sm:$0xff] }
0x170e   : > { %13759 = vmatpush3.bf16.msra.mxu1 %v13758_v16  ;;  %v10150_v16 = vld [vmem:[%s18650_s9 + $0x10] sm:$0xff]  ;;  %s14829_s9 = sshll.u32 %s14970_s0, 4  ;;  %s14830_s9 = int_to_ptr.vmem [resolvable:$false] %s14829_s9 }
0x170f   : > { %13761 = vmatprep.subr.bf16.mxu1 %v13760_v17  ;;  %s14831_s12 = scalar_lea.vmem %s14830_s9, 1024  ;;  %p14832_p0 = scmp.lt.s32.totalorder %s18049_s7, %s14830_s9 }
0x1712   : > { %13763 = vmatpush3.bf16.msra.mxu1 %v13762_v56 }
0x1713   : > { %13765 = vmatprep.subr.bf16.mxu1 %v13764_v61 }
0x1716   : > { %13767 = vmatpush3.bf16.msra.mxu1 %v13766_v27  ;;  %v13784_v27 = vpack.c.bf16 %v10373_v43, %v10372_v1 }
0x1717   : > { %13769 = vmatprep.subr.bf16.mxu1 %v13768_v25  ;;  %v10272_v25 = vld [vmem:[%s18651_s8 + $0x8] sm:$0xff]  ;;  %s14825_s8 = scalar_lea.vmem %s18049_s7, 512 }
0x1718   : > { %p14826_p8 = scmp.ne.s32.totalorder %s18049_s7, %s14825_s8  ;;  %p14833_p2 = scmp.lt.s32.totalorder %s14831_s12, %s14825_s8 }
0x171a   : > { %13771 = vmatpush3.bf16.msra.mxu1 %v13770_v8  ;;  %p14827_p13 = pnand %p14826_p8, %p18665_p11  ;;  %p14834_p3 = por %p14833_p2, %p14832_p0 }
0x171b   : > { %13773 = vmatprep.subr.bf16.mxu1 %v13772_v7 }
0x171c   : > { %p14828_p1 = pneg %p14827_p13 }
0x171e   : > { %13775 = vmatpush3.bf16.msra.mxu1 %v13774_v57  ;;  %p14835_p4 = pnand %p14834_p3, %p14828_p1 }
0x171f   : > { %13777 = vmatprep.subr.bf16.mxu1 %v13776_v47 }
0x1722   : > { %13779 = vmatpush3.bf16.msra.mxu1 %v13778_v48 }
0x17d0   : > { %v10086_v34 = vpop.f32.mrb[228].mxu1 }
0x17d1   : > { %v10088_v26 = vpop.f32.mrb[229].mxu1  ;;  %v10087_v35 = vadd.f32 %v10086_v34, %v10042_v51 }
0x17d2   : > { %v10090_v62 = vpop.f32.mrb[230].mxu1  ;;  %v10089_v53 = vadd.f32 %v10088_v26, %v10046_v15 }
0x17d3   : > { %v10091_v32 = vpop.f32.mrb[231].mxu1 }
0x17d8   : > { %v10127_v44 = vpop.f32.mrb[232].mxu1 }
0x17d9   : > { %v10128_v11 = vadd.f32 %v10127_v44, %v10087_v35  ;;  %v10129_v41 = vpop.f32.mrb[233].mxu1 }
0x17da   : > { %v10130_v3 = vadd.f32 %v10129_v41, %v10089_v53  ;;  %v10131_v31 = vpop.f32.mrb[234].mxu1 }
0x17db   : > { %v10134_v33 = vadd.f32 1.0, %v10128_v11  ;;  %v10132_v54 = vpop.f32.mrb[235].mxu1 }
0x17dc   : > { %v10135_v4 = vadd.f32 1.0, %v10130_v3 }
0x17dd   : > { %v11479_v21 = vmul.f32 -1.442695, %v10134_v33 }
0x17de   : > { %v11480_v63 = vmul.f32 -1.442695, %v10135_v4 }
0x17df   : > { %14593 = vpow2.f32 %v11479_v21 }
0x17e0   : > { %14595 = vpow2.f32 %v11480_v63 }
0x17e9   : > { %v14594_v18 = vpop.eup %14593 }
0x17ea   : > { %v14596_v55 = vpop.eup %14595  ;;  %v10142_v60 = vadd.f32 1.0, %v14594_v18 }
0x17eb   : > { %v10143_v19 = vadd.f32 1.0, %v14596_v55 }
0x17ec   : > { %14597 = vrcp.f32 %v10142_v60 }
0x17ed   : > { %14599 = vrcp.f32 %v10143_v19 }
0x17f6   : > { %v14598_v46 = vpop.eup %14597 }
0x17f7   : > { %v14600_v30 = vpop.eup %14599  ;;  %v10155_v20 = vrot.slane %v14598_v46, %v10041_v37 }
0x17f8   : > { %v10159_v29 = vrot.slane %v14600_v30, %v10041_v37 }
0x17f9   : > { %v10160_v22 = vmul.f32 %v10155_v20, %v10148_v52  ;;  %v10162_v17 = vmul.f32 %v10155_v20, %v10150_v16 }
0x17fa   : > { %v10161_v0 = vmul.f32 %v10159_v29, %v10149_v42  ;;  %v10163_v10 = vmul.f32 %v10159_v29, %v10151_v45 }
0x17fc   : > { %10260 = vmatprep.mubr.f32.mxu1 %v10161_v0 }
0x17fd   : > { %10261 = vmatmul.mubr.f32.vlgmr.msra.gmra.mrb[226].mxu1 %v10160_v22 }
0x17fe   : > { %10265 = vmatprep.mubr.f32.mxu1 %v10163_v10 }
0x1801   : > { %10266 = vmatmul.mubr.f32.gmra.mrb[236].mxu1 %v10162_v17 }
0x1802   : > { %13340 = vmatprep.mubr.msk.f32.mxu1 %vm18652_vm10, %v10271_v9 }
0x18d0   : > { %v12370_v59 = vpop.f32.mrb[226].mxu1 }
0x18d1   : > { %v12371_v58 = vpop.f32.mrb[227].mxu1 }
0x18d2   : > { %v12372_v50 = vadd.f32 %v12371_v58, %v12370_v59 }
0x18d4   : > { %v12373_v56 = vpop.f32.mrb[236].mxu1 }
0x18d5   : > { %v12374_v61 = vpop.f32.mrb[237].mxu1 }
0x18d6   : > { %v12375_v14 = vadd.f32 %v12374_v61, %v12373_v56 }
0x18d8   : > { %v13780_v12 = vpack.c.bf16 %v12375_v14, %v12372_v50 }
0x18da   : > { %13781 = vmatprep.subr.bf16.mxu1 %v13780_v12 }
0x18db   : > { %13783 = vmatpush3.bf16.msra.mxu1 %v13780_v12 }
0x18dc   : > { %13785 = vmatprep.subr.bf16.mxu1 %v13784_v27 }
0x18de   : > { %13341 = vmatmul.mubr.msk.f32.vlgmr.msra.gmra.mrb[238].mxu1 %vm18653_vm1, %v10272_v25 }
0x18df   : > { %13343 = vmatprep.mubr.msk.f32.mxu1 %vm18654_vm2, %v10273_v38  ;;  %13787 = vmatpush3.bf16.msra.mxu1 %v13784_v27 }
0x18e2   : > { %13344 = vmatmul.mubr.msk.f32.gmra.mrb[240].mxu1 %vm18655_vm13, %v10274_v39 }
0x19b1   : > { %v13342_v49 = vpop.f32.mrb[238].mxu1 }
0x19b2   : > { %v10353_v36 = vpop.f32.mrb[239].mxu1 }
0x19b3   : > { %13350 = vmatprep.mubr.msk.f32.mxu1 %vm18656_vm5, %v10353_v36 }
0x19b4   : > { %13351 = vmatmul.mubr.msk.f32.vlgmr.msra.gmra.mrb[242].mxu1 %vm18657_vm8, %v13342_v49 }
0x19b5   : > { %v13345_v8 = vpop.f32.mrb[240].mxu1 }
0x19b6   : > { %v10363_v7 = vpop.f32.mrb[241].mxu1 }
0x19b7   : > { %13353 = vmatprep.mubr.msk.f32.mxu1 %vm18658_vm11, %v10363_v7 }
0x19b8   : > { %13354 = vmatmul.mubr.msk.f32.gmra.mrb[244].mxu1 %vm18659_vm12, %v13345_v8 }
0x1a87   : > { %v13352_v28 = vpop.f32.mrb[242].mxu1 }
0x1a88   : > { %10472 = vst.msk [vmem:[%s1213_s2 + $0x8] sm:$0xff] %vm18661_vm14, %v13352_v28  ;;  %v10452_v5 = vpop.f32.mrb[243].mxu1 }
0x1a89   : > { %10471 = vst.msk [vmem:[%s1213_s2] sm:$0xff] %vm18662_vm0, %v10452_v5 }
0x1a8b   : > { %v13355_v23 = vpop.f32.mrb[244].mxu1 }
0x1a8c   : > { %10474 = vst.msk [vmem:[%s1213_s2 + $0x18] sm:$0xff] %vm18663_vm6, %v13355_v23  ;;  %v10462_v13 = vpop.f32.mrb[245].mxu1 }
0x1a8d   : > { %10473 = vst.msk [vmem:[%s1213_s2 + $0x10] sm:$0xff] %vm18664_vm4, %v10462_v13 }
0x1a8e   : > { %14838 = shalt.err (!%p14835_p4)
}
0x1a8f   : > { %s14839_s3 = scalar_lea.hbm %s18052_s5, 512  ;;  %s14843_s6 = scalar_lea.hbm %s18267_s4, 1024 }
0x1a90   : > { %p14840_p12 = scmp.ne.s32.totalorder %s18052_s5, %s14839_s3  ;;  %p14844_p9 = scmp.lt.u32.totalorder %s18052_s5, %s18267_s4 }
0x1a91   : > { %p14845_p10 = scmp.lt.u32.totalorder %s14843_s6, %s14839_s3  ;;  %p14847_p8 = scmp.lt.u32.totalorder %s14839_s3, %s18052_s5 }
0x1a92   : > { %p14841_p5 = pnand %p14840_p12, %p18665_p11 }
0x1a93   : > { %p14846_p7 = por %p14845_p10, %p14844_p9 }
0x1a94   : > { %p14842_p6 = pneg %p14841_p5 }
0x1a95   : > { %p14848_p13 = por %p14847_p8, %p14846_p7 }
0x1a97   : > { %p14849_p1 = pnand %p14848_p13, %p14842_p6 }
0x1a99   : > { %14852 = shalt.err (!%p14849_p1)
}
0x1a9a   : > { %s14971_s12 = smov 128   ;;  %s14972_s9 = smov 8  }
0x1a9b   : > { %13845 = dma.vmem_to_hbm [thread:$0]  (%p18665_p11), %s18049_s7, 512, %s18052_s5, %s18056_s11, %s14971_s12, %s14971_s12, %s14972_s9  }
0x1a9c PF: > { %s18666_s8 = sld [smem:[#allocation52_spill]]  ;;  %s18667_s2 = sld [smem:[#allocation50_spill]] }
0x1a9d   : > { %s18668_s0 = sld [smem:[#allocation56_spill]] }
0x1aa2   : > { %p13892_p0 = scmp.ge.s32.totalorder %s18666_s8, 2  ;;  %s10504_s4 = sand.u32 1, %s18667_s2  }
0x1aa3   : > { %p18669_p2 = scmp.ne.s32.totalorder %s18668_s0, 0  ;;  %s10505_s3 = scalar_lea.sflag [#allocation4], %s10504_s4 }
0x1aa5   : > { %p13873_p3 = pnand %p13892_p0, %p18669_p2 }
0x1aa7   : > { %14890 = dma.done.wait (!%p13873_p3), %s10505_s3, 512  }
0x1aa8   : > { %14892 = vsyncadd (!%p13873_p3), %s10505_s3, 4294966784  ;;  %s18670_s7 = sld [smem:[#allocation53_spill]]  ;;  %s18671_s6 = sld [smem:[#allocation51_spill]] }
0x1aa9   : > { %s18672_s2 = sld [smem:[#allocation54_spill]]  ;;  %18673 = sst [smem:[#allocation50_spill]] %s14899_s1 }
0x1aae   : > { %p88_p4 = scmp.ge.s32.totalorder %s18670_s7, 4   ;;  %s18674_s1 = smov %s18671_s6 }
0x1ab0   :  { %90 = sbr.rel (!%p88_p4) target bundleno = 79 (0x4f), region = 292 }
0x1ab7   :  { %10510 = vsyncpa [#allocation3], 1 }
0x1ab8   :  { %10512 = vsyncpa [#allocation3 + $0x1], 1 }
0x1ab9   :  { %10513 = vsyncpa [#allocation6], 1 }
0x1aba   :  { %10514 = vsyncpa [#allocation9], 1 }
0x1abb   :  { %10515 = vsyncpa [#allocation12], 1 }
0x1abc   :  { %10516 = vsyncpa [#allocation15], 1 }
0x1abd   :  { %10517 = vsyncpa [#allocation4], 1 }
0x1abe   :  { %10519 = vsyncpa [#allocation4 + $0x1], 1 }

</bundles_post_ra>
